<compile_context>
chip_gen: v7x
topology: tpu7x:2x2x1
jax: 0.10.0
libtpu: 0.0.40
codegen_flags: <defaults>
</compile_context>

<pallas_src>
import functools

import numpy as np
import jax
import jax.numpy as jnp
from jax.experimental import pallas as pl
from jax.experimental.pallas import tpu as pltpu

# Static network dims for a (N, 1, 28, 28) input, as implied by the module:
# 28 -conv3-> 26 -pool2-> 13 -conv3-> 11 -pool2-> 5 -conv3-> 3 -pool2-> 1,
# channels 1 -> 10 -> 15 -> 7, then view(-1, 5) -> Linear(5, 30) -> Linear(30, 10).
C1, C2, C3 = 10, 15, 7
NB = 8          # image count padded to 8 so every in-kernel sublane slice is 8-aligned
H1 = 10         # rows/cols of the layer-1 pooled output that actually reach the output
H2 = 8          # rows/cols of the layer-2 conv output that are needed (-> 4 pooled)
P2 = 4          # rows/cols of the layer-2 pooled output that are needed
NCLS = 10
LANES = 128


def _flatten_pieces(n_imgs):
    """Static decomposition of torch's x.view(-1, 5) on the (N, 7, 1, 1) trunk output.

    Each piece copies l3[n, c0:c0+take] into fc_in[i, j0:j0+take].
    """
    pieces = []
    for n in range(n_imgs):
        c = 0
        while c < C3:
            flat = C3 * n + c
            i, j = flat // 5, flat % 5
            take = min(C3 - c, 5 - j)
            pieces.append((n, i, c, j, take))
            c += take
    return pieces


def _net5_kernel(x1_ref, w1_ref, b1_ref, w2_ref, b2_ref, w3_ref, b3_ref,
                 q_ref, fw1_ref, fb1_ref, fw2_ref, fb2_ref, o_ref,
                 *, pieces, n_rows):
    """Whole Net5 forward pass; every intermediate stays in VMEM/vregs."""
    f32 = jnp.float32

    # ---- block 1: conv1(3x3) -> maxpool(2) -> relu --------------------------------
    # x1 holds, for each of the four 2x2-pool-window positions, the 3x3 patches of the
    # 10x10 pooled-output subgrid, laid out (4*H1, H1*NB, 9): one stacked matmul.
    w1b = jnp.broadcast_to(w1_ref[...][None], (4 * H1, 9, C1))
    y = jnp.einsum('hwk,hkc->hwc', x1_ref[...], w1b,
                   preferred_element_type=f32)                  # (4*H1, H1*NB, C1)
    y = y.reshape(4, H1, H1 * NB, C1)                           # split pool groups (leading dim)
    l1 = jnp.maximum(jnp.max(y, axis=0) + b1_ref[...], 0.0)     # max over window, +bias, relu
    # l1[h, w*NB + n, c] == L1[n, h, w, c] for h, w in 0..9

    # ---- block 2: conv2(3x3) -> maxpool(2) -> relu --------------------------------
    # conv2 as shift-and-accumulate over the 9 taps; all slices static & 8-aligned.
    c2 = None
    for kh in range(3):
        for kw in range(3):
            lhs = l1[kh:kh + H2, kw * NB:(kw + H2) * NB, :]     # (H2, H2*NB, C1)
            rhs = jnp.broadcast_to(w2_ref[kh * 3 + kw][None], (H2, C1, C2))
            t = jnp.einsum('hwk,hkc->hwc', lhs, rhs, preferred_element_type=f32)
            c2 = t if c2 is None else c2 + t                    # (H2, H2*NB, C2)
    # 2x2/2 max pool: rows via leading-dim selection, cols via image-block-aligned slices.
    r_even = jnp.stack([c2[2 * p] for p in range(P2)], axis=0)
    r_odd = jnp.stack([c2[2 * p + 1] for p in range(P2)], axis=0)
    mh = jnp.maximum(r_even, r_odd)                             # (P2, H2*NB, C2)
    l2 = []                                                     # l2[q][p] == L2[:, p, q, :]
    for q in range(P2):
        col = jnp.maximum(mh[:, (2 * q) * NB:(2 * q) * NB + NB, :],
                          mh[:, (2 * q + 1) * NB:(2 * q + 1) * NB + NB, :])
        l2.append(jnp.maximum(col + b2_ref[...], 0.0))          # (P2, NB, C2)

    # ---- block 3: conv3(3x3) (+ Dropout2d == identity) -> maxpool(2) -> relu ------
    # TODO(synk): nn.Dropout2d / F.dropout are evaluated as identity (eval-mode).
    c3 = None
    for kh in range(3):
        for kw in range(3):
            lhs = jnp.stack([l2[dw + kw][dh + kh]
                             for dh in range(2) for dw in range(2)], axis=0)  # (4, NB, C2)
            rhs = jnp.broadcast_to(w3_ref[kh * 3 + kw][None], (4, C2, C3))
            t = jnp.einsum('gmk,gkc->gmc', lhs, rhs, preferred_element_type=f32)
            c3 = t if c3 is None else c3 + t                    # (4, NB, C3)
    l3 = jnp.maximum(jnp.max(c3, axis=0) + b3_ref[...], 0.0)    # (NB, C3) == L3[n, c]

    # ---- x.view(-1, 5): NCHW-order flatten via tiny scatter matmuls ----------------
    rows = [jnp.zeros((1, 5), f32) for _ in range(n_rows)]
    for p, (n, i, _c0, _j0, _take) in enumerate(pieces):
        rows[i] = rows[i] + jnp.dot(l3[n:n + 1, :], q_ref[p],
                                    preferred_element_type=f32)
    fc_in = jnp.concatenate(rows, axis=0)                       # (n_rows, 5)

    # ---- fc1 -> relu -> (dropout: identity) -> fc2 -> log_softmax ------------------
    h = jnp.maximum(jnp.dot(fc_in, fw1_ref[...], preferred_element_type=f32)
                    + fb1_ref[...], 0.0)                        # (n_rows, 30)
    logits = jnp.dot(h, fw2_ref[...], preferred_element_type=f32) + fb2_ref[...]
    m = jnp.max(logits, axis=-1, keepdims=True)                 # padded lanes sit at -1e30
    s = logits - m
    lse = jnp.log(jnp.sum(jnp.exp(s), axis=-1, keepdims=True))
    o_ref[...] = s - lse                                        # dense (n_rows, 128) store


def _build_layer1_patches(x_nchw):
    """Pool-grouped 3x3 patches of the input for the 10x10 layer-1 subgrid.

    Returns (4*H1, H1*NB, 9) f32 with
      out[g*H1 + h, w*NB + n, kh*3 + kw] = x[n, 0, 2h + dh + kh, 2w + dw + kw],
    where g = dh*2 + dw indexes the 2x2 maxpool window position.
    """
    n = x_nchw.shape[0]
    x = x_nchw[:, 0, :, :].astype(jnp.float32)                  # Cin == 1
    x = jnp.pad(x, ((0, NB - n), (0, 0), (0, 0)))               # (NB, 28, 28)
    groups = []
    for dh in range(2):
        for dw in range(2):
            taps = [x[:, dh + kh:dh + kh + 2 * H1:2, dw + kw:dw + kw + 2 * H1:2]
                    for kh in range(3) for kw in range(3)]      # 9 x (NB, H1, H1)
            t = jnp.transpose(jnp.stack(taps, axis=-1), (1, 2, 0, 3))   # (H1, H1, NB, 9)
            groups.append(t.reshape(H1, H1 * NB, 9))
    return jnp.concatenate(groups, axis=0)                      # (4*H1, H1*NB, 9)


def _flatten_constants(n_imgs):
    pieces = _flatten_pieces(n_imgs)
    q = np.zeros((len(pieces), C3, 5), np.float32)
    for p, (_n, _i, c0, j0, take) in enumerate(pieces):
        for t in range(take):
            q[p, c0 + t, j0 + t] = 1.0
    return pieces, jnp.asarray(q)


@jax.jit
def net5_forward(x_nchw, params):
    n = x_nchw.shape[0]
    assert x_nchw.shape[1:] == (1, 28, 28), x_nchw.shape
    assert n <= NB and (n * C3) % 5 == 0, "batch must satisfy torch's x.view(-1, 5)"
    n_out = (n * C3) // 5
    n_rows = ((n_out + 7) // 8) * 8                             # pad rows to a sublane tile

    x1 = _build_layer1_patches(x_nchw)                          # (40, 80, 9), ~115 KB
    pieces, q = _flatten_constants(n)

    w1 = params["cw1"].reshape(9, C1)
    w2 = params["cw2"].reshape(9, C1, C2)
    w3 = params["cw3"].reshape(9, C2, C3)
    b1 = params["cb1"].reshape(1, 1, C1)
    b2 = params["cb2"].reshape(1, 1, C2)
    b3 = params["cb3"].reshape(1, C3)
    fw1 = params["fw1"]
    fb1 = params["fb1"].reshape(1, -1)
    # Lane-dense head: zero-pad fc2 to 128 output lanes; padded logits get a -1e30 bias
    # so they contribute nothing to the log_softmax and are sliced away below.
    fw2 = jnp.concatenate(
        [params["fw2"], jnp.zeros((params["fw2"].shape[0], LANES - NCLS), jnp.float32)], axis=1)
    fb2 = jnp.concatenate(
        [params["fb2"].reshape(1, NCLS), jnp.full((1, LANES - NCLS), -1e30, jnp.float32)], axis=1)

    vmem = pl.BlockSpec(memory_space=pltpu.MemorySpace.VMEM)
    kernel = functools.partial(_net5_kernel, pieces=tuple(pieces), n_rows=n_rows)
    out = pl.pallas_call(
        kernel,
        out_shape=jax.ShapeDtypeStruct((n_rows, LANES), jnp.float32),
        in_specs=[vmem] * 12,
        out_specs=vmem,
        # No grid needed at this size; for large batches, add a grid over images with
        # dimension_semantics=("parallel",) (v7x megacore) and tile the row dimension.
    )(x1, w1, b1, w2, b2, w3, b3, q, fw1, fb1, fw2, fb2)
    return out[:n_out, :NCLS]


def net5_reference(x_nchw, params):
    """Pure-JAX (XLA-only) reference for correctness checking."""
    hp = jax.lax.Precision.HIGHEST
    x = jnp.transpose(x_nchw, (0, 2, 3, 1)).astype(jnp.float32)         # NCHW -> NHWC

    def block(y, w, b):
        y = jax.lax.conv_general_dilated(
            y, w, (1, 1), 'VALID',
            dimension_numbers=('NHWC', 'HWIO', 'NHWC'), precision=hp) + b
        y = jax.lax.reduce_window(y, -jnp.inf, jax.lax.max,
                                  (1, 2, 2, 1), (1, 2, 2, 1), 'VALID')
        return jnp.maximum(y, 0.0)

    x = block(x, params["cw1"], params["cb1"])
    x = block(x, params["cw2"], params["cb2"])
    x = block(x, params["cw3"], params["cb3"])                          # Dropout2d: identity
    x = jnp.transpose(x, (0, 3, 1, 2)).reshape(-1, 5)                   # torch's x.view(-1, 5)
    x = jnp.maximum(jnp.dot(x, params["fw1"], precision=hp) + params["fb1"], 0.0)
    x = jnp.dot(x, params["fw2"], precision=hp) + params["fb2"]         # F.dropout: identity
    return jax.nn.log_softmax(x, axis=-1)


def _uniform(key, shape, fan_in):
    bound = 1.0 / np.sqrt(float(fan_in))
    return jax.random.uniform(key, shape, jnp.float32, -bound, bound)


def init_params(key):
    ks = jax.random.split(key, 10)
    return {
        "cw1": _uniform(ks[0], (3, 3, 1, C1), 1 * 9),
        "cb1": _uniform(ks[1], (C1,), 1 * 9),
        "cw2": _uniform(ks[2], (3, 3, C1, C2), C1 * 9),
        "cb2": _uniform(ks[3], (C2,), C1 * 9),
        "cw3": _uniform(ks[4], (3, 3, C2, C3), C2 * 9),
        "cb3": _uniform(ks[5], (C3,), C2 * 9),
        "fw1": _uniform(ks[6], (5, 30), 5),
        "fb1": _uniform(ks[7], (30,), 5),
        "fw2": _uniform(ks[8], (30, NCLS), 30),
        "fb2": _uniform(ks[9], (NCLS,), 30),
    }


if __name__ == "__main__":
    key = jax.random.PRNGKey(0)
    kx, kp = jax.random.split(key)
    # N=5 so the flattened conv trunk output (5 * 7 * 1 * 1 = 35) reshapes to (-1, 5).
    x = jax.random.normal(kx, (5, 1, 28, 28), dtype=jnp.float32)
    params = init_params(kp)

    out = jax.block_until_ready(net5_forward(x, params))
    assert out.shape == (7, NCLS), out.shape
    # Rows of log_softmax output must exp-sum to 1.
    assert bool(jnp.all(jnp.abs(jnp.sum(jnp.exp(out), axis=-1) - 1.0) < 1e-4))
    # Match the pure-JAX reference.
    ref = jax.block_until_ready(net5_reference(x, params))
    max_err = float(jnp.max(jnp.abs(out - ref)))
    assert max_err < 5e-2, max_err
    print("KERNEL_OK")
</pallas_src>

<mosaic_0001>
module attributes {stable_mosaic.version = 11 : i64} {
  func.func @_net5_kernel(%arg0: memref<40x80x9xf32, #tpu.memory_space<vmem>>, %arg1: memref<9x10xf32, #tpu.memory_space<vmem>>, %arg2: memref<1x1x10xf32, #tpu.memory_space<vmem>>, %arg3: memref<9x10x15xf32, #tpu.memory_space<vmem>>, %arg4: memref<1x1x15xf32, #tpu.memory_space<vmem>>, %arg5: memref<9x15x7xf32, #tpu.memory_space<vmem>>, %arg6: memref<1x7xf32, #tpu.memory_space<vmem>>, %arg7: memref<11x7x5xf32, #tpu.memory_space<vmem>>, %arg8: memref<5x30xf32, #tpu.memory_space<vmem>>, %arg9: memref<1x30xf32, #tpu.memory_space<vmem>>, %arg10: memref<30x128xf32, #tpu.memory_space<vmem>>, %arg11: memref<1x128xf32, #tpu.memory_space<vmem>>, %arg12: memref<8x128xf32, #tpu.memory_space<vmem>>) attributes {dimension_semantics = [], scalar_prefetch = 0 : i64, scratch_operands = 0 : i64, tpu.core_type = #tpu.core_type<tc>} {
    %c0 = arith.constant 0 : index
    %c0_0 = arith.constant 0 : index
    %0 = vector.load %arg1[%c0, %c0_0] : memref<9x10xf32, #tpu.memory_space<vmem>>, vector<9x10xf32>
    %1 = vector.shape_cast %0 : vector<9x10xf32> to vector<1x9x10xf32>
    %2 = vector.shape_cast %1 : vector<1x9x10xf32> to vector<1x9x10xf32>
    %3 = vector.broadcast %2 : vector<1x9x10xf32> to vector<40x9x10xf32>
    %c0_1 = arith.constant 0 : index
    %c0_2 = arith.constant 0 : index
    %c0_3 = arith.constant 0 : index
    %4 = vector.load %arg0[%c0_1, %c0_2, %c0_3] : memref<40x80x9xf32, #tpu.memory_space<vmem>>, vector<40x80x9xf32>
    "tpu.trace_start"() <{level = 10 : i32, message = "hwk,hkc->hwc"}> : () -> ()
    %cst = arith.constant dense<0.000000e+00> : vector<40x80x10xf32>
    %5 = tpu.matmul %4, %3, %cst {dimension_numbers = #tpu.dot_dimension_numbers<[2], [1], [1], [2], [0, 0, 0, 1, 1, 2], [0], [0]>} : vector<40x80x9xf32>, vector<40x9x10xf32>, vector<40x80x10xf32> -> vector<40x80x10xf32>
    "tpu.trace_stop"() : () -> ()
    %6 = vector.shape_cast %5 : vector<40x80x10xf32> to vector<4x10x80x10xf32>
    %cst_4 = arith.constant dense<0xFF800000> : vector<10x80x10xf32>
    %7 = vector.multi_reduction <maximumf>, %6, %cst_4 [0] : vector<4x10x80x10xf32> to vector<10x80x10xf32>
    %c0_5 = arith.constant 0 : index
    %c0_6 = arith.constant 0 : index
    %c0_7 = arith.constant 0 : index
    %8 = vector.load %arg2[%c0_5, %c0_6, %c0_7] : memref<1x1x10xf32, #tpu.memory_space<vmem>>, vector<1x1x10xf32>
    %9 = vector.broadcast %8 : vector<1x1x10xf32> to vector<10x80x10xf32>
    %10 = arith.addf %7, %9 : vector<10x80x10xf32>
    %cst_8 = arith.constant 0.000000e+00 : f32
    %11 = vector.broadcast %cst_8 : f32 to vector<10x80x10xf32>
    %12 = arith.maximumf %10, %11 : vector<10x80x10xf32>
    %13 = vector.extract_strided_slice %12 {offsets = [0, 0, 0], sizes = [8, 64, 10], strides = [1, 1, 1]} : vector<10x80x10xf32> to vector<8x64x10xf32>
    %c0_9 = arith.constant 0 : index
    %c0_10 = arith.constant 0 : index
    %c0_11 = arith.constant 0 : index
    %14 = vector.load %arg3[%c0_9, %c0_10, %c0_11] : memref<9x10x15xf32, #tpu.memory_space<vmem>>, vector<1x10x15xf32>
    %15 = vector.shape_cast %14 : vector<1x10x15xf32> to vector<10x15xf32>
    %16 = vector.shape_cast %15 : vector<10x15xf32> to vector<1x10x15xf32>
    %17 = vector.shape_cast %16 : vector<1x10x15xf32> to vector<1x10x15xf32>
    %18 = vector.broadcast %17 : vector<1x10x15xf32> to vector<8x10x15xf32>
    "tpu.trace_start"() <{level = 10 : i32, message = "hwk,hkc->hwc"}> : () -> ()
    %cst_12 = arith.constant dense<0.000000e+00> : vector<8x64x15xf32>
    %19 = tpu.matmul %13, %18, %cst_12 {dimension_numbers = #tpu.dot_dimension_numbers<[2], [1], [1], [2], [0, 0, 0, 1, 1, 2], [0], [0]>} : vector<8x64x10xf32>, vector<8x10x15xf32>, vector<8x64x15xf32> -> vector<8x64x15xf32>
    "tpu.trace_stop"() : () -> ()
    %20 = vector.extract_strided_slice %12 {offsets = [0, 8, 0], sizes = [8, 64, 10], strides = [1, 1, 1]} : vector<10x80x10xf32> to vector<8x64x10xf32>
    %c1 = arith.constant 1 : index
    %c0_13 = arith.constant 0 : index
    %c0_14 = arith.constant 0 : index
    %21 = vector.load %arg3[%c1, %c0_13, %c0_14] : memref<9x10x15xf32, #tpu.memory_space<vmem>>, vector<1x10x15xf32>
    %22 = vector.shape_cast %21 : vector<1x10x15xf32> to vector<10x15xf32>
    %23 = vector.shape_cast %22 : vector<10x15xf32> to vector<1x10x15xf32>
    %24 = vector.shape_cast %23 : vector<1x10x15xf32> to vector<1x10x15xf32>
    %25 = vector.broadcast %24 : vector<1x10x15xf32> to vector<8x10x15xf32>
    "tpu.trace_start"() <{level = 10 : i32, message = "hwk,hkc->hwc"}> : () -> ()
    %cst_15 = arith.constant dense<0.000000e+00> : vector<8x64x15xf32>
    %26 = tpu.matmul %20, %25, %cst_15 {dimension_numbers = #tpu.dot_dimension_numbers<[2], [1], [1], [2], [0, 0, 0, 1, 1, 2], [0], [0]>} : vector<8x64x10xf32>, vector<8x10x15xf32>, vector<8x64x15xf32> -> vector<8x64x15xf32>
    "tpu.trace_stop"() : () -> ()
    %27 = arith.addf %19, %26 : vector<8x64x15xf32>
    %28 = vector.extract_strided_slice %12 {offsets = [0, 16, 0], sizes = [8, 64, 10], strides = [1, 1, 1]} : vector<10x80x10xf32> to vector<8x64x10xf32>
    %c2 = arith.constant 2 : index
    %c0_16 = arith.constant 0 : index
    %c0_17 = arith.constant 0 : index
    %29 = vector.load %arg3[%c2, %c0_16, %c0_17] : memref<9x10x15xf32, #tpu.memory_space<vmem>>, vector<1x10x15xf32>
    %30 = vector.shape_cast %29 : vector<1x10x15xf32> to vector<10x15xf32>
    %31 = vector.shape_cast %30 : vector<10x15xf32> to vector<1x10x15xf32>
    %32 = vector.shape_cast %31 : vector<1x10x15xf32> to vector<1x10x15xf32>
    %33 = vector.broadcast %32 : vector<1x10x15xf32> to vector<8x10x15xf32>
    "tpu.trace_start"() <{level = 10 : i32, message = "hwk,hkc->hwc"}> : () -> ()
    %cst_18 = arith.constant dense<0.000000e+00> : vector<8x64x15xf32>
    %34 = tpu.matmul %28, %33, %cst_18 {dimension_numbers = #tpu.dot_dimension_numbers<[2], [1], [1], [2], [0, 0, 0, 1, 1, 2], [0], [0]>} : vector<8x64x10xf32>, vector<8x10x15xf32>, vector<8x64x15xf32> -> vector<8x64x15xf32>
    "tpu.trace_stop"() : () -> ()
    %35 = arith.addf %27, %34 : vector<8x64x15xf32>
    %36 = vector.extract_strided_slice %12 {offsets = [1, 0, 0], sizes = [8, 64, 10], strides = [1, 1, 1]} : vector<10x80x10xf32> to vector<8x64x10xf32>
    %c3 = arith.constant 3 : index
    %c0_19 = arith.constant 0 : index
    %c0_20 = arith.constant 0 : index
    %37 = vector.load %arg3[%c3, %c0_19, %c0_20] : memref<9x10x15xf32, #tpu.memory_space<vmem>>, vector<1x10x15xf32>
    %38 = vector.shape_cast %37 : vector<1x10x15xf32> to vector<10x15xf32>
    %39 = vector.shape_cast %38 : vector<10x15xf32> to vector<1x10x15xf32>
    %40 = vector.shape_cast %39 : vector<1x10x15xf32> to vector<1x10x15xf32>
    %41 = vector.broadcast %40 : vector<1x10x15xf32> to vector<8x10x15xf32>
    "tpu.trace_start"() <{level = 10 : i32, message = "hwk,hkc->hwc"}> : () -> ()
    %cst_21 = arith.constant dense<0.000000e+00> : vector<8x64x15xf32>
    %42 = tpu.matmul %36, %41, %cst_21 {dimension_numbers = #tpu.dot_dimension_numbers<[2], [1], [1], [2], [0, 0, 0, 1, 1, 2], [0], [0]>} : vector<8x64x10xf32>, vector<8x10x15xf32>, vector<8x64x15xf32> -> vector<8x64x15xf32>
    "tpu.trace_stop"() : () -> ()
    %43 = arith.addf %35, %42 : vector<8x64x15xf32>
    %44 = vector.extract_strided_slice %12 {offsets = [1, 8, 0], sizes = [8, 64, 10], strides = [1, 1, 1]} : vector<10x80x10xf32> to vector<8x64x10xf32>
    %c4 = arith.constant 4 : index
    %c0_22 = arith.constant 0 : index
    %c0_23 = arith.constant 0 : index
    %45 = vector.load %arg3[%c4, %c0_22, %c0_23] : memref<9x10x15xf32, #tpu.memory_space<vmem>>, vector<1x10x15xf32>
    %46 = vector.shape_cast %45 : vector<1x10x15xf32> to vector<10x15xf32>
    %47 = vector.shape_cast %46 : vector<10x15xf32> to vector<1x10x15xf32>
    %48 = vector.shape_cast %47 : vector<1x10x15xf32> to vector<1x10x15xf32>
    %49 = vector.broadcast %48 : vector<1x10x15xf32> to vector<8x10x15xf32>
    "tpu.trace_start"() <{level = 10 : i32, message = "hwk,hkc->hwc"}> : () -> ()
    %cst_24 = arith.constant dense<0.000000e+00> : vector<8x64x15xf32>
    %50 = tpu.matmul %44, %49, %cst_24 {dimension_numbers = #tpu.dot_dimension_numbers<[2], [1], [1], [2], [0, 0, 0, 1, 1, 2], [0], [0]>} : vector<8x64x10xf32>, vector<8x10x15xf32>, vector<8x64x15xf32> -> vector<8x64x15xf32>
    "tpu.trace_stop"() : () -> ()
    %51 = arith.addf %43, %50 : vector<8x64x15xf32>
    %52 = vector.extract_strided_slice %12 {offsets = [1, 16, 0], sizes = [8, 64, 10], strides = [1, 1, 1]} : vector<10x80x10xf32> to vector<8x64x10xf32>
    %c5 = arith.constant 5 : index
    %c0_25 = arith.constant 0 : index
    %c0_26 = arith.constant 0 : index
    %53 = vector.load %arg3[%c5, %c0_25, %c0_26] : memref<9x10x15xf32, #tpu.memory_space<vmem>>, vector<1x10x15xf32>
    %54 = vector.shape_cast %53 : vector<1x10x15xf32> to vector<10x15xf32>
    %55 = vector.shape_cast %54 : vector<10x15xf32> to vector<1x10x15xf32>
    %56 = vector.shape_cast %55 : vector<1x10x15xf32> to vector<1x10x15xf32>
    %57 = vector.broadcast %56 : vector<1x10x15xf32> to vector<8x10x15xf32>
    "tpu.trace_start"() <{level = 10 : i32, message = "hwk,hkc->hwc"}> : () -> ()
    %cst_27 = arith.constant dense<0.000000e+00> : vector<8x64x15xf32>
    %58 = tpu.matmul %52, %57, %cst_27 {dimension_numbers = #tpu.dot_dimension_numbers<[2], [1], [1], [2], [0, 0, 0, 1, 1, 2], [0], [0]>} : vector<8x64x10xf32>, vector<8x10x15xf32>, vector<8x64x15xf32> -> vector<8x64x15xf32>
    "tpu.trace_stop"() : () -> ()
    %59 = arith.addf %51, %58 : vector<8x64x15xf32>
    %60 = vector.extract_strided_slice %12 {offsets = [2, 0, 0], sizes = [8, 64, 10], strides = [1, 1, 1]} : vector<10x80x10xf32> to vector<8x64x10xf32>
    %c6 = arith.constant 6 : index
    %c0_28 = arith.constant 0 : index
    %c0_29 = arith.constant 0 : index
    %61 = vector.load %arg3[%c6, %c0_28, %c0_29] : memref<9x10x15xf32, #tpu.memory_space<vmem>>, vector<1x10x15xf32>
    %62 = vector.shape_cast %61 : vector<1x10x15xf32> to vector<10x15xf32>
    %63 = vector.shape_cast %62 : vector<10x15xf32> to vector<1x10x15xf32>
    %64 = vector.shape_cast %63 : vector<1x10x15xf32> to vector<1x10x15xf32>
    %65 = vector.broadcast %64 : vector<1x10x15xf32> to vector<8x10x15xf32>
    "tpu.trace_start"() <{level = 10 : i32, message = "hwk,hkc->hwc"}> : () -> ()
    %cst_30 = arith.constant dense<0.000000e+00> : vector<8x64x15xf32>
    %66 = tpu.matmul %60, %65, %cst_30 {dimension_numbers = #tpu.dot_dimension_numbers<[2], [1], [1], [2], [0, 0, 0, 1, 1, 2], [0], [0]>} : vector<8x64x10xf32>, vector<8x10x15xf32>, vector<8x64x15xf32> -> vector<8x64x15xf32>
    "tpu.trace_stop"() : () -> ()
    %67 = arith.addf %59, %66 : vector<8x64x15xf32>
    %68 = vector.extract_strided_slice %12 {offsets = [2, 8, 0], sizes = [8, 64, 10], strides = [1, 1, 1]} : vector<10x80x10xf32> to vector<8x64x10xf32>
    %c7 = arith.constant 7 : index
    %c0_31 = arith.constant 0 : index
    %c0_32 = arith.constant 0 : index
    %69 = vector.load %arg3[%c7, %c0_31, %c0_32] : memref<9x10x15xf32, #tpu.memory_space<vmem>>, vector<1x10x15xf32>
    %70 = vector.shape_cast %69 : vector<1x10x15xf32> to vector<10x15xf32>
    %71 = vector.shape_cast %70 : vector<10x15xf32> to vector<1x10x15xf32>
    %72 = vector.shape_cast %71 : vector<1x10x15xf32> to vector<1x10x15xf32>
    %73 = vector.broadcast %72 : vector<1x10x15xf32> to vector<8x10x15xf32>
    "tpu.trace_start"() <{level = 10 : i32, message = "hwk,hkc->hwc"}> : () -> ()
    %cst_33 = arith.constant dense<0.000000e+00> : vector<8x64x15xf32>
    %74 = tpu.matmul %68, %73, %cst_33 {dimension_numbers = #tpu.dot_dimension_numbers<[2], [1], [1], [2], [0, 0, 0, 1, 1, 2], [0], [0]>} : vector<8x64x10xf32>, vector<8x10x15xf32>, vector<8x64x15xf32> -> vector<8x64x15xf32>
    "tpu.trace_stop"() : () -> ()
    %75 = arith.addf %67, %74 : vector<8x64x15xf32>
    %76 = vector.extract_strided_slice %12 {offsets = [2, 16, 0], sizes = [8, 64, 10], strides = [1, 1, 1]} : vector<10x80x10xf32> to vector<8x64x10xf32>
    %c8 = arith.constant 8 : index
    %c0_34 = arith.constant 0 : index
    %c0_35 = arith.constant 0 : index
    %77 = vector.load %arg3[%c8, %c0_34, %c0_35] : memref<9x10x15xf32, #tpu.memory_space<vmem>>, vector<1x10x15xf32>
    %78 = vector.shape_cast %77 : vector<1x10x15xf32> to vector<10x15xf32>
    %79 = vector.shape_cast %78 : vector<10x15xf32> to vector<1x10x15xf32>
    %80 = vector.shape_cast %79 : vector<1x10x15xf32> to vector<1x10x15xf32>
    %81 = vector.broadcast %80 : vector<1x10x15xf32> to vector<8x10x15xf32>
    "tpu.trace_start"() <{level = 10 : i32, message = "hwk,hkc->hwc"}> : () -> ()
    %cst_36 = arith.constant dense<0.000000e+00> : vector<8x64x15xf32>
    %82 = tpu.matmul %76, %81, %cst_36 {dimension_numbers = #tpu.dot_dimension_numbers<[2], [1], [1], [2], [0, 0, 0, 1, 1, 2], [0], [0]>} : vector<8x64x10xf32>, vector<8x10x15xf32>, vector<8x64x15xf32> -> vector<8x64x15xf32>
    "tpu.trace_stop"() : () -> ()
    %83 = arith.addf %75, %82 : vector<8x64x15xf32>
    %84 = vector.extract_strided_slice %83 {offsets = [0, 0, 0], sizes = [1, 64, 15], strides = [1, 1, 1]} : vector<8x64x15xf32> to vector<1x64x15xf32>
    %85 = vector.shape_cast %84 : vector<1x64x15xf32> to vector<64x15xf32>
    %86 = vector.extract_strided_slice %83 {offsets = [2, 0, 0], sizes = [1, 64, 15], strides = [1, 1, 1]} : vector<8x64x15xf32> to vector<1x64x15xf32>
    %87 = vector.shape_cast %86 : vector<1x64x15xf32> to vector<64x15xf32>
    %88 = vector.extract_strided_slice %83 {offsets = [4, 0, 0], sizes = [1, 64, 15], strides = [1, 1, 1]} : vector<8x64x15xf32> to vector<1x64x15xf32>
    %89 = vector.shape_cast %88 : vector<1x64x15xf32> to vector<64x15xf32>
    %90 = vector.extract_strided_slice %83 {offsets = [6, 0, 0], sizes = [1, 64, 15], strides = [1, 1, 1]} : vector<8x64x15xf32> to vector<1x64x15xf32>
    %91 = vector.shape_cast %90 : vector<1x64x15xf32> to vector<64x15xf32>
    %92 = vector.shape_cast %85 : vector<64x15xf32> to vector<1x64x15xf32>
    %93 = vector.shape_cast %87 : vector<64x15xf32> to vector<1x64x15xf32>
    %94 = vector.shape_cast %89 : vector<64x15xf32> to vector<1x64x15xf32>
    %95 = vector.shape_cast %91 : vector<64x15xf32> to vector<1x64x15xf32>
    %96 = tpu.concatenate %92, %93, %94, %95 in 0 : vector<1x64x15xf32>, vector<1x64x15xf32>, vector<1x64x15xf32>, vector<1x64x15xf32> -> vector<4x64x15xf32>
    %97 = vector.extract_strided_slice %83 {offsets = [1, 0, 0], sizes = [1, 64, 15], strides = [1, 1, 1]} : vector<8x64x15xf32> to vector<1x64x15xf32>
    %98 = vector.shape_cast %97 : vector<1x64x15xf32> to vector<64x15xf32>
    %99 = vector.extract_strided_slice %83 {offsets = [3, 0, 0], sizes = [1, 64, 15], strides = [1, 1, 1]} : vector<8x64x15xf32> to vector<1x64x15xf32>
    %100 = vector.shape_cast %99 : vector<1x64x15xf32> to vector<64x15xf32>
    %101 = vector.extract_strided_slice %83 {offsets = [5, 0, 0], sizes = [1, 64, 15], strides = [1, 1, 1]} : vector<8x64x15xf32> to vector<1x64x15xf32>
    %102 = vector.shape_cast %101 : vector<1x64x15xf32> to vector<64x15xf32>
    %103 = vector.extract_strided_slice %83 {offsets = [7, 0, 0], sizes = [1, 64, 15], strides = [1, 1, 1]} : vector<8x64x15xf32> to vector<1x64x15xf32>
    %104 = vector.shape_cast %103 : vector<1x64x15xf32> to vector<64x15xf32>
    %105 = vector.shape_cast %98 : vector<64x15xf32> to vector<1x64x15xf32>
    %106 = vector.shape_cast %100 : vector<64x15xf32> to vector<1x64x15xf32>
    %107 = vector.shape_cast %102 : vector<64x15xf32> to vector<1x64x15xf32>
    %108 = vector.shape_cast %104 : vector<64x15xf32> to vector<1x64x15xf32>
    %109 = tpu.concatenate %105, %106, %107, %108 in 0 : vector<1x64x15xf32>, vector<1x64x15xf32>, vector<1x64x15xf32>, vector<1x64x15xf32> -> vector<4x64x15xf32>
    %110 = arith.maximumf %96, %109 : vector<4x64x15xf32>
    %111 = vector.extract_strided_slice %110 {offsets = [0, 0, 0], sizes = [4, 8, 15], strides = [1, 1, 1]} : vector<4x64x15xf32> to vector<4x8x15xf32>
    %112 = vector.extract_strided_slice %110 {offsets = [0, 8, 0], sizes = [4, 8, 15], strides = [1, 1, 1]} : vector<4x64x15xf32> to vector<4x8x15xf32>
    %113 = arith.maximumf %111, %112 : vector<4x8x15xf32>
    %c0_37 = arith.constant 0 : index
    %c0_38 = arith.constant 0 : index
    %c0_39 = arith.constant 0 : index
    %114 = vector.load %arg4[%c0_37, %c0_38, %c0_39] : memref<1x1x15xf32, #tpu.memory_space<vmem>>, vector<1x1x15xf32>
    %115 = vector.broadcast %114 : vector<1x1x15xf32> to vector<4x8x15xf32>
    %116 = arith.addf %113, %115 : vector<4x8x15xf32>
    %cst_40 = arith.constant 0.000000e+00 : f32
    %117 = vector.broadcast %cst_40 : f32 to vector<4x8x15xf32>
    %118 = arith.maximumf %116, %117 : vector<4x8x15xf32>
    %119 = vector.extract_strided_slice %110 {offsets = [0, 16, 0], sizes = [4, 8, 15], strides = [1, 1, 1]} : vector<4x64x15xf32> to vector<4x8x15xf32>
    %120 = vector.extract_strided_slice %110 {offsets = [0, 24, 0], sizes = [4, 8, 15], strides = [1, 1, 1]} : vector<4x64x15xf32> to vector<4x8x15xf32>
    %121 = arith.maximumf %119, %120 : vector<4x8x15xf32>
    %c0_41 = arith.constant 0 : index
    %c0_42 = arith.constant 0 : index
    %c0_43 = arith.constant 0 : index
    %122 = vector.load %arg4[%c0_41, %c0_42, %c0_43] : memref<1x1x15xf32, #tpu.memory_space<vmem>>, vector<1x1x15xf32>
    %123 = vector.broadcast %122 : vector<1x1x15xf32> to vector<4x8x15xf32>
    %124 = arith.addf %121, %123 : vector<4x8x15xf32>
    %cst_44 = arith.constant 0.000000e+00 : f32
    %125 = vector.broadcast %cst_44 : f32 to vector<4x8x15xf32>
    %126 = arith.maximumf %124, %125 : vector<4x8x15xf32>
    %127 = vector.extract_strided_slice %110 {offsets = [0, 32, 0], sizes = [4, 8, 15], strides = [1, 1, 1]} : vector<4x64x15xf32> to vector<4x8x15xf32>
    %128 = vector.extract_strided_slice %110 {offsets = [0, 40, 0], sizes = [4, 8, 15], strides = [1, 1, 1]} : vector<4x64x15xf32> to vector<4x8x15xf32>
    %129 = arith.maximumf %127, %128 : vector<4x8x15xf32>
    %c0_45 = arith.constant 0 : index
    %c0_46 = arith.constant 0 : index
    %c0_47 = arith.constant 0 : index
    %130 = vector.load %arg4[%c0_45, %c0_46, %c0_47] : memref<1x1x15xf32, #tpu.memory_space<vmem>>, vector<1x1x15xf32>
    %131 = vector.broadcast %130 : vector<1x1x15xf32> to vector<4x8x15xf32>
    %132 = arith.addf %129, %131 : vector<4x8x15xf32>
    %cst_48 = arith.constant 0.000000e+00 : f32
    %133 = vector.broadcast %cst_48 : f32 to vector<4x8x15xf32>
    %134 = arith.maximumf %132, %133 : vector<4x8x15xf32>
    %135 = vector.extract_strided_slice %110 {offsets = [0, 48, 0], sizes = [4, 8, 15], strides = [1, 1, 1]} : vector<4x64x15xf32> to vector<4x8x15xf32>
    %136 = vector.extract_strided_slice %110 {offsets = [0, 56, 0], sizes = [4, 8, 15], strides = [1, 1, 1]} : vector<4x64x15xf32> to vector<4x8x15xf32>
    %137 = arith.maximumf %135, %136 : vector<4x8x15xf32>
    %c0_49 = arith.constant 0 : index
    %c0_50 = arith.constant 0 : index
    %c0_51 = arith.constant 0 : index
    %138 = vector.load %arg4[%c0_49, %c0_50, %c0_51] : memref<1x1x15xf32, #tpu.memory_space<vmem>>, vector<1x1x15xf32>
    %139 = vector.broadcast %138 : vector<1x1x15xf32> to vector<4x8x15xf32>
    %140 = arith.addf %137, %139 : vector<4x8x15xf32>
    %cst_52 = arith.constant 0.000000e+00 : f32
    %141 = vector.broadcast %cst_52 : f32 to vector<4x8x15xf32>
    %142 = arith.maximumf %140, %141 : vector<4x8x15xf32>
    %143 = vector.extract_strided_slice %118 {offsets = [0, 0, 0], sizes = [1, 8, 15], strides = [1, 1, 1]} : vector<4x8x15xf32> to vector<1x8x15xf32>
    %144 = vector.shape_cast %143 : vector<1x8x15xf32> to vector<8x15xf32>
    %145 = vector.extract_strided_slice %126 {offsets = [0, 0, 0], sizes = [1, 8, 15], strides = [1, 1, 1]} : vector<4x8x15xf32> to vector<1x8x15xf32>
    %146 = vector.shape_cast %145 : vector<1x8x15xf32> to vector<8x15xf32>
    %147 = vector.extract_strided_slice %118 {offsets = [1, 0, 0], sizes = [1, 8, 15], strides = [1, 1, 1]} : vector<4x8x15xf32> to vector<1x8x15xf32>
    %148 = vector.shape_cast %147 : vector<1x8x15xf32> to vector<8x15xf32>
    %149 = vector.extract_strided_slice %126 {offsets = [1, 0, 0], sizes = [1, 8, 15], strides = [1, 1, 1]} : vector<4x8x15xf32> to vector<1x8x15xf32>
    %150 = vector.shape_cast %149 : vector<1x8x15xf32> to vector<8x15xf32>
    %151 = vector.shape_cast %144 : vector<8x15xf32> to vector<1x8x15xf32>
    %152 = vector.shape_cast %146 : vector<8x15xf32> to vector<1x8x15xf32>
    %153 = vector.shape_cast %148 : vector<8x15xf32> to vector<1x8x15xf32>
    %154 = vector.shape_cast %150 : vector<8x15xf32> to vector<1x8x15xf32>
    %155 = tpu.concatenate %151, %152, %153, %154 in 0 : vector<1x8x15xf32>, vector<1x8x15xf32>, vector<1x8x15xf32>, vector<1x8x15xf32> -> vector<4x8x15xf32>
    %c0_53 = arith.constant 0 : index
    %c0_54 = arith.constant 0 : index
    %c0_55 = arith.constant 0 : index
    %156 = vector.load %arg5[%c0_53, %c0_54, %c0_55] : memref<9x15x7xf32, #tpu.memory_space<vmem>>, vector<1x15x7xf32>
    %157 = vector.shape_cast %156 : vector<1x15x7xf32> to vector<15x7xf32>
    %158 = vector.shape_cast %157 : vector<15x7xf32> to vector<1x15x7xf32>
    %159 = vector.shape_cast %158 : vector<1x15x7xf32> to vector<1x15x7xf32>
    %160 = vector.broadcast %159 : vector<1x15x7xf32> to vector<4x15x7xf32>
    "tpu.trace_start"() <{level = 10 : i32, message = "gmk,gkc->gmc"}> : () -> ()
    %cst_56 = arith.constant dense<0.000000e+00> : vector<4x8x7xf32>
    %161 = tpu.matmul %155, %160, %cst_56 {dimension_numbers = #tpu.dot_dimension_numbers<[2], [1], [1], [2], [0, 0, 0, 1, 1, 2], [0], [0]>} : vector<4x8x15xf32>, vector<4x15x7xf32>, vector<4x8x7xf32> -> vector<4x8x7xf32>
    "tpu.trace_stop"() : () -> ()
    %162 = vector.extract_strided_slice %126 {offsets = [0, 0, 0], sizes = [1, 8, 15], strides = [1, 1, 1]} : vector<4x8x15xf32> to vector<1x8x15xf32>
    %163 = vector.shape_cast %162 : vector<1x8x15xf32> to vector<8x15xf32>
    %164 = vector.extract_strided_slice %134 {offsets = [0, 0, 0], sizes = [1, 8, 15], strides = [1, 1, 1]} : vector<4x8x15xf32> to vector<1x8x15xf32>
    %165 = vector.shape_cast %164 : vector<1x8x15xf32> to vector<8x15xf32>
    %166 = vector.extract_strided_slice %126 {offsets = [1, 0, 0], sizes = [1, 8, 15], strides = [1, 1, 1]} : vector<4x8x15xf32> to vector<1x8x15xf32>
    %167 = vector.shape_cast %166 : vector<1x8x15xf32> to vector<8x15xf32>
    %168 = vector.extract_strided_slice %134 {offsets = [1, 0, 0], sizes = [1, 8, 15], strides = [1, 1, 1]} : vector<4x8x15xf32> to vector<1x8x15xf32>
    %169 = vector.shape_cast %168 : vector<1x8x15xf32> to vector<8x15xf32>
    %170 = vector.shape_cast %163 : vector<8x15xf32> to vector<1x8x15xf32>
    %171 = vector.shape_cast %165 : vector<8x15xf32> to vector<1x8x15xf32>
    %172 = vector.shape_cast %167 : vector<8x15xf32> to vector<1x8x15xf32>
    %173 = vector.shape_cast %169 : vector<8x15xf32> to vector<1x8x15xf32>
    %174 = tpu.concatenate %170, %171, %172, %173 in 0 : vector<1x8x15xf32>, vector<1x8x15xf32>, vector<1x8x15xf32>, vector<1x8x15xf32> -> vector<4x8x15xf32>
    %c1_57 = arith.constant 1 : index
    %c0_58 = arith.constant 0 : index
    %c0_59 = arith.constant 0 : index
    %175 = vector.load %arg5[%c1_57, %c0_58, %c0_59] : memref<9x15x7xf32, #tpu.memory_space<vmem>>, vector<1x15x7xf32>
    %176 = vector.shape_cast %175 : vector<1x15x7xf32> to vector<15x7xf32>
    %177 = vector.shape_cast %176 : vector<15x7xf32> to vector<1x15x7xf32>
    %178 = vector.shape_cast %177 : vector<1x15x7xf32> to vector<1x15x7xf32>
    %179 = vector.broadcast %178 : vector<1x15x7xf32> to vector<4x15x7xf32>
    "tpu.trace_start"() <{level = 10 : i32, message = "gmk,gkc->gmc"}> : () -> ()
    %cst_60 = arith.constant dense<0.000000e+00> : vector<4x8x7xf32>
    %180 = tpu.matmul %174, %179, %cst_60 {dimension_numbers = #tpu.dot_dimension_numbers<[2], [1], [1], [2], [0, 0, 0, 1, 1, 2], [0], [0]>} : vector<4x8x15xf32>, vector<4x15x7xf32>, vector<4x8x7xf32> -> vector<4x8x7xf32>
    "tpu.trace_stop"() : () -> ()
    %181 = arith.addf %161, %180 : vector<4x8x7xf32>
    %182 = vector.extract_strided_slice %134 {offsets = [0, 0, 0], sizes = [1, 8, 15], strides = [1, 1, 1]} : vector<4x8x15xf32> to vector<1x8x15xf32>
    %183 = vector.shape_cast %182 : vector<1x8x15xf32> to vector<8x15xf32>
    %184 = vector.extract_strided_slice %142 {offsets = [0, 0, 0], sizes = [1, 8, 15], strides = [1, 1, 1]} : vector<4x8x15xf32> to vector<1x8x15xf32>
    %185 = vector.shape_cast %184 : vector<1x8x15xf32> to vector<8x15xf32>
    %186 = vector.extract_strided_slice %134 {offsets = [1, 0, 0], sizes = [1, 8, 15], strides = [1, 1, 1]} : vector<4x8x15xf32> to vector<1x8x15xf32>
    %187 = vector.shape_cast %186 : vector<1x8x15xf32> to vector<8x15xf32>
    %188 = vector.extract_strided_slice %142 {offsets = [1, 0, 0], sizes = [1, 8, 15], strides = [1, 1, 1]} : vector<4x8x15xf32> to vector<1x8x15xf32>
    %189 = vector.shape_cast %188 : vector<1x8x15xf32> to vector<8x15xf32>
    %190 = vector.shape_cast %183 : vector<8x15xf32> to vector<1x8x15xf32>
    %191 = vector.shape_cast %185 : vector<8x15xf32> to vector<1x8x15xf32>
    %192 = vector.shape_cast %187 : vector<8x15xf32> to vector<1x8x15xf32>
    %193 = vector.shape_cast %189 : vector<8x15xf32> to vector<1x8x15xf32>
    %194 = tpu.concatenate %190, %191, %192, %193 in 0 : vector<1x8x15xf32>, vector<1x8x15xf32>, vector<1x8x15xf32>, vector<1x8x15xf32> -> vector<4x8x15xf32>
    %c2_61 = arith.constant 2 : index
    %c0_62 = arith.constant 0 : index
    %c0_63 = arith.constant 0 : index
    %195 = vector.load %arg5[%c2_61, %c0_62, %c0_63] : memref<9x15x7xf32, #tpu.memory_space<vmem>>, vector<1x15x7xf32>
    %196 = vector.shape_cast %195 : vector<1x15x7xf32> to vector<15x7xf32>
    %197 = vector.shape_cast %196 : vector<15x7xf32> to vector<1x15x7xf32>
    %198 = vector.shape_cast %197 : vector<1x15x7xf32> to vector<1x15x7xf32>
    %199 = vector.broadcast %198 : vector<1x15x7xf32> to vector<4x15x7xf32>
    "tpu.trace_start"() <{level = 10 : i32, message = "gmk,gkc->gmc"}> : () -> ()
    %cst_64 = arith.constant dense<0.000000e+00> : vector<4x8x7xf32>
    %200 = tpu.matmul %194, %199, %cst_64 {dimension_numbers = #tpu.dot_dimension_numbers<[2], [1], [1], [2], [0, 0, 0, 1, 1, 2], [0], [0]>} : vector<4x8x15xf32>, vector<4x15x7xf32>, vector<4x8x7xf32> -> vector<4x8x7xf32>
    "tpu.trace_stop"() : () -> ()
    %201 = arith.addf %181, %200 : vector<4x8x7xf32>
    %202 = vector.extract_strided_slice %118 {offsets = [1, 0, 0], sizes = [1, 8, 15], strides = [1, 1, 1]} : vector<4x8x15xf32> to vector<1x8x15xf32>
    %203 = vector.shape_cast %202 : vector<1x8x15xf32> to vector<8x15xf32>
    %204 = vector.extract_strided_slice %126 {offsets = [1, 0, 0], sizes = [1, 8, 15], strides = [1, 1, 1]} : vector<4x8x15xf32> to vector<1x8x15xf32>
    %205 = vector.shape_cast %204 : vector<1x8x15xf32> to vector<8x15xf32>
    %206 = vector.extract_strided_slice %118 {offsets = [2, 0, 0], sizes = [1, 8, 15], strides = [1, 1, 1]} : vector<4x8x15xf32> to vector<1x8x15xf32>
    %207 = vector.shape_cast %206 : vector<1x8x15xf32> to vector<8x15xf32>
    %208 = vector.extract_strided_slice %126 {offsets = [2, 0, 0], sizes = [1, 8, 15], strides = [1, 1, 1]} : vector<4x8x15xf32> to vector<1x8x15xf32>
    %209 = vector.shape_cast %208 : vector<1x8x15xf32> to vector<8x15xf32>
    %210 = vector.shape_cast %203 : vector<8x15xf32> to vector<1x8x15xf32>
    %211 = vector.shape_cast %205 : vector<8x15xf32> to vector<1x8x15xf32>
    %212 = vector.shape_cast %207 : vector<8x15xf32> to vector<1x8x15xf32>
    %213 = vector.shape_cast %209 : vector<8x15xf32> to vector<1x8x15xf32>
    %214 = tpu.concatenate %210, %211, %212, %213 in 0 : vector<1x8x15xf32>, vector<1x8x15xf32>, vector<1x8x15xf32>, vector<1x8x15xf32> -> vector<4x8x15xf32>
    %c3_65 = arith.constant 3 : index
    %c0_66 = arith.constant 0 : index
    %c0_67 = arith.constant 0 : index
    %215 = vector.load %arg5[%c3_65, %c0_66, %c0_67] : memref<9x15x7xf32, #tpu.memory_space<vmem>>, vector<1x15x7xf32>
    %216 = vector.shape_cast %215 : vector<1x15x7xf32> to vector<15x7xf32>
    %217 = vector.shape_cast %216 : vector<15x7xf32> to vector<1x15x7xf32>
    %218 = vector.shape_cast %217 : vector<1x15x7xf32> to vector<1x15x7xf32>
    %219 = vector.broadcast %218 : vector<1x15x7xf32> to vector<4x15x7xf32>
    "tpu.trace_start"() <{level = 10 : i32, message = "gmk,gkc->gmc"}> : () -> ()
    %cst_68 = arith.constant dense<0.000000e+00> : vector<4x8x7xf32>
    %220 = tpu.matmul %214, %219, %cst_68 {dimension_numbers = #tpu.dot_dimension_numbers<[2], [1], [1], [2], [0, 0, 0, 1, 1, 2], [0], [0]>} : vector<4x8x15xf32>, vector<4x15x7xf32>, vector<4x8x7xf32> -> vector<4x8x7xf32>
    "tpu.trace_stop"() : () -> ()
    %221 = arith.addf %201, %220 : vector<4x8x7xf32>
    %222 = vector.extract_strided_slice %126 {offsets = [1, 0, 0], sizes = [1, 8, 15], strides = [1, 1, 1]} : vector<4x8x15xf32> to vector<1x8x15xf32>
    %223 = vector.shape_cast %222 : vector<1x8x15xf32> to vector<8x15xf32>
    %224 = vector.extract_strided_slice %134 {offsets = [1, 0, 0], sizes = [1, 8, 15], strides = [1, 1, 1]} : vector<4x8x15xf32> to vector<1x8x15xf32>
    %225 = vector.shape_cast %224 : vector<1x8x15xf32> to vector<8x15xf32>
    %226 = vector.extract_strided_slice %126 {offsets = [2, 0, 0], sizes = [1, 8, 15], strides = [1, 1, 1]} : vector<4x8x15xf32> to vector<1x8x15xf32>
    %227 = vector.shape_cast %226 : vector<1x8x15xf32> to vector<8x15xf32>
    %228 = vector.extract_strided_slice %134 {offsets = [2, 0, 0], sizes = [1, 8, 15], strides = [1, 1, 1]} : vector<4x8x15xf32> to vector<1x8x15xf32>
    %229 = vector.shape_cast %228 : vector<1x8x15xf32> to vector<8x15xf32>
    %230 = vector.shape_cast %223 : vector<8x15xf32> to vector<1x8x15xf32>
    %231 = vector.shape_cast %225 : vector<8x15xf32> to vector<1x8x15xf32>
    %232 = vector.shape_cast %227 : vector<8x15xf32> to vector<1x8x15xf32>
    %233 = vector.shape_cast %229 : vector<8x15xf32> to vector<1x8x15xf32>
    %234 = tpu.concatenate %230, %231, %232, %233 in 0 : vector<1x8x15xf32>, vector<1x8x15xf32>, vector<1x8x15xf32>, vector<1x8x15xf32> -> vector<4x8x15xf32>
    %c4_69 = arith.constant 4 : index
    %c0_70 = arith.constant 0 : index
    %c0_71 = arith.constant 0 : index
    %235 = vector.load %arg5[%c4_69, %c0_70, %c0_71] : memref<9x15x7xf32, #tpu.memory_space<vmem>>, vector<1x15x7xf32>
    %236 = vector.shape_cast %235 : vector<1x15x7xf32> to vector<15x7xf32>
    %237 = vector.shape_cast %236 : vector<15x7xf32> to vector<1x15x7xf32>
    %238 = vector.shape_cast %237 : vector<1x15x7xf32> to vector<1x15x7xf32>
    %239 = vector.broadcast %238 : vector<1x15x7xf32> to vector<4x15x7xf32>
    "tpu.trace_start"() <{level = 10 : i32, message = "gmk,gkc->gmc"}> : () -> ()
    %cst_72 = arith.constant dense<0.000000e+00> : vector<4x8x7xf32>
    %240 = tpu.matmul %234, %239, %cst_72 {dimension_numbers = #tpu.dot_dimension_numbers<[2], [1], [1], [2], [0, 0, 0, 1, 1, 2], [0], [0]>} : vector<4x8x15xf32>, vector<4x15x7xf32>, vector<4x8x7xf32> -> vector<4x8x7xf32>
    "tpu.trace_stop"() : () -> ()
    %241 = arith.addf %221, %240 : vector<4x8x7xf32>
    %242 = vector.extract_strided_slice %134 {offsets = [1, 0, 0], sizes = [1, 8, 15], strides = [1, 1, 1]} : vector<4x8x15xf32> to vector<1x8x15xf32>
    %243 = vector.shape_cast %242 : vector<1x8x15xf32> to vector<8x15xf32>
    %244 = vector.extract_strided_slice %142 {offsets = [1, 0, 0], sizes = [1, 8, 15], strides = [1, 1, 1]} : vector<4x8x15xf32> to vector<1x8x15xf32>
    %245 = vector.shape_cast %244 : vector<1x8x15xf32> to vector<8x15xf32>
    %246 = vector.extract_strided_slice %134 {offsets = [2, 0, 0], sizes = [1, 8, 15], strides = [1, 1, 1]} : vector<4x8x15xf32> to vector<1x8x15xf32>
    %247 = vector.shape_cast %246 : vector<1x8x15xf32> to vector<8x15xf32>
    %248 = vector.extract_strided_slice %142 {offsets = [2, 0, 0], sizes = [1, 8, 15], strides = [1, 1, 1]} : vector<4x8x15xf32> to vector<1x8x15xf32>
    %249 = vector.shape_cast %248 : vector<1x8x15xf32> to vector<8x15xf32>
    %250 = vector.shape_cast %243 : vector<8x15xf32> to vector<1x8x15xf32>
    %251 = vector.shape_cast %245 : vector<8x15xf32> to vector<1x8x15xf32>
    %252 = vector.shape_cast %247 : vector<8x15xf32> to vector<1x8x15xf32>
    %253 = vector.shape_cast %249 : vector<8x15xf32> to vector<1x8x15xf32>
    %254 = tpu.concatenate %250, %251, %252, %253 in 0 : vector<1x8x15xf32>, vector<1x8x15xf32>, vector<1x8x15xf32>, vector<1x8x15xf32> -> vector<4x8x15xf32>
    %c5_73 = arith.constant 5 : index
    %c0_74 = arith.constant 0 : index
    %c0_75 = arith.constant 0 : index
    %255 = vector.load %arg5[%c5_73, %c0_74, %c0_75] : memref<9x15x7xf32, #tpu.memory_space<vmem>>, vector<1x15x7xf32>
    %256 = vector.shape_cast %255 : vector<1x15x7xf32> to vector<15x7xf32>
    %257 = vector.shape_cast %256 : vector<15x7xf32> to vector<1x15x7xf32>
    %258 = vector.shape_cast %257 : vector<1x15x7xf32> to vector<1x15x7xf32>
    %259 = vector.broadcast %258 : vector<1x15x7xf32> to vector<4x15x7xf32>
    "tpu.trace_start"() <{level = 10 : i32, message = "gmk,gkc->gmc"}> : () -> ()
    %cst_76 = arith.constant dense<0.000000e+00> : vector<4x8x7xf32>
    %260 = tpu.matmul %254, %259, %cst_76 {dimension_numbers = #tpu.dot_dimension_numbers<[2], [1], [1], [2], [0, 0, 0, 1, 1, 2], [0], [0]>} : vector<4x8x15xf32>, vector<4x15x7xf32>, vector<4x8x7xf32> -> vector<4x8x7xf32>
    "tpu.trace_stop"() : () -> ()
    %261 = arith.addf %241, %260 : vector<4x8x7xf32>
    %262 = vector.extract_strided_slice %118 {offsets = [2, 0, 0], sizes = [1, 8, 15], strides = [1, 1, 1]} : vector<4x8x15xf32> to vector<1x8x15xf32>
    %263 = vector.shape_cast %262 : vector<1x8x15xf32> to vector<8x15xf32>
    %264 = vector.extract_strided_slice %126 {offsets = [2, 0, 0], sizes = [1, 8, 15], strides = [1, 1, 1]} : vector<4x8x15xf32> to vector<1x8x15xf32>
    %265 = vector.shape_cast %264 : vector<1x8x15xf32> to vector<8x15xf32>
    %266 = vector.extract_strided_slice %118 {offsets = [3, 0, 0], sizes = [1, 8, 15], strides = [1, 1, 1]} : vector<4x8x15xf32> to vector<1x8x15xf32>
    %267 = vector.shape_cast %266 : vector<1x8x15xf32> to vector<8x15xf32>
    %268 = vector.extract_strided_slice %126 {offsets = [3, 0, 0], sizes = [1, 8, 15], strides = [1, 1, 1]} : vector<4x8x15xf32> to vector<1x8x15xf32>
    %269 = vector.shape_cast %268 : vector<1x8x15xf32> to vector<8x15xf32>
    %270 = vector.shape_cast %263 : vector<8x15xf32> to vector<1x8x15xf32>
    %271 = vector.shape_cast %265 : vector<8x15xf32> to vector<1x8x15xf32>
    %272 = vector.shape_cast %267 : vector<8x15xf32> to vector<1x8x15xf32>
    %273 = vector.shape_cast %269 : vector<8x15xf32> to vector<1x8x15xf32>
    %274 = tpu.concatenate %270, %271, %272, %273 in 0 : vector<1x8x15xf32>, vector<1x8x15xf32>, vector<1x8x15xf32>, vector<1x8x15xf32> -> vector<4x8x15xf32>
    %c6_77 = arith.constant 6 : index
    %c0_78 = arith.constant 0 : index
    %c0_79 = arith.constant 0 : index
    %275 = vector.load %arg5[%c6_77, %c0_78, %c0_79] : memref<9x15x7xf32, #tpu.memory_space<vmem>>, vector<1x15x7xf32>
    %276 = vector.shape_cast %275 : vector<1x15x7xf32> to vector<15x7xf32>
    %277 = vector.shape_cast %276 : vector<15x7xf32> to vector<1x15x7xf32>
    %278 = vector.shape_cast %277 : vector<1x15x7xf32> to vector<1x15x7xf32>
    %279 = vector.broadcast %278 : vector<1x15x7xf32> to vector<4x15x7xf32>
    "tpu.trace_start"() <{level = 10 : i32, message = "gmk,gkc->gmc"}> : () -> ()
    %cst_80 = arith.constant dense<0.000000e+00> : vector<4x8x7xf32>
    %280 = tpu.matmul %274, %279, %cst_80 {dimension_numbers = #tpu.dot_dimension_numbers<[2], [1], [1], [2], [0, 0, 0, 1, 1, 2], [0], [0]>} : vector<4x8x15xf32>, vector<4x15x7xf32>, vector<4x8x7xf32> -> vector<4x8x7xf32>
    "tpu.trace_stop"() : () -> ()
    %281 = arith.addf %261, %280 : vector<4x8x7xf32>
    %282 = vector.extract_strided_slice %126 {offsets = [2, 0, 0], sizes = [1, 8, 15], strides = [1, 1, 1]} : vector<4x8x15xf32> to vector<1x8x15xf32>
    %283 = vector.shape_cast %282 : vector<1x8x15xf32> to vector<8x15xf32>
    %284 = vector.extract_strided_slice %134 {offsets = [2, 0, 0], sizes = [1, 8, 15], strides = [1, 1, 1]} : vector<4x8x15xf32> to vector<1x8x15xf32>
    %285 = vector.shape_cast %284 : vector<1x8x15xf32> to vector<8x15xf32>
    %286 = vector.extract_strided_slice %126 {offsets = [3, 0, 0], sizes = [1, 8, 15], strides = [1, 1, 1]} : vector<4x8x15xf32> to vector<1x8x15xf32>
    %287 = vector.shape_cast %286 : vector<1x8x15xf32> to vector<8x15xf32>
    %288 = vector.extract_strided_slice %134 {offsets = [3, 0, 0], sizes = [1, 8, 15], strides = [1, 1, 1]} : vector<4x8x15xf32> to vector<1x8x15xf32>
    %289 = vector.shape_cast %288 : vector<1x8x15xf32> to vector<8x15xf32>
    %290 = vector.shape_cast %283 : vector<8x15xf32> to vector<1x8x15xf32>
    %291 = vector.shape_cast %285 : vector<8x15xf32> to vector<1x8x15xf32>
    %292 = vector.shape_cast %287 : vector<8x15xf32> to vector<1x8x15xf32>
    %293 = vector.shape_cast %289 : vector<8x15xf32> to vector<1x8x15xf32>
    %294 = tpu.concatenate %290, %291, %292, %293 in 0 : vector<1x8x15xf32>, vector<1x8x15xf32>, vector<1x8x15xf32>, vector<1x8x15xf32> -> vector<4x8x15xf32>
    %c7_81 = arith.constant 7 : index
    %c0_82 = arith.constant 0 : index
    %c0_83 = arith.constant 0 : index
    %295 = vector.load %arg5[%c7_81, %c0_82, %c0_83] : memref<9x15x7xf32, #tpu.memory_space<vmem>>, vector<1x15x7xf32>
    %296 = vector.shape_cast %295 : vector<1x15x7xf32> to vector<15x7xf32>
    %297 = vector.shape_cast %296 : vector<15x7xf32> to vector<1x15x7xf32>
    %298 = vector.shape_cast %297 : vector<1x15x7xf32> to vector<1x15x7xf32>
    %299 = vector.broadcast %298 : vector<1x15x7xf32> to vector<4x15x7xf32>
    "tpu.trace_start"() <{level = 10 : i32, message = "gmk,gkc->gmc"}> : () -> ()
    %cst_84 = arith.constant dense<0.000000e+00> : vector<4x8x7xf32>
    %300 = tpu.matmul %294, %299, %cst_84 {dimension_numbers = #tpu.dot_dimension_numbers<[2], [1], [1], [2], [0, 0, 0, 1, 1, 2], [0], [0]>} : vector<4x8x15xf32>, vector<4x15x7xf32>, vector<4x8x7xf32> -> vector<4x8x7xf32>
    "tpu.trace_stop"() : () -> ()
    %301 = arith.addf %281, %300 : vector<4x8x7xf32>
    %302 = vector.extract_strided_slice %134 {offsets = [2, 0, 0], sizes = [1, 8, 15], strides = [1, 1, 1]} : vector<4x8x15xf32> to vector<1x8x15xf32>
    %303 = vector.shape_cast %302 : vector<1x8x15xf32> to vector<8x15xf32>
    %304 = vector.extract_strided_slice %142 {offsets = [2, 0, 0], sizes = [1, 8, 15], strides = [1, 1, 1]} : vector<4x8x15xf32> to vector<1x8x15xf32>
    %305 = vector.shape_cast %304 : vector<1x8x15xf32> to vector<8x15xf32>
    %306 = vector.extract_strided_slice %134 {offsets = [3, 0, 0], sizes = [1, 8, 15], strides = [1, 1, 1]} : vector<4x8x15xf32> to vector<1x8x15xf32>
    %307 = vector.shape_cast %306 : vector<1x8x15xf32> to vector<8x15xf32>
    %308 = vector.extract_strided_slice %142 {offsets = [3, 0, 0], sizes = [1, 8, 15], strides = [1, 1, 1]} : vector<4x8x15xf32> to vector<1x8x15xf32>
    %309 = vector.shape_cast %308 : vector<1x8x15xf32> to vector<8x15xf32>
    %310 = vector.shape_cast %303 : vector<8x15xf32> to vector<1x8x15xf32>
    %311 = vector.shape_cast %305 : vector<8x15xf32> to vector<1x8x15xf32>
    %312 = vector.shape_cast %307 : vector<8x15xf32> to vector<1x8x15xf32>
    %313 = vector.shape_cast %309 : vector<8x15xf32> to vector<1x8x15xf32>
    %314 = tpu.concatenate %310, %311, %312, %313 in 0 : vector<1x8x15xf32>, vector<1x8x15xf32>, vector<1x8x15xf32>, vector<1x8x15xf32> -> vector<4x8x15xf32>
    %c8_85 = arith.constant 8 : index
    %c0_86 = arith.constant 0 : index
    %c0_87 = arith.constant 0 : index
    %315 = vector.load %arg5[%c8_85, %c0_86, %c0_87] : memref<9x15x7xf32, #tpu.memory_space<vmem>>, vector<1x15x7xf32>
    %316 = vector.shape_cast %315 : vector<1x15x7xf32> to vector<15x7xf32>
    %317 = vector.shape_cast %316 : vector<15x7xf32> to vector<1x15x7xf32>
    %318 = vector.shape_cast %317 : vector<1x15x7xf32> to vector<1x15x7xf32>
    %319 = vector.broadcast %318 : vector<1x15x7xf32> to vector<4x15x7xf32>
    "tpu.trace_start"() <{level = 10 : i32, message = "gmk,gkc->gmc"}> : () -> ()
    %cst_88 = arith.constant dense<0.000000e+00> : vector<4x8x7xf32>
    %320 = tpu.matmul %314, %319, %cst_88 {dimension_numbers = #tpu.dot_dimension_numbers<[2], [1], [1], [2], [0, 0, 0, 1, 1, 2], [0], [0]>} : vector<4x8x15xf32>, vector<4x15x7xf32>, vector<4x8x7xf32> -> vector<4x8x7xf32>
    "tpu.trace_stop"() : () -> ()
    %321 = arith.addf %301, %320 : vector<4x8x7xf32>
    %cst_89 = arith.constant dense<0xFF800000> : vector<8x7xf32>
    %322 = vector.multi_reduction <maximumf>, %321, %cst_89 [0] : vector<4x8x7xf32> to vector<8x7xf32>
    %c0_90 = arith.constant 0 : index
    %c0_91 = arith.constant 0 : index
    %323 = vector.load %arg6[%c0_90, %c0_91] : memref<1x7xf32, #tpu.memory_space<vmem>>, vector<1x7xf32>
    %324 = vector.broadcast %323 : vector<1x7xf32> to vector<8x7xf32>
    %325 = arith.addf %322, %324 : vector<8x7xf32>
    %cst_92 = arith.constant 0.000000e+00 : f32
    %326 = vector.broadcast %cst_92 : f32 to vector<8x7xf32>
    %327 = arith.maximumf %325, %326 : vector<8x7xf32>
    %cst_93 = arith.constant 0.000000e+00 : f32
    %328 = vector.broadcast %cst_93 : f32 to vector<1x5xf32>
    %cst_94 = arith.constant 0.000000e+00 : f32
    %329 = vector.broadcast %cst_94 : f32 to vector<1x5xf32>
    %cst_95 = arith.constant 0.000000e+00 : f32
    %330 = vector.broadcast %cst_95 : f32 to vector<1x5xf32>
    %cst_96 = arith.constant 0.000000e+00 : f32
    %331 = vector.broadcast %cst_96 : f32 to vector<1x5xf32>
    %cst_97 = arith.constant 0.000000e+00 : f32
    %332 = vector.broadcast %cst_97 : f32 to vector<1x5xf32>
    %cst_98 = arith.constant 0.000000e+00 : f32
    %333 = vector.broadcast %cst_98 : f32 to vector<1x5xf32>
    %cst_99 = arith.constant 0.000000e+00 : f32
    %334 = vector.broadcast %cst_99 : f32 to vector<1x5xf32>
    %cst_100 = arith.constant 0.000000e+00 : f32
    %335 = vector.broadcast %cst_100 : f32 to vector<1x5xf32>
    %336 = vector.extract_strided_slice %327 {offsets = [0, 0], sizes = [1, 7], strides = [1, 1]} : vector<8x7xf32> to vector<1x7xf32>
    %c0_101 = arith.constant 0 : index
    %c0_102 = arith.constant 0 : index
    %c0_103 = arith.constant 0 : index
    %337 = vector.load %arg7[%c0_101, %c0_102, %c0_103] : memref<11x7x5xf32, #tpu.memory_space<vmem>>, vector<1x7x5xf32>
    %338 = vector.shape_cast %337 : vector<1x7x5xf32> to vector<7x5xf32>
    %cst_104 = arith.constant dense<0.000000e+00> : vector<1x5xf32>
    %339 = tpu.matmul %336, %338, %cst_104 {dimension_numbers = #tpu.dot_dimension_numbers<[1], [0], [0], [1], [0, 0, 1, 1], [], []>} : vector<1x7xf32>, vector<7x5xf32>, vector<1x5xf32> -> vector<1x5xf32>
    %340 = arith.addf %328, %339 : vector<1x5xf32>
    %341 = vector.extract_strided_slice %327 {offsets = [0, 0], sizes = [1, 7], strides = [1, 1]} : vector<8x7xf32> to vector<1x7xf32>
    %c1_105 = arith.constant 1 : index
    %c0_106 = arith.constant 0 : index
    %c0_107 = arith.constant 0 : index
    %342 = vector.load %arg7[%c1_105, %c0_106, %c0_107] : memref<11x7x5xf32, #tpu.memory_space<vmem>>, vector<1x7x5xf32>
    %343 = vector.shape_cast %342 : vector<1x7x5xf32> to vector<7x5xf32>
    %cst_108 = arith.constant dense<0.000000e+00> : vector<1x5xf32>
    %344 = tpu.matmul %341, %343, %cst_108 {dimension_numbers = #tpu.dot_dimension_numbers<[1], [0], [0], [1], [0, 0, 1, 1], [], []>} : vector<1x7xf32>, vector<7x5xf32>, vector<1x5xf32> -> vector<1x5xf32>
    %345 = arith.addf %329, %344 : vector<1x5xf32>
    %346 = vector.extract_strided_slice %327 {offsets = [1, 0], sizes = [1, 7], strides = [1, 1]} : vector<8x7xf32> to vector<1x7xf32>
    %c2_109 = arith.constant 2 : index
    %c0_110 = arith.constant 0 : index
    %c0_111 = arith.constant 0 : index
    %347 = vector.load %arg7[%c2_109, %c0_110, %c0_111] : memref<11x7x5xf32, #tpu.memory_space<vmem>>, vector<1x7x5xf32>
    %348 = vector.shape_cast %347 : vector<1x7x5xf32> to vector<7x5xf32>
    %cst_112 = arith.constant dense<0.000000e+00> : vector<1x5xf32>
    %349 = tpu.matmul %346, %348, %cst_112 {dimension_numbers = #tpu.dot_dimension_numbers<[1], [0], [0], [1], [0, 0, 1, 1], [], []>} : vector<1x7xf32>, vector<7x5xf32>, vector<1x5xf32> -> vector<1x5xf32>
    %350 = arith.addf %345, %349 : vector<1x5xf32>
    %351 = vector.extract_strided_slice %327 {offsets = [1, 0], sizes = [1, 7], strides = [1, 1]} : vector<8x7xf32> to vector<1x7xf32>
    %c3_113 = arith.constant 3 : index
    %c0_114 = arith.constant 0 : index
    %c0_115 = arith.constant 0 : index
    %352 = vector.load %arg7[%c3_113, %c0_114, %c0_115] : memref<11x7x5xf32, #tpu.memory_space<vmem>>, vector<1x7x5xf32>
    %353 = vector.shape_cast %352 : vector<1x7x5xf32> to vector<7x5xf32>
    %cst_116 = arith.constant dense<0.000000e+00> : vector<1x5xf32>
    %354 = tpu.matmul %351, %353, %cst_116 {dimension_numbers = #tpu.dot_dimension_numbers<[1], [0], [0], [1], [0, 0, 1, 1], [], []>} : vector<1x7xf32>, vector<7x5xf32>, vector<1x5xf32> -> vector<1x5xf32>
    %355 = arith.addf %330, %354 : vector<1x5xf32>
    %356 = vector.extract_strided_slice %327 {offsets = [2, 0], sizes = [1, 7], strides = [1, 1]} : vector<8x7xf32> to vector<1x7xf32>
    %c4_117 = arith.constant 4 : index
    %c0_118 = arith.constant 0 : index
    %c0_119 = arith.constant 0 : index
    %357 = vector.load %arg7[%c4_117, %c0_118, %c0_119] : memref<11x7x5xf32, #tpu.memory_space<vmem>>, vector<1x7x5xf32>
    %358 = vector.shape_cast %357 : vector<1x7x5xf32> to vector<7x5xf32>
    %cst_120 = arith.constant dense<0.000000e+00> : vector<1x5xf32>
    %359 = tpu.matmul %356, %358, %cst_120 {dimension_numbers = #tpu.dot_dimension_numbers<[1], [0], [0], [1], [0, 0, 1, 1], [], []>} : vector<1x7xf32>, vector<7x5xf32>, vector<1x5xf32> -> vector<1x5xf32>
    %360 = arith.addf %355, %359 : vector<1x5xf32>
    %361 = vector.extract_strided_slice %327 {offsets = [2, 0], sizes = [1, 7], strides = [1, 1]} : vector<8x7xf32> to vector<1x7xf32>
    %c5_121 = arith.constant 5 : index
    %c0_122 = arith.constant 0 : index
    %c0_123 = arith.constant 0 : index
    %362 = vector.load %arg7[%c5_121, %c0_122, %c0_123] : memref<11x7x5xf32, #tpu.memory_space<vmem>>, vector<1x7x5xf32>
    %363 = vector.shape_cast %362 : vector<1x7x5xf32> to vector<7x5xf32>
    %cst_124 = arith.constant dense<0.000000e+00> : vector<1x5xf32>
    %364 = tpu.matmul %361, %363, %cst_124 {dimension_numbers = #tpu.dot_dimension_numbers<[1], [0], [0], [1], [0, 0, 1, 1], [], []>} : vector<1x7xf32>, vector<7x5xf32>, vector<1x5xf32> -> vector<1x5xf32>
    %365 = arith.addf %331, %364 : vector<1x5xf32>
    %366 = vector.extract_strided_slice %327 {offsets = [2, 0], sizes = [1, 7], strides = [1, 1]} : vector<8x7xf32> to vector<1x7xf32>
    %c6_125 = arith.constant 6 : index
    %c0_126 = arith.constant 0 : index
    %c0_127 = arith.constant 0 : index
    %367 = vector.load %arg7[%c6_125, %c0_126, %c0_127] : memref<11x7x5xf32, #tpu.memory_space<vmem>>, vector<1x7x5xf32>
    %368 = vector.shape_cast %367 : vector<1x7x5xf32> to vector<7x5xf32>
    %cst_128 = arith.constant dense<0.000000e+00> : vector<1x5xf32>
    %369 = tpu.matmul %366, %368, %cst_128 {dimension_numbers = #tpu.dot_dimension_numbers<[1], [0], [0], [1], [0, 0, 1, 1], [], []>} : vector<1x7xf32>, vector<7x5xf32>, vector<1x5xf32> -> vector<1x5xf32>
    %370 = arith.addf %332, %369 : vector<1x5xf32>
    %371 = vector.extract_strided_slice %327 {offsets = [3, 0], sizes = [1, 7], strides = [1, 1]} : vector<8x7xf32> to vector<1x7xf32>
    %c7_129 = arith.constant 7 : index
    %c0_130 = arith.constant 0 : index
    %c0_131 = arith.constant 0 : index
    %372 = vector.load %arg7[%c7_129, %c0_130, %c0_131] : memref<11x7x5xf32, #tpu.memory_space<vmem>>, vector<1x7x5xf32>
    %373 = vector.shape_cast %372 : vector<1x7x5xf32> to vector<7x5xf32>
    %cst_132 = arith.constant dense<0.000000e+00> : vector<1x5xf32>
    %374 = tpu.matmul %371, %373, %cst_132 {dimension_numbers = #tpu.dot_dimension_numbers<[1], [0], [0], [1], [0, 0, 1, 1], [], []>} : vector<1x7xf32>, vector<7x5xf32>, vector<1x5xf32> -> vector<1x5xf32>
    %375 = arith.addf %370, %374 : vector<1x5xf32>
    %376 = vector.extract_strided_slice %327 {offsets = [3, 0], sizes = [1, 7], strides = [1, 1]} : vector<8x7xf32> to vector<1x7xf32>
    %c8_133 = arith.constant 8 : index
    %c0_134 = arith.constant 0 : index
    %c0_135 = arith.constant 0 : index
    %377 = vector.load %arg7[%c8_133, %c0_134, %c0_135] : memref<11x7x5xf32, #tpu.memory_space<vmem>>, vector<1x7x5xf32>
    %378 = vector.shape_cast %377 : vector<1x7x5xf32> to vector<7x5xf32>
    %cst_136 = arith.constant dense<0.000000e+00> : vector<1x5xf32>
    %379 = tpu.matmul %376, %378, %cst_136 {dimension_numbers = #tpu.dot_dimension_numbers<[1], [0], [0], [1], [0, 0, 1, 1], [], []>} : vector<1x7xf32>, vector<7x5xf32>, vector<1x5xf32> -> vector<1x5xf32>
    %380 = arith.addf %333, %379 : vector<1x5xf32>
    %381 = vector.extract_strided_slice %327 {offsets = [4, 0], sizes = [1, 7], strides = [1, 1]} : vector<8x7xf32> to vector<1x7xf32>
    %c9 = arith.constant 9 : index
    %c0_137 = arith.constant 0 : index
    %c0_138 = arith.constant 0 : index
    %382 = vector.load %arg7[%c9, %c0_137, %c0_138] : memref<11x7x5xf32, #tpu.memory_space<vmem>>, vector<1x7x5xf32>
    %383 = vector.shape_cast %382 : vector<1x7x5xf32> to vector<7x5xf32>
    %cst_139 = arith.constant dense<0.000000e+00> : vector<1x5xf32>
    %384 = tpu.matmul %381, %383, %cst_139 {dimension_numbers = #tpu.dot_dimension_numbers<[1], [0], [0], [1], [0, 0, 1, 1], [], []>} : vector<1x7xf32>, vector<7x5xf32>, vector<1x5xf32> -> vector<1x5xf32>
    %385 = arith.addf %380, %384 : vector<1x5xf32>
    %386 = vector.extract_strided_slice %327 {offsets = [4, 0], sizes = [1, 7], strides = [1, 1]} : vector<8x7xf32> to vector<1x7xf32>
    %c10 = arith.constant 10 : index
    %c0_140 = arith.constant 0 : index
    %c0_141 = arith.constant 0 : index
    %387 = vector.load %arg7[%c10, %c0_140, %c0_141] : memref<11x7x5xf32, #tpu.memory_space<vmem>>, vector<1x7x5xf32>
    %388 = vector.shape_cast %387 : vector<1x7x5xf32> to vector<7x5xf32>
    %cst_142 = arith.constant dense<0.000000e+00> : vector<1x5xf32>
    %389 = tpu.matmul %386, %388, %cst_142 {dimension_numbers = #tpu.dot_dimension_numbers<[1], [0], [0], [1], [0, 0, 1, 1], [], []>} : vector<1x7xf32>, vector<7x5xf32>, vector<1x5xf32> -> vector<1x5xf32>
    %390 = arith.addf %334, %389 : vector<1x5xf32>
    %391 = tpu.concatenate %340, %350, %360, %365, %375, %385, %390, %335 in 0 : vector<1x5xf32>, vector<1x5xf32>, vector<1x5xf32>, vector<1x5xf32>, vector<1x5xf32>, vector<1x5xf32>, vector<1x5xf32>, vector<1x5xf32> -> vector<8x5xf32>
    %c0_143 = arith.constant 0 : index
    %c0_144 = arith.constant 0 : index
    %392 = vector.load %arg8[%c0_143, %c0_144] : memref<5x30xf32, #tpu.memory_space<vmem>>, vector<5x30xf32>
    %cst_145 = arith.constant dense<0.000000e+00> : vector<8x30xf32>
    %393 = tpu.matmul %391, %392, %cst_145 {dimension_numbers = #tpu.dot_dimension_numbers<[1], [0], [0], [1], [0, 0, 1, 1], [], []>} : vector<8x5xf32>, vector<5x30xf32>, vector<8x30xf32> -> vector<8x30xf32>
    %c0_146 = arith.constant 0 : index
    %c0_147 = arith.constant 0 : index
    %394 = vector.load %arg9[%c0_146, %c0_147] : memref<1x30xf32, #tpu.memory_space<vmem>>, vector<1x30xf32>
    %395 = vector.broadcast %394 : vector<1x30xf32> to vector<8x30xf32>
    %396 = arith.addf %393, %395 : vector<8x30xf32>
    %cst_148 = arith.constant 0.000000e+00 : f32
    %397 = vector.broadcast %cst_148 : f32 to vector<8x30xf32>
    %398 = arith.maximumf %396, %397 : vector<8x30xf32>
    %c0_149 = arith.constant 0 : index
    %c0_150 = arith.constant 0 : index
    %399 = vector.load %arg10[%c0_149, %c0_150] : memref<30x128xf32, #tpu.memory_space<vmem>>, vector<30x128xf32>
    %cst_151 = arith.constant dense<0.000000e+00> : vector<8x128xf32>
    %400 = tpu.matmul %398, %399, %cst_151 {dimension_numbers = #tpu.dot_dimension_numbers<[1], [0], [0], [1], [0, 0, 1, 1], [], []>} : vector<8x30xf32>, vector<30x128xf32>, vector<8x128xf32> -> vector<8x128xf32>
    %c0_152 = arith.constant 0 : index
    %c0_153 = arith.constant 0 : index
    %401 = vector.load %arg11[%c0_152, %c0_153] : memref<1x128xf32, #tpu.memory_space<vmem>>, vector<1x128xf32>
    %402 = vector.broadcast %401 : vector<1x128xf32> to vector<8x128xf32>
    %403 = arith.addf %400, %402 : vector<8x128xf32>
    %cst_154 = arith.constant dense<0xFF800000> : vector<8xf32>
    %404 = vector.multi_reduction <maximumf>, %403, %cst_154 [1] : vector<8x128xf32> to vector<8xf32>
    %405 = vector.shape_cast %404 : vector<8xf32> to vector<8x1xf32>
    %406 = vector.broadcast %405 : vector<8x1xf32> to vector<8x128xf32>
    %407 = arith.subf %403, %406 : vector<8x128xf32>
    %408 = math.exp %407 : vector<8x128xf32>
    %cst_155 = arith.constant dense<0.000000e+00> : vector<8xf32>
    %409 = vector.multi_reduction <add>, %408, %cst_155 [1] : vector<8x128xf32> to vector<8xf32>
    %410 = vector.shape_cast %409 : vector<8xf32> to vector<8x1xf32>
    %411 = math.log %410 : vector<8x1xf32>
    %412 = vector.broadcast %411 : vector<8x1xf32> to vector<8x128xf32>
    %413 = arith.subf %407, %412 : vector<8x128xf32>
    %c0_156 = arith.constant 0 : index
    %c0_157 = arith.constant 0 : index
    %414 = vector.load %arg12[%c0_156, %c0_157] : memref<8x128xf32, #tpu.memory_space<vmem>>, vector<8x128xf32>
    tpu.vector_store %arg12[%c0_156, %c0_157], %413 {strides = array<i32>} : memref<8x128xf32, #tpu.memory_space<vmem>>, vector<8x128xf32>,
    return
  }
}

</mosaic_0001>

<bundles_post_ra>
// kernel: net5_forward.1
= control target key start
LH: loop header
LB: loop body
LE: loop exit
PB: predicated region body
PF: predicated region fallthrough
CT: control target
= control target key end

     0   :  { %vm475_vm0 = vcmask 1040384   ;;  %vm25590_vm1 = vmmov 1   ;;  %vm444_vm3 = vcmask 72704   ;;  %s32146_s0 = inlined_call_operand.vmem [shape: f32[40,80,9], index: 0, kind: input, shape index: {}]   ;;  %s32147_s1 = inlined_call_operand.vmem [shape: f32[9,10], index: 1, kind: input, shape index: {}]   ;;  %s32148_s2 = inlined_call_operand.vmem [shape: f32[1,1,10], index: 2, kind: input, shape index: {}]   ;;  %s32149_s3 = inlined_call_operand.vmem [shape: f32[9,10,15], index: 3, kind: input, shape index: {}]   ;;  %s32150_s4 = inlined_call_operand.vmem [shape: f32[1,1,15], index: 4, kind: input, shape index: {}]   ;;  %s32151_s5 = inlined_call_operand.vmem [shape: f32[9,15,7], index: 5, kind: input, shape index: {}]   ;;  %s32152_s6 = inlined_call_operand.vmem [shape: f32[1,7], index: 6, kind: input, shape index: {}]   ;;  %s32153_s7 = inlined_call_operand.vmem [shape: f32[11,7,5], index: 7, kind: input, shape index: {}]   ;;  %s32154_s8 = inlined_call_operand.vmem [shape: f32[5,30], index: 8, kind: input, shape index: {}]   ;;  %s32155_s9 = inlined_call_operand.vmem [shape: f32[1,30], index: 9, kind: input, shape index: {}]   ;;  %s32156_s10 = inlined_call_operand.vmem [shape: f32[30,128], index: 10, kind: input, shape index: {}]   ;;  %s32157_s11 = inlined_call_operand.vmem [shape: f32[1,128], index: 11, kind: input, shape index: {}]   ;;  %s32158_s12 = inlined_call_operand.hbm [shape: f32[8,128], index: 12, kind: output, shape index: {}]  }
   0x1   :  { %v42_v0 = vld [vmem:[%s32147_s1] sm:$0xff]  ;;  %v43_v1 = vld [vmem:[%s32147_s1 + $0x8] sm:$0x1]  ;;  %vm25670_vm2 = vmpackc.low %vm475_vm0, %vm25590_vm1 }
   0x2   :  { %v25666_v2 = vpack.c.bf16 %v43_v1, %v42_v0  ;;  %v44_v4 = vld [vmem:[%s32146_s0] sm:$0xff]  ;;  %v45_v6 = vld [vmem:[%s32146_s0 + $0x8] sm:$0xff]  ;;  %v46_v8 = vld [vmem:[%s32146_s0 + $0x10] sm:$0xff] }
   0x3   :  { %v52_v5 = vld [vmem:[%s32146_s0 + $0x40] sm:$0xff]  ;;  %21915 = vmatprep.mubr.msk.f32.mxu0 %vm444_vm3, %v44_v4  ;;  %v53_v7 = vld [vmem:[%s32146_s0 + $0x48] sm:$0xff]  ;;  %v54_v9 = vld [vmem:[%s32146_s0 + $0x50] sm:$0xff] }
   0x4   :  { %21927 = vmatprep.mubr.msk.f32.mxu1 %vm444_vm3, %v52_v5  ;;  %24148 = vmatprep.subr.msk.bf16.mxu0 %vm25670_vm2, %v25666_v2  ;;  %v47_v10 = vld [vmem:[%s32146_s0 + $0x18] sm:$0xff]  ;;  %v48_v12 = vld [vmem:[%s32146_s0 + $0x20] sm:$0xff]  ;;  %v49_v14 = vld [vmem:[%s32146_s0 + $0x28] sm:$0xff] }
   0x5   :  { %24969 = vmatprep.subr.msk.bf16.mxu1 %vm25670_vm2, %v25666_v2  ;;  %24151 = vmatpush3.bf16.msk.msra.mxu0 %vm25670_vm2, %v25666_v2  ;;  %v55_v11 = vld [vmem:[%s32146_s0 + $0x58] sm:$0xff]  ;;  %v56_v13 = vld [vmem:[%s32146_s0 + $0x60] sm:$0xff]  ;;  %v57_v15 = vld [vmem:[%s32146_s0 + $0x68] sm:$0xff] }
   0x6   :  { %24970 = vmatpush3.bf16.msk.msra.mxu1 %vm25670_vm2, %v25666_v2  ;;  %24160 = vmatprep.subr.msk.bf16.mxu0 %vm25670_vm2, %v25666_v2  ;;  %v50_v16 = vld [vmem:[%s32146_s0 + $0x30] sm:$0xff]  ;;  %v51_v18 = vld [vmem:[%s32146_s0 + $0x38] sm:$0xff]  ;;  %v60_v20 = vld [vmem:[%s32146_s0 + $0x80] sm:$0xff] }
   0x7   :  { %24154 = vmatprep.subr.msk.bf16.mxu1 %vm25670_vm2, %v25666_v2  ;;  %v58_v17 = vld [vmem:[%s32146_s0 + $0x70] sm:$0xff]  ;;  %v59_v19 = vld [vmem:[%s32146_s0 + $0x78] sm:$0xff]  ;;  %v64_v21 = vld [vmem:[%s32146_s0 + $0xa0] sm:$0xff] }
   0x8   :  { %21916 = vmatmul.mubr.msk.f32.vlgmr.msra.gmra.mrb[0].mxu0 %vm444_vm3, %v45_v6  ;;  %v61_v22 = vld [vmem:[%s32146_s0 + $0x88] sm:$0xff]  ;;  %v62_v24 = vld [vmem:[%s32146_s0 + $0x90] sm:$0xff]  ;;  %v63_v26 = vld [vmem:[%s32146_s0 + $0x98] sm:$0xff] }
   0x9   :  { %21928 = vmatmul.mubr.msk.f32.vlgmr.msra.gmra.mrb[0].mxu1 %vm444_vm3, %v53_v7  ;;  %21918 = vmatprep.mubr.msk.f32.mxu0 %vm444_vm3, %v46_v8  ;;  %v65_v23 = vld [vmem:[%s32146_s0 + $0xa8] sm:$0xff]  ;;  %v66_v25 = vld [vmem:[%s32146_s0 + $0xb0] sm:$0xff]  ;;  %v67_v27 = vld [vmem:[%s32146_s0 + $0xb8] sm:$0xff] }
   0xa   :  { %24157 = vmatpush3.bf16.msk.msra.mxu1 %vm25670_vm2, %v25666_v2  ;;  %21934 = vmatprep.mubr.msk.f32.mxu1 %vm444_vm3, %v54_v9  ;;  %v68_v28 = vld [vmem:[%s32146_s0 + $0xc0] sm:$0xff]  ;;  %v74_v29 = vld [vmem:[%s32146_s0 + $0xf0] sm:$0xff]  ;;  %v69_v30 = vld [vmem:[%s32146_s0 + $0xc8] sm:$0xff] }
   0xb   :  { %24166 = vmatprep.subr.msk.bf16.mxu1 %vm25670_vm2, %v25666_v2  ;;  %24163 = vmatpush3.bf16.msk.msra.mxu0 %vm25670_vm2, %v25666_v2  ;;  %v75_v31 = vld [vmem:[%s32146_s0 + $0xf8] sm:$0xff]  ;;  %v70_v32 = vld [vmem:[%s32146_s0 + $0xd0] sm:$0xff]  ;;  %v76_v33 = vld [vmem:[%s32146_s0 + $0x100] sm:$0xff] }
   0xc   :  { %21919 = vmatmul.mubr.msk.f32.gmra.mrb[2].mxu0 %vm444_vm3, %v47_v10  ;;  %24172 = vmatprep.subr.msk.bf16.mxu0 %vm25670_vm2, %v25666_v2  ;;  %v71_v34 = vld [vmem:[%s32146_s0 + $0xd8] sm:$0xff]  ;;  %v77_v35 = vld [vmem:[%s32146_s0 + $0x108] sm:$0xff]  ;;  %v72_v36 = vld [vmem:[%s32146_s0 + $0xe0] sm:$0xff] }
   0xd   :  { %21935 = vmatmul.mubr.msk.f32.vlgmr.msra.gmra.mrb[2].mxu1 %vm444_vm3, %v55_v11  ;;  %21921 = vmatprep.mubr.msk.f32.mxu0 %vm444_vm3, %v48_v12  ;;  %v78_v37 = vld [vmem:[%s32146_s0 + $0x110] sm:$0xff]  ;;  %v73_v38 = vld [vmem:[%s32146_s0 + $0xe8] sm:$0xff]  ;;  %v79_v39 = vld [vmem:[%s32146_s0 + $0x118] sm:$0xff] }
   0xe   :  { %24169 = vmatpush3.bf16.msk.msra.mxu1 %vm25670_vm2, %v25666_v2  ;;  %21937 = vmatprep.mubr.msk.f32.mxu1 %vm444_vm3, %v56_v13  ;;  %v80_v40 = vld [vmem:[%s32146_s0 + $0x120] sm:$0xff]  ;;  %v81_v42 = vld [vmem:[%s32146_s0 + $0x128] sm:$0xff]  ;;  %v82_v44 = vld [vmem:[%s32146_s0 + $0x130] sm:$0xff] }
   0xf   :  { %24178 = vmatprep.subr.msk.bf16.mxu1 %vm25670_vm2, %v25666_v2  ;;  %v84_v41 = vld [vmem:[%s32146_s0 + $0x140] sm:$0xff]  ;;  %v85_v43 = vld [vmem:[%s32146_s0 + $0x148] sm:$0xff]  ;;  %v86_v45 = vld [vmem:[%s32146_s0 + $0x150] sm:$0xff] }
  0x10   :  { %21922 = vmatmul.mubr.msk.f32.gmra.mrb[4].mxu0 %vm444_vm3, %v49_v14  ;;  %v83_v46 = vld [vmem:[%s32146_s0 + $0x138] sm:$0xff]  ;;  %v88_v48 = vld [vmem:[%s32146_s0 + $0x160] sm:$0xff]  ;;  %v94_v49 = vld [vmem:[%s32146_s0 + $0x190] sm:$0xff] }
  0x11   :  { %21938 = vmatmul.mubr.msk.f32.gmra.mrb[4].mxu1 %vm444_vm3, %v57_v15  ;;  %21924 = vmatprep.mubr.msk.f32.mxu0 %vm444_vm3, %v50_v16  ;;  %v87_v47 = vld [vmem:[%s32146_s0 + $0x158] sm:$0xff]  ;;  %v89_v50 = vld [vmem:[%s32146_s0 + $0x168] sm:$0xff]  ;;  %v90_v52 = vld [vmem:[%s32146_s0 + $0x170] sm:$0xff] }
  0x12   :  { %21940 = vmatprep.mubr.msk.f32.mxu1 %vm444_vm3, %v58_v17  ;;  %v95_v51 = vld [vmem:[%s32146_s0 + $0x198] sm:$0xff]  ;;  %v96_v53 = vld [vmem:[%s32146_s0 + $0x1a0] sm:$0xff]  ;;  %v97_v55 = vld [vmem:[%s32146_s0 + $0x1a8] sm:$0xff] }
  0x13   :  { %v91_v54 = vld [vmem:[%s32146_s0 + $0x178] sm:$0xff]  ;;  %v92_v56 = vld [vmem:[%s32146_s0 + $0x180] sm:$0xff]  ;;  %v98_v57 = vld [vmem:[%s32146_s0 + $0x1b0] sm:$0xff] }
  0x14   :  { %21925 = vmatmul.mubr.msk.f32.gmra.mrb[6].mxu0 %vm444_vm3, %v51_v18  ;;  %v93_v58 = vld [vmem:[%s32146_s0 + $0x188] sm:$0xff]  ;;  %v99_v59 = vld [vmem:[%s32146_s0 + $0x1b8] sm:$0xff]  ;;  %v100_v60 = vld [vmem:[%s32146_s0 + $0x1c0] sm:$0xff] }
  0x15   :  { %21941 = vmatmul.mubr.msk.f32.gmra.mrb[6].mxu1 %vm444_vm3, %v59_v19  ;;  %21953 = vmatprep.mubr.msk.f32.mxu0 %vm444_vm3, %v64_v21  ;;  %v104_v61 = vld [vmem:[%s32146_s0 + $0x1e0] sm:$0xff]  ;;  %v101_v62 = vld [vmem:[%s32146_s0 + $0x1c8] sm:$0xff]  ;;  %v102_v0 = vld [vmem:[%s32146_s0 + $0x1d0] sm:$0xff] }
  0x16   :  { %21943 = vmatprep.mubr.msk.f32.mxu1 %vm444_vm3, %v60_v20  ;;  %v105_v63 = vld [vmem:[%s32146_s0 + $0x1e8] sm:$0xff]  ;;  %v106_v1 = vld [vmem:[%s32146_s0 + $0x1f0] sm:$0xff]  ;;  %v103_v4 = vld [vmem:[%s32146_s0 + $0x1d8] sm:$0xff] }
  0x17   :  { %v107_v5 = vld [vmem:[%s32146_s0 + $0x1f8] sm:$0xff]  ;;  %v108_v6 = vld [vmem:[%s32146_s0 + $0x200] sm:$0xff]  ;;  %v114_v7 = vld [vmem:[%s32146_s0 + $0x230] sm:$0xff] }
  0x18   :  { %21954 = vmatmul.mubr.msk.f32.vlgmr.msra.gmra.mrb[8].mxu0 %vm444_vm3, %v65_v23 }
  0x19   :  { %21944 = vmatmul.mubr.msk.f32.gmra.mrb[8].mxu1 %vm444_vm3, %v61_v22  ;;  %21956 = vmatprep.mubr.msk.f32.mxu0 %vm444_vm3, %v66_v25 }
  0x1a   :  { %21946 = vmatprep.mubr.msk.f32.mxu1 %vm444_vm3, %v62_v24  ;;  %24175 = vmatpush3.bf16.msk.msra.mxu0 %vm25670_vm2, %v25666_v2 }
  0x1b   :  { %24184 = vmatprep.subr.msk.bf16.mxu0 %vm25670_vm2, %v25666_v2 }
  0x1c   :  { %21957 = vmatmul.mubr.msk.f32.gmra.mrb[10].mxu0 %vm444_vm3, %v67_v27 }
  0x1d   :  { %21947 = vmatmul.mubr.msk.f32.gmra.mrb[10].mxu1 %vm444_vm3, %v63_v26  ;;  %21959 = vmatprep.mubr.msk.f32.mxu0 %vm444_vm3, %v68_v28 }
  0x1e   :  { %21972 = vmatprep.mubr.msk.f32.mxu1 %vm444_vm3, %v74_v29 }
  0x20   :  { %21960 = vmatmul.mubr.msk.f32.gmra.mrb[12].mxu0 %vm444_vm3, %v69_v30 }
  0x21   :  { %21973 = vmatmul.mubr.msk.f32.vlgmr.msra.gmra.mrb[12].mxu1 %vm444_vm3, %v75_v31  ;;  %21962 = vmatprep.mubr.msk.f32.mxu0 %vm444_vm3, %v70_v32 }
  0x22   :  { %24181 = vmatpush3.bf16.msk.msra.mxu1 %vm25670_vm2, %v25666_v2  ;;  %21975 = vmatprep.mubr.msk.f32.mxu1 %vm444_vm3, %v76_v33 }
  0x23   :  { %24190 = vmatprep.subr.msk.bf16.mxu1 %vm25670_vm2, %v25666_v2 }
  0x24   :  { %21963 = vmatmul.mubr.msk.f32.gmra.mrb[14].mxu0 %vm444_vm3, %v71_v34 }
  0x25   :  { %21976 = vmatmul.mubr.msk.f32.gmra.mrb[14].mxu1 %vm444_vm3, %v77_v35  ;;  %21965 = vmatprep.mubr.msk.f32.mxu0 %vm444_vm3, %v72_v36 }
  0x26   :  { %21978 = vmatprep.mubr.msk.f32.mxu1 %vm444_vm3, %v78_v37 }
  0x28   :  { %21966 = vmatmul.mubr.msk.f32.gmra.mrb[16].mxu0 %vm444_vm3, %v73_v38 }
  0x29   :  { %21979 = vmatmul.mubr.msk.f32.gmra.mrb[16].mxu1 %vm444_vm3, %v79_v39  ;;  %21991 = vmatprep.mubr.msk.f32.mxu0 %vm444_vm3, %v84_v41 }
  0x2a   :  { %21981 = vmatprep.mubr.msk.f32.mxu1 %vm444_vm3, %v80_v40 }
  0x2c   :  { %21992 = vmatmul.mubr.msk.f32.vlgmr.msra.gmra.mrb[18].mxu0 %vm444_vm3, %v85_v43 }
  0x2d   :  { %21982 = vmatmul.mubr.msk.f32.gmra.mrb[18].mxu1 %vm444_vm3, %v81_v42  ;;  %21994 = vmatprep.mubr.msk.f32.mxu0 %vm444_vm3, %v86_v45 }
  0x2e   :  { %21984 = vmatprep.mubr.msk.f32.mxu1 %vm444_vm3, %v82_v44  ;;  %24187 = vmatpush3.bf16.msk.msra.mxu0 %vm25670_vm2, %v25666_v2 }
  0x2f   :  { %24196 = vmatprep.subr.msk.bf16.mxu0 %vm25670_vm2, %v25666_v2 }
  0x30   :  { %21995 = vmatmul.mubr.msk.f32.gmra.mrb[20].mxu0 %vm444_vm3, %v87_v47 }
  0x31   :  { %21985 = vmatmul.mubr.msk.f32.gmra.mrb[20].mxu1 %vm444_vm3, %v83_v46  ;;  %21997 = vmatprep.mubr.msk.f32.mxu0 %vm444_vm3, %v88_v48 }
  0x32   :  { %22010 = vmatprep.mubr.msk.f32.mxu1 %vm444_vm3, %v94_v49 }
  0x34   :  { %21998 = vmatmul.mubr.msk.f32.gmra.mrb[22].mxu0 %vm444_vm3, %v89_v50 }
  0x35   :  { %22011 = vmatmul.mubr.msk.f32.vlgmr.msra.gmra.mrb[22].mxu1 %vm444_vm3, %v95_v51  ;;  %22000 = vmatprep.mubr.msk.f32.mxu0 %vm444_vm3, %v90_v52 }
  0x36   :  { %24193 = vmatpush3.bf16.msk.msra.mxu1 %vm25670_vm2, %v25666_v2  ;;  %22013 = vmatprep.mubr.msk.f32.mxu1 %vm444_vm3, %v96_v53 }
  0x37   :  { %24202 = vmatprep.subr.msk.bf16.mxu1 %vm25670_vm2, %v25666_v2 }
  0x38   :  { %22001 = vmatmul.mubr.msk.f32.gmra.mrb[24].mxu0 %vm444_vm3, %v91_v54 }
  0x39   :  { %22014 = vmatmul.mubr.msk.f32.gmra.mrb[24].mxu1 %vm444_vm3, %v97_v55  ;;  %22003 = vmatprep.mubr.msk.f32.mxu0 %vm444_vm3, %v92_v56 }
  0x3a   :  { %22016 = vmatprep.mubr.msk.f32.mxu1 %vm444_vm3, %v98_v57 }
  0x3c   :  { %22004 = vmatmul.mubr.msk.f32.gmra.mrb[26].mxu0 %vm444_vm3, %v93_v58 }
  0x3d   :  { %22017 = vmatmul.mubr.msk.f32.gmra.mrb[26].mxu1 %vm444_vm3, %v99_v59  ;;  %22029 = vmatprep.mubr.msk.f32.mxu0 %vm444_vm3, %v104_v61 }
  0x3e   :  { %22019 = vmatprep.mubr.msk.f32.mxu1 %vm444_vm3, %v100_v60 }
  0x40   :  { %22030 = vmatmul.mubr.msk.f32.vlgmr.msra.gmra.mrb[28].mxu0 %vm444_vm3, %v105_v63 }
  0x41   :  { %22020 = vmatmul.mubr.msk.f32.gmra.mrb[28].mxu1 %vm444_vm3, %v101_v62  ;;  %22032 = vmatprep.mubr.msk.f32.mxu0 %vm444_vm3, %v106_v1 }
  0x42   :  { %22022 = vmatprep.mubr.msk.f32.mxu1 %vm444_vm3, %v102_v0  ;;  %24199 = vmatpush3.bf16.msk.msra.mxu0 %vm25670_vm2, %v25666_v2 }
  0x43   :  { %17 = vsyncpa [#allocation3], 0  ;;  %24208 = vmatprep.subr.msk.bf16.mxu0 %vm25670_vm2, %v25666_v2  ;;  %v109_v8 = vld [vmem:[%s32146_s0 + $0x208] sm:$0xff]  ;;  %v115_v9 = vld [vmem:[%s32146_s0 + $0x238] sm:$0xff]  ;;  %vm6249_vm4 = vcmask 80896   ;;  %vm7186_vm5 = vcmask 1041408  }
  0x44   :  { %22033 = vmatmul.mubr.msk.f32.gmra.mrb[30].mxu0 %vm444_vm3, %v107_v5  ;;  %v110_v10 = vld [vmem:[%s32146_s0 + $0x210] sm:$0xff]  ;;  %v116_v11 = vld [vmem:[%s32146_s0 + $0x240] sm:$0xff]  ;;  %v111_v12 = vld [vmem:[%s32146_s0 + $0x218] sm:$0xff]  ;;  %vm15615_vm7 = vcmask 1046528   ;;  %vm25592_vm9 = vmmov 0   ;;  %vm15611_vm10 = vcmask 121856  }
  0x45   :  { %22023 = vmatmul.mubr.msk.f32.gmra.mrb[30].mxu1 %vm444_vm3, %v103_v4  ;;  %22035 = vmatprep.mubr.msk.f32.mxu0 %vm444_vm3, %v108_v6  ;;  %v117_v13 = vld [vmem:[%s32146_s0 + $0x248] sm:$0xff]  ;;  %v112_v14 = vld [vmem:[%s32146_s0 + $0x220] sm:$0xff]  ;;  %v118_v15 = vld [vmem:[%s32146_s0 + $0x250] sm:$0xff]  ;;  %vm18257_vm11 = vcmask 56320   ;;  %vm19137_vm12 = vcmask 1044480   ;;  %vm19133_vm13 = vcmask 1042432  }
  0x46   :  { %22048 = vmatprep.mubr.msk.f32.mxu1 %vm444_vm3, %v114_v7  ;;  %v113_v16 = vld [vmem:[%s32146_s0 + $0x228] sm:$0xff]  ;;  %v119_v17 = vld [vmem:[%s32146_s0 + $0x258] sm:$0xff]  ;;  %v120_v18 = vld [vmem:[%s32146_s0 + $0x260] sm:$0xff]  ;;  %vm19135_vm14 = vcmask 1043456   ;;  %vm19139_vm15 = vcmask 1045504  }
  0x47   :  { %v124_v19 = vld [vmem:[%s32146_s0 + $0x280] sm:$0xff]  ;;  %v121_v20 = vld [vmem:[%s32146_s0 + $0x268] sm:$0xff]  ;;  %v122_v22 = vld [vmem:[%s32146_s0 + $0x270] sm:$0xff] }
  0x48   :  { %22036 = vmatmul.mubr.msk.f32.gmra.mrb[32].mxu0 %vm444_vm3, %v109_v8  ;;  %v125_v21 = vld [vmem:[%s32146_s0 + $0x288] sm:$0xff]  ;;  %v126_v23 = vld [vmem:[%s32146_s0 + $0x290] sm:$0xff]  ;;  %v123_v24 = vld [vmem:[%s32146_s0 + $0x278] sm:$0xff] }
  0x49   :  { %22049 = vmatmul.mubr.msk.f32.vlgmr.msra.gmra.mrb[32].mxu1 %vm444_vm3, %v115_v9  ;;  %22038 = vmatprep.mubr.msk.f32.mxu0 %vm444_vm3, %v110_v10  ;;  %v127_v25 = vld [vmem:[%s32146_s0 + $0x298] sm:$0xff]  ;;  %v128_v26 = vld [vmem:[%s32146_s0 + $0x2a0] sm:$0xff]  ;;  %v134_v27 = vld [vmem:[%s32146_s0 + $0x2d0] sm:$0xff] }
  0x4a   :  { %24205 = vmatpush3.bf16.msk.msra.mxu1 %vm25670_vm2, %v25666_v2  ;;  %22051 = vmatprep.mubr.msk.f32.mxu1 %vm444_vm3, %v116_v11  ;;  %v129_v28 = vld [vmem:[%s32146_s0 + $0x2a8] sm:$0xff]  ;;  %v135_v29 = vld [vmem:[%s32146_s0 + $0x2d8] sm:$0xff]  ;;  %v130_v30 = vld [vmem:[%s32146_s0 + $0x2b0] sm:$0xff] }
  0x4b   :  { %24214 = vmatprep.subr.msk.bf16.mxu1 %vm25670_vm2, %v25666_v2  ;;  %v136_v31 = vld [vmem:[%s32146_s0 + $0x2e0] sm:$0xff]  ;;  %v131_v32 = vld [vmem:[%s32146_s0 + $0x2b8] sm:$0xff]  ;;  %v137_v33 = vld [vmem:[%s32146_s0 + $0x2e8] sm:$0xff] }
  0x4c   :  { %22039 = vmatmul.mubr.msk.f32.gmra.mrb[34].mxu0 %vm444_vm3, %v111_v12  ;;  %v132_v34 = vld [vmem:[%s32146_s0 + $0x2c0] sm:$0xff]  ;;  %v138_v35 = vld [vmem:[%s32146_s0 + $0x2f0] sm:$0xff]  ;;  %v133_v36 = vld [vmem:[%s32146_s0 + $0x2c8] sm:$0xff] }
  0x4d   :  { %22052 = vmatmul.mubr.msk.f32.gmra.mrb[34].mxu1 %vm444_vm3, %v117_v13  ;;  %22041 = vmatprep.mubr.msk.f32.mxu0 %vm444_vm3, %v112_v14  ;;  %v139_v37 = vld [vmem:[%s32146_s0 + $0x2f8] sm:$0xff]  ;;  %v140_v38 = vld [vmem:[%s32146_s0 + $0x300] sm:$0xff]  ;;  %v141_v40 = vld [vmem:[%s32146_s0 + $0x308] sm:$0xff] }
  0x4e   :  { %22054 = vmatprep.mubr.msk.f32.mxu1 %vm444_vm3, %v118_v15  ;;  %v144_v39 = vld [vmem:[%s32146_s0 + $0x320] sm:$0xff]  ;;  %v145_v41 = vld [vmem:[%s32146_s0 + $0x328] sm:$0xff]  ;;  %v142_v42 = vld [vmem:[%s32146_s0 + $0x310] sm:$0xff] }
  0x4f   :  { %v146_v43 = vld [vmem:[%s32146_s0 + $0x330] sm:$0xff]  ;;  %v143_v44 = vld [vmem:[%s32146_s0 + $0x318] sm:$0xff]  ;;  %v148_v46 = vld [vmem:[%s32146_s0 + $0x340] sm:$0xff] }
  0x50   :  { %22042 = vmatmul.mubr.msk.f32.gmra.mrb[36].mxu0 %vm444_vm3, %v113_v16  ;;  %v147_v45 = vld [vmem:[%s32146_s0 + $0x338] sm:$0xff]  ;;  %v154_v47 = vld [vmem:[%s32146_s0 + $0x370] sm:$0xff]  ;;  %v149_v48 = vld [vmem:[%s32146_s0 + $0x348] sm:$0xff] }
  0x51   :  { %22055 = vmatmul.mubr.msk.f32.gmra.mrb[36].mxu1 %vm444_vm3, %v119_v17  ;;  %22067 = vmatprep.mubr.msk.f32.mxu0 %vm444_vm3, %v124_v19  ;;  %v155_v49 = vld [vmem:[%s32146_s0 + $0x378] sm:$0xff]  ;;  %v150_v50 = vld [vmem:[%s32146_s0 + $0x350] sm:$0xff]  ;;  %v156_v51 = vld [vmem:[%s32146_s0 + $0x380] sm:$0xff] }
  0x52   :  { %22057 = vmatprep.mubr.msk.f32.mxu1 %vm444_vm3, %v120_v18  ;;  %v151_v52 = vld [vmem:[%s32146_s0 + $0x358] sm:$0xff]  ;;  %v157_v53 = vld [vmem:[%s32146_s0 + $0x388] sm:$0xff]  ;;  %v152_v54 = vld [vmem:[%s32146_s0 + $0x360] sm:$0xff] }
  0x53   :  { %v158_v55 = vld [vmem:[%s32146_s0 + $0x390] sm:$0xff]  ;;  %v153_v56 = vld [vmem:[%s32146_s0 + $0x368] sm:$0xff]  ;;  %v159_v57 = vld [vmem:[%s32146_s0 + $0x398] sm:$0xff] }
  0x54   :  { %22068 = vmatmul.mubr.msk.f32.vlgmr.msra.gmra.mrb[38].mxu0 %vm444_vm3, %v125_v21  ;;  %v160_v58 = vld [vmem:[%s32146_s0 + $0x3a0] sm:$0xff]  ;;  %v161_v60 = vld [vmem:[%s32146_s0 + $0x3a8] sm:$0xff]  ;;  %v162_v62 = vld [vmem:[%s32146_s0 + $0x3b0] sm:$0xff] }
  0x55   :  { %22058 = vmatmul.mubr.msk.f32.gmra.mrb[38].mxu1 %vm444_vm3, %v121_v20  ;;  %22070 = vmatprep.mubr.msk.f32.mxu0 %vm444_vm3, %v126_v23  ;;  %v164_v59 = vld [vmem:[%s32146_s0 + $0x3c0] sm:$0xff]  ;;  %v165_v61 = vld [vmem:[%s32146_s0 + $0x3c8] sm:$0xff]  ;;  %v166_v63 = vld [vmem:[%s32146_s0 + $0x3d0] sm:$0xff] }
  0x56   :  { %22060 = vmatprep.mubr.msk.f32.mxu1 %vm444_vm3, %v122_v22  ;;  %24211 = vmatpush3.bf16.msk.msra.mxu0 %vm25670_vm2, %v25666_v2  ;;  %v163_v0 = vld [vmem:[%s32146_s0 + $0x3b8] sm:$0xff]  ;;  %v168_v4 = vld [vmem:[%s32146_s0 + $0x3e0] sm:$0xff]  ;;  %v174_v5 = vld [vmem:[%s32146_s0 + $0x410] sm:$0xff] }
  0x57   :  { %24220 = vmatprep.subr.msk.bf16.mxu0 %vm25670_vm2, %v25666_v2  ;;  %v167_v1 = vld [vmem:[%s32146_s0 + $0x3d8] sm:$0xff]  ;;  %v169_v6 = vld [vmem:[%s32146_s0 + $0x3e8] sm:$0xff]  ;;  %v170_v8 = vld [vmem:[%s32146_s0 + $0x3f0] sm:$0xff] }
  0x58   :  { %22071 = vmatmul.mubr.msk.f32.gmra.mrb[40].mxu0 %vm444_vm3, %v127_v25  ;;  %v175_v7 = vld [vmem:[%s32146_s0 + $0x418] sm:$0xff]  ;;  %v176_v9 = vld [vmem:[%s32146_s0 + $0x420] sm:$0xff]  ;;  %v177_v11 = vld [vmem:[%s32146_s0 + $0x428] sm:$0xff] }
  0x59   :  { %22061 = vmatmul.mubr.msk.f32.gmra.mrb[40].mxu1 %vm444_vm3, %v123_v24  ;;  %22073 = vmatprep.mubr.msk.f32.mxu0 %vm444_vm3, %v128_v26  ;;  %v171_v10 = vld [vmem:[%s32146_s0 + $0x3f8] sm:$0xff]  ;;  %v172_v12 = vld [vmem:[%s32146_s0 + $0x400] sm:$0xff]  ;;  %v178_v13 = vld [vmem:[%s32146_s0 + $0x430] sm:$0xff] }
  0x5a   :  { %22086 = vmatprep.mubr.msk.f32.mxu1 %vm444_vm3, %v134_v27  ;;  %v173_v14 = vld [vmem:[%s32146_s0 + $0x408] sm:$0xff]  ;;  %v179_v15 = vld [vmem:[%s32146_s0 + $0x438] sm:$0xff]  ;;  %v180_v16 = vld [vmem:[%s32146_s0 + $0x440] sm:$0xff] }
  0x5b   :  { %v184_v17 = vld [vmem:[%s32146_s0 + $0x460] sm:$0xff]  ;;  %v181_v18 = vld [vmem:[%s32146_s0 + $0x448] sm:$0xff]  ;;  %v182_v20 = vld [vmem:[%s32146_s0 + $0x450] sm:$0xff] }
  0x5c   :  { %22074 = vmatmul.mubr.msk.f32.gmra.mrb[42].mxu0 %vm444_vm3, %v129_v28  ;;  %v185_v19 = vld [vmem:[%s32146_s0 + $0x468] sm:$0xff]  ;;  %v186_v21 = vld [vmem:[%s32146_s0 + $0x470] sm:$0xff]  ;;  %v183_v22 = vld [vmem:[%s32146_s0 + $0x458] sm:$0xff] }
  0x5d   :  { %22087 = vmatmul.mubr.msk.f32.vlgmr.msra.gmra.mrb[42].mxu1 %vm444_vm3, %v135_v29  ;;  %22076 = vmatprep.mubr.msk.f32.mxu0 %vm444_vm3, %v130_v30  ;;  %v187_v23 = vld [vmem:[%s32146_s0 + $0x478] sm:$0xff]  ;;  %v188_v24 = vld [vmem:[%s32146_s0 + $0x480] sm:$0xff]  ;;  %v194_v25 = vld [vmem:[%s32146_s0 + $0x4b0] sm:$0xff] }
  0x5e   :  { %24217 = vmatpush3.bf16.msk.msra.mxu1 %vm25670_vm2, %v25666_v2  ;;  %22089 = vmatprep.mubr.msk.f32.mxu1 %vm444_vm3, %v136_v31  ;;  %v189_v26 = vld [vmem:[%s32146_s0 + $0x488] sm:$0xff]  ;;  %v195_v27 = vld [vmem:[%s32146_s0 + $0x4b8] sm:$0xff]  ;;  %v190_v28 = vld [vmem:[%s32146_s0 + $0x490] sm:$0xff] }
  0x5f   :  { %24226 = vmatprep.subr.msk.bf16.mxu1 %vm25670_vm2, %v25666_v2  ;;  %v196_v29 = vld [vmem:[%s32146_s0 + $0x4c0] sm:$0xff]  ;;  %v191_v30 = vld [vmem:[%s32146_s0 + $0x498] sm:$0xff]  ;;  %v197_v31 = vld [vmem:[%s32146_s0 + $0x4c8] sm:$0xff] }
  0x60   :  { %22077 = vmatmul.mubr.msk.f32.gmra.mrb[44].mxu0 %vm444_vm3, %v131_v32  ;;  %v192_v32 = vld [vmem:[%s32146_s0 + $0x4a0] sm:$0xff]  ;;  %vm28386_vm6 = vmpackc.low %vm7186_vm5, %vm25590_vm1 }
  0x61   :  { %22090 = vmatmul.mubr.msk.f32.gmra.mrb[44].mxu1 %vm444_vm3, %v137_v33  ;;  %22079 = vmatprep.mubr.msk.f32.mxu0 %vm444_vm3, %v132_v34  ;;  %v198_v33 = vld [vmem:[%s32146_s0 + $0x4d0] sm:$0xff]  ;;  %v193_v34 = vld [vmem:[%s32146_s0 + $0x4a8] sm:$0xff]  ;;  %vm31634_vm8 = vmpackc.low %vm15615_vm7, %vm25590_vm1 }
  0x62   :  { %22092 = vmatprep.mubr.msk.f32.mxu1 %vm444_vm3, %v138_v35  ;;  %v199_v35 = vld [vmem:[%s32146_s0 + $0x4d8] sm:$0xff] }
  0x64   :  { %22080 = vmatmul.mubr.msk.f32.gmra.mrb[46].mxu0 %vm444_vm3, %v133_v36  ;;  %v200_v36 = vld [vmem:[%s32146_s0 + $0x4e0] sm:$0xff] }
  0x65   :  { %22093 = vmatmul.mubr.msk.f32.gmra.mrb[46].mxu1 %vm444_vm3, %v139_v37  ;;  %22105 = vmatprep.mubr.msk.f32.mxu0 %vm444_vm3, %v144_v39  ;;  %v204_v37 = vld [vmem:[%s32146_s0 + $0x500] sm:$0xff]  ;;  %v205_v39 = vld [vmem:[%s32146_s0 + $0x508] sm:$0xff] }
  0x66   :  { %22095 = vmatprep.mubr.msk.f32.mxu1 %vm444_vm3, %v140_v38  ;;  %v201_v38 = vld [vmem:[%s32146_s0 + $0x4e8] sm:$0xff] }
  0x68   :  { %22106 = vmatmul.mubr.msk.f32.vlgmr.msra.gmra.mrb[48].mxu0 %vm444_vm3, %v145_v41  ;;  %v206_v41 = vld [vmem:[%s32146_s0 + $0x510] sm:$0xff] }
  0x69   :  { %22096 = vmatmul.mubr.msk.f32.gmra.mrb[48].mxu1 %vm444_vm3, %v141_v40  ;;  %22108 = vmatprep.mubr.msk.f32.mxu0 %vm444_vm3, %v146_v43  ;;  %v202_v40 = vld [vmem:[%s32146_s0 + $0x4f0] sm:$0xff]  ;;  %v207_v43 = vld [vmem:[%s32146_s0 + $0x518] sm:$0xff] }
  0x6a   :  { %22098 = vmatprep.mubr.msk.f32.mxu1 %vm444_vm3, %v142_v42  ;;  %24223 = vmatpush3.bf16.msk.msra.mxu0 %vm25670_vm2, %v25666_v2  ;;  %v203_v42 = vld [vmem:[%s32146_s0 + $0x4f8] sm:$0xff] }
  0x6b   :  { %24232 = vmatprep.subr.msk.bf16.mxu0 %vm25670_vm2, %v25666_v2 }
  0x6c   :  { %22109 = vmatmul.mubr.msk.f32.gmra.mrb[50].mxu0 %vm444_vm3, %v147_v45  ;;  %v214_v45 = vld [vmem:[%s32146_s0 + $0x550] sm:$0xff] }
  0x6d   :  { %22099 = vmatmul.mubr.msk.f32.gmra.mrb[50].mxu1 %vm444_vm3, %v143_v44  ;;  %22111 = vmatprep.mubr.msk.f32.mxu0 %vm444_vm3, %v148_v46  ;;  %v208_v44 = vld [vmem:[%s32146_s0 + $0x520] sm:$0xff]  ;;  %v209_v46 = vld [vmem:[%s32146_s0 + $0x528] sm:$0xff] }
  0x6e   :  { %22124 = vmatprep.mubr.msk.f32.mxu1 %vm444_vm3, %v154_v47  ;;  %v215_v47 = vld [vmem:[%s32146_s0 + $0x558] sm:$0xff] }
  0x70   :  { %22112 = vmatmul.mubr.msk.f32.gmra.mrb[52].mxu0 %vm444_vm3, %v149_v48  ;;  %v210_v48 = vld [vmem:[%s32146_s0 + $0x530] sm:$0xff] }
  0x71   :  { %22125 = vmatmul.mubr.msk.f32.vlgmr.msra.gmra.mrb[52].mxu1 %vm444_vm3, %v155_v49  ;;  %22114 = vmatprep.mubr.msk.f32.mxu0 %vm444_vm3, %v150_v50  ;;  %v216_v49 = vld [vmem:[%s32146_s0 + $0x560] sm:$0xff]  ;;  %v211_v50 = vld [vmem:[%s32146_s0 + $0x538] sm:$0xff] }
  0x72   :  { %24229 = vmatpush3.bf16.msk.msra.mxu1 %vm25670_vm2, %v25666_v2  ;;  %22127 = vmatprep.mubr.msk.f32.mxu1 %vm444_vm3, %v156_v51  ;;  %v217_v51 = vld [vmem:[%s32146_s0 + $0x568] sm:$0xff] }
  0x73   :  { %24238 = vmatprep.subr.msk.bf16.mxu1 %vm25670_vm2, %v25666_v2 }
  0x74   :  { %22115 = vmatmul.mubr.msk.f32.gmra.mrb[54].mxu0 %vm444_vm3, %v151_v52  ;;  %v212_v52 = vld [vmem:[%s32146_s0 + $0x540] sm:$0xff] }
  0x75   :  { %22128 = vmatmul.mubr.msk.f32.gmra.mrb[54].mxu1 %vm444_vm3, %v157_v53  ;;  %22117 = vmatprep.mubr.msk.f32.mxu0 %vm444_vm3, %v152_v54  ;;  %v218_v53 = vld [vmem:[%s32146_s0 + $0x570] sm:$0xff]  ;;  %v213_v54 = vld [vmem:[%s32146_s0 + $0x548] sm:$0xff] }
  0x76   :  { %22130 = vmatprep.mubr.msk.f32.mxu1 %vm444_vm3, %v158_v55  ;;  %v219_v55 = vld [vmem:[%s32146_s0 + $0x578] sm:$0xff] }
  0x78   :  { %22118 = vmatmul.mubr.msk.f32.gmra.mrb[56].mxu0 %vm444_vm3, %v153_v56  ;;  %v220_v56 = vld [vmem:[%s32146_s0 + $0x580] sm:$0xff] }
  0x79   :  { %22131 = vmatmul.mubr.msk.f32.gmra.mrb[56].mxu1 %vm444_vm3, %v159_v57  ;;  %22143 = vmatprep.mubr.msk.f32.mxu0 %vm444_vm3, %v164_v59  ;;  %v224_v57 = vld [vmem:[%s32146_s0 + $0x5a0] sm:$0xff]  ;;  %v225_v59 = vld [vmem:[%s32146_s0 + $0x5a8] sm:$0xff] }
  0x7a   :  { %22133 = vmatprep.mubr.msk.f32.mxu1 %vm444_vm3, %v160_v58  ;;  %v221_v58 = vld [vmem:[%s32146_s0 + $0x588] sm:$0xff] }
  0x7c   :  { %22144 = vmatmul.mubr.msk.f32.vlgmr.msra.gmra.mrb[58].mxu0 %vm444_vm3, %v165_v61  ;;  %v226_v61 = vld [vmem:[%s32146_s0 + $0x5b0] sm:$0xff] }
  0x7d   :  { %22134 = vmatmul.mubr.msk.f32.gmra.mrb[58].mxu1 %vm444_vm3, %v161_v60  ;;  %22146 = vmatprep.mubr.msk.f32.mxu0 %vm444_vm3, %v166_v63  ;;  %v222_v60 = vld [vmem:[%s32146_s0 + $0x590] sm:$0xff]  ;;  %v227_v63 = vld [vmem:[%s32146_s0 + $0x5b8] sm:$0xff] }
  0x7e   :  { %22136 = vmatprep.mubr.msk.f32.mxu1 %vm444_vm3, %v162_v62  ;;  %24235 = vmatpush3.bf16.msk.msra.mxu0 %vm25670_vm2, %v25666_v2  ;;  %v223_v62 = vld [vmem:[%s32146_s0 + $0x598] sm:$0xff] }
  0x7f   :  { %24244 = vmatprep.subr.msk.bf16.mxu0 %vm25670_vm2, %v25666_v2 }
  0x80   :  { %22147 = vmatmul.mubr.msk.f32.gmra.mrb[60].mxu0 %vm444_vm3, %v167_v1  ;;  %v234_v1 = vld [vmem:[%s32146_s0 + $0x5f0] sm:$0xff] }
  0x81   :  { %22137 = vmatmul.mubr.msk.f32.gmra.mrb[60].mxu1 %vm444_vm3, %v163_v0  ;;  %22149 = vmatprep.mubr.msk.f32.mxu0 %vm444_vm3, %v168_v4  ;;  %v228_v0 = vld [vmem:[%s32146_s0 + $0x5c0] sm:$0xff]  ;;  %v229_v4 = vld [vmem:[%s32146_s0 + $0x5c8] sm:$0xff] }
  0x82   :  { %22162 = vmatprep.mubr.msk.f32.mxu1 %vm444_vm3, %v174_v5  ;;  %v235_v5 = vld [vmem:[%s32146_s0 + $0x5f8] sm:$0xff] }
  0x84   :  { %22150 = vmatmul.mubr.msk.f32.gmra.mrb[62].mxu0 %vm444_vm3, %v169_v6  ;;  %v230_v6 = vld [vmem:[%s32146_s0 + $0x5d0] sm:$0xff] }
  0x85   :  { %22163 = vmatmul.mubr.msk.f32.vlgmr.msra.gmra.mrb[62].mxu1 %vm444_vm3, %v175_v7  ;;  %22152 = vmatprep.mubr.msk.f32.mxu0 %vm444_vm3, %v170_v8  ;;  %v236_v7 = vld [vmem:[%s32146_s0 + $0x600] sm:$0xff]  ;;  %v231_v8 = vld [vmem:[%s32146_s0 + $0x5d8] sm:$0xff] }
  0x86   :  { %24241 = vmatpush3.bf16.msk.msra.mxu1 %vm25670_vm2, %v25666_v2  ;;  %22165 = vmatprep.mubr.msk.f32.mxu1 %vm444_vm3, %v176_v9  ;;  %v237_v9 = vld [vmem:[%s32146_s0 + $0x608] sm:$0xff] }
  0x87   :  { %24250 = vmatprep.subr.msk.bf16.mxu1 %vm25670_vm2, %v25666_v2 }
  0x88   :  { %22153 = vmatmul.mubr.msk.f32.gmra.mrb[64].mxu0 %vm444_vm3, %v171_v10  ;;  %v232_v10 = vld [vmem:[%s32146_s0 + $0x5e0] sm:$0xff] }
  0x89   :  { %22166 = vmatmul.mubr.msk.f32.gmra.mrb[64].mxu1 %vm444_vm3, %v177_v11  ;;  %22155 = vmatprep.mubr.msk.f32.mxu0 %vm444_vm3, %v172_v12  ;;  %v238_v11 = vld [vmem:[%s32146_s0 + $0x610] sm:$0xff]  ;;  %v233_v12 = vld [vmem:[%s32146_s0 + $0x5e8] sm:$0xff] }
  0x8a   :  { %22168 = vmatprep.mubr.msk.f32.mxu1 %vm444_vm3, %v178_v13  ;;  %v239_v13 = vld [vmem:[%s32146_s0 + $0x618] sm:$0xff] }
  0x8c   :  { %22156 = vmatmul.mubr.msk.f32.gmra.mrb[66].mxu0 %vm444_vm3, %v173_v14  ;;  %v240_v14 = vld [vmem:[%s32146_s0 + $0x620] sm:$0xff] }
  0x8d   :  { %22169 = vmatmul.mubr.msk.f32.gmra.mrb[66].mxu1 %vm444_vm3, %v179_v15  ;;  %22181 = vmatprep.mubr.msk.f32.mxu0 %vm444_vm3, %v184_v17  ;;  %v244_v15 = vld [vmem:[%s32146_s0 + $0x640] sm:$0xff]  ;;  %v245_v17 = vld [vmem:[%s32146_s0 + $0x648] sm:$0xff] }
  0x8e   :  { %22171 = vmatprep.mubr.msk.f32.mxu1 %vm444_vm3, %v180_v16  ;;  %v241_v16 = vld [vmem:[%s32146_s0 + $0x628] sm:$0xff] }
  0x90   :  { %22182 = vmatmul.mubr.msk.f32.vlgmr.msra.gmra.mrb[68].mxu0 %vm444_vm3, %v185_v19  ;;  %v246_v19 = vld [vmem:[%s32146_s0 + $0x650] sm:$0xff] }
  0x91   :  { %22172 = vmatmul.mubr.msk.f32.gmra.mrb[68].mxu1 %vm444_vm3, %v181_v18  ;;  %22184 = vmatprep.mubr.msk.f32.mxu0 %vm444_vm3, %v186_v21  ;;  %v242_v18 = vld [vmem:[%s32146_s0 + $0x630] sm:$0xff]  ;;  %v247_v21 = vld [vmem:[%s32146_s0 + $0x658] sm:$0xff] }
  0x92   :  { %22174 = vmatprep.mubr.msk.f32.mxu1 %vm444_vm3, %v182_v20  ;;  %24247 = vmatpush3.bf16.msk.msra.mxu0 %vm25670_vm2, %v25666_v2  ;;  %v243_v20 = vld [vmem:[%s32146_s0 + $0x638] sm:$0xff] }
  0x93   :  { %24256 = vmatprep.subr.msk.bf16.mxu0 %vm25670_vm2, %v25666_v2 }
  0x94   :  { %22185 = vmatmul.mubr.msk.f32.gmra.mrb[70].mxu0 %vm444_vm3, %v187_v23  ;;  %v254_v23 = vld [vmem:[%s32146_s0 + $0x690] sm:$0xff] }
  0x95   :  { %22175 = vmatmul.mubr.msk.f32.gmra.mrb[70].mxu1 %vm444_vm3, %v183_v22  ;;  %22187 = vmatprep.mubr.msk.f32.mxu0 %vm444_vm3, %v188_v24  ;;  %v248_v22 = vld [vmem:[%s32146_s0 + $0x660] sm:$0xff]  ;;  %v249_v24 = vld [vmem:[%s32146_s0 + $0x668] sm:$0xff] }
  0x96   :  { %22200 = vmatprep.mubr.msk.f32.mxu1 %vm444_vm3, %v194_v25  ;;  %v255_v25 = vld [vmem:[%s32146_s0 + $0x698] sm:$0xff] }
  0x98   :  { %22188 = vmatmul.mubr.msk.f32.gmra.mrb[72].mxu0 %vm444_vm3, %v189_v26  ;;  %v250_v26 = vld [vmem:[%s32146_s0 + $0x670] sm:$0xff] }
  0x99   :  { %22201 = vmatmul.mubr.msk.f32.vlgmr.msra.gmra.mrb[72].mxu1 %vm444_vm3, %v195_v27  ;;  %22190 = vmatprep.mubr.msk.f32.mxu0 %vm444_vm3, %v190_v28  ;;  %v256_v27 = vld [vmem:[%s32146_s0 + $0x6a0] sm:$0xff]  ;;  %v251_v28 = vld [vmem:[%s32146_s0 + $0x678] sm:$0xff] }
  0x9a   :  { %24253 = vmatpush3.bf16.msk.msra.mxu1 %vm25670_vm2, %v25666_v2  ;;  %22203 = vmatprep.mubr.msk.f32.mxu1 %vm444_vm3, %v196_v29  ;;  %v257_v29 = vld [vmem:[%s32146_s0 + $0x6a8] sm:$0xff] }
  0x9b   :  { %24262 = vmatprep.subr.msk.bf16.mxu1 %vm25670_vm2, %v25666_v2 }
  0x9c   :  { %22191 = vmatmul.mubr.msk.f32.gmra.mrb[74].mxu0 %vm444_vm3, %v191_v30  ;;  %v252_v30 = vld [vmem:[%s32146_s0 + $0x680] sm:$0xff] }
  0x9d   :  { %22204 = vmatmul.mubr.msk.f32.gmra.mrb[74].mxu1 %vm444_vm3, %v197_v31  ;;  %22193 = vmatprep.mubr.msk.f32.mxu0 %vm444_vm3, %v192_v32  ;;  %v258_v31 = vld [vmem:[%s32146_s0 + $0x6b0] sm:$0xff]  ;;  %v253_v32 = vld [vmem:[%s32146_s0 + $0x688] sm:$0xff] }
  0x9e   :  { %22206 = vmatprep.mubr.msk.f32.mxu1 %vm444_vm3, %v198_v33  ;;  %v259_v33 = vld [vmem:[%s32146_s0 + $0x6b8] sm:$0xff] }
  0xa0   :  { %22194 = vmatmul.mubr.msk.f32.gmra.mrb[76].mxu0 %vm444_vm3, %v193_v34  ;;  %v260_v34 = vld [vmem:[%s32146_s0 + $0x6c0] sm:$0xff] }
  0xa1   :  { %22207 = vmatmul.mubr.msk.f32.gmra.mrb[76].mxu1 %vm444_vm3, %v199_v35  ;;  %22219 = vmatprep.mubr.msk.f32.mxu0 %vm444_vm3, %v204_v37  ;;  %v264_v35 = vld [vmem:[%s32146_s0 + $0x6e0] sm:$0xff] }
  0xa2   :  { %22209 = vmatprep.mubr.msk.f32.mxu1 %vm444_vm3, %v200_v36 }
  0xa4   :  { %22220 = vmatmul.mubr.msk.f32.vlgmr.msra.gmra.mrb[78].mxu0 %vm444_vm3, %v205_v39 }
  0xa5   :  { %22210 = vmatmul.mubr.msk.f32.gmra.mrb[78].mxu1 %vm444_vm3, %v201_v38  ;;  %22222 = vmatprep.mubr.msk.f32.mxu0 %vm444_vm3, %v206_v41  ;;  %v265_v41 = vld [vmem:[%s32146_s0 + $0x6e8] sm:$0xff] }
  0xa6   :  { %22212 = vmatprep.mubr.msk.f32.mxu1 %vm444_vm3, %v202_v40  ;;  %24259 = vmatpush3.bf16.msk.msra.mxu0 %vm25670_vm2, %v25666_v2  ;;  %v261_v40 = vld [vmem:[%s32146_s0 + $0x6c8] sm:$0xff] }
  0xa7   :  { %24268 = vmatprep.subr.msk.bf16.mxu0 %vm25670_vm2, %v25666_v2 }
  0xa8   :  { %22223 = vmatmul.mubr.msk.f32.gmra.mrb[80].mxu0 %vm444_vm3, %v207_v43  ;;  %v266_v43 = vld [vmem:[%s32146_s0 + $0x6f0] sm:$0xff] }
  0xa9   :  { %22213 = vmatmul.mubr.msk.f32.gmra.mrb[80].mxu1 %vm444_vm3, %v203_v42  ;;  %22225 = vmatprep.mubr.msk.f32.mxu0 %vm444_vm3, %v208_v44  ;;  %v262_v42 = vld [vmem:[%s32146_s0 + $0x6d0] sm:$0xff] }
  0xaa   :  { %22238 = vmatprep.mubr.msk.f32.mxu1 %vm444_vm3, %v214_v45 }
  0xac   :  { %22226 = vmatmul.mubr.msk.f32.gmra.mrb[82].mxu0 %vm444_vm3, %v209_v46 }
  0xad   :  { %22239 = vmatmul.mubr.msk.f32.vlgmr.msra.gmra.mrb[82].mxu1 %vm444_vm3, %v215_v47  ;;  %22228 = vmatprep.mubr.msk.f32.mxu0 %vm444_vm3, %v210_v48  ;;  %v263_v48 = vld [vmem:[%s32146_s0 + $0x6d8] sm:$0xff] }
  0xae   :  { %24265 = vmatpush3.bf16.msk.msra.mxu1 %vm25670_vm2, %v25666_v2  ;;  %22241 = vmatprep.mubr.msk.f32.mxu1 %vm444_vm3, %v216_v49  ;;  %v267_v49 = vld [vmem:[%s32146_s0 + $0x6f8] sm:$0xff] }
  0xaf   :  { %24274 = vmatprep.subr.msk.bf16.mxu1 %vm25670_vm2, %v25666_v2 }
  0xb0   :  { %22229 = vmatmul.mubr.msk.f32.gmra.mrb[84].mxu0 %vm444_vm3, %v211_v50  ;;  %v268_v50 = vld [vmem:[%s32146_s0 + $0x700] sm:$0xff] }
  0xb1   :  { %22242 = vmatmul.mubr.msk.f32.gmra.mrb[84].mxu1 %vm444_vm3, %v217_v51  ;;  %22231 = vmatprep.mubr.msk.f32.mxu0 %vm444_vm3, %v212_v52  ;;  %v274_v51 = vld [vmem:[%s32146_s0 + $0x730] sm:$0xff] }
  0xb2   :  { %22244 = vmatprep.mubr.msk.f32.mxu1 %vm444_vm3, %v218_v53 }
  0xb4   :  { %22232 = vmatmul.mubr.msk.f32.gmra.mrb[86].mxu0 %vm444_vm3, %v213_v54 }
  0xb5   :  { %22245 = vmatmul.mubr.msk.f32.gmra.mrb[86].mxu1 %vm444_vm3, %v219_v55  ;;  %22257 = vmatprep.mubr.msk.f32.mxu0 %vm444_vm3, %v224_v57  ;;  %v275_v57 = vld [vmem:[%s32146_s0 + $0x738] sm:$0xff] }
  0xb6   :  { %22247 = vmatprep.mubr.msk.f32.mxu1 %vm444_vm3, %v220_v56  ;;  %v269_v56 = vld [vmem:[%s32146_s0 + $0x708] sm:$0xff] }
  0xb8   :  { %22258 = vmatmul.mubr.msk.f32.vlgmr.msra.gmra.mrb[88].mxu0 %vm444_vm3, %v225_v59 }
  0xb9   :  { %22248 = vmatmul.mubr.msk.f32.gmra.mrb[88].mxu1 %vm444_vm3, %v221_v58  ;;  %22260 = vmatprep.mubr.msk.f32.mxu0 %vm444_vm3, %v226_v61  ;;  %v270_v58 = vld [vmem:[%s32146_s0 + $0x710] sm:$0xff] }
  0xba   :  { %22250 = vmatprep.mubr.msk.f32.mxu1 %vm444_vm3, %v222_v60  ;;  %24271 = vmatpush3.bf16.msk.msra.mxu0 %vm25670_vm2, %v25666_v2  ;;  %v276_v60 = vld [vmem:[%s32146_s0 + $0x740] sm:$0xff] }
  0xbb   :  { %24280 = vmatprep.subr.msk.bf16.mxu0 %vm25670_vm2, %v25666_v2 }
  0xbc   :  { %22261 = vmatmul.mubr.msk.f32.gmra.mrb[90].mxu0 %vm444_vm3, %v227_v63 }
  0xbd   :  { %22251 = vmatmul.mubr.msk.f32.gmra.mrb[90].mxu1 %vm444_vm3, %v223_v62  ;;  %22263 = vmatprep.mubr.msk.f32.mxu0 %vm444_vm3, %v228_v0  ;;  %v271_v0 = vld [vmem:[%s32146_s0 + $0x718] sm:$0xff] }
  0xbe   :  { %22276 = vmatprep.mubr.msk.f32.mxu1 %vm444_vm3, %v234_v1  ;;  %v277_v1 = vld [vmem:[%s32146_s0 + $0x748] sm:$0xff] }
  0xc0   :  { %22264 = vmatmul.mubr.msk.f32.gmra.mrb[92].mxu0 %vm444_vm3, %v229_v4  ;;  %v272_v4 = vld [vmem:[%s32146_s0 + $0x720] sm:$0xff] }
  0xc1   :  { %22277 = vmatmul.mubr.msk.f32.vlgmr.msra.gmra.mrb[92].mxu1 %vm444_vm3, %v235_v5  ;;  %22266 = vmatprep.mubr.msk.f32.mxu0 %vm444_vm3, %v230_v6  ;;  %v278_v5 = vld [vmem:[%s32146_s0 + $0x750] sm:$0xff] }
  0xc2   :  { %24277 = vmatpush3.bf16.msk.msra.mxu1 %vm25670_vm2, %v25666_v2  ;;  %22279 = vmatprep.mubr.msk.f32.mxu1 %vm444_vm3, %v236_v7 }
  0xc3   :  { %24286 = vmatprep.subr.msk.bf16.mxu1 %vm25670_vm2, %v25666_v2 }
  0xc4   :  { %22267 = vmatmul.mubr.msk.f32.gmra.mrb[94].mxu0 %vm444_vm3, %v231_v8 }
  0xc5   :  { %22280 = vmatmul.mubr.msk.f32.gmra.mrb[94].mxu1 %vm444_vm3, %v237_v9  ;;  %22269 = vmatprep.mubr.msk.f32.mxu0 %vm444_vm3, %v232_v10  ;;  %v273_v10 = vld [vmem:[%s32146_s0 + $0x728] sm:$0xff] }
  0xc6   :  { %22282 = vmatprep.mubr.msk.f32.mxu1 %vm444_vm3, %v238_v11  ;;  %v279_v11 = vld [vmem:[%s32146_s0 + $0x758] sm:$0xff] }
  0xc8   :  { %22270 = vmatmul.mubr.msk.f32.gmra.mrb[96].mxu0 %vm444_vm3, %v233_v12  ;;  %v280_v12 = vld [vmem:[%s32146_s0 + $0x760] sm:$0xff] }
  0xc9   :  { %22283 = vmatmul.mubr.msk.f32.gmra.mrb[96].mxu1 %vm444_vm3, %v239_v13  ;;  %22295 = vmatprep.mubr.msk.f32.mxu0 %vm444_vm3, %v244_v15  ;;  %v284_v13 = vld [vmem:[%s32146_s0 + $0x780] sm:$0xff] }
  0xca   :  { %22285 = vmatprep.mubr.msk.f32.mxu1 %vm444_vm3, %v240_v14 }
  0xcc   :  { %22296 = vmatmul.mubr.msk.f32.vlgmr.msra.gmra.mrb[98].mxu0 %vm444_vm3, %v245_v17 }
  0xcd   :  { %22286 = vmatmul.mubr.msk.f32.gmra.mrb[98].mxu1 %vm444_vm3, %v241_v16  ;;  %22298 = vmatprep.mubr.msk.f32.mxu0 %vm444_vm3, %v246_v19  ;;  %v285_v19 = vld [vmem:[%s32146_s0 + $0x788] sm:$0xff] }
  0xce   :  { %22288 = vmatprep.mubr.msk.f32.mxu1 %vm444_vm3, %v242_v18  ;;  %24283 = vmatpush3.bf16.msk.msra.mxu0 %vm25670_vm2, %v25666_v2  ;;  %v281_v18 = vld [vmem:[%s32146_s0 + $0x768] sm:$0xff] }
  0xcf   :  { %24292 = vmatprep.subr.msk.bf16.mxu0 %vm25670_vm2, %v25666_v2 }
  0xd0   :  { %22299 = vmatmul.mubr.msk.f32.gmra.mrb[100].mxu0 %vm444_vm3, %v247_v21  ;;  %v286_v21 = vld [vmem:[%s32146_s0 + $0x790] sm:$0xff] }
  0xd1   :  { %22289 = vmatmul.mubr.msk.f32.gmra.mrb[100].mxu1 %vm444_vm3, %v243_v20  ;;  %22301 = vmatprep.mubr.msk.f32.mxu0 %vm444_vm3, %v248_v22  ;;  %v282_v20 = vld [vmem:[%s32146_s0 + $0x770] sm:$0xff] }
  0xd2   :  { %22314 = vmatprep.mubr.msk.f32.mxu1 %vm444_vm3, %v254_v23 }
  0xd4   :  { %22302 = vmatmul.mubr.msk.f32.gmra.mrb[102].mxu0 %vm444_vm3, %v249_v24 }
  0xd5   :  { %22315 = vmatmul.mubr.msk.f32.vlgmr.msra.gmra.mrb[102].mxu1 %vm444_vm3, %v255_v25  ;;  %22304 = vmatprep.mubr.msk.f32.mxu0 %vm444_vm3, %v250_v26  ;;  %v283_v26 = vld [vmem:[%s32146_s0 + $0x778] sm:$0xff] }
  0xd6   :  { %24289 = vmatpush3.bf16.msk.msra.mxu1 %vm25670_vm2, %v25666_v2  ;;  %22317 = vmatprep.mubr.msk.f32.mxu1 %vm444_vm3, %v256_v27  ;;  %v287_v27 = vld [vmem:[%s32146_s0 + $0x798] sm:$0xff] }
  0xd7   :  { %24298 = vmatprep.subr.msk.bf16.mxu1 %vm25670_vm2, %v25666_v2 }
  0xd8   :  { %22305 = vmatmul.mubr.msk.f32.gmra.mrb[104].mxu0 %vm444_vm3, %v251_v28  ;;  %v288_v28 = vld [vmem:[%s32146_s0 + $0x7a0] sm:$0xff] }
  0xd9   :  { %22318 = vmatmul.mubr.msk.f32.gmra.mrb[104].mxu1 %vm444_vm3, %v257_v29  ;;  %22307 = vmatprep.mubr.msk.f32.mxu0 %vm444_vm3, %v252_v30  ;;  %v294_v29 = vld [vmem:[%s32146_s0 + $0x7d0] sm:$0xff] }
  0xda   :  { %22320 = vmatprep.mubr.msk.f32.mxu1 %vm444_vm3, %v258_v31 }
  0xdb   :  { %v26700_v37 = vpop.f32.mrb[0].mxu0 }
  0xdc   :  { %v26698_v36 = vpop.f32.mrb[0].mxu1  ;;  %22308 = vmatmul.mubr.msk.f32.gmra.mrb[106].mxu0 %vm444_vm3, %v253_v32  ;;  %v26706_v39 = vpop.f32.mrb[1].mxu0 }
  0xdd   :  { %v26702_v38 = vpop.f32.mrb[1].mxu1  ;;  %22321 = vmatmul.mubr.msk.f32.gmra.mrb[106].mxu1 %vm444_vm3, %v259_v33  ;;  %22333 = vmatprep.mubr.msk.f32.mxu0 %vm444_vm3, %v264_v35  ;;  %v295_v35 = vld [vmem:[%s32146_s0 + $0x7d8] sm:$0xff] }
  0xde   :  { %22323 = vmatprep.mubr.msk.f32.mxu1 %vm444_vm3, %v260_v34  ;;  %v289_v34 = vld [vmem:[%s32146_s0 + $0x7a8] sm:$0xff] }
  0xdf   :  { %v26724_v45 = vpop.f32.mrb[2].mxu0 }
  0xe0   :  { %v26722_v44 = vpop.f32.mrb[2].mxu1  ;;  %22334 = vmatmul.mubr.msk.f32.vlgmr.msra.gmra.mrb[108].mxu0 %vm444_vm3, %v265_v41  ;;  %v26730_v47 = vpop.f32.mrb[3].mxu0 }
  0xe1   :  { %v26726_v46 = vpop.f32.mrb[3].mxu1  ;;  %22324 = vmatmul.mubr.msk.f32.gmra.mrb[108].mxu1 %vm444_vm3, %v261_v40  ;;  %22336 = vmatprep.mubr.msk.f32.mxu0 %vm444_vm3, %v266_v43  ;;  %v290_v40 = vld [vmem:[%s32146_s0 + $0x7b0] sm:$0xff] }
  0xe2   :  { %22326 = vmatprep.mubr.msk.f32.mxu1 %vm444_vm3, %v262_v42  ;;  %24295 = vmatpush3.bf16.msk.msra.mxu0 %vm25670_vm2, %v25666_v2  ;;  %v296_v42 = vld [vmem:[%s32146_s0 + $0x7e0] sm:$0xff] }
  0xe3   :  { %v26751_v53 = vpop.f32.mrb[4].mxu0  ;;  %24304 = vmatprep.subr.msk.bf16.mxu0 %vm25670_vm2, %v25666_v2 }
  0xe4   :  { %v26749_v52 = vpop.f32.mrb[4].mxu1  ;;  %22337 = vmatmul.mubr.msk.f32.gmra.mrb[110].mxu0 %vm444_vm3, %v267_v49  ;;  %v26760_v55 = vpop.f32.mrb[5].mxu0 }
  0xe5   :  { %v26756_v54 = vpop.f32.mrb[5].mxu1  ;;  %22327 = vmatmul.mubr.msk.f32.gmra.mrb[110].mxu1 %vm444_vm3, %v263_v48  ;;  %22339 = vmatprep.mubr.msk.f32.mxu0 %vm444_vm3, %v268_v50  ;;  %v291_v50 = vld [vmem:[%s32146_s0 + $0x7b8] sm:$0xff] }
  0xe6   :  { %22352 = vmatprep.mubr.msk.f32.mxu1 %vm444_vm3, %v274_v51  ;;  %v297_v51 = vld [vmem:[%s32146_s0 + $0x7e8] sm:$0xff] }
  0xe7   :  { %v26778_v61 = vpop.f32.mrb[6].mxu0 }
  0xe8   :  { %v26773_v59 = vpop.f32.mrb[6].mxu1  ;;  %22340 = vmatmul.mubr.msk.f32.gmra.mrb[112].mxu0 %vm444_vm3, %v269_v56  ;;  %v26784_v63 = vpop.f32.mrb[7].mxu0  ;;  %v292_v56 = vld [vmem:[%s32146_s0 + $0x7c0] sm:$0xff] }
  0xe9   :  { %v26780_v62 = vpop.f32.mrb[7].mxu1  ;;  %22353 = vmatmul.mubr.msk.f32.vlgmr.msra.gmra.mrb[112].mxu1 %vm444_vm3, %v275_v57  ;;  %22342 = vmatprep.mubr.msk.f32.mxu0 %vm444_vm3, %v270_v58  ;;  %v298_v57 = vld [vmem:[%s32146_s0 + $0x7f0] sm:$0xff] }
  0xea   :  { %24301 = vmatpush3.bf16.msk.msra.mxu1 %vm25670_vm2, %v25666_v2  ;;  %22355 = vmatprep.mubr.msk.f32.mxu1 %vm444_vm3, %v276_v60 }
  0xeb   :  { %24310 = vmatprep.subr.msk.bf16.mxu1 %vm25670_vm2, %v25666_v2  ;;  %v26808_v7 = vpop.f32.mrb[8].mxu0 }
  0xec   :  { %v26806_v6 = vpop.f32.mrb[8].mxu1  ;;  %22343 = vmatmul.mubr.msk.f32.gmra.mrb[114].mxu0 %vm444_vm3, %v271_v0  ;;  %v26814_v9 = vpop.f32.mrb[9].mxu0 }
  0xed   :  { %v26810_v8 = vpop.f32.mrb[9].mxu1  ;;  %22356 = vmatmul.mubr.msk.f32.gmra.mrb[114].mxu1 %vm444_vm3, %v277_v1  ;;  %22345 = vmatprep.mubr.msk.f32.mxu0 %vm444_vm3, %v272_v4  ;;  %v293_v4 = vld [vmem:[%s32146_s0 + $0x7c8] sm:$0xff] }
  0xee   :  { %22358 = vmatprep.mubr.msk.f32.mxu1 %vm444_vm3, %v278_v5  ;;  %v299_v5 = vld [vmem:[%s32146_s0 + $0x7f8] sm:$0xff] }
  0xef   :  { %v26832_v15 = vpop.f32.mrb[10].mxu0 }
  0xf0   :  { %v26830_v14 = vpop.f32.mrb[10].mxu1  ;;  %22346 = vmatmul.mubr.msk.f32.gmra.mrb[116].mxu0 %vm444_vm3, %v273_v10  ;;  %v26838_v17 = vpop.f32.mrb[11].mxu0  ;;  %v300_v10 = vld [vmem:[%s32146_s0 + $0x800] sm:$0xff] }
  0xf1   :  { %v26834_v16 = vpop.f32.mrb[11].mxu1  ;;  %22359 = vmatmul.mubr.msk.f32.gmra.mrb[116].mxu1 %vm444_vm3, %v279_v11  ;;  %22371 = vmatprep.mubr.msk.f32.mxu0 %vm444_vm3, %v284_v13  ;;  %v304_v11 = vld [vmem:[%s32146_s0 + $0x820] sm:$0xff] }
  0xf2   :  { %22361 = vmatprep.mubr.msk.f32.mxu1 %vm444_vm3, %v280_v12 }
  0xf3   :  { %v26856_v23 = vpop.f32.mrb[12].mxu0 }
  0xf4   :  { %v26854_v22 = vpop.f32.mrb[12].mxu1  ;;  %22372 = vmatmul.mubr.msk.f32.vlgmr.msra.gmra.mrb[118].mxu0 %vm444_vm3, %v285_v19  ;;  %v26862_v25 = vpop.f32.mrb[13].mxu0 }
  0xf5   :  { %v26858_v24 = vpop.f32.mrb[13].mxu1  ;;  %22362 = vmatmul.mubr.msk.f32.gmra.mrb[118].mxu1 %vm444_vm3, %v281_v18  ;;  %22374 = vmatprep.mubr.msk.f32.mxu0 %vm444_vm3, %v286_v21  ;;  %v305_v21 = vld [vmem:[%s32146_s0 + $0x828] sm:$0xff] }
  0xf6   :  { %22364 = vmatprep.mubr.msk.f32.mxu1 %vm444_vm3, %v282_v20  ;;  %24307 = vmatpush3.bf16.msk.msra.mxu0 %vm25670_vm2, %v25666_v2  ;;  %v301_v20 = vld [vmem:[%s32146_s0 + $0x808] sm:$0xff] }
  0xf7   :  { %v26883_v31 = vpop.f32.mrb[14].mxu0  ;;  %24316 = vmatprep.subr.msk.bf16.mxu0 %vm25670_vm2, %v25666_v2 }
  0xf8   :  { %v26881_v30 = vpop.f32.mrb[14].mxu1  ;;  %22375 = vmatmul.mubr.msk.f32.gmra.mrb[120].mxu0 %vm444_vm3, %v287_v27  ;;  %v26892_v33 = vpop.f32.mrb[15].mxu0  ;;  %v306_v27 = vld [vmem:[%s32146_s0 + $0x830] sm:$0xff] }
  0xf9   :  { %v26888_v32 = vpop.f32.mrb[15].mxu1  ;;  %22365 = vmatmul.mubr.msk.f32.gmra.mrb[120].mxu1 %vm444_vm3, %v283_v26  ;;  %22377 = vmatprep.mubr.msk.f32.mxu0 %vm444_vm3, %v288_v28  ;;  %v302_v26 = vld [vmem:[%s32146_s0 + $0x810] sm:$0xff] }
  0xfa   :  { %22390 = vmatprep.mubr.msk.f32.mxu1 %vm444_vm3, %v294_v29 }
  0xfb   :  { %v26910_v43 = vpop.f32.mrb[16].mxu0 }
  0xfc   :  { %v26905_v41 = vpop.f32.mrb[16].mxu1  ;;  %22378 = vmatmul.mubr.msk.f32.gmra.mrb[122].mxu0 %vm444_vm3, %v289_v34  ;;  %v26916_v49 = vpop.f32.mrb[17].mxu0 }
  0xfd   :  { %v26912_v48 = vpop.f32.mrb[17].mxu1  ;;  %22391 = vmatmul.mubr.msk.f32.vlgmr.msra.gmra.mrb[122].mxu1 %vm444_vm3, %v295_v35  ;;  %22380 = vmatprep.mubr.msk.f32.mxu0 %vm444_vm3, %v290_v40  ;;  %v303_v40 = vld [vmem:[%s32146_s0 + $0x818] sm:$0xff] }
  0xfe   :  { %24313 = vmatpush3.bf16.msk.msra.mxu1 %vm25670_vm2, %v25666_v2  ;;  %22393 = vmatprep.mubr.msk.f32.mxu1 %vm444_vm3, %v296_v42  ;;  %v307_v42 = vld [vmem:[%s32146_s0 + $0x838] sm:$0xff] }
  0xff   :  { %24322 = vmatprep.subr.msk.bf16.mxu1 %vm25670_vm2, %v25666_v2  ;;  %v26940_v60 = vpop.f32.mrb[18].mxu0 }
 0x100   :  { %v26938_v58 = vpop.f32.mrb[18].mxu1  ;;  %22381 = vmatmul.mubr.msk.f32.gmra.mrb[124].mxu0 %vm444_vm3, %v291_v50  ;;  %v26946_v1 = vpop.f32.mrb[19].mxu0  ;;  %v308_v50 = vld [vmem:[%s32146_s0 + $0x840] sm:$0xff] }
 0x101   :  { %v26942_v0 = vpop.f32.mrb[19].mxu1  ;;  %22394 = vmatmul.mubr.msk.f32.gmra.mrb[124].mxu1 %vm444_vm3, %v297_v51  ;;  %22383 = vmatprep.mubr.msk.f32.mxu0 %vm444_vm3, %v292_v56  ;;  %v314_v51 = vld [vmem:[%s32146_s0 + $0x870] sm:$0xff] }
 0x102   :  { %22396 = vmatprep.mubr.msk.f32.mxu1 %vm444_vm3, %v298_v57 }
 0x103   :  { %v26964_v13 = vpop.f32.mrb[20].mxu0 }
 0x104   :  { %v26962_v12 = vpop.f32.mrb[20].mxu1  ;;  %22384 = vmatmul.mubr.msk.f32.gmra.mrb[126].mxu0 %vm444_vm3, %v293_v4  ;;  %v26970_v19 = vpop.f32.mrb[21].mxu0 }
 0x105   :  { %v26966_v18 = vpop.f32.mrb[21].mxu1  ;;  %22397 = vmatmul.mubr.msk.f32.gmra.mrb[126].mxu1 %vm444_vm3, %v299_v5  ;;  %22409 = vmatprep.mubr.msk.f32.mxu0 %vm444_vm3, %v304_v11  ;;  %v315_v11 = vld [vmem:[%s32146_s0 + $0x878] sm:$0xff] }
 0x106   :  { %22399 = vmatprep.mubr.msk.f32.mxu1 %vm444_vm3, %v300_v10  ;;  %v309_v10 = vld [vmem:[%s32146_s0 + $0x848] sm:$0xff] }
 0x107   :  { %v26988_v29 = vpop.f32.mrb[22].mxu0 }
 0x108   :  { %v26986_v28 = vpop.f32.mrb[22].mxu1  ;;  %22410 = vmatmul.mubr.msk.f32.vlgmr.msra.gmra.mrb[128].mxu0 %vm444_vm3, %v305_v21  ;;  %v26994_v35 = vpop.f32.mrb[23].mxu0 }
 0x109   :  { %v26990_v34 = vpop.f32.mrb[23].mxu1  ;;  %22400 = vmatmul.mubr.msk.f32.gmra.mrb[128].mxu1 %vm444_vm3, %v301_v20  ;;  %22412 = vmatprep.mubr.msk.f32.mxu0 %vm444_vm3, %v306_v27  ;;  %v310_v20 = vld [vmem:[%s32146_s0 + $0x850] sm:$0xff] }
 0x10a   :  { %22402 = vmatprep.mubr.msk.f32.mxu1 %vm444_vm3, %v302_v26  ;;  %24319 = vmatpush3.bf16.msk.msra.mxu0 %vm25670_vm2, %v25666_v2  ;;  %v316_v26 = vld [vmem:[%s32146_s0 + $0x880] sm:$0xff] }
 0x10b   :  { %v27015_v57 = vpop.f32.mrb[24].mxu0  ;;  %24328 = vmatprep.subr.msk.bf16.mxu0 %vm25670_vm2, %v25666_v2 }
 0x10c   :  { %v27013_v56 = vpop.f32.mrb[24].mxu1  ;;  %22413 = vmatmul.mubr.msk.f32.gmra.mrb[130].mxu0 %vm444_vm3, %v307_v42  ;;  %v27024_v5 = vpop.f32.mrb[25].mxu0 }
 0x10d   :  { %v27020_v4 = vpop.f32.mrb[25].mxu1  ;;  %22403 = vmatmul.mubr.msk.f32.gmra.mrb[130].mxu1 %vm444_vm3, %v303_v40  ;;  %32499 = vst [vmem:[#allocation5_spill] sm:$0xff] %v27024_v5  ;;  %22415 = vmatprep.mubr.msk.f32.mxu0 %vm444_vm3, %v308_v50  ;;  %v311_v50 = vld [vmem:[%s32146_s0 + $0x858] sm:$0xff]  ;;  %v27349_v5 = vsel %vm6249_vm4, %v26706_v39, -inf }
 0x10e   :  { %22428 = vmatprep.mubr.msk.f32.mxu1 %vm444_vm3, %v314_v51  ;;  %v317_v51 = vld [vmem:[%s32146_s0 + $0x888] sm:$0xff] }
 0x10f   :  { %v27042_v27 = vpop.f32.mrb[26].mxu0 }
 0x110   :  { %v27037_v21 = vpop.f32.mrb[26].mxu1  ;;  %32501 = vst [vmem:[#allocation7_spill] sm:$0xff] %v27042_v27  ;;  %22416 = vmatmul.mubr.msk.f32.gmra.mrb[132].mxu0 %vm444_vm3, %v309_v10  ;;  %v27048_v42 = vpop.f32.mrb[27].mxu0  ;;  %v312_v10 = vld [vmem:[%s32146_s0 + $0x860] sm:$0xff]  ;;  %v313_v27 = vld [vmem:[%s32146_s0 + $0x868] sm:$0xff] }
 0x111   :  { %32500 = vst [vmem:[#allocation6_spill] sm:$0xff] %v27037_v21  ;;  %v27044_v40 = vpop.f32.mrb[27].mxu1  ;;  %22429 = vmatmul.mubr.msk.f32.vlgmr.msra.gmra.mrb[132].mxu1 %vm444_vm3, %v315_v11  ;;  %32503 = vst [vmem:[#allocation9_spill] sm:$0xff] %v27048_v42  ;;  %22418 = vmatprep.mubr.msk.f32.mxu0 %vm444_vm3, %v310_v20  ;;  %v318_v11 = vld [vmem:[%s32146_s0 + $0x890] sm:$0xff] }
 0x112   :  { %32502 = vst [vmem:[#allocation8_spill] sm:$0xff] %v27044_v40  ;;  %24325 = vmatpush3.bf16.msk.msra.mxu1 %vm25670_vm2, %v25666_v2  ;;  %22431 = vmatprep.mubr.msk.f32.mxu1 %vm444_vm3, %v316_v26 }
 0x113   :  { %24334 = vmatprep.subr.msk.bf16.mxu1 %vm25670_vm2, %v25666_v2  ;;  %v27072_v42 = vpop.f32.mrb[28].mxu0 }
 0x114   :  { %v27070_v20 = vpop.f32.mrb[28].mxu1  ;;  %32505 = vst [vmem:[#allocation11_spill] sm:$0xff] %v27072_v42  ;;  %22419 = vmatmul.mubr.msk.f32.gmra.mrb[134].mxu0 %vm444_vm3, %v311_v50  ;;  %v27078_v26 = vpop.f32.mrb[29].mxu0  ;;  %v319_v42 = vld [vmem:[%s32146_s0 + $0x898] sm:$0xff]  ;;  %v320_v50 = vld [vmem:[%s32146_s0 + $0x8a0] sm:$0xff] }
 0x115   :  { %32504 = vst [vmem:[#allocation10_spill] sm:$0xff] %v27070_v20  ;;  %v27074_v40 = vpop.f32.mrb[29].mxu1  ;;  %22432 = vmatmul.mubr.msk.f32.gmra.mrb[134].mxu1 %vm444_vm3, %v317_v51  ;;  %32507 = vst [vmem:[#allocation13_spill] sm:$0xff] %v27078_v26  ;;  %22421 = vmatprep.mubr.msk.f32.mxu0 %vm444_vm3, %v312_v10  ;;  %v324_v51 = vld [vmem:[%s32146_s0 + $0x8c0] sm:$0xff]  ;;  %v321_v20 = vld [vmem:[%s32146_s0 + $0x8a8] sm:$0xff] }
 0x116   :  { %32506 = vst [vmem:[#allocation12_spill] sm:$0xff] %v27074_v40  ;;  %22434 = vmatprep.mubr.msk.f32.mxu1 %vm444_vm3, %v318_v11 }
 0x117   :  { %v27096_v10 = vpop.f32.mrb[30].mxu0 }
 0x118   :  { %v27094_v26 = vpop.f32.mrb[30].mxu1  ;;  %32509 = vst [vmem:[#allocation15_spill] sm:$0xff] %v27096_v10  ;;  %22422 = vmatmul.mubr.msk.f32.gmra.mrb[136].mxu0 %vm444_vm3, %v313_v27  ;;  %v27102_v40 = vpop.f32.mrb[31].mxu0  ;;  %v325_v10 = vld [vmem:[%s32146_s0 + $0x8c8] sm:$0xff]  ;;  %v322_v27 = vld [vmem:[%s32146_s0 + $0x8b0] sm:$0xff] }
 0x119   :  { %32508 = vst [vmem:[#allocation14_spill] sm:$0xff] %v27094_v26  ;;  %v27098_v11 = vpop.f32.mrb[31].mxu1  ;;  %22435 = vmatmul.mubr.msk.f32.gmra.mrb[136].mxu1 %vm444_vm3, %v319_v42  ;;  %32511 = vst [vmem:[#allocation17_spill] sm:$0xff] %v27102_v40  ;;  %22447 = vmatprep.mubr.msk.f32.mxu0 %vm444_vm3, %v324_v51  ;;  %v326_v42 = vld [vmem:[%s32146_s0 + $0x8d0] sm:$0xff]  ;;  %v323_v26 = vld [vmem:[%s32146_s0 + $0x8b8] sm:$0xff] }
 0x11a   :  { %32510 = vst [vmem:[#allocation16_spill] sm:$0xff] %v27098_v11  ;;  %22437 = vmatprep.mubr.msk.f32.mxu1 %vm444_vm3, %v320_v50 }
 0x11b   :  { %v27120_v50 = vpop.f32.mrb[32].mxu0 }
 0x11c   :  { %v27118_v40 = vpop.f32.mrb[32].mxu1  ;;  %32513 = vst [vmem:[#allocation19_spill] sm:$0xff] %v27120_v50  ;;  %22448 = vmatmul.mubr.msk.f32.vlgmr.msra.gmra.mrb[138].mxu0 %vm444_vm3, %v325_v10  ;;  %v27126_v11 = vpop.f32.mrb[33].mxu0  ;;  %v327_v50 = vld [vmem:[%s32146_s0 + $0x8d8] sm:$0xff]  ;;  %v334_v10 = vld [vmem:[%s32146_s0 + $0x910] sm:$0xff] }
 0x11d   :  { %32512 = vst [vmem:[#allocation18_spill] sm:$0xff] %v27118_v40  ;;  %v27122_v51 = vpop.f32.mrb[33].mxu1  ;;  %22438 = vmatmul.mubr.msk.f32.gmra.mrb[138].mxu1 %vm444_vm3, %v321_v20  ;;  %32515 = vst [vmem:[#allocation21_spill] sm:$0xff] %v27126_v11  ;;  %22450 = vmatprep.mubr.msk.f32.mxu0 %vm444_vm3, %v326_v42  ;;  %v328_v20 = vld [vmem:[%s32146_s0 + $0x8e0] sm:$0xff]  ;;  %v333_v40 = vld [vmem:[%s32146_s0 + $0x908] sm:$0xff] }
 0x11e   :  { %32514 = vst [vmem:[#allocation20_spill] sm:$0xff] %v27122_v51  ;;  %22440 = vmatprep.mubr.msk.f32.mxu1 %vm444_vm3, %v322_v27  ;;  %24331 = vmatpush3.bf16.msk.msra.mxu0 %vm25670_vm2, %v25666_v2 }
 0x11f   :  { %v27147_v42 = vpop.f32.mrb[34].mxu0  ;;  %24340 = vmatprep.subr.msk.bf16.mxu0 %vm25670_vm2, %v25666_v2 }
 0x120   :  { %v27145_v27 = vpop.f32.mrb[34].mxu1  ;;  %32517 = vst [vmem:[#allocation23_spill] sm:$0xff] %v27147_v42  ;;  %22451 = vmatmul.mubr.msk.f32.gmra.mrb[140].mxu0 %vm444_vm3, %v327_v50  ;;  %v27156_v51 = vpop.f32.mrb[35].mxu0  ;;  %v329_v42 = vld [vmem:[%s32146_s0 + $0x8e8] sm:$0xff]  ;;  %v336_v50 = vld [vmem:[%s32146_s0 + $0x920] sm:$0xff] }
 0x121   :  { %32516 = vst [vmem:[#allocation22_spill] sm:$0xff] %v27145_v27  ;;  %v27152_v11 = vpop.f32.mrb[35].mxu1  ;;  %22441 = vmatmul.mubr.msk.f32.gmra.mrb[140].mxu1 %vm444_vm3, %v323_v26  ;;  %32519 = vst [vmem:[#allocation25_spill] sm:$0xff] %v27156_v51  ;;  %22453 = vmatprep.mubr.msk.f32.mxu0 %vm444_vm3, %v328_v20  ;;  %v335_v27 = vld [vmem:[%s32146_s0 + $0x918] sm:$0xff]  ;;  %v330_v26 = vld [vmem:[%s32146_s0 + $0x8f0] sm:$0xff] }
 0x122   :  { %32518 = vst [vmem:[#allocation24_spill] sm:$0xff] %v27152_v11  ;;  %22466 = vmatprep.mubr.msk.f32.mxu1 %vm444_vm3, %v334_v10 }
 0x123   :  { %v27174_v20 = vpop.f32.mrb[36].mxu0 }
 0x124   :  { %v27169_v11 = vpop.f32.mrb[36].mxu1  ;;  %32521 = vst [vmem:[#allocation27_spill] sm:$0xff] %v27174_v20  ;;  %22454 = vmatmul.mubr.msk.f32.gmra.mrb[142].mxu0 %vm444_vm3, %v329_v42  ;;  %v27180_v51 = vpop.f32.mrb[37].mxu0  ;;  %v338_v42 = vld [vmem:[%s32146_s0 + $0x930] sm:$0xff] }
 0x125   :  { %32520 = vst [vmem:[#allocation26_spill] sm:$0xff] %v27169_v11  ;;  %v27176_v10 = vpop.f32.mrb[37].mxu1  ;;  %22467 = vmatmul.mubr.msk.f32.vlgmr.msra.gmra.mrb[142].mxu1 %vm444_vm3, %v335_v27  ;;  %32523 = vst [vmem:[#allocation29_spill] sm:$0xff] %v27180_v51  ;;  %22456 = vmatprep.mubr.msk.f32.mxu0 %vm444_vm3, %v330_v26  ;;  %v331_v11 = vld [vmem:[%s32146_s0 + $0x8f8] sm:$0xff]  ;;  %v332_v27 = vld [vmem:[%s32146_s0 + $0x900] sm:$0xff] }
 0x126   :  { %32522 = vst [vmem:[#allocation28_spill] sm:$0xff] %v27176_v10  ;;  %24337 = vmatpush3.bf16.msk.msra.mxu1 %vm25670_vm2, %v25666_v2  ;;  %v337_v10 = vld [vmem:[%s32146_s0 + $0x928] sm:$0xff]  ;;  %22469 = vmatprep.mubr.msk.f32.mxu1 %vm444_vm3, %v336_v50 }
 0x127   :  { %24346 = vmatprep.subr.msk.bf16.mxu1 %vm25670_vm2, %v25666_v2  ;;  %v27204_v51 = vpop.f32.mrb[38].mxu0 }
 0x128   :  { %v27202_v26 = vpop.f32.mrb[38].mxu1  ;;  %32525 = vst [vmem:[#allocation31_spill] sm:$0xff] %v27204_v51  ;;  %22457 = vmatmul.mubr.msk.f32.gmra.mrb[144].mxu0 %vm444_vm3, %v331_v11  ;;  %v27210_v50 = vpop.f32.mrb[39].mxu0  ;;  %v339_v51 = vld [vmem:[%s32146_s0 + $0x938] sm:$0xff]  ;;  %v340_v11 = vld [vmem:[%s32146_s0 + $0x940] sm:$0xff] }
 0x129   :  { %32524 = vst [vmem:[#allocation30_spill] sm:$0xff] %v27202_v26  ;;  %v27206_v20 = vpop.f32.mrb[39].mxu1  ;;  %22470 = vmatmul.mubr.msk.f32.gmra.mrb[144].mxu1 %vm444_vm3, %v337_v10  ;;  %32527 = vst [vmem:[#allocation33_spill] sm:$0xff] %v27210_v50  ;;  %22459 = vmatprep.mubr.msk.f32.mxu0 %vm444_vm3, %v332_v27  ;;  %v344_v10 = vld [vmem:[%s32146_s0 + $0x960] sm:$0xff]  ;;  %v341_v26 = vld [vmem:[%s32146_s0 + $0x948] sm:$0xff] }
 0x12a   :  { %32526 = vst [vmem:[#allocation32_spill] sm:$0xff] %v27206_v20  ;;  %22472 = vmatprep.mubr.msk.f32.mxu1 %vm444_vm3, %v338_v42 }
 0x12b   :  { %v27228_v27 = vpop.f32.mrb[40].mxu0 }
 0x12c   :  { %v27226_v50 = vpop.f32.mrb[40].mxu1  ;;  %32529 = vst [vmem:[#allocation35_spill] sm:$0xff] %v27228_v27  ;;  %22460 = vmatmul.mubr.msk.f32.gmra.mrb[146].mxu0 %vm444_vm3, %v333_v40  ;;  %v27234_v20 = vpop.f32.mrb[41].mxu0  ;;  %v345_v27 = vld [vmem:[%s32146_s0 + $0x968] sm:$0xff]  ;;  %v342_v40 = vld [vmem:[%s32146_s0 + $0x950] sm:$0xff] }
 0x12d   :  { %32528 = vst [vmem:[#allocation34_spill] sm:$0xff] %v27226_v50  ;;  %v27230_v42 = vpop.f32.mrb[41].mxu1  ;;  %22473 = vmatmul.mubr.msk.f32.gmra.mrb[146].mxu1 %vm444_vm3, %v339_v51  ;;  %32531 = vst [vmem:[#allocation37_spill] sm:$0xff] %v27234_v20  ;;  %22485 = vmatprep.mubr.msk.f32.mxu0 %vm444_vm3, %v344_v10  ;;  %v346_v51 = vld [vmem:[%s32146_s0 + $0x970] sm:$0xff]  ;;  %v343_v50 = vld [vmem:[%s32146_s0 + $0x958] sm:$0xff] }
 0x12e   :  { %32530 = vst [vmem:[#allocation36_spill] sm:$0xff] %v27230_v42  ;;  %22475 = vmatprep.mubr.msk.f32.mxu1 %vm444_vm3, %v340_v11 }
 0x12f   :  { %v27252_v11 = vpop.f32.mrb[42].mxu0 }
 0x130   :  { %v27250_v20 = vpop.f32.mrb[42].mxu1  ;;  %32533 = vst [vmem:[#allocation39_spill] sm:$0xff] %v27252_v11  ;;  %22486 = vmatmul.mubr.msk.f32.vlgmr.msra.gmra.mrb[148].mxu0 %vm444_vm3, %v345_v27  ;;  %v27258_v42 = vpop.f32.mrb[43].mxu0  ;;  %v347_v11 = vld [vmem:[%s32146_s0 + $0x978] sm:$0xff]  ;;  %v354_v27 = vld [vmem:[%s32146_s0 + $0x9b0] sm:$0xff] }
 0x131   :  { %32532 = vst [vmem:[#allocation38_spill] sm:$0xff] %v27250_v20  ;;  %v27254_v10 = vpop.f32.mrb[43].mxu1  ;;  %22476 = vmatmul.mubr.msk.f32.gmra.mrb[148].mxu1 %vm444_vm3, %v341_v26  ;;  %32535 = vst [vmem:[#allocation41_spill] sm:$0xff] %v27258_v42  ;;  %22488 = vmatprep.mubr.msk.f32.mxu0 %vm444_vm3, %v346_v51  ;;  %v348_v26 = vld [vmem:[%s32146_s0 + $0x980] sm:$0xff] }
 0x132   :  { %32534 = vst [vmem:[#allocation40_spill] sm:$0xff] %v27254_v10  ;;  %22478 = vmatprep.mubr.msk.f32.mxu1 %vm444_vm3, %v342_v40  ;;  %24343 = vmatpush3.bf16.msk.msra.mxu0 %vm25670_vm2, %v25666_v2 }
 0x133   :  { %v27279_v51 = vpop.f32.mrb[44].mxu0  ;;  %24352 = vmatprep.subr.msk.bf16.mxu0 %vm25670_vm2, %v25666_v2 }
 0x134   :  { %v27277_v40 = vpop.f32.mrb[44].mxu1  ;;  %32537 = vst [vmem:[#allocation43_spill] sm:$0xff] %v27279_v51  ;;  %22489 = vmatmul.mubr.msk.f32.gmra.mrb[150].mxu0 %vm444_vm3, %v347_v11  ;;  %v27288_v10 = vpop.f32.mrb[45].mxu0  ;;  %v349_v51 = vld [vmem:[%s32146_s0 + $0x988] sm:$0xff] }
 0x135   :  { %32536 = vst [vmem:[#allocation42_spill] sm:$0xff] %v27277_v40  ;;  %v27284_v42 = vpop.f32.mrb[45].mxu1  ;;  %22479 = vmatmul.mubr.msk.f32.gmra.mrb[150].mxu1 %vm444_vm3, %v343_v50  ;;  %32539 = vst [vmem:[#allocation45_spill] sm:$0xff] %v27288_v10  ;;  %22491 = vmatprep.mubr.msk.f32.mxu0 %vm444_vm3, %v348_v26  ;;  %v355_v40 = vld [vmem:[%s32146_s0 + $0x9b8] sm:$0xff]  ;;  %v350_v50 = vld [vmem:[%s32146_s0 + $0x990] sm:$0xff] }
 0x136   :  { %32538 = vst [vmem:[#allocation44_spill] sm:$0xff] %v27284_v42  ;;  %22504 = vmatprep.mubr.msk.f32.mxu1 %vm444_vm3, %v354_v27  ;;  %v356_v26 = vld [vmem:[%s32146_s0 + $0x9c0] sm:$0xff] }
 0x137   :  { %v27303_v11 = vpop.f32.mrb[46].mxu0 }
 0x138   :  { %v27301_v42 = vpop.f32.mrb[46].mxu1  ;;  %32541 = vst [vmem:[#allocation47_spill] sm:$0xff] %v27303_v11  ;;  %22492 = vmatmul.mubr.msk.f32.gmra.mrb[152].mxu0 %vm444_vm3, %v349_v51  ;;  %v27312_v10 = vpop.f32.mrb[47].mxu0  ;;  %v351_v11 = vld [vmem:[%s32146_s0 + $0x998] sm:$0xff]  ;;  %v358_v51 = vld [vmem:[%s32146_s0 + $0x9d0] sm:$0xff] }
 0x139   :  { %32540 = vst [vmem:[#allocation46_spill] sm:$0xff] %v27301_v42  ;;  %v27308_v27 = vpop.f32.mrb[47].mxu1  ;;  %22505 = vmatmul.mubr.msk.f32.vlgmr.msra.gmra.mrb[152].mxu1 %vm444_vm3, %v355_v40  ;;  %32543 = vst [vmem:[#allocation49_spill] sm:$0xff] %v27312_v10  ;;  %22494 = vmatprep.mubr.msk.f32.mxu0 %vm444_vm3, %v350_v50  ;;  %v352_v40 = vld [vmem:[%s32146_s0 + $0x9a0] sm:$0xff]  ;;  %v27338_v42 = vsel %vm6249_vm4, %v26700_v37, -inf }
 0x13a   :  { %32542 = vst [vmem:[#allocation48_spill] sm:$0xff] %v27308_v27  ;;  %24349 = vmatpush3.bf16.msk.msra.mxu1 %vm25670_vm2, %v25666_v2  ;;  %v357_v27 = vld [vmem:[%s32146_s0 + $0x9c8] sm:$0xff]  ;;  %22507 = vmatprep.mubr.msk.f32.mxu1 %vm444_vm3, %v356_v26  ;;  %32545 = vst [vmem:[#allocation51_spill] sm:$0xff] %v27338_v42 }
 0x13b   :  { %24358 = vmatprep.subr.msk.bf16.mxu1 %vm25670_vm2, %v25666_v2  ;;  %v22107_v10 = vpop.f32.mrb[48].mxu0 }
 0x13c   :  { %v27334_v50 = vpop.f32.mrb[48].mxu1  ;;  %v27341_v26 = vsel %vm6249_vm4, %v22107_v10, -inf  ;;  %v1995_v21 = vpop.f32.mrb[49].mxu0  ;;  %22495 = vmatmul.mubr.msk.f32.gmra.mrb[154].mxu0 %vm444_vm3, %v351_v11  ;;  %v353_v10 = vld [vmem:[%s32146_s0 + $0x9a8] sm:$0xff]  ;;  %v359_v11 = vld [vmem:[%s32146_s0 + $0x9d8] sm:$0xff] }
 0x13d   :  { %32544 = vst [vmem:[#allocation50_spill] sm:$0xff] %v27334_v50  ;;  %32546 = vst [vmem:[#allocation52_spill] sm:$0xff] %v27341_v26  ;;  %v27343_v20 = vpop.f32.mrb[49].mxu1  ;;  %22508 = vmatmul.mubr.msk.f32.gmra.mrb[154].mxu1 %vm444_vm3, %v357_v27  ;;  %v27354_v37 = vsel %vm6249_vm4, %v1995_v21, -inf  ;;  %22497 = vmatprep.mubr.msk.f32.mxu0 %vm444_vm3, %v352_v40  ;;  %v360_v21 = vld [vmem:[%s32146_s0 + $0x9e0] sm:$0xff]  ;;  %v27376_v50 = vsel %vm6249_vm4, %v26724_v45, -inf }
 0x13e   :  { %32547 = vst [vmem:[#allocation53_spill] sm:$0xff] %v27354_v37  ;;  %22510 = vmatprep.mubr.msk.f32.mxu1 %vm444_vm3, %v358_v51  ;;  %v364_v27 = vld [vmem:[%s32146_s0 + $0xa00] sm:$0xff]  ;;  %32549 = vst [vmem:[#allocation55_spill] sm:$0xff] %v27376_v50  ;;  %v27387_v37 = vsel %vm6249_vm4, %v26730_v47, -inf  ;;  %v27420_v47 = vsel %vm6249_vm4, %v26751_v53, -inf }
 0x13f   :  { %v22110_v51 = vpop.f32.mrb[50].mxu0  ;;  %32552 = vst [vmem:[#allocation58_spill] sm:$0xff] %v27387_v37 }
 0x140   :  { %v27372_v40 = vpop.f32.mrb[50].mxu1  ;;  %v27379_v26 = vsel %vm6249_vm4, %v22110_v51, -inf  ;;  %v2005_v39 = vpop.f32.mrb[51].mxu0  ;;  %22498 = vmatmul.mubr.msk.f32.gmra.mrb[156].mxu0 %vm444_vm3, %v353_v10  ;;  %v361_v10 = vld [vmem:[%s32146_s0 + $0x9e8] sm:$0xff]  ;;  %v27416_v51 = vsel %vm6249_vm4, %v26726_v46, -inf  ;;  %v27478_v46 = vsel %vm6249_vm4, %v26778_v61, -inf }
 0x141   :  { %32548 = vst [vmem:[#allocation54_spill] sm:$0xff] %v27372_v40  ;;  %32550 = vst [vmem:[#allocation56_spill] sm:$0xff] %v27379_v26  ;;  %v27381_v42 = vpop.f32.mrb[51].mxu1  ;;  %22511 = vmatmul.mubr.msk.f32.gmra.mrb[156].mxu1 %vm444_vm3, %v359_v11  ;;  %v27392_v45 = vsel %vm6249_vm4, %v2005_v39, -inf  ;;  %22523 = vmatprep.mubr.msk.f32.mxu0 %vm444_vm3, %v364_v27  ;;  %v365_v11 = vld [vmem:[%s32146_s0 + $0xa08] sm:$0xff]  ;;  %v362_v39 = vld [vmem:[%s32146_s0 + $0x9f0] sm:$0xff] }
 0x142   :  { %32551 = vst [vmem:[#allocation57_spill] sm:$0xff] %v27381_v42  ;;  %32553 = vst [vmem:[#allocation59_spill] sm:$0xff] %v27392_v45  ;;  %22513 = vmatprep.mubr.msk.f32.mxu1 %vm444_vm3, %v360_v21  ;;  %v366_v21 = vld [vmem:[%s32146_s0 + $0xa10] sm:$0xff]  ;;  %v27412_v27 = vsel %vm6249_vm4, %v26722_v44, -inf  ;;  %v27424_v45 = vsel %vm6249_vm4, %v26760_v55, -inf }
 0x143   :  { %32554 = vst [vmem:[#allocation60_spill] sm:$0xff] %v27416_v51  ;;  %v22113_v40 = vpop.f32.mrb[52].mxu0  ;;  %32555 = vst [vmem:[#allocation61_spill] sm:$0xff] %v27424_v45 }
 0x144   :  { %v22126_v26 = vpop.f32.mrb[52].mxu1  ;;  %v27427_v37 = vsel %vm6249_vm4, %v22113_v40, -inf  ;;  %v2015_v50 = vpop.f32.mrb[53].mxu0  ;;  %22524 = vmatmul.mubr.msk.f32.vlgmr.msra.gmra.mrb[158].mxu0 %vm444_vm3, %v365_v11  ;;  %v27471_v11 = vsel %vm6249_vm4, %v26756_v54, -inf }
 0x145   :  { %v27430_v44 = vsel %vm6249_vm4, %v22126_v26, -inf  ;;  %v2140_v42 = vpop.f32.mrb[53].mxu1  ;;  %22514 = vmatmul.mubr.msk.f32.gmra.mrb[158].mxu1 %vm444_vm3, %v361_v10  ;;  %v27439_v55 = vsel %vm6249_vm4, %v2015_v50, -inf  ;;  %22526 = vmatprep.mubr.msk.f32.mxu0 %vm444_vm3, %v366_v21  ;;  %v363_v26 = vld [vmem:[%s32146_s0 + $0x9f8] sm:$0xff]  ;;  %v27467_v21 = vsel %vm6249_vm4, %v26749_v52, -inf  ;;  %32558 = vst [vmem:[#allocation64_spill] sm:$0xff] %v27471_v11 }
 0x146   :  { %32556 = vst [vmem:[#allocation62_spill] sm:$0xff] %v27439_v55  ;;  %v27442_v40 = vsel %vm6249_vm4, %v2140_v42, -inf  ;;  %22516 = vmatprep.mubr.msk.f32.mxu1 %vm444_vm3, %v362_v39  ;;  %v367_v10 = vld [vmem:[%s32146_s0 + $0xa18] sm:$0xff]  ;;  %v368_v42 = vld [vmem:[%s32146_s0 + $0xa20] sm:$0xff]  ;;  %v374_v39 = vld [vmem:[%s32146_s0 + $0xa50] sm:$0xff]  ;;  %24355 = vmatpush3.bf16.msk.msra.mxu0 %vm25670_vm2, %v25666_v2 }
 0x147   :  { %32557 = vst [vmem:[#allocation63_spill] sm:$0xff] %v27442_v40  ;;  %v22116_v50 = vpop.f32.mrb[54].mxu0  ;;  %24364 = vmatprep.subr.msk.bf16.mxu0 %vm25670_vm2, %v25666_v2  ;;  %v27482_v40 = vsel %vm6249_vm4, %v26784_v63, -inf }
 0x148   :  { %v22129_v53 = vpop.f32.mrb[54].mxu1  ;;  %32559 = vst [vmem:[#allocation65_spill] sm:$0xff] %v27482_v40  ;;  %v27485_v52 = vsel %vm6249_vm4, %v22116_v50, -inf  ;;  %v2025_v51 = vpop.f32.mrb[55].mxu0  ;;  %22527 = vmatmul.mubr.msk.f32.gmra.mrb[160].mxu0 %vm444_vm3, %v367_v10  ;;  %v376_v10 = vld [vmem:[%s32146_s0 + $0xa60] sm:$0xff] }
 0x149   :  { %v27488_v54 = vsel %vm6249_vm4, %v22129_v53, -inf  ;;  %v2150_v55 = vpop.f32.mrb[55].mxu1  ;;  %22517 = vmatmul.mubr.msk.f32.gmra.mrb[160].mxu1 %vm444_vm3, %v363_v26  ;;  %v27497_v63 = vsel %vm6249_vm4, %v2025_v51, -inf  ;;  %22529 = vmatprep.mubr.msk.f32.mxu0 %vm444_vm3, %v368_v42  ;;  %v369_v53 = vld [vmem:[%s32146_s0 + $0xa28] sm:$0xff]  ;;  %v375_v26 = vld [vmem:[%s32146_s0 + $0xa58] sm:$0xff]  ;;  %v27519_v42 = vsel %vm6249_vm4, %v26698_v36, -inf }
 0x14a   :  { %32560 = vst [vmem:[#allocation66_spill] sm:$0xff] %v27497_v63  ;;  %v27500_v50 = vsel %vm6249_vm4, %v2150_v55, -inf  ;;  %22542 = vmatprep.mubr.msk.f32.mxu1 %vm444_vm3, %v374_v39  ;;  %v370_v55 = vld [vmem:[%s32146_s0 + $0xa30] sm:$0xff]  ;;  %v27523_v39 = vsel %vm6249_vm4, %v26702_v38, -inf  ;;  %v27530_v51 = vsel %vm6249_vm4, %v26773_v59, -inf  ;;  %v27588_v59 = vsel %vm6249_vm4, %v26810_v8, -inf }
 0x14b   :  { %32561 = vst [vmem:[#allocation67_spill] sm:$0xff] %v27500_v50  ;;  %32562 = vst [vmem:[#allocation68_spill] sm:$0xff] %v27523_v39  ;;  %v22119_v45 = vpop.f32.mrb[56].mxu0  ;;  %v27534_v50 = vsel %vm6249_vm4, %v26780_v62, -inf  ;;  %v27636_v8 = vsel %vm6249_vm4, %v26832_v15, -inf }
 0x14c   :  { %v22132_v61 = vpop.f32.mrb[56].mxu1  ;;  %32563 = vst [vmem:[#allocation69_spill] sm:$0xff] %v27534_v50  ;;  %v27537_v36 = vsel %vm6249_vm4, %v22119_v45, -inf  ;;  %v2035_v11 = vpop.f32.mrb[57].mxu0  ;;  %22530 = vmatmul.mubr.msk.f32.gmra.mrb[162].mxu0 %vm444_vm3, %v369_v53  ;;  %v377_v53 = vld [vmem:[%s32146_s0 + $0xa68] sm:$0xff]  ;;  %32566 = vst [vmem:[#allocation72_spill] sm:$0xff] %v27588_v59 }
 0x14d   :  { %v27540_v38 = vsel %vm6249_vm4, %v22132_v61, -inf  ;;  %v2160_v63 = vpop.f32.mrb[57].mxu1  ;;  %22543 = vmatmul.mubr.msk.f32.vlgmr.msra.gmra.mrb[162].mxu1 %vm444_vm3, %v375_v26  ;;  %v27549_v62 = vsel %vm6249_vm4, %v2035_v11, -inf  ;;  %22532 = vmatprep.mubr.msk.f32.mxu0 %vm444_vm3, %v370_v55  ;;  %v371_v61 = vld [vmem:[%s32146_s0 + $0xa38] sm:$0xff]  ;;  %v372_v26 = vld [vmem:[%s32146_s0 + $0xa40] sm:$0xff]  ;;  %v378_v55 = vld [vmem:[%s32146_s0 + $0xa70] sm:$0xff] }
 0x14e   :  { %32564 = vst [vmem:[#allocation70_spill] sm:$0xff] %v27549_v62  ;;  %v27552_v45 = vsel %vm6249_vm4, %v2160_v63, -inf  ;;  %24361 = vmatpush3.bf16.msk.msra.mxu1 %vm25670_vm2, %v25666_v2  ;;  %22545 = vmatprep.mubr.msk.f32.mxu1 %vm444_vm3, %v376_v10  ;;  %v27580_v11 = vsel %vm6249_vm4, %v26806_v6, -inf  ;;  %v27584_v63 = vsel %vm6249_vm4, %v26808_v7, -inf }
 0x14f   :  { %32565 = vst [vmem:[#allocation71_spill] sm:$0xff] %v27552_v45  ;;  %24370 = vmatprep.subr.msk.bf16.mxu1 %vm25670_vm2, %v25666_v2  ;;  %v22145_v40 = vpop.f32.mrb[58].mxu0  ;;  %v27592_v45 = vsel %vm6249_vm4, %v26814_v9, -inf }
 0x150   :  { %v22135_v10 = vpop.f32.mrb[58].mxu1  ;;  %32567 = vst [vmem:[#allocation73_spill] sm:$0xff] %v27592_v45  ;;  %v27598_v6 = vsel %vm6249_vm4, %v22145_v40, -inf  ;;  %v2285_v39 = vpop.f32.mrb[59].mxu0  ;;  %22533 = vmatmul.mubr.msk.f32.gmra.mrb[164].mxu0 %vm444_vm3, %v371_v61  ;;  %v373_v40 = vld [vmem:[%s32146_s0 + $0xa48] sm:$0xff]  ;;  %v379_v61 = vld [vmem:[%s32146_s0 + $0xa78] sm:$0xff] }
 0x151   :  { %v27595_v50 = vsel %vm6249_vm4, %v22135_v10, -inf  ;;  %v2170_v62 = vpop.f32.mrb[59].mxu1  ;;  %22546 = vmatmul.mubr.msk.f32.gmra.mrb[164].mxu1 %vm444_vm3, %v377_v53  ;;  %v27610_v10 = vsel %vm6249_vm4, %v2285_v39, -inf  ;;  %22535 = vmatprep.mubr.msk.f32.mxu0 %vm444_vm3, %v372_v26  ;;  %v380_v39 = vld [vmem:[%s32146_s0 + $0xa80] sm:$0xff] }
 0x152   :  { %v27607_v9 = vsel %vm6249_vm4, %v2170_v62, -inf  ;;  %32569 = vst [vmem:[#allocation75_spill] sm:$0xff] %v27610_v10  ;;  %22548 = vmatprep.mubr.msk.f32.mxu1 %vm444_vm3, %v378_v55  ;;  %v384_v26 = vld [vmem:[%s32146_s0 + $0xaa0] sm:$0xff]  ;;  %v27632_v55 = vsel %vm6249_vm4, %v26830_v14, -inf  ;;  %v27640_v62 = vsel %vm6249_vm4, %v26834_v16, -inf  ;;  %v27644_v10 = vsel %vm6249_vm4, %v26838_v17, -inf }
 0x153   :  { %32568 = vst [vmem:[#allocation74_spill] sm:$0xff] %v27607_v9  ;;  %v22148_v7 = vpop.f32.mrb[60].mxu0  ;;  %32570 = vst [vmem:[#allocation76_spill] sm:$0xff] %v27640_v62  ;;  %v27688_v16 = vsel %vm6249_vm4, %v26856_v23, -inf  ;;  %v27750_v23 = vsel %vm6249_vm4, %v26888_v32, -inf }
 0x154   :  { %v22138_v53 = vpop.f32.mrb[60].mxu1  ;;  %32571 = vst [vmem:[#allocation77_spill] sm:$0xff] %v27644_v10  ;;  %v27650_v14 = vsel %vm6249_vm4, %v22148_v7, -inf  ;;  %v2295_v59 = vpop.f32.mrb[61].mxu0  ;;  %22536 = vmatmul.mubr.msk.f32.gmra.mrb[166].mxu0 %vm444_vm3, %v373_v40  ;;  %v381_v7 = vld [vmem:[%s32146_s0 + $0xa88] sm:$0xff]  ;;  %32578 = vst [vmem:[#allocation84_spill] sm:$0xff] %v27750_v23 }
 0x155   :  { %v27647_v45 = vsel %vm6249_vm4, %v22138_v53, -inf  ;;  %v2180_v9 = vpop.f32.mrb[61].mxu1  ;;  %22549 = vmatmul.mubr.msk.f32.gmra.mrb[166].mxu1 %vm444_vm3, %v379_v61  ;;  %v27662_v53 = vsel %vm6249_vm4, %v2295_v59, -inf  ;;  %22561 = vmatprep.mubr.msk.f32.mxu0 %vm444_vm3, %v384_v26  ;;  %v385_v40 = vld [vmem:[%s32146_s0 + $0xaa8] sm:$0xff]  ;;  %v382_v59 = vld [vmem:[%s32146_s0 + $0xa90] sm:$0xff]  ;;  %v27684_v26 = vsel %vm6249_vm4, %v26854_v22, -inf }
 0x156   :  { %v27659_v17 = vsel %vm6249_vm4, %v2180_v9, -inf  ;;  %32573 = vst [vmem:[#allocation79_spill] sm:$0xff] %v27662_v53  ;;  %22551 = vmatprep.mubr.msk.f32.mxu1 %vm444_vm3, %v380_v39  ;;  %v386_v39 = vld [vmem:[%s32146_s0 + $0xab0] sm:$0xff]  ;;  %v27692_v9 = vsel %vm6249_vm4, %v26858_v24, -inf  ;;  %v27696_v53 = vsel %vm6249_vm4, %v26862_v25, -inf }
 0x157   :  { %32572 = vst [vmem:[#allocation78_spill] sm:$0xff] %v27659_v17  ;;  %v22151_v61 = vpop.f32.mrb[62].mxu0  ;;  %32574 = vst [vmem:[#allocation80_spill] sm:$0xff] %v27692_v9 }
 0x158   :  { %v22164_v15 = vpop.f32.mrb[62].mxu1  ;;  %32575 = vst [vmem:[#allocation81_spill] sm:$0xff] %v27696_v53  ;;  %v27699_v10 = vsel %vm6249_vm4, %v22151_v61, -inf  ;;  %v2305_v17 = vpop.f32.mrb[63].mxu0  ;;  %22562 = vmatmul.mubr.msk.f32.vlgmr.msra.gmra.mrb[168].mxu0 %vm444_vm3, %v385_v40  ;;  %v27743_v40 = vsel %vm6249_vm4, %v26883_v31, -inf }
 0x159   :  { %v27702_v22 = vsel %vm6249_vm4, %v22164_v15, -inf  ;;  %v2430_v62 = vpop.f32.mrb[63].mxu1  ;;  %22552 = vmatmul.mubr.msk.f32.gmra.mrb[168].mxu1 %vm444_vm3, %v381_v7  ;;  %v27711_v25 = vsel %vm6249_vm4, %v2305_v17, -inf  ;;  %22564 = vmatprep.mubr.msk.f32.mxu0 %vm444_vm3, %v386_v39  ;;  %v383_v15 = vld [vmem:[%s32146_s0 + $0xa98] sm:$0xff]  ;;  %v27739_v39 = vsel %vm6249_vm4, %v26881_v30, -inf }
 0x15a   :  { %32576 = vst [vmem:[#allocation82_spill] sm:$0xff] %v27711_v25  ;;  %v27714_v61 = vsel %vm6249_vm4, %v2430_v62, -inf  ;;  %22554 = vmatprep.mubr.msk.f32.mxu1 %vm444_vm3, %v382_v59  ;;  %v387_v7 = vld [vmem:[%s32146_s0 + $0xab8] sm:$0xff]  ;;  %v388_v62 = vld [vmem:[%s32146_s0 + $0xac0] sm:$0xff]  ;;  %v394_v59 = vld [vmem:[%s32146_s0 + $0xaf0] sm:$0xff]  ;;  %24367 = vmatpush3.bf16.msk.msra.mxu0 %vm25670_vm2, %v25666_v2 }
 0x15b   :  { %32577 = vst [vmem:[#allocation83_spill] sm:$0xff] %v27714_v61  ;;  %v22154_v17 = vpop.f32.mrb[64].mxu0  ;;  %24376 = vmatprep.subr.msk.bf16.mxu0 %vm25670_vm2, %v25666_v2  ;;  %v27754_v61 = vsel %vm6249_vm4, %v26892_v33, -inf }
 0x15c   :  { %v22167_v24 = vpop.f32.mrb[64].mxu1  ;;  %32579 = vst [vmem:[#allocation85_spill] sm:$0xff] %v27754_v61  ;;  %v27757_v30 = vsel %vm6249_vm4, %v22154_v17, -inf  ;;  %v2315_v9 = vpop.f32.mrb[65].mxu0  ;;  %22565 = vmatmul.mubr.msk.f32.gmra.mrb[170].mxu0 %vm444_vm3, %v387_v7  ;;  %v396_v7 = vld [vmem:[%s32146_s0 + $0xb00] sm:$0xff] }
 0x15d   :  { %v27760_v31 = vsel %vm6249_vm4, %v22167_v24, -inf  ;;  %v2440_v25 = vpop.f32.mrb[65].mxu1  ;;  %22555 = vmatmul.mubr.msk.f32.gmra.mrb[170].mxu1 %vm444_vm3, %v383_v15  ;;  %v27769_v33 = vsel %vm6249_vm4, %v2315_v9, -inf  ;;  %22567 = vmatprep.mubr.msk.f32.mxu0 %vm444_vm3, %v388_v62  ;;  %v389_v24 = vld [vmem:[%s32146_s0 + $0xac8] sm:$0xff]  ;;  %v395_v15 = vld [vmem:[%s32146_s0 + $0xaf8] sm:$0xff]  ;;  %v27791_v62 = vsel %vm6249_vm4, %v26905_v41, -inf }
 0x15e   :  { %32580 = vst [vmem:[#allocation86_spill] sm:$0xff] %v27769_v33  ;;  %v27772_v17 = vsel %vm6249_vm4, %v2440_v25, -inf  ;;  %22580 = vmatprep.mubr.msk.f32.mxu1 %vm444_vm3, %v394_v59  ;;  %v390_v25 = vld [vmem:[%s32146_s0 + $0xad0] sm:$0xff]  ;;  %v27795_v59 = vsel %vm6249_vm4, %v26910_v43, -inf  ;;  %v27802_v9 = vsel %vm6249_vm4, %v26912_v48, -inf  ;;  %v27860_v48 = vsel %vm6249_vm4, %v26942_v0, -inf }
 0x15f   :  { %32581 = vst [vmem:[#allocation87_spill] sm:$0xff] %v27772_v17  ;;  %v22157_v53 = vpop.f32.mrb[66].mxu0  ;;  %32582 = vst [vmem:[#allocation88_spill] sm:$0xff] %v27802_v9  ;;  %v27806_v17 = vsel %vm6249_vm4, %v26916_v49, -inf  ;;  %v27908_v0 = vsel %vm6249_vm4, %v26964_v13, -inf }
 0x160   :  { %v22170_v32 = vpop.f32.mrb[66].mxu1  ;;  %32583 = vst [vmem:[#allocation89_spill] sm:$0xff] %v27806_v17  ;;  %v27809_v41 = vsel %vm6249_vm4, %v22157_v53, -inf  ;;  %v2325_v23 = vpop.f32.mrb[67].mxu0  ;;  %22568 = vmatmul.mubr.msk.f32.gmra.mrb[172].mxu0 %vm444_vm3, %v389_v24  ;;  %v397_v24 = vld [vmem:[%s32146_s0 + $0xb08] sm:$0xff]  ;;  %32586 = vst [vmem:[#allocation92_spill] sm:$0xff] %v27860_v48 }
 0x161   :  { %v27812_v43 = vsel %vm6249_vm4, %v22170_v32, -inf  ;;  %v2450_v33 = vpop.f32.mrb[67].mxu1  ;;  %22581 = vmatmul.mubr.msk.f32.vlgmr.msra.gmra.mrb[172].mxu1 %vm444_vm3, %v395_v15  ;;  %v27821_v49 = vsel %vm6249_vm4, %v2325_v23, -inf  ;;  %22570 = vmatprep.mubr.msk.f32.mxu0 %vm444_vm3, %v390_v25  ;;  %v391_v32 = vld [vmem:[%s32146_s0 + $0xad8] sm:$0xff]  ;;  %v392_v15 = vld [vmem:[%s32146_s0 + $0xae0] sm:$0xff]  ;;  %v398_v25 = vld [vmem:[%s32146_s0 + $0xb10] sm:$0xff] }
 0x162   :  { %32584 = vst [vmem:[#allocation90_spill] sm:$0xff] %v27821_v49  ;;  %v27824_v53 = vsel %vm6249_vm4, %v2450_v33, -inf  ;;  %24373 = vmatpush3.bf16.msk.msra.mxu1 %vm25670_vm2, %v25666_v2  ;;  %22583 = vmatprep.mubr.msk.f32.mxu1 %vm444_vm3, %v396_v7  ;;  %v27852_v23 = vsel %vm6249_vm4, %v26938_v58, -inf  ;;  %v27856_v33 = vsel %vm6249_vm4, %v26940_v60, -inf }
 0x163   :  { %32585 = vst [vmem:[#allocation91_spill] sm:$0xff] %v27824_v53  ;;  %24382 = vmatprep.subr.msk.bf16.mxu1 %vm25670_vm2, %v25666_v2  ;;  %v22183_v61 = vpop.f32.mrb[68].mxu0  ;;  %v27864_v53 = vsel %vm6249_vm4, %v26946_v1, -inf }
 0x164   :  { %v22173_v7 = vpop.f32.mrb[68].mxu1  ;;  %32587 = vst [vmem:[#allocation93_spill] sm:$0xff] %v27864_v53  ;;  %v27870_v58 = vsel %vm6249_vm4, %v22183_v61, -inf  ;;  %v2575_v17 = vpop.f32.mrb[69].mxu0  ;;  %22571 = vmatmul.mubr.msk.f32.gmra.mrb[174].mxu0 %vm444_vm3, %v391_v32  ;;  %v393_v61 = vld [vmem:[%s32146_s0 + $0xae8] sm:$0xff]  ;;  %v399_v32 = vld [vmem:[%s32146_s0 + $0xb18] sm:$0xff] }
 0x165   :  { %v27867_v9 = vsel %vm6249_vm4, %v22173_v7, -inf  ;;  %v2460_v49 = vpop.f32.mrb[69].mxu1  ;;  %22584 = vmatmul.mubr.msk.f32.gmra.mrb[174].mxu1 %vm444_vm3, %v397_v24  ;;  %v27882_v7 = vsel %vm6249_vm4, %v2575_v17, -inf  ;;  %22573 = vmatprep.mubr.msk.f32.mxu0 %vm444_vm3, %v392_v15  ;;  %v400_v17 = vld [vmem:[%s32146_s0 + $0xb20] sm:$0xff] }
 0x166   :  { %v27879_v1 = vsel %vm6249_vm4, %v2460_v49, -inf  ;;  %32589 = vst [vmem:[#allocation95_spill] sm:$0xff] %v27882_v7  ;;  %22586 = vmatprep.mubr.msk.f32.mxu1 %vm444_vm3, %v398_v25  ;;  %v404_v15 = vld [vmem:[%s32146_s0 + $0xb40] sm:$0xff]  ;;  %v27904_v25 = vsel %vm6249_vm4, %v26962_v12, -inf  ;;  %v27912_v49 = vsel %vm6249_vm4, %v26966_v18, -inf  ;;  %v27916_v7 = vsel %vm6249_vm4, %v26970_v19, -inf }
 0x167   :  { %32588 = vst [vmem:[#allocation94_spill] sm:$0xff] %v27879_v1  ;;  %v22186_v60 = vpop.f32.mrb[70].mxu0  ;;  %32590 = vst [vmem:[#allocation96_spill] sm:$0xff] %v27912_v49  ;;  %v27960_v18 = vsel %vm6249_vm4, %v26988_v29, -inf  ;;  %v28019_v29 = vsel %vm6249_vm4, %v27020_v4, -inf }
 0x168   :  { %v22176_v24 = vpop.f32.mrb[70].mxu1  ;;  %32591 = vst [vmem:[#allocation97_spill] sm:$0xff] %v27916_v7  ;;  %v27922_v12 = vsel %vm6249_vm4, %v22186_v60, -inf  ;;  %v2585_v48 = vpop.f32.mrb[71].mxu0  ;;  %22574 = vmatmul.mubr.msk.f32.gmra.mrb[176].mxu0 %vm444_vm3, %v393_v61  ;;  %v401_v60 = vld [vmem:[%s32146_s0 + $0xb28] sm:$0xff]  ;;  %32602 = vst [vmem:[#allocation108_spill] sm:$0xff] %v28019_v29 }
 0x169   :  { %v27919_v53 = vsel %vm6249_vm4, %v22176_v24, -inf  ;;  %v2470_v1 = vpop.f32.mrb[71].mxu1  ;;  %22587 = vmatmul.mubr.msk.f32.gmra.mrb[176].mxu1 %vm444_vm3, %v399_v32  ;;  %v27934_v24 = vsel %vm6249_vm4, %v2585_v48, -inf  ;;  %22599 = vmatprep.mubr.msk.f32.mxu0 %vm444_vm3, %v404_v15  ;;  %v405_v61 = vld [vmem:[%s32146_s0 + $0xb48] sm:$0xff]  ;;  %v402_v48 = vld [vmem:[%s32146_s0 + $0xb30] sm:$0xff]  ;;  %v27956_v15 = vsel %vm6249_vm4, %v26986_v28, -inf }
 0x16a   :  { %v27931_v19 = vsel %vm6249_vm4, %v2470_v1, -inf  ;;  %32593 = vst [vmem:[#allocation99_spill] sm:$0xff] %v27934_v24  ;;  %22589 = vmatprep.mubr.msk.f32.mxu1 %vm444_vm3, %v400_v17  ;;  %v406_v17 = vld [vmem:[%s32146_s0 + $0xb50] sm:$0xff]  ;;  %32594 = vst [vmem:[#allocation100_spill] sm:$0xff] %v27956_v15  ;;  %v27964_v1 = vsel %vm6249_vm4, %v26990_v34, -inf  ;;  %v27968_v24 = vsel %vm6249_vm4, %v26994_v35, -inf }
 0x16b   :  { %32592 = vst [vmem:[#allocation98_spill] sm:$0xff] %v27931_v19  ;;  %v22189_v32 = vpop.f32.mrb[72].mxu0  ;;  %32595 = vst [vmem:[#allocation101_spill] sm:$0xff] %v27964_v1  ;;  %v32698_v15 = vld [vmem:[#allocation36_spill] sm:$0xff] }
 0x16c   :  { %v22202_v13 = vpop.f32.mrb[72].mxu1  ;;  %32596 = vst [vmem:[#allocation102_spill] sm:$0xff] %v27968_v24  ;;  %v27971_v7 = vsel %vm6249_vm4, %v22189_v32, -inf  ;;  %v2595_v19 = vpop.f32.mrb[73].mxu0  ;;  %22600 = vmatmul.mubr.msk.f32.vlgmr.msra.gmra.mrb[178].mxu0 %vm444_vm3, %v405_v61  ;;  %v28015_v61 = vsel %vm6249_vm4, %v27015_v57, -inf  ;;  %v32611_v57 = vld [vmem:[#allocation7_spill] sm:$0xff] }
 0x16d   :  { %v27974_v28 = vsel %vm6249_vm4, %v22202_v13, -inf  ;;  %v2720_v49 = vpop.f32.mrb[73].mxu1  ;;  %22590 = vmatmul.mubr.msk.f32.gmra.mrb[178].mxu1 %vm444_vm3, %v401_v60  ;;  %v27983_v35 = vsel %vm6249_vm4, %v2595_v19, -inf  ;;  %22602 = vmatprep.mubr.msk.f32.mxu0 %vm444_vm3, %v406_v17  ;;  %v403_v13 = vld [vmem:[%s32146_s0 + $0xb38] sm:$0xff]  ;;  %v28011_v17 = vsel %vm6249_vm4, %v27013_v56, -inf  ;;  %32601 = vst [vmem:[#allocation107_spill] sm:$0xff] %v28015_v61 }
 0x16e   :  { %32597 = vst [vmem:[#allocation103_spill] sm:$0xff] %v27974_v28  ;;  %32598 = vst [vmem:[#allocation104_spill] sm:$0xff] %v27983_v35  ;;  %v27986_v32 = vsel %vm6249_vm4, %v2720_v49, -inf  ;;  %22592 = vmatprep.mubr.msk.f32.mxu1 %vm444_vm3, %v402_v48  ;;  %v407_v60 = vld [vmem:[%s32146_s0 + $0xb58] sm:$0xff]  ;;  %v408_v49 = vld [vmem:[%s32146_s0 + $0xb60] sm:$0xff]  ;;  %24379 = vmatpush3.bf16.msk.msra.mxu0 %vm25670_vm2, %v25666_v2 }
 0x16f   :  { %32599 = vst [vmem:[#allocation105_spill] sm:$0xff] %v27986_v32  ;;  %v414_v48 = vld [vmem:[%s32146_s0 + $0xb90] sm:$0xff]  ;;  %32600 = vst [vmem:[#allocation106_spill] sm:$0xff] %v28011_v17  ;;  %v22192_v19 = vpop.f32.mrb[74].mxu0  ;;  %v32603_v32 = vld [vmem:[#allocation5_spill] sm:$0xff] }
 0x170   :  { %v22205_v34 = vpop.f32.mrb[74].mxu1  ;;  %v28023_v1 = vsel %vm6249_vm4, %v32603_v32, -inf  ;;  %v28026_v35 = vsel %vm6249_vm4, %v22192_v19, -inf  ;;  %v2605_v24 = vpop.f32.mrb[75].mxu0  ;;  %22603 = vmatmul.mubr.msk.f32.gmra.mrb[180].mxu0 %vm444_vm3, %v407_v60 }
 0x171   :  { %32604 = vst [vmem:[#allocation5_spill] sm:$0xff] %v28023_v1  ;;  %32605 = vst [vmem:[#allocation109_spill] sm:$0xff] %v28026_v35  ;;  %v28029_v56 = vsel %vm6249_vm4, %v22205_v34, -inf  ;;  %v2730_v28 = vpop.f32.mrb[75].mxu1  ;;  %22593 = vmatmul.mubr.msk.f32.gmra.mrb[180].mxu1 %vm444_vm3, %v403_v13  ;;  %v28038_v32 = vsel %vm6249_vm4, %v2605_v24, -inf  ;;  %22605 = vmatprep.mubr.msk.f32.mxu0 %vm444_vm3, %v408_v49  ;;  %v409_v34 = vld [vmem:[%s32146_s0 + $0xb68] sm:$0xff] }
 0x172   :  { %32606 = vst [vmem:[#allocation110_spill] sm:$0xff] %v28029_v56  ;;  %32607 = vst [vmem:[#allocation111_spill] sm:$0xff] %v28038_v32  ;;  %v28041_v19 = vsel %vm6249_vm4, %v2730_v28, -inf  ;;  %22618 = vmatprep.mubr.msk.f32.mxu1 %vm444_vm3, %v414_v48  ;;  %v415_v13 = vld [vmem:[%s32146_s0 + $0xb98] sm:$0xff]  ;;  %v410_v28 = vld [vmem:[%s32146_s0 + $0xb70] sm:$0xff]  ;;  %v28067_v56 = vsel %vm6249_vm4, %v32611_v57, -inf }
 0x173   :  { %32608 = vst [vmem:[#allocation112_spill] sm:$0xff] %v28041_v19  ;;  %v416_v49 = vld [vmem:[%s32146_s0 + $0xba0] sm:$0xff]  ;;  %v32609_v48 = vld [vmem:[#allocation6_spill] sm:$0xff]  ;;  %32612 = vst [vmem:[#allocation7_spill] sm:$0xff] %v28067_v56  ;;  %v22195_v60 = vpop.f32.mrb[76].mxu0 }
 0x174   :  { %v28063_v4 = vsel %vm6249_vm4, %v32609_v48, -inf  ;;  %v22208_v32 = vpop.f32.mrb[76].mxu1  ;;  %v32613_v1 = vld [vmem:[#allocation8_spill] sm:$0xff]  ;;  %v32615_v19 = vld [vmem:[#allocation9_spill] sm:$0xff]  ;;  %v28078_v17 = vsel %vm6249_vm4, %v22195_v60, -inf  ;;  %v2615_v35 = vpop.f32.mrb[77].mxu0  ;;  %22606 = vmatmul.mubr.msk.f32.gmra.mrb[182].mxu0 %vm444_vm3, %v409_v34 }
 0x175   :  { %32610 = vst [vmem:[#allocation6_spill] sm:$0xff] %v28063_v4  ;;  %v28071_v24 = vsel %vm6249_vm4, %v32613_v1, -inf  ;;  %v28075_v29 = vsel %vm6249_vm4, %v32615_v19, -inf  ;;  %32617 = vst [vmem:[#allocation113_spill] sm:$0xff] %v28078_v17  ;;  %v28081_v48 = vsel %vm6249_vm4, %v22208_v32, -inf  ;;  %v2740_v61 = vpop.f32.mrb[77].mxu1  ;;  %22619 = vmatmul.mubr.msk.f32.vlgmr.msra.gmra.mrb[182].mxu1 %vm444_vm3, %v415_v13  ;;  %22608 = vmatprep.mubr.msk.f32.mxu0 %vm444_vm3, %v410_v28 }
 0x176   :  { %32614 = vst [vmem:[#allocation8_spill] sm:$0xff] %v28071_v24  ;;  %32616 = vst [vmem:[#allocation9_spill] sm:$0xff] %v28075_v29  ;;  %v28090_v19 = vsel %vm6249_vm4, %v2615_v35, -inf  ;;  %v28093_v60 = vsel %vm6249_vm4, %v2740_v61, -inf  ;;  %22621 = vmatprep.mubr.msk.f32.mxu1 %vm444_vm3, %v416_v49  ;;  %v411_v32 = vld [vmem:[%s32146_s0 + $0xb78] sm:$0xff]  ;;  %v417_v34 = vld [vmem:[%s32146_s0 + $0xba8] sm:$0xff]  ;;  %24385 = vmatpush3.bf16.msk.msra.mxu1 %vm25670_vm2, %v25666_v2 }
 0x177   :  { %32618 = vst [vmem:[#allocation114_spill] sm:$0xff] %v28081_v48  ;;  %32619 = vst [vmem:[#allocation115_spill] sm:$0xff] %v28090_v19  ;;  %v412_v61 = vld [vmem:[%s32146_s0 + $0xb80] sm:$0xff]  ;;  %v418_v28 = vld [vmem:[%s32146_s0 + $0xbb0] sm:$0xff] }
 0x178   :  { %32620 = vst [vmem:[#allocation116_spill] sm:$0xff] %v28093_v60  ;;  %v32621_v49 = vld [vmem:[#allocation10_spill] sm:$0xff]  ;;  %v32623_v13 = vld [vmem:[#allocation11_spill] sm:$0xff]  ;;  %v22211_v35 = vpop.f32.mrb[78].mxu1  ;;  %v22221_v60 = vpop.f32.mrb[78].mxu0  ;;  %v32625_v24 = vld [vmem:[#allocation12_spill] sm:$0xff]  ;;  %22609 = vmatmul.mubr.msk.f32.gmra.mrb[184].mxu0 %vm444_vm3, %v411_v32 }
 0x179   :  { %v28118_v57 = vsel %vm6249_vm4, %v32621_v49, -inf  ;;  %v28122_v1 = vsel %vm6249_vm4, %v32623_v13, -inf  ;;  %v28126_v19 = vsel %vm6249_vm4, %v32625_v24, -inf  ;;  %v32627_v29 = vld [vmem:[#allocation13_spill] sm:$0xff]  ;;  %v28133_v2 = vsel %vm6249_vm4, %v22211_v35, -inf  ;;  %v2750_v49 = vpop.f32.mrb[79].mxu1  ;;  %22622 = vmatmul.mubr.msk.f32.gmra.mrb[184].mxu1 %vm444_vm3, %v417_v34  ;;  %22611 = vmatprep.mubr.msk.f32.mxu0 %vm444_vm3, %v412_v61  ;;  %vm24967_vm2 = vmpackc.low %vm19139_vm15, %vm25590_vm1 }
 0x17a   :  { %32622 = vst [vmem:[#allocation10_spill] sm:$0xff] %v28118_v57  ;;  %32624 = vst [vmem:[#allocation11_spill] sm:$0xff] %v28122_v1  ;;  %v28130_v48 = vsel %vm6249_vm4, %v32627_v29, -inf  ;;  %v28136_v3 = vsel %vm6249_vm4, %v22221_v60, -inf  ;;  %v2865_v4 = vpop.f32.mrb[79].mxu0  ;;  %v28145_v29 = vsel %vm6249_vm4, %v2750_v49, -inf  ;;  %22624 = vmatprep.mubr.msk.f32.mxu1 %vm444_vm3, %v418_v28 }
 0x17b   :  { %32626 = vst [vmem:[#allocation12_spill] sm:$0xff] %v28126_v19  ;;  %32628 = vst [vmem:[#allocation13_spill] sm:$0xff] %v28130_v48  ;;  %v28148_v35 = vsel %vm6249_vm4, %v2865_v4, -inf  ;;  %v413_v60 = vld [vmem:[%s32146_s0 + $0xb88] sm:$0xff]  ;;  %v419_v32 = vld [vmem:[%s32146_s0 + $0xbb8] sm:$0xff] }
 0x17c   :  { %32629 = vst [vmem:[#allocation117_spill] sm:$0xff] %v28133_v2  ;;  %32630 = vst [vmem:[#allocation118_spill] sm:$0xff] %v28136_v3  ;;  %v420_v4 = vld [vmem:[%s32146_s0 + $0xbc0] sm:$0xff]  ;;  %v32633_v28 = vld [vmem:[#allocation14_spill] sm:$0xff]  ;;  %v22214_v34 = vpop.f32.mrb[80].mxu1  ;;  %22612 = vmatmul.mubr.msk.f32.gmra.mrb[186].mxu0 %vm444_vm3, %v413_v60 }
 0x17d   :  { %32631 = vst [vmem:[#allocation119_spill] sm:$0xff] %v28145_v29  ;;  %32632 = vst [vmem:[#allocation120_spill] sm:$0xff] %v28148_v35  ;;  %v424_v61 = vld [vmem:[%s32146_s0 + $0xbe0] sm:$0xff]  ;;  %v28170_v13 = vsel %vm6249_vm4, %v32633_v28, -inf  ;;  %v32635_v24 = vld [vmem:[#allocation15_spill] sm:$0xff]  ;;  %v22224_v29 = vpop.f32.mrb[80].mxu0  ;;  %22625 = vmatmul.mubr.msk.f32.gmra.mrb[186].mxu1 %vm444_vm3, %v419_v32 }
 0x17e   :  { %32634 = vst [vmem:[#allocation14_spill] sm:$0xff] %v28170_v13  ;;  %v28174_v3 = vsel %vm6249_vm4, %v32635_v24, -inf  ;;  %v32637_v19 = vld [vmem:[#allocation16_spill] sm:$0xff]  ;;  %v32639_v35 = vld [vmem:[#allocation17_spill] sm:$0xff]  ;;  %v28185_v1 = vsel %vm6249_vm4, %v22214_v34, -inf  ;;  %v28188_v28 = vsel %vm6249_vm4, %v22224_v29, -inf  ;;  %22627 = vmatprep.mubr.msk.f32.mxu1 %vm444_vm3, %v420_v4  ;;  %22637 = vmatprep.mubr.msk.f32.mxu0 %vm444_vm3, %v424_v61 }
 0x17f   :  { %32636 = vst [vmem:[#allocation15_spill] sm:$0xff] %v28174_v3  ;;  %v28178_v49 = vsel %vm6249_vm4, %v32637_v19, -inf  ;;  %v28182_v48 = vsel %vm6249_vm4, %v32639_v35, -inf  ;;  %32641 = vst [vmem:[#allocation121_spill] sm:$0xff] %v28185_v1  ;;  %v2760_v2 = vpop.f32.mrb[81].mxu1  ;;  %v2875_v57 = vpop.f32.mrb[81].mxu0 }
 0x180   :  { %32638 = vst [vmem:[#allocation16_spill] sm:$0xff] %v28178_v49  ;;  %32640 = vst [vmem:[#allocation17_spill] sm:$0xff] %v28182_v48  ;;  %v28197_v35 = vsel %vm6249_vm4, %v2760_v2, -inf  ;;  %v28200_v34 = vsel %vm6249_vm4, %v2875_v57, -inf  ;;  %v421_v29 = vld [vmem:[%s32146_s0 + $0xbc8] sm:$0xff]  ;;  %v422_v57 = vld [vmem:[%s32146_s0 + $0xbd0] sm:$0xff] }
 0x181   :  { %32642 = vst [vmem:[#allocation122_spill] sm:$0xff] %v28188_v28  ;;  %32643 = vst [vmem:[#allocation123_spill] sm:$0xff] %v28197_v35  ;;  %v425_v60 = vld [vmem:[%s32146_s0 + $0xbe8] sm:$0xff]  ;;  %v426_v4 = vld [vmem:[%s32146_s0 + $0xbf0] sm:$0xff]  ;;  %v22227_v32 = vpop.f32.mrb[82].mxu0  ;;  %v22240_v35 = vpop.f32.mrb[82].mxu1  ;;  %22628 = vmatmul.mubr.msk.f32.gmra.mrb[188].mxu1 %vm444_vm3, %v421_v29 }
 0x182   :  { %32644 = vst [vmem:[#allocation124_spill] sm:$0xff] %v28200_v34  ;;  %v32645_v61 = vld [vmem:[#allocation18_spill] sm:$0xff]  ;;  %v32647_v19 = vld [vmem:[#allocation19_spill] sm:$0xff]  ;;  %v32649_v49 = vld [vmem:[#allocation20_spill] sm:$0xff]  ;;  %v28237_v3 = vsel %vm6249_vm4, %v22227_v32, -inf  ;;  %v2885_v1 = vpop.f32.mrb[83].mxu0  ;;  %22638 = vmatmul.mubr.msk.f32.vlgmr.msra.gmra.mrb[188].mxu0 %vm444_vm3, %v425_v60  ;;  %22630 = vmatprep.mubr.msk.f32.mxu1 %vm444_vm3, %v422_v57 }
 0x183   :  { %v28222_v24 = vsel %vm6249_vm4, %v32645_v61, -inf  ;;  %v28226_v28 = vsel %vm6249_vm4, %v32647_v19, -inf  ;;  %v28230_v2 = vsel %vm6249_vm4, %v32649_v49, -inf  ;;  %v32651_v34 = vld [vmem:[#allocation21_spill] sm:$0xff]  ;;  %32653 = vst [vmem:[#allocation125_spill] sm:$0xff] %v28237_v3  ;;  %v28240_v61 = vsel %vm6249_vm4, %v22240_v35, -inf  ;;  %22640 = vmatprep.mubr.msk.f32.mxu0 %vm444_vm3, %v426_v4 }
 0x184   :  { %32646 = vst [vmem:[#allocation18_spill] sm:$0xff] %v28222_v24  ;;  %32648 = vst [vmem:[#allocation19_spill] sm:$0xff] %v28226_v28  ;;  %v28234_v48 = vsel %vm6249_vm4, %v32651_v34, -inf  ;;  %v3010_v13 = vpop.f32.mrb[83].mxu1  ;;  %v28249_v34 = vsel %vm6249_vm4, %v2885_v1, -inf  ;;  %v423_v35 = vld [vmem:[%s32146_s0 + $0xbd8] sm:$0xff] }
 0x185   :  { %32650 = vst [vmem:[#allocation20_spill] sm:$0xff] %v28230_v2  ;;  %32652 = vst [vmem:[#allocation21_spill] sm:$0xff] %v28234_v48  ;;  %v28252_v32 = vsel %vm6249_vm4, %v3010_v13, -inf  ;;  %v427_v29 = vld [vmem:[%s32146_s0 + $0xbf8] sm:$0xff]  ;;  %v428_v13 = vld [vmem:[%s32146_s0 + $0xc00] sm:$0xff]  ;;  %v22230_v60 = vpop.f32.mrb[84].mxu0  ;;  %22631 = vmatmul.mubr.msk.f32.gmra.mrb[190].mxu1 %vm444_vm3, %v423_v35 }
 0x186   :  { %32654 = vst [vmem:[#allocation126_spill] sm:$0xff] %v28240_v61  ;;  %32655 = vst [vmem:[#allocation127_spill] sm:$0xff] %v28249_v34  ;;  %v434_v57 = vld [vmem:[%s32146_s0 + $0xc30] sm:$0xff]  ;;  %v32659_v49 = vld [vmem:[#allocation23_spill] sm:$0xff]  ;;  %v22243_v34 = vpop.f32.mrb[84].mxu1  ;;  %v28289_v24 = vsel %vm6249_vm4, %v22230_v60, -inf  ;;  %22641 = vmatmul.mubr.msk.f32.gmra.mrb[190].mxu0 %vm444_vm3, %v427_v29 }
 0x187   :  { %32656 = vst [vmem:[#allocation128_spill] sm:$0xff] %v28252_v32  ;;  %v32657_v4 = vld [vmem:[#allocation22_spill] sm:$0xff]  ;;  %v28278_v61 = vsel %vm6249_vm4, %v32659_v49, -inf  ;;  %v32661_v48 = vld [vmem:[#allocation24_spill] sm:$0xff]  ;;  %v32663_v32 = vld [vmem:[#allocation25_spill] sm:$0xff]  ;;  %v2895_v3 = vpop.f32.mrb[85].mxu0  ;;  %22643 = vmatprep.mubr.msk.f32.mxu0 %vm444_vm3, %v428_v13  ;;  %22656 = vmatprep.mubr.msk.f32.mxu1 %vm444_vm3, %v434_v57 }
 0x188   :  { %v28274_v19 = vsel %vm6249_vm4, %v32657_v4, -inf  ;;  %32660 = vst [vmem:[#allocation23_spill] sm:$0xff] %v28278_v61  ;;  %v28282_v1 = vsel %vm6249_vm4, %v32661_v48, -inf  ;;  %v28286_v2 = vsel %vm6249_vm4, %v32663_v32, -inf  ;;  %32665 = vst [vmem:[#allocation129_spill] sm:$0xff] %v28289_v24  ;;  %v28292_v4 = vsel %vm6249_vm4, %v22243_v34, -inf }
 0x189   :  { %32658 = vst [vmem:[#allocation22_spill] sm:$0xff] %v28274_v19  ;;  %32662 = vst [vmem:[#allocation24_spill] sm:$0xff] %v28282_v1  ;;  %v3020_v28 = vpop.f32.mrb[85].mxu1  ;;  %v28301_v32 = vsel %vm6249_vm4, %v2895_v3, -inf  ;;  %v429_v34 = vld [vmem:[%s32146_s0 + $0xc08] sm:$0xff]  ;;  %v435_v35 = vld [vmem:[%s32146_s0 + $0xc38] sm:$0xff] }
 0x18a   :  { %32664 = vst [vmem:[#allocation25_spill] sm:$0xff] %v28286_v2  ;;  %32666 = vst [vmem:[#allocation130_spill] sm:$0xff] %v28292_v4  ;;  %v28304_v60 = vsel %vm6249_vm4, %v3020_v28, -inf  ;;  %v430_v28 = vld [vmem:[%s32146_s0 + $0xc10] sm:$0xff]  ;;  %v436_v13 = vld [vmem:[%s32146_s0 + $0xc40] sm:$0xff]  ;;  %v22233_v29 = vpop.f32.mrb[86].mxu0  ;;  %22644 = vmatmul.mubr.msk.f32.gmra.mrb[192].mxu0 %vm444_vm3, %v429_v34  ;;  %22657 = vmatmul.mubr.msk.f32.vlgmr.msra.gmra.mrb[192].mxu1 %vm444_vm3, %v435_v35 }
 0x18b   :  { %32667 = vst [vmem:[#allocation131_spill] sm:$0xff] %v28301_v32  ;;  %32668 = vst [vmem:[#allocation132_spill] sm:$0xff] %v28304_v60  ;;  %v32669_v57 = vld [vmem:[#allocation26_spill] sm:$0xff]  ;;  %v32671_v48 = vld [vmem:[#allocation27_spill] sm:$0xff]  ;;  %v22246_v32 = vpop.f32.mrb[86].mxu1  ;;  %v28341_v19 = vsel %vm6249_vm4, %v22233_v29, -inf  ;;  %22646 = vmatprep.mubr.msk.f32.mxu0 %vm444_vm3, %v430_v28  ;;  %22659 = vmatprep.mubr.msk.f32.mxu1 %vm444_vm3, %v436_v13 }
 0x18c   :  { %v28326_v49 = vsel %vm6249_vm4, %v32669_v57, -inf  ;;  %v28330_v4 = vsel %vm6249_vm4, %v32671_v48, -inf  ;;  %v32673_v3 = vld [vmem:[#allocation28_spill] sm:$0xff]  ;;  %v32675_v1 = vld [vmem:[#allocation29_spill] sm:$0xff]  ;;  %32677 = vst [vmem:[#allocation133_spill] sm:$0xff] %v28341_v19  ;;  %v28344_v57 = vsel %vm6249_vm4, %v22246_v32, -inf }
 0x18d   :  { %32670 = vst [vmem:[#allocation26_spill] sm:$0xff] %v28326_v49  ;;  %32672 = vst [vmem:[#allocation27_spill] sm:$0xff] %v28330_v4  ;;  %v28334_v60 = vsel %vm6249_vm4, %v32673_v3, -inf  ;;  %v28338_v2 = vsel %vm6249_vm4, %v32675_v1, -inf  ;;  %v2905_v24 = vpop.f32.mrb[87].mxu0  ;;  %v3030_v61 = vpop.f32.mrb[87].mxu1 }
 0x18e   :  { %32674 = vst [vmem:[#allocation28_spill] sm:$0xff] %v28334_v60  ;;  %32676 = vst [vmem:[#allocation29_spill] sm:$0xff] %v28338_v2  ;;  %v28353_v1 = vsel %vm6249_vm4, %v2905_v24, -inf  ;;  %v28356_v29 = vsel %vm6249_vm4, %v3030_v61, -inf  ;;  %v431_v32 = vld [vmem:[%s32146_s0 + $0xc18] sm:$0xff]  ;;  %v437_v34 = vld [vmem:[%s32146_s0 + $0xc48] sm:$0xff] }
 0x18f   :  { %32678 = vst [vmem:[#allocation134_spill] sm:$0xff] %v28344_v57  ;;  %32679 = vst [vmem:[#allocation135_spill] sm:$0xff] %v28353_v1  ;;  %v32681_v35 = vld [vmem:[#allocation30_spill] sm:$0xff]  ;;  %v32682_v24 = vld [vmem:[#allocation31_spill] sm:$0xff]  ;;  %v22249_v1 = vpop.f32.mrb[88].mxu1  ;;  %v22259_v13 = vpop.f32.mrb[88].mxu0  ;;  %22647 = vmatmul.mubr.msk.f32.gmra.mrb[194].mxu0 %vm444_vm3, %v431_v32  ;;  %22660 = vmatmul.mubr.msk.f32.gmra.mrb[194].mxu1 %vm444_vm3, %v437_v34 }
 0x190   :  { %32680 = vst [vmem:[#allocation136_spill] sm:$0xff] %v28356_v29  ;;  %v28368_v3 = vsel %vm6249_vm4, %v32681_v35, -inf  ;;  %v28372_v61 = vsel %vm6249_vm4, %v32682_v24, -inf  ;;  %v432_v48 = vld [vmem:[%s32146_s0 + $0xc20] sm:$0xff]  ;;  %v438_v57 = vld [vmem:[%s32146_s0 + $0xc50] sm:$0xff]  ;;  %v32684_v35 = vmov 0 }
 0x191   :  { %32683 = vst [vmem:[#allocation30_spill] sm:$0xff] %v28372_v61  ;;  %v32685_v35 = vsel %vm28386_vm6, 4294967295, %v32684_v35  ;;  %v32687_v24 = vld [vmem:[#allocation32_spill] sm:$0xff]  ;;  %v19782_v29 = vld [vmem:[%s32149_s3 + $0x10] sm:$0xff]  ;;  %v19783_v60 = vld [vmem:[%s32149_s3 + $0x18] sm:$0x3]  ;;  %22649 = vmatprep.mubr.msk.f32.mxu0 %vm444_vm3, %v432_v48  ;;  %22662 = vmatprep.mubr.msk.f32.mxu1 %vm444_vm3, %v438_v57 }
 0x192   :  { %32686 = vst [vmem:[#allocation31_spill] sm:$0xff] %v32685_v35  ;;  %v28392_v28 = vsel %vm6249_vm4, %v32687_v24, -inf  ;;  %v32689_v2 = vld [vmem:[#allocation33_spill] sm:$0xff]  ;;  %v28405_v19 = vsel %vm6249_vm4, %v22249_v1, -inf  ;;  %v28408_v24 = vsel %vm6249_vm4, %v22259_v13, -inf  ;;  %v3040_v4 = vpop.f32.mrb[89].mxu1  ;;  %v28412_v56 = vpack.c.bf16 %v19783_v60, %v19782_v29 }
 0x193   :  { %32688 = vst [vmem:[#allocation32_spill] sm:$0xff] %v28392_v28  ;;  %v28402_v49 = vsel %vm6249_vm4, %v32689_v2, -inf  ;;  %32691 = vst [vmem:[#allocation137_spill] sm:$0xff] %v28408_v24  ;;  %v3155_v17 = vpop.f32.mrb[89].mxu0  ;;  %v28419_v1 = vsel %vm6249_vm4, %v3040_v4, -inf  ;;  %v433_v60 = vld [vmem:[%s32146_s0 + $0xc28] sm:$0xff] }
 0x194   :  { %32690 = vst [vmem:[#allocation33_spill] sm:$0xff] %v28402_v49  ;;  %32692 = vst [vmem:[#allocation138_spill] sm:$0xff] %v28412_v56  ;;  %v28422_v13 = vsel %vm6249_vm4, %v3155_v17, -inf  ;;  %v439_v29 = vld [vmem:[%s32146_s0 + $0xc58] sm:$0xff]  ;;  %v440_v17 = vld [vmem:[%s32146_s0 + $0xc60] sm:$0xff]  ;;  %24388 = vmatprep.subr.msk.bf16.mxu0 %vm28386_vm6, %v28412_v56  ;;  %24394 = vmatprep.subr.msk.bf16.mxu1 %vm28386_vm6, %v28412_v56  ;;  %v22252_v4 = vpop.f32.mrb[90].mxu1 }
 0x195   :  { %32693 = vst [vmem:[#allocation139_spill] sm:$0xff] %v28419_v1  ;;  %32694 = vst [vmem:[#allocation140_spill] sm:$0xff] %v28422_v13  ;;  %v32695_v57 = vld [vmem:[#allocation34_spill] sm:$0xff]  ;;  %v32696_v34 = vld [vmem:[#allocation35_spill] sm:$0xff]  ;;  %v22262_v2 = vpop.f32.mrb[90].mxu0  ;;  %24391 = vmatpush3.bf16.msk.msra.mxu0 %vm28386_vm6, %v28412_v56  ;;  %24397 = vmatpush3.bf16.msk.msra.mxu1 %vm28386_vm6, %v28412_v56  ;;  %v28461_v13 = vsel %vm6249_vm4, %v32698_v15, -inf }
 0x196   :  { %v28447_v48 = vsel %vm6249_vm4, %v32695_v57, -inf  ;;  %v28451_v32 = vsel %vm6249_vm4, %v32696_v34, -inf  ;;  %32699 = vst [vmem:[#allocation35_spill] sm:$0xff] %v28461_v13  ;;  %v32700_v57 = vld [vmem:[#allocation37_spill] sm:$0xff]  ;;  %v28468_v34 = vsel %vm6249_vm4, %v22252_v4, -inf  ;;  %v28471_v1 = vsel %vm6249_vm4, %v22262_v2, -inf  ;;  %22650 = vmatmul.mubr.msk.f32.gmra.mrb[196].mxu0 %vm444_vm3, %v433_v60  ;;  %22663 = vmatmul.mubr.msk.f32.gmra.mrb[196].mxu1 %vm444_vm3, %v439_v29 }
 0x197   :  { %32697 = vst [vmem:[#allocation34_spill] sm:$0xff] %v28451_v32  ;;  %v28465_v49 = vsel %vm6249_vm4, %v32700_v57, -inf  ;;  %32702 = vst [vmem:[#allocation37_spill] sm:$0xff] %v28468_v34  ;;  %v3050_v28 = vpop.f32.mrb[91].mxu1  ;;  %v3165_v24 = vpop.f32.mrb[91].mxu0  ;;  %22665 = vmatprep.mubr.msk.f32.mxu1 %vm444_vm3, %v440_v17  ;;  %v441_v2 = vld [vmem:[%s32146_s0 + $0xc68] sm:$0xff]  ;;  %24400 = vmatprep.subr.msk.bf16.mxu0 %vm28386_vm6, %v28412_v56 }
 0x198   :  { %32701 = vst [vmem:[#allocation36_spill] sm:$0xff] %v28465_v49  ;;  %32703 = vst [vmem:[#allocation141_spill] sm:$0xff] %v28471_v1  ;;  %v28480_v57 = vsel %vm6249_vm4, %v3050_v28, -inf  ;;  %v28483_v4 = vsel %vm6249_vm4, %v3165_v24, -inf  ;;  %v442_v24 = vld [vmem:[%s32146_s0 + $0xc70] sm:$0xff]  ;;  %24406 = vmatprep.subr.msk.bf16.mxu1 %vm28386_vm6, %v28412_v56  ;;  %v32708_v61 = vld [vmem:[#allocation39_spill] sm:$0xff] }
 0x199   :  { %32704 = vst [vmem:[#allocation142_spill] sm:$0xff] %v28480_v57  ;;  %32705 = vst [vmem:[#allocation143_spill] sm:$0xff] %v28483_v4  ;;  %v32706_v29 = vld [vmem:[#allocation38_spill] sm:$0xff]  ;;  %v28508_v15 = vsel %vm6249_vm4, %v32708_v61, -inf  ;;  %v22265_v60 = vpop.f32.mrb[92].mxu0  ;;  %v22278_v57 = vpop.f32.mrb[92].mxu1 }
 0x19a   :  { %v28504_v17 = vsel %vm6249_vm4, %v32706_v29, -inf  ;;  %32709 = vst [vmem:[#allocation39_spill] sm:$0xff] %v28508_v15  ;;  %v32710_v13 = vld [vmem:[#allocation40_spill] sm:$0xff]  ;;  %v32712_v4 = vld [vmem:[#allocation41_spill] sm:$0xff]  ;;  %v28519_v35 = vsel %vm6249_vm4, %v22265_v60, -inf  ;;  %v28522_v29 = vsel %vm6249_vm4, %v22278_v57, -inf  ;;  %22666 = vmatmul.mubr.msk.f32.gmra.mrb[198].mxu1 %vm444_vm3, %v441_v2 }
 0x19b   :  { %32707 = vst [vmem:[#allocation38_spill] sm:$0xff] %v28504_v17  ;;  %v28512_v28 = vsel %vm6249_vm4, %v32710_v13, -inf  ;;  %v28516_v49 = vsel %vm6249_vm4, %v32712_v4, -inf  ;;  %32714 = vst [vmem:[#allocation144_spill] sm:$0xff] %v28519_v35  ;;  %v3175_v56 = vpop.f32.mrb[93].mxu0  ;;  %v3300_v1 = vpop.f32.mrb[93].mxu1  ;;  %22668 = vmatprep.mubr.msk.f32.mxu1 %vm444_vm3, %v442_v24 }
 0x19c   :  { %32711 = vst [vmem:[#allocation40_spill] sm:$0xff] %v28512_v28  ;;  %32713 = vst [vmem:[#allocation41_spill] sm:$0xff] %v28516_v49  ;;  %v28530_v32 = vsel %vm6249_vm4, %v3175_v56, -inf  ;;  %v28533_v4 = vsel %vm6249_vm4, %v3300_v1, -inf  ;;  %v443_v57 = vld [vmem:[%s32146_s0 + $0xc78] sm:$0xff]  ;;  %v32718_v61 = vld [vmem:[#allocation42_spill] sm:$0xff] }
 0x19d   :  { %32715 = vst [vmem:[#allocation145_spill] sm:$0xff] %v28522_v29  ;;  %32716 = vst [vmem:[#allocation146_spill] sm:$0xff] %v28530_v32  ;;  %v28545_v13 = vsel %vm6249_vm4, %v32718_v61, -inf  ;;  %v32720_v56 = vld [vmem:[#allocation43_spill] sm:$0xff]  ;;  %v22268_v29 = vpop.f32.mrb[94].mxu0  ;;  %v22281_v24 = vpop.f32.mrb[94].mxu1 }
 0x19e   :  { %32717 = vst [vmem:[#allocation147_spill] sm:$0xff] %v28533_v4  ;;  %32719 = vst [vmem:[#allocation42_spill] sm:$0xff] %v28545_v13  ;;  %v28549_v1 = vsel %vm6249_vm4, %v32720_v56, -inf  ;;  %v32722_v17 = vld [vmem:[#allocation44_spill] sm:$0xff]  ;;  %v32724_v15 = vld [vmem:[#allocation45_spill] sm:$0xff]  ;;  %v28560_v60 = vsel %vm6249_vm4, %v22268_v29, -inf  ;;  %22669 = vmatmul.mubr.msk.f32.gmra.mrb[200].mxu1 %vm444_vm3, %v443_v57 }
 0x19f   :  { %32721 = vst [vmem:[#allocation43_spill] sm:$0xff] %v28549_v1  ;;  %v28553_v35 = vsel %vm6249_vm4, %v32722_v17, -inf  ;;  %v28557_v2 = vsel %vm6249_vm4, %v32724_v15, -inf  ;;  %32726 = vst [vmem:[#allocation148_spill] sm:$0xff] %v28560_v60  ;;  %v28563_v61 = vsel %vm6249_vm4, %v22281_v24, -inf  ;;  %v3185_v4 = vpop.f32.mrb[95].mxu0 }
 0x1a0   :  { %32723 = vst [vmem:[#allocation44_spill] sm:$0xff] %v28553_v35  ;;  %32725 = vst [vmem:[#allocation45_spill] sm:$0xff] %v28557_v2  ;;  %v3310_v28 = vpop.f32.mrb[95].mxu1  ;;  %v28571_v32 = vsel %vm6249_vm4, %v3185_v4, -inf  ;;  %v32730_v49 = vld [vmem:[#allocation46_spill] sm:$0xff]  ;;  %v32732_v56 = vld [vmem:[#allocation47_spill] sm:$0xff] }
 0x1a1   :  { %32727 = vst [vmem:[#allocation149_spill] sm:$0xff] %v28563_v61  ;;  %32728 = vst [vmem:[#allocation150_spill] sm:$0xff] %v28571_v32  ;;  %v28574_v15 = vsel %vm6249_vm4, %v3310_v28, -inf  ;;  %v28582_v57 = vsel %vm6249_vm4, %v32730_v49, -inf  ;;  %v28586_v60 = vsel %vm6249_vm4, %v32732_v56, -inf  ;;  %v22271_v17 = vpop.f32.mrb[96].mxu0 }
 0x1a2   :  { %32729 = vst [vmem:[#allocation151_spill] sm:$0xff] %v28574_v15  ;;  %32731 = vst [vmem:[#allocation46_spill] sm:$0xff] %v28582_v57  ;;  %v22284_v4 = vpop.f32.mrb[96].mxu1  ;;  %v32734_v61 = vld [vmem:[#allocation48_spill] sm:$0xff]  ;;  %v32736_v13 = vld [vmem:[#allocation49_spill] sm:$0xff]  ;;  %v28597_v24 = vsel %vm6249_vm4, %v22271_v17, -inf }
 0x1a3   :  { %32733 = vst [vmem:[#allocation47_spill] sm:$0xff] %v28586_v60  ;;  %v28590_v28 = vsel %vm6249_vm4, %v32734_v61, -inf  ;;  %v28594_v29 = vsel %vm6249_vm4, %v32736_v13, -inf  ;;  %32738 = vst [vmem:[#allocation152_spill] sm:$0xff] %v28597_v24  ;;  %v28600_v49 = vsel %vm6249_vm4, %v22284_v4, -inf  ;;  %v3195_v15 = vpop.f32.mrb[97].mxu0 }
 0x1a4   :  { %32735 = vst [vmem:[#allocation48_spill] sm:$0xff] %v28590_v28  ;;  %32737 = vst [vmem:[#allocation49_spill] sm:$0xff] %v28594_v29  ;;  %v3320_v35 = vpop.f32.mrb[97].mxu1  ;;  %v28607_v61 = vsel %vm6249_vm4, %v3195_v15, -inf  ;;  %v22297_v1 = vpop.f32.mrb[98].mxu0  ;;  %v32742_v34 = vld [vmem:[#allocation50_spill] sm:$0xff] }
 0x1a5   :  { %32739 = vst [vmem:[#allocation153_spill] sm:$0xff] %v28600_v49  ;;  %32740 = vst [vmem:[#allocation154_spill] sm:$0xff] %v28607_v61  ;;  %v28610_v13 = vsel %vm6249_vm4, %v3320_v35, -inf  ;;  %v22287_v2 = vpop.f32.mrb[98].mxu1  ;;  %v28618_v56 = vsel %vm6249_vm4, %v32742_v34, -inf  ;;  %v28622_v32 = vsel %vm6249_vm4, %v27343_v20, -inf }
 0x1a6   :  { %32741 = vst [vmem:[#allocation155_spill] sm:$0xff] %v28610_v13  ;;  %32743 = vst [vmem:[#allocation50_spill] sm:$0xff] %v28618_v56  ;;  %v28625_v15 = vsel %vm6249_vm4, %v22287_v2, -inf  ;;  %v6260_v35 = vsel %vm6249_vm4, %v22297_v1, -inf  ;;  %v3330_v49 = vpop.f32.mrb[99].mxu1  ;;  %v3445_v17 = vpop.f32.mrb[99].mxu0 }
 0x1a7   :  { %32744 = vst [vmem:[#allocation156_spill] sm:$0xff] %v28622_v32  ;;  %32745 = vst [vmem:[#allocation157_spill] sm:$0xff] %v28625_v15  ;;  %v32746_v13 = vld [vmem:[#allocation51_spill] sm:$0xff]  ;;  %v32747_v28 = vld [vmem:[#allocation52_spill] sm:$0xff]  ;;  %v28636_v34 = vsel %vm6249_vm4, %v3330_v49, -inf  ;;  %v6253_v20 = vsel %vm6249_vm4, %v3445_v17, -inf }
 0x1a8   :  { %v32748_v61 = vmax.f32 %v32746_v13, %v32747_v28  ;;  %32750 = vst [vmem:[#allocation52_spill] sm:$0xff] %v28636_v34  ;;  %v32751_v1 = vld [vmem:[#allocation53_spill] sm:$0xff]  ;;  %v22290_v60 = vpop.f32.mrb[100].mxu1  ;;  %v22300_v4 = vpop.f32.mrb[100].mxu0  ;;  %v32754_v15 = vld [vmem:[#allocation54_spill] sm:$0xff]  ;;  %vm19239_vm3 = vcmask 244736  }
 0x1a9   :  { %v32752_v57 = vmax.f32 %v27349_v5, %v32751_v1  ;;  %v28648_v28 = vsel %vm6249_vm4, %v32754_v15, -inf  ;;  %v28655_v13 = vsel %vm6249_vm4, %v22290_v60, -inf  ;;  %v6274_v17 = vsel %vm6249_vm4, %v22300_v4, -inf  ;;  %v3455_v2 = vpop.f32.mrb[101].mxu0  ;;  %v32762_v34 = vld [vmem:[#allocation58_spill] sm:$0xff]  ;;  %v32763_v4 = vld [vmem:[#allocation59_spill] sm:$0xff] }
 0x1aa   :  { %v28633_v29 = vmax.f32 %v32748_v61, %v6260_v35  ;;  %v32755_v61 = vld [vmem:[#allocation57_spill] sm:$0xff]  ;;  %v3340_v35 = vpop.f32.mrb[101].mxu1  ;;  %v32764_v32 = vmax.f32 %v32762_v34, %v32763_v4  ;;  %v22303_v56 = vpop.f32.mrb[102].mxu0 }
 0x1ab   :  { %v28644_v24 = vmax.f32 %v32752_v57, %v6253_v20  ;;  %v28652_v49 = vsel %vm6249_vm4, %v32755_v61, -inf  ;;  %32757 = vst [vmem:[#allocation57_spill] sm:$0xff] %v28655_v13  ;;  %v32758_v57 = vld [vmem:[#allocation55_spill] sm:$0xff]  ;;  %v32759_v20 = vld [vmem:[#allocation56_spill] sm:$0xff]  ;;  %v28666_v15 = vsel %vm6249_vm4, %v3340_v35, -inf  ;;  %v6267_v61 = vsel %vm6249_vm4, %v3455_v2, -inf }
 0x1ac   :  { %32749 = vst [vmem:[#allocation51_spill] sm:$0xff] %v28633_v29  ;;  %32756 = vst [vmem:[#allocation54_spill] sm:$0xff] %v28652_v49  ;;  %v32760_v1 = vmax.f32 %v32758_v57, %v32759_v20  ;;  %v28674_v29 = vmax.f32 %v32764_v32, %v6267_v61  ;;  %v22316_v5 = vpop.f32.mrb[102].mxu1  ;;  %v6288_v13 = vsel %vm6249_vm4, %v22303_v56, -inf  ;;  %v3465_v57 = vpop.f32.mrb[103].mxu0  ;;  %v32766_v35 = vmax.f32 %v27420_v47, %v27427_v37  ;;  %v32768_v61 = vld [vmem:[#allocation61_spill] sm:$0xff] }
 0x1ad   :  { %32753 = vst [vmem:[#allocation53_spill] sm:$0xff] %v28644_v24  ;;  %32761 = vst [vmem:[#allocation55_spill] sm:$0xff] %v28666_v15  ;;  %v3590_v20 = vpop.f32.mrb[103].mxu1  ;;  %v6281_v32 = vsel %vm6249_vm4, %v3465_v57, -inf  ;;  %v32769_v56 = vld [vmem:[#allocation62_spill] sm:$0xff]  ;;  %v32772_v15 = vld [vmem:[#allocation63_spill] sm:$0xff] }
 0x1ae   :  { %v28663_v24 = vmax.f32 %v32760_v1, %v6274_v17  ;;  %32765 = vst [vmem:[#allocation56_spill] sm:$0xff] %v28674_v29  ;;  %v6330_v17 = vsel %vm6249_vm4, %v22316_v5, -inf  ;;  %v28681_v2 = vmax.f32 %v32766_v35, %v6288_v13  ;;  %v32767_v1 = vmax.f32 %v27412_v27, %v27430_v44  ;;  %v32771_v29 = vld [vmem:[#allocation60_spill] sm:$0xff]  ;;  %v22306_v47 = vpop.f32.mrb[104].mxu0  ;;  %v22319_v13 = vpop.f32.mrb[104].mxu1 }
 0x1af   :  { %v6323_v34 = vsel %vm6249_vm4, %v3590_v20, -inf  ;;  %v32770_v4 = vmax.f32 %v32768_v61, %v32769_v56  ;;  %v32773_v49 = vmax.f32 %v32771_v29, %v32772_v15  ;;  %v6302_v27 = vsel %vm6249_vm4, %v22306_v47, -inf  ;;  %v3600_v57 = vpop.f32.mrb[105].mxu1  ;;  %v32776_v15 = vld [vmem:[#allocation65_spill] sm:$0xff]  ;;  %v32780_v47 = vld [vmem:[#allocation67_spill] sm:$0xff] }
 0x1b0   :  { %v28686_v60 = vmax.f32 %v32767_v1, %v6330_v17  ;;  %v6344_v44 = vsel %vm6249_vm4, %v22319_v13, -inf  ;;  %v3475_v17 = vpop.f32.mrb[105].mxu0  ;;  %v32774_v20 = vmax.f32 %v27478_v46, %v27485_v52  ;;  %v32775_v1 = vmax.f32 %v27467_v21, %v27488_v54 }
 0x1b1   :  { %v28693_v5 = vmax.f32 %v32770_v4, %v6281_v32  ;;  %v28698_v37 = vmax.f32 %v32773_v49, %v6323_v34  ;;  %v6295_v29 = vsel %vm6249_vm4, %v3475_v17, -inf  ;;  %v6337_v49 = vsel %vm6249_vm4, %v3600_v57, -inf  ;;  %v32777_v34 = vld [vmem:[#allocation66_spill] sm:$0xff]  ;;  %v32779_v4 = vld [vmem:[#allocation64_spill] sm:$0xff]  ;;  %v22309_v52 = vpop.f32.mrb[106].mxu0 }
 0x1b2   :  { %v28705_v35 = vmax.f32 %v32774_v20, %v6302_v27  ;;  %v28710_v32 = vmax.f32 %v32775_v1, %v6344_v44  ;;  %v32778_v61 = vmax.f32 %v32776_v15, %v32777_v34  ;;  %v32781_v13 = vmax.f32 %v32779_v4, %v32780_v47  ;;  %v22322_v27 = vpop.f32.mrb[106].mxu1  ;;  %v3485_v44 = vpop.f32.mrb[107].mxu0  ;;  %v32785_v34 = vld [vmem:[#allocation68_spill] sm:$0xff] }
 0x1b3   :  { %v6316_v21 = vsel %vm6249_vm4, %v22309_v52, -inf  ;;  %v6358_v54 = vsel %vm6249_vm4, %v22322_v27, -inf  ;;  %v3610_v17 = vpop.f32.mrb[107].mxu1  ;;  %v32782_v57 = vmax.f32 %v27519_v42, %v27537_v36  ;;  %v32784_v1 = vmax.f32 %v27530_v51, %v27540_v38  ;;  %v32789_v52 = vld [vmem:[#allocation71_spill] sm:$0xff] }
 0x1b4   :  { %v28717_v56 = vmax.f32 %v32778_v61, %v6295_v29  ;;  %v28722_v46 = vmax.f32 %v32781_v13, %v6337_v49  ;;  %v6309_v49 = vsel %vm6249_vm4, %v3485_v44, -inf  ;;  %v6351_v15 = vsel %vm6249_vm4, %v3610_v17, -inf  ;;  %v32786_v61 = vld [vmem:[#allocation70_spill] sm:$0xff]  ;;  %v32788_v13 = vld [vmem:[#allocation69_spill] sm:$0xff]  ;;  %v22325_v36 = vpop.f32.mrb[108].mxu1 }
 0x1b5   :  { %v28729_v20 = vmax.f32 %v32782_v57, %v6316_v21  ;;  %v28734_v29 = vmax.f32 %v32784_v1, %v6358_v54  ;;  %v32787_v4 = vmax.f32 %v32785_v34, %v32786_v61  ;;  %v32790_v27 = vmax.f32 %v32788_v13, %v32789_v52  ;;  %v22335_v21 = vpop.f32.mrb[108].mxu0  ;;  %v3620_v54 = vpop.f32.mrb[109].mxu1  ;;  %v32793_v61 = vld [vmem:[#allocation72_spill] sm:$0xff] }
 0x1b6   :  { %v6372_v51 = vsel %vm6249_vm4, %v22325_v36, -inf  ;;  %v6400_v38 = vsel %vm6249_vm4, %v22335_v21, -inf  ;;  %v3735_v44 = vpop.f32.mrb[109].mxu0  ;;  %v32791_v17 = vmax.f32 %v27580_v11, %v27595_v50  ;;  %v32792_v1 = vmax.f32 %v27584_v63, %v27598_v6  ;;  %v32797_v36 = vld [vmem:[#allocation75_spill] sm:$0xff] }
 0x1b7   :  { %32783 = vst [vmem:[#allocation58_spill] sm:$0xff] %v28729_v20  ;;  %v28741_v47 = vmax.f32 %v32787_v4, %v6309_v49  ;;  %v28746_v42 = vmax.f32 %v32790_v27, %v6351_v15  ;;  %v6365_v15 = vsel %vm6249_vm4, %v3620_v54, -inf  ;;  %v6393_v34 = vsel %vm6249_vm4, %v3735_v44, -inf  ;;  %v32794_v4 = vld [vmem:[#allocation74_spill] sm:$0xff]  ;;  %v32796_v27 = vld [vmem:[#allocation73_spill] sm:$0xff] }
 0x1b8   :  { %v28753_v57 = vmax.f32 %v32791_v17, %v6372_v51  ;;  %v28758_v49 = vmax.f32 %v32792_v1, %v6400_v38  ;;  %v32795_v13 = vmax.f32 %v32793_v61, %v32794_v4  ;;  %v32798_v21 = vmax.f32 %v32796_v27, %v32797_v36  ;;  %v22328_v11 = vpop.f32.mrb[110].mxu1  ;;  %v22338_v51 = vpop.f32.mrb[110].mxu0  ;;  %v32802_v4 = vld [vmem:[#allocation76_spill] sm:$0xff] }
 0x1b9   :  { %v6386_v63 = vsel %vm6249_vm4, %v22328_v11, -inf  ;;  %v6414_v6 = vsel %vm6249_vm4, %v22338_v51, -inf  ;;  %v3630_v38 = vpop.f32.mrb[111].mxu1  ;;  %v3745_v54 = vpop.f32.mrb[111].mxu0  ;;  %v32799_v44 = vmax.f32 %v27632_v55, %v27647_v45  ;;  %v32801_v1 = vmax.f32 %v27636_v8, %v27650_v14  ;;  %v32806_v11 = vld [vmem:[#allocation79_spill] sm:$0xff] }
 0x1ba   :  { %v28765_v52 = vmax.f32 %v32795_v13, %v6365_v15  ;;  %v28770_v50 = vmax.f32 %v32798_v21, %v6393_v34  ;;  %v6379_v34 = vsel %vm6249_vm4, %v3630_v38, -inf  ;;  %v6407_v61 = vsel %vm6249_vm4, %v3745_v54, -inf  ;;  %v32803_v13 = vld [vmem:[#allocation78_spill] sm:$0xff]  ;;  %v32805_v21 = vld [vmem:[#allocation77_spill] sm:$0xff] }
 0x1bb   :  { %v28777_v17 = vmax.f32 %v32799_v44, %v6386_v63  ;;  %v28782_v15 = vmax.f32 %v32801_v1, %v6414_v6  ;;  %v32804_v27 = vmax.f32 %v32802_v4, %v32803_v13  ;;  %v32807_v51 = vmax.f32 %v32805_v21, %v32806_v11  ;;  %v22341_v55 = vpop.f32.mrb[112].mxu0  ;;  %v32810_v13 = vld [vmem:[#allocation81_spill] sm:$0xff] }
 0x1bc   :  { %v22354_v63 = vpop.f32.mrb[112].mxu1  ;;  %v6428_v8 = vsel %vm6249_vm4, %v22341_v55, -inf  ;;  %v3755_v6 = vpop.f32.mrb[113].mxu0  ;;  %v32808_v54 = vmax.f32 %v27688_v16, %v27699_v10  ;;  %v32809_v1 = vmax.f32 %v27684_v26, %v27702_v22  ;;  %v32814_v55 = vld [vmem:[#allocation83_spill] sm:$0xff] }
 0x1bd   :  { %32800 = vst [vmem:[#allocation59_spill] sm:$0xff] %v28777_v17  ;;  %v28789_v36 = vmax.f32 %v32804_v27, %v6379_v34  ;;  %v28794_v45 = vmax.f32 %v32807_v51, %v6407_v61  ;;  %v6470_v14 = vsel %vm6249_vm4, %v22354_v63, -inf  ;;  %v3880_v38 = vpop.f32.mrb[113].mxu1  ;;  %v6421_v61 = vsel %vm6249_vm4, %v3755_v6, -inf  ;;  %v32811_v27 = vld [vmem:[#allocation82_spill] sm:$0xff]  ;;  %v32813_v51 = vld [vmem:[#allocation80_spill] sm:$0xff] }
 0x1be   :  { %v28801_v44 = vmax.f32 %v32808_v54, %v6428_v8  ;;  %v28806_v34 = vmax.f32 %v32809_v1, %v6470_v14  ;;  %v6463_v4 = vsel %vm6249_vm4, %v3880_v38, -inf  ;;  %v32812_v21 = vmax.f32 %v32810_v13, %v32811_v27  ;;  %v32818_v27 = vld [vmem:[#allocation85_spill] sm:$0xff] }
 0x1bf   :  { %v32815_v63 = vmax.f32 %v32813_v51, %v32814_v55  ;;  %v22344_v16 = vpop.f32.mrb[114].mxu0  ;;  %v32816_v38 = vmax.f32 %v27743_v40, %v27757_v30  ;;  %v32817_v1 = vmax.f32 %v27739_v39, %v27760_v31 }
 0x1c0   :  { %v28813_v11 = vmax.f32 %v32812_v21, %v6421_v61  ;;  %v22357_v8 = vpop.f32.mrb[114].mxu1  ;;  %v6442_v26 = vsel %vm6249_vm4, %v22344_v16, -inf  ;;  %v3765_v14 = vpop.f32.mrb[115].mxu0  ;;  %v32819_v21 = vld [vmem:[#allocation86_spill] sm:$0xff]  ;;  %v32822_v16 = vld [vmem:[#allocation87_spill] sm:$0xff] }
 0x1c1   :  { %v28818_v10 = vmax.f32 %v32815_v63, %v6463_v4  ;;  %v6484_v22 = vsel %vm6249_vm4, %v22357_v8, -inf  ;;  %v3890_v6 = vpop.f32.mrb[115].mxu1  ;;  %v28825_v54 = vmax.f32 %v32816_v38, %v6442_v26  ;;  %v6435_v4 = vsel %vm6249_vm4, %v3765_v14, -inf  ;;  %v32821_v63 = vld [vmem:[#allocation84_spill] sm:$0xff] }
 0x1c2   :  { %v28830_v61 = vmax.f32 %v32817_v1, %v6484_v22  ;;  %v6477_v13 = vsel %vm6249_vm4, %v3890_v6, -inf  ;;  %v32820_v51 = vmax.f32 %v32818_v27, %v32819_v21  ;;  %v32823_v8 = vmax.f32 %v32821_v63, %v32822_v16  ;;  %v32827_v21 = vld [vmem:[#allocation89_spill] sm:$0xff] }
 0x1c3   :  { %v22347_v30 = vpop.f32.mrb[116].mxu0  ;;  %v32824_v6 = vmax.f32 %v27795_v59, %v27809_v41  ;;  %v32826_v1 = vmax.f32 %v27791_v62, %v27812_v43 }
 0x1c4   :  { %v28837_v55 = vmax.f32 %v32820_v51, %v6435_v4  ;;  %v28842_v40 = vmax.f32 %v32823_v8, %v6477_v13  ;;  %v22360_v26 = vpop.f32.mrb[116].mxu1  ;;  %v6456_v39 = vsel %vm6249_vm4, %v22347_v30, -inf  ;;  %v3775_v22 = vpop.f32.mrb[117].mxu0  ;;  %v32828_v51 = vld [vmem:[#allocation90_spill] sm:$0xff]  ;;  %v32830_v8 = vld [vmem:[#allocation88_spill] sm:$0xff]  ;;  %v32831_v30 = vld [vmem:[#allocation91_spill] sm:$0xff] }
 0x1c5   :  { %v6498_v31 = vsel %vm6249_vm4, %v22360_v26, -inf  ;;  %v3900_v14 = vpop.f32.mrb[117].mxu1  ;;  %v28849_v38 = vmax.f32 %v32824_v6, %v6456_v39  ;;  %v6449_v13 = vsel %vm6249_vm4, %v3775_v22, -inf  ;;  %v32829_v63 = vmax.f32 %v32827_v21, %v32828_v51  ;;  %v32835_v51 = vld [vmem:[#allocation92_spill] sm:$0xff] }
 0x1c6   :  { %v28854_v4 = vmax.f32 %v32826_v1, %v6498_v31  ;;  %v6491_v27 = vsel %vm6249_vm4, %v3900_v14, -inf  ;;  %v32832_v26 = vmax.f32 %v32830_v8, %v32831_v30  ;;  %v32833_v14 = vmax.f32 %v27852_v23, %v27867_v9 }
 0x1c7   :  { %32825 = vst [vmem:[#allocation61_spill] sm:$0xff] %v28849_v38  ;;  %v28861_v16 = vmax.f32 %v32829_v63, %v6449_v13  ;;  %v22373_v39 = vpop.f32.mrb[118].mxu0  ;;  %v32834_v1 = vmax.f32 %v27856_v33, %v27870_v58  ;;  %v32836_v63 = vld [vmem:[#allocation94_spill] sm:$0xff] }
 0x1c8   :  { %v28866_v59 = vmax.f32 %v32832_v26, %v6491_v27  ;;  %v22363_v41 = vpop.f32.mrb[118].mxu1  ;;  %v6540_v43 = vsel %vm6249_vm4, %v22373_v39, -inf  ;;  %v4025_v22 = vpop.f32.mrb[119].mxu0  ;;  %v32837_v8 = vmax.f32 %v32835_v51, %v32836_v63  ;;  %v32838_v26 = vld [vmem:[#allocation93_spill] sm:$0xff]  ;;  %v32844_v63 = vld [vmem:[#allocation96_spill] sm:$0xff] }
 0x1c9   :  { %v6512_v62 = vsel %vm6249_vm4, %v22363_v41, -inf  ;;  %v3910_v31 = vpop.f32.mrb[119].mxu1  ;;  %v28878_v13 = vmax.f32 %v32834_v1, %v6540_v43  ;;  %v6533_v21 = vsel %vm6249_vm4, %v4025_v22, -inf  ;;  %v32839_v41 = vld [vmem:[#allocation95_spill] sm:$0xff]  ;;  %v32841_v22 = vmax.f32 %v27904_v25, %v27919_v53 }
 0x1ca   :  { %v28873_v6 = vmax.f32 %v32833_v14, %v6512_v62  ;;  %v6505_v27 = vsel %vm6249_vm4, %v3910_v31, -inf  ;;  %v32840_v39 = vmax.f32 %v32838_v26, %v32839_v41  ;;  %v32843_v1 = vmax.f32 %v27908_v0, %v27922_v12 }
 0x1cb   :  { %v28885_v30 = vmax.f32 %v32837_v8, %v6505_v27  ;;  %v22376_v62 = vpop.f32.mrb[120].mxu0  ;;  %v32845_v8 = vld [vmem:[#allocation98_spill] sm:$0xff] }
 0x1cc   :  { %v28890_v9 = vmax.f32 %v32840_v39, %v6533_v21  ;;  %v22366_v23 = vpop.f32.mrb[120].mxu1  ;;  %v6554_v58 = vsel %vm6249_vm4, %v22376_v62, -inf  ;;  %v4035_v31 = vpop.f32.mrb[121].mxu0  ;;  %v32846_v26 = vmax.f32 %v32844_v63, %v32845_v8  ;;  %v32848_v39 = vld [vmem:[#allocation97_spill] sm:$0xff] }
 0x1cd   :  { %v6526_v33 = vsel %vm6249_vm4, %v22366_v23, -inf  ;;  %v3920_v43 = vpop.f32.mrb[121].mxu1  ;;  %v28902_v27 = vmax.f32 %v32843_v1, %v6554_v58  ;;  %v6547_v51 = vsel %vm6249_vm4, %v4035_v31, -inf  ;;  %v32849_v23 = vld [vmem:[#allocation99_spill] sm:$0xff]  ;;  %v32852_v31 = vmax.f32 %v27960_v18, %v27971_v7  ;;  %v32854_v1 = vld [vmem:[#allocation100_spill] sm:$0xff] }
 0x1ce   :  { %v28897_v14 = vmax.f32 %v32841_v22, %v6526_v33  ;;  %v6519_v21 = vsel %vm6249_vm4, %v3920_v43, -inf  ;;  %v32850_v62 = vmax.f32 %v32848_v39, %v32849_v23  ;;  %v32858_v39 = vld [vmem:[#allocation102_spill] sm:$0xff]  ;;  %v32859_v23 = vld [vmem:[#allocation104_spill] sm:$0xff] }
 0x1cf   :  { %v28909_v41 = vmax.f32 %v32846_v26, %v6519_v21  ;;  %v22379_v25 = vpop.f32.mrb[122].mxu0  ;;  %v32855_v21 = vld [vmem:[#allocation103_spill] sm:$0xff] }
 0x1d0   :  { %32842 = vst [vmem:[#allocation62_spill] sm:$0xff] %v28897_v14  ;;  %v28914_v53 = vmax.f32 %v32850_v62, %v6547_v51  ;;  %v22392_v33 = vpop.f32.mrb[122].mxu1  ;;  %v6568_v0 = vsel %vm6249_vm4, %v22379_v25, -inf  ;;  %v4045_v58 = vpop.f32.mrb[123].mxu0  ;;  %v32856_v63 = vmax.f32 %v32854_v1, %v32855_v21  ;;  %v32860_v62 = vmax.f32 %v32858_v39, %v32859_v23  ;;  %v32866_v21 = vld [vmem:[#allocation107_spill] sm:$0xff]  ;;  %v32871_v39 = vld [vmem:[#allocation110_spill] sm:$0xff] }
 0x1d1   :  { %32847 = vst [vmem:[#allocation60_spill] sm:$0xff] %v28909_v41  ;;  %v6610_v12 = vsel %vm6249_vm4, %v22392_v33, -inf  ;;  %v4170_v43 = vpop.f32.mrb[123].mxu1  ;;  %v28921_v22 = vmax.f32 %v32852_v31, %v6568_v0  ;;  %v6561_v51 = vsel %vm6249_vm4, %v4045_v58, -inf  ;;  %v32862_v33 = vld [vmem:[#allocation101_spill] sm:$0xff] }
 0x1d2   :  { %32851 = vst [vmem:[#allocation63_spill] sm:$0xff] %v28914_v53  ;;  %v28926_v8 = vmax.f32 %v32856_v63, %v6610_v12  ;;  %v6603_v26 = vsel %vm6249_vm4, %v4170_v43, -inf  ;;  %v28933_v25 = vmax.f32 %v32860_v62, %v6561_v51  ;;  %v32863_v53 = vld [vmem:[#allocation105_spill] sm:$0xff]  ;;  %v32870_v51 = vld [vmem:[#allocation106_spill] sm:$0xff] }
 0x1d3   :  { %32853 = vst [vmem:[#allocation65_spill] sm:$0xff] %v28921_v22  ;;  %v32864_v41 = vmax.f32 %v32862_v33, %v32863_v53  ;;  %v22382_v18 = vpop.f32.mrb[124].mxu0  ;;  %v32867_v43 = vld [vmem:[#allocation109_spill] sm:$0xff]  ;;  %v32872_v23 = vmax.f32 %v32870_v51, %v32871_v39  ;;  %v32875_v33 = vld [vmem:[#allocation111_spill] sm:$0xff] }
 0x1d4   :  { %32857 = vst [vmem:[#allocation66_spill] sm:$0xff] %v28926_v8  ;;  %32861 = vst [vmem:[#allocation64_spill] sm:$0xff] %v28933_v25  ;;  %v22395_v0 = vpop.f32.mrb[124].mxu1  ;;  %v6582_v31 = vsel %vm6249_vm4, %v22382_v18, -inf  ;;  %v4055_v1 = vpop.f32.mrb[125].mxu0  ;;  %v32868_v63 = vmax.f32 %v32866_v21, %v32867_v43  ;;  %v32879_v25 = vld [vmem:[#allocation112_spill] sm:$0xff] }
 0x1d5   :  { %v28938_v7 = vmax.f32 %v32864_v41, %v6603_v26  ;;  %v6624_v12 = vsel %vm6249_vm4, %v22395_v0, -inf  ;;  %v4180_v58 = vpop.f32.mrb[125].mxu1  ;;  %v6575_v41 = vsel %vm6249_vm4, %v4055_v1, -inf  ;;  %v32874_v26 = vld [vmem:[#allocation5_spill] sm:$0xff]  ;;  %v32882_v39 = vld [vmem:[#allocation7_spill] sm:$0xff] }
 0x1d6   :  { %v28945_v8 = vmax.f32 %v32868_v63, %v6582_v31  ;;  %v28950_v62 = vmax.f32 %v32872_v23, %v6624_v12  ;;  %v6617_v53 = vsel %vm6249_vm4, %v4180_v58, -inf  ;;  %v32876_v18 = vmax.f32 %v32874_v26, %v32875_v33  ;;  %v32883_v58 = vld [vmem:[#allocation113_spill] sm:$0xff]  ;;  %v32887_v26 = vld [vmem:[#allocation114_spill] sm:$0xff] }
 0x1d7   :  { %32865 = vst [vmem:[#allocation67_spill] sm:$0xff] %v28938_v7  ;;  %v32878_v7 = vld [vmem:[#allocation108_spill] sm:$0xff]  ;;  %v22385_v31 = vpop.f32.mrb[126].mxu0  ;;  %v32884_v23 = vmax.f32 %v32882_v39, %v32883_v58 }
 0x1d8   :  { %32869 = vst [vmem:[#allocation68_spill] sm:$0xff] %v28945_v8  ;;  %32873 = vst [vmem:[#allocation70_spill] sm:$0xff] %v28950_v62  ;;  %v28957_v0 = vmax.f32 %v32876_v18, %v6575_v41  ;;  %v32880_v22 = vmax.f32 %v32878_v7, %v32879_v25  ;;  %v22398_v43 = vpop.f32.mrb[126].mxu1  ;;  %v6596_v63 = vsel %vm6249_vm4, %v22385_v31, -inf  ;;  %v4065_v51 = vpop.f32.mrb[127].mxu0  ;;  %v32886_v41 = vld [vmem:[#allocation6_spill] sm:$0xff] }
 0x1d9   :  { %v6638_v12 = vsel %vm6249_vm4, %v22398_v43, -inf  ;;  %v4190_v1 = vpop.f32.mrb[127].mxu1  ;;  %v28969_v62 = vmax.f32 %v32884_v23, %v6596_v63  ;;  %v32888_v33 = vmax.f32 %v32886_v41, %v32887_v26  ;;  %v32890_v7 = vld [vmem:[#allocation9_spill] sm:$0xff]  ;;  %v32898_v26 = vld [vmem:[#allocation10_spill] sm:$0xff] }
 0x1da   :  { %32877 = vst [vmem:[#allocation69_spill] sm:$0xff] %v28957_v0  ;;  %v28962_v21 = vmax.f32 %v32880_v22, %v6617_v53  ;;  %v6589_v22 = vsel %vm6249_vm4, %v4065_v51, -inf  ;;  %v6631_v25 = vsel %vm6249_vm4, %v4190_v1, -inf  ;;  %v32891_v53 = vld [vmem:[#allocation115_spill] sm:$0xff]  ;;  %v32895_v0 = vld [vmem:[#allocation116_spill] sm:$0xff]  ;;  %v32899_v1 = vld [vmem:[#allocation117_spill] sm:$0xff] }
 0x1db   :  { %32885 = vst [vmem:[#allocation72_spill] sm:$0xff] %v28969_v62  ;;  %v28974_v18 = vmax.f32 %v32888_v33, %v6638_v12  ;;  %v32892_v31 = vmax.f32 %v32890_v7, %v32891_v53  ;;  %v22411_v58 = vpop.f32.mrb[128].mxu0  ;;  %v32900_v33 = vmax.f32 %v32898_v26, %v32899_v1  ;;  %v32903_v7 = vld [vmem:[#allocation118_spill] sm:$0xff] }
 0x1dc   :  { %32881 = vst [vmem:[#allocation71_spill] sm:$0xff] %v28962_v21  ;;  %v32894_v21 = vld [vmem:[#allocation8_spill] sm:$0xff]  ;;  %v22401_v63 = vpop.f32.mrb[128].mxu1  ;;  %v6680_v12 = vsel %vm6249_vm4, %v22411_v58, -inf  ;;  %v4315_v51 = vpop.f32.mrb[129].mxu0 }
 0x1dd   :  { %32889 = vst [vmem:[#allocation74_spill] sm:$0xff] %v28974_v18  ;;  %v28981_v43 = vmax.f32 %v32892_v31, %v6589_v22  ;;  %v32896_v8 = vmax.f32 %v32894_v21, %v32895_v0  ;;  %v6652_v23 = vsel %vm6249_vm4, %v22401_v63, -inf  ;;  %v4200_v41 = vpop.f32.mrb[129].mxu1  ;;  %v32902_v22 = vld [vmem:[#allocation11_spill] sm:$0xff]  ;;  %v6673_v0 = vsel %vm6249_vm4, %v4315_v51, -inf  ;;  %v32906_v21 = vld [vmem:[#allocation12_spill] sm:$0xff] }
 0x1de   :  { %v28993_v18 = vmax.f32 %v32900_v33, %v6652_v23  ;;  %v32904_v53 = vmax.f32 %v32902_v22, %v32903_v7  ;;  %v32914_v7 = vld [vmem:[#allocation14_spill] sm:$0xff]  ;;  %v32915_v51 = vld [vmem:[#allocation121_spill] sm:$0xff] }
 0x1df   :  { %32893 = vst [vmem:[#allocation73_spill] sm:$0xff] %v28981_v43  ;;  %v28986_v39 = vmax.f32 %v32896_v8, %v6631_v25  ;;  %v6645_v8 = vsel %vm6249_vm4, %v4200_v41, -inf  ;;  %v32907_v25 = vld [vmem:[#allocation119_spill] sm:$0xff]  ;;  %v32911_v43 = vld [vmem:[#allocation120_spill] sm:$0xff]  ;;  %v22414_v1 = vpop.f32.mrb[130].mxu0 }
 0x1e0   :  { %32901 = vst [vmem:[#allocation76_spill] sm:$0xff] %v28993_v18  ;;  %v28998_v31 = vmax.f32 %v32904_v53, %v6680_v12  ;;  %v32908_v63 = vmax.f32 %v32906_v21, %v32907_v25  ;;  %v22404_v23 = vpop.f32.mrb[130].mxu1  ;;  %v6694_v12 = vsel %vm6249_vm4, %v22414_v1, -inf  ;;  %v4325_v41 = vpop.f32.mrb[131].mxu0  ;;  %v32916_v53 = vmax.f32 %v32914_v7, %v32915_v51  ;;  %v32919_v21 = vld [vmem:[#allocation122_spill] sm:$0xff] }
 0x1e1   :  { %32897 = vst [vmem:[#allocation75_spill] sm:$0xff] %v28986_v39  ;;  %v32910_v39 = vld [vmem:[#allocation13_spill] sm:$0xff]  ;;  %v6666_v33 = vsel %vm6249_vm4, %v22404_v23, -inf  ;;  %v4210_v22 = vpop.f32.mrb[131].mxu1 }
 0x1e2   :  { %32905 = vst [vmem:[#allocation78_spill] sm:$0xff] %v28998_v31  ;;  %v29005_v58 = vmax.f32 %v32908_v63, %v6645_v8  ;;  %v32912_v62 = vmax.f32 %v32910_v39, %v32911_v43  ;;  %v29017_v31 = vmax.f32 %v32916_v53, %v6666_v33  ;;  %v32918_v8 = vld [vmem:[#allocation15_spill] sm:$0xff]  ;;  %v6687_v43 = vsel %vm6249_vm4, %v4325_v41, -inf  ;;  %v32922_v39 = vld [vmem:[#allocation16_spill] sm:$0xff]  ;;  %v32931_v41 = vld [vmem:[#allocation125_spill] sm:$0xff] }
 0x1e3   :  { %v32920_v25 = vmax.f32 %v32918_v8, %v32919_v21  ;;  %v22417_v33 = vpop.f32.mrb[132].mxu0  ;;  %v32930_v21 = vld [vmem:[#allocation19_spill] sm:$0xff] }
 0x1e4   :  { %32909 = vst [vmem:[#allocation77_spill] sm:$0xff] %v29005_v58  ;;  %v29010_v26 = vmax.f32 %v32912_v62, %v6673_v0  ;;  %32917 = vst [vmem:[#allocation81_spill] sm:$0xff] %v29017_v31  ;;  %v6659_v62 = vsel %vm6249_vm4, %v4210_v22, -inf  ;;  %v32923_v0 = vld [vmem:[#allocation123_spill] sm:$0xff]  ;;  %v32927_v58 = vld [vmem:[#allocation124_spill] sm:$0xff]  ;;  %v22430_v51 = vpop.f32.mrb[132].mxu1 }
 0x1e5   :  { %v29022_v63 = vmax.f32 %v32920_v25, %v6694_v12  ;;  %v32924_v23 = vmax.f32 %v32922_v39, %v32923_v0  ;;  %v6708_v53 = vsel %vm6249_vm4, %v22417_v33, -inf  ;;  %v6750_v12 = vsel %vm6249_vm4, %v22430_v51, -inf  ;;  %v4335_v8 = vpop.f32.mrb[133].mxu0  ;;  %v4460_v22 = vpop.f32.mrb[133].mxu1  ;;  %v32935_v39 = vld [vmem:[#allocation126_spill] sm:$0xff] }
 0x1e6   :  { %32913 = vst [vmem:[#allocation79_spill] sm:$0xff] %v29010_v26  ;;  %v32926_v26 = vld [vmem:[#allocation17_spill] sm:$0xff]  ;;  %v32932_v25 = vmax.f32 %v32930_v21, %v32931_v41 }
 0x1e7   :  { %32921 = vst [vmem:[#allocation82_spill] sm:$0xff] %v29022_v63  ;;  %v29029_v1 = vmax.f32 %v32924_v23, %v6659_v62  ;;  %v32928_v18 = vmax.f32 %v32926_v26, %v32927_v58  ;;  %v32934_v62 = vld [vmem:[#allocation18_spill] sm:$0xff]  ;;  %v6743_v58 = vsel %vm6249_vm4, %v4460_v22, -inf  ;;  %v32938_v26 = vld [vmem:[#allocation21_spill] sm:$0xff] }
 0x1e8   :  { %v29041_v63 = vmax.f32 %v32932_v25, %v6708_v53  ;;  %v32936_v0 = vmax.f32 %v32934_v62, %v32935_v39  ;;  %v22420_v53 = vpop.f32.mrb[134].mxu0  ;;  %v22433_v41 = vpop.f32.mrb[134].mxu1  ;;  %v32946_v39 = vld [vmem:[#allocation23_spill] sm:$0xff]  ;;  %v32947_v22 = vld [vmem:[#allocation129_spill] sm:$0xff] }
 0x1e9   :  { %32925 = vst [vmem:[#allocation80_spill] sm:$0xff] %v29029_v1  ;;  %v29034_v7 = vmax.f32 %v32928_v18, %v6687_v43  ;;  %v6701_v18 = vsel %vm6249_vm4, %v4335_v8, -inf  ;;  %v32939_v43 = vld [vmem:[#allocation127_spill] sm:$0xff]  ;;  %v32943_v1 = vld [vmem:[#allocation128_spill] sm:$0xff]  ;;  %v6722_v25 = vsel %vm6249_vm4, %v22420_v53, -inf  ;;  %v4345_v62 = vpop.f32.mrb[135].mxu0 }
 0x1ea   :  { %32933 = vst [vmem:[#allocation85_spill] sm:$0xff] %v29041_v63  ;;  %v29046_v23 = vmax.f32 %v32936_v0, %v6750_v12  ;;  %v32940_v33 = vmax.f32 %v32938_v26, %v32939_v43  ;;  %v6764_v12 = vsel %vm6249_vm4, %v22433_v41, -inf  ;;  %v4470_v8 = vpop.f32.mrb[135].mxu1  ;;  %v32948_v0 = vmax.f32 %v32946_v39, %v32947_v22  ;;  %v32951_v26 = vld [vmem:[#allocation130_spill] sm:$0xff] }
 0x1eb   :  { %32929 = vst [vmem:[#allocation83_spill] sm:$0xff] %v29034_v7  ;;  %v32942_v7 = vld [vmem:[#allocation20_spill] sm:$0xff] }
 0x1ec   :  { %32937 = vst [vmem:[#allocation86_spill] sm:$0xff] %v29046_v23  ;;  %v29053_v51 = vmax.f32 %v32940_v33, %v6701_v18  ;;  %v32944_v31 = vmax.f32 %v32942_v7, %v32943_v1  ;;  %v29065_v23 = vmax.f32 %v32948_v0, %v6722_v25  ;;  %v32950_v18 = vld [vmem:[#allocation22_spill] sm:$0xff]  ;;  %v6757_v1 = vsel %vm6249_vm4, %v4470_v8, -inf  ;;  %v32954_v7 = vld [vmem:[#allocation25_spill] sm:$0xff]  ;;  %v22423_v25 = vpop.f32.mrb[136].mxu0  ;;  %v22436_v22 = vpop.f32.mrb[136].mxu1 }
 0x1ed   :  { %v32952_v43 = vmax.f32 %v32950_v18, %v32951_v26  ;;  %v6736_v0 = vsel %vm6249_vm4, %v22423_v25, -inf  ;;  %v4355_v18 = vpop.f32.mrb[137].mxu0  ;;  %v32962_v26 = vld [vmem:[#allocation27_spill] sm:$0xff]  ;;  %v32963_v8 = vld [vmem:[#allocation133_spill] sm:$0xff] }
 0x1ee   :  { %32941 = vst [vmem:[#allocation84_spill] sm:$0xff] %v29053_v51  ;;  %v29058_v21 = vmax.f32 %v32944_v31, %v6743_v58  ;;  %32949 = vst [vmem:[#allocation89_spill] sm:$0xff] %v29065_v23  ;;  %v6715_v31 = vsel %vm6249_vm4, %v4345_v62, -inf  ;;  %v32955_v58 = vld [vmem:[#allocation131_spill] sm:$0xff]  ;;  %v32959_v51 = vld [vmem:[#allocation132_spill] sm:$0xff]  ;;  %v4480_v62 = vpop.f32.mrb[137].mxu1 }
 0x1ef   :  { %v29070_v33 = vmax.f32 %v32952_v43, %v6764_v12  ;;  %v32956_v53 = vmax.f32 %v32954_v7, %v32955_v58  ;;  %v6778_v12 = vsel %vm6249_vm4, %v22436_v22, -inf  ;;  %v32964_v43 = vmax.f32 %v32962_v26, %v32963_v8  ;;  %v32967_v7 = vld [vmem:[#allocation134_spill] sm:$0xff]  ;;  %v22449_v8 = vpop.f32.mrb[138].mxu0 }
 0x1f0   :  { %32945 = vst [vmem:[#allocation87_spill] sm:$0xff] %v29058_v21  ;;  %v32958_v21 = vld [vmem:[#allocation24_spill] sm:$0xff] }
 0x1f1   :  { %32953 = vst [vmem:[#allocation90_spill] sm:$0xff] %v29070_v33  ;;  %v29077_v41 = vmax.f32 %v32956_v53, %v6715_v31  ;;  %v32960_v63 = vmax.f32 %v32958_v21, %v32959_v51  ;;  %v29089_v33 = vmax.f32 %v32964_v43, %v6736_v0  ;;  %v32966_v31 = vld [vmem:[#allocation26_spill] sm:$0xff]  ;;  %v6771_v51 = vsel %vm6249_vm4, %v4480_v62, -inf  ;;  %v32970_v21 = vld [vmem:[#allocation29_spill] sm:$0xff]  ;;  %v22439_v0 = vpop.f32.mrb[138].mxu1 }
 0x1f2   :  { %v32968_v58 = vmax.f32 %v32966_v31, %v32967_v7  ;;  %v6792_v43 = vsel %vm6249_vm4, %v22439_v0, -inf  ;;  %v4490_v31 = vpop.f32.mrb[139].mxu1  ;;  %v32978_v62 = vmax.f32 %v28368_v3, %v28405_v19 }
 0x1f3   :  { %32957 = vst [vmem:[#allocation88_spill] sm:$0xff] %v29077_v41  ;;  %v29082_v39 = vmax.f32 %v32960_v63, %v6757_v1  ;;  %32965 = vst [vmem:[#allocation92_spill] sm:$0xff] %v29089_v33  ;;  %v6729_v63 = vsel %vm6249_vm4, %v4355_v18, -inf  ;;  %v32971_v1 = vld [vmem:[#allocation135_spill] sm:$0xff]  ;;  %v32975_v41 = vld [vmem:[#allocation136_spill] sm:$0xff]  ;;  %v4605_v18 = vpop.f32.mrb[139].mxu0 }
 0x1f4   :  { %v29094_v53 = vmax.f32 %v32968_v58, %v6778_v12  ;;  %v32972_v25 = vmax.f32 %v32970_v21, %v32971_v1  ;;  %v6820_v12 = vsel %vm6249_vm4, %v22449_v8, -inf  ;;  %v29113_v7 = vmax.f32 %v32978_v62, %v6792_v43  ;;  %v32980_v58 = vld [vmem:[#allocation30_spill] sm:$0xff]  ;;  %v32988_v8 = vld [vmem:[#allocation33_spill] sm:$0xff]  ;;  %v22442_v3 = vpop.f32.mrb[140].mxu1  ;;  %v22452_v43 = vpop.f32.mrb[140].mxu0 }
 0x1f5   :  { %32961 = vst [vmem:[#allocation91_spill] sm:$0xff] %v29082_v39  ;;  %v32974_v39 = vld [vmem:[#allocation28_spill] sm:$0xff]  ;;  %v6806_v62 = vsel %vm6249_vm4, %v22442_v3, -inf }
 0x1f6   :  { %32969 = vst [vmem:[#allocation94_spill] sm:$0xff] %v29094_v53  ;;  %v29101_v22 = vmax.f32 %v32972_v25, %v6729_v63  ;;  %v32976_v23 = vmax.f32 %v32974_v39, %v32975_v41  ;;  %32979 = vst [vmem:[#allocation96_spill] sm:$0xff] %v29113_v7  ;;  %v32981_v63 = vld [vmem:[#allocation137_spill] sm:$0xff]  ;;  %v6813_v41 = vsel %vm6249_vm4, %v4605_v18, -inf  ;;  %v32984_v39 = vld [vmem:[#allocation32_spill] sm:$0xff] }
 0x1f7   :  { %v32982_v21 = vmax.f32 %v32980_v58, %v32981_v63  ;;  %v4500_v58 = vpop.f32.mrb[141].mxu1  ;;  %v32992_v18 = vld [vmem:[#allocation37_spill] sm:$0xff] }
 0x1f8   :  { %32973 = vst [vmem:[#allocation93_spill] sm:$0xff] %v29101_v22  ;;  %v29106_v26 = vmax.f32 %v32976_v23, %v6771_v51  ;;  %v6785_v23 = vsel %vm6249_vm4, %v4490_v31, -inf  ;;  %v32985_v51 = vld [vmem:[#allocation139_spill] sm:$0xff]  ;;  %v4615_v31 = vpop.f32.mrb[141].mxu0  ;;  %v32993_v63 = vmax.f32 %v28447_v48, %v32992_v18  ;;  %v22468_v18 = vpop.f32.mrb[142].mxu1 }
 0x1f9   :  { %v29118_v1 = vmax.f32 %v32982_v21, %v6820_v12  ;;  %v32986_v25 = vmax.f32 %v32984_v39, %v32985_v51  ;;  %v6834_v12 = vsel %vm6249_vm4, %v22452_v43, -inf  ;;  %v32996_v39 = vld [vmem:[#allocation141_spill] sm:$0xff] }
 0x1fa   :  { %32977 = vst [vmem:[#allocation95_spill] sm:$0xff] %v29106_v26  ;;  %v32989_v26 = vld [vmem:[#allocation140_spill] sm:$0xff]  ;;  %v29137_v21 = vmax.f32 %v32993_v63, %v6806_v62  ;;  %v22455_v62 = vpop.f32.mrb[142].mxu0 }
 0x1fb   :  { %32983 = vst [vmem:[#allocation98_spill] sm:$0xff] %v29118_v1  ;;  %v29125_v0 = vmax.f32 %v32986_v25, %v6785_v23  ;;  %v32990_v22 = vmax.f32 %v32988_v8, %v32989_v26  ;;  %v32995_v23 = vld [vmem:[#allocation34_spill] sm:$0xff]  ;;  %v6827_v26 = vsel %vm6249_vm4, %v4615_v31, -inf  ;;  %v6848_v63 = vsel %vm6249_vm4, %v22455_v62, -inf  ;;  %v33008_v31 = vld [vmem:[#allocation144_spill] sm:$0xff] }
 0x1fc   :  { %32994 = vst [vmem:[#allocation100_spill] sm:$0xff] %v29137_v21  ;;  %v32997_v51 = vmax.f32 %v32995_v23, %v32996_v39  ;;  %v33000_v8 = vld [vmem:[#allocation142_spill] sm:$0xff]  ;;  %v4625_v23 = vpop.f32.mrb[143].mxu0  ;;  %v33007_v39 = vld [vmem:[#allocation39_spill] sm:$0xff] }
 0x1fd   :  { %32987 = vst [vmem:[#allocation97_spill] sm:$0xff] %v29125_v0  ;;  %v29130_v19 = vmax.f32 %v32990_v22, %v6813_v41  ;;  %v6799_v22 = vsel %vm6249_vm4, %v4500_v58, -inf  ;;  %v32999_v41 = vld [vmem:[#allocation35_spill] sm:$0xff]  ;;  %v4750_v58 = vpop.f32.mrb[143].mxu1 }
 0x1fe   :  { %v29142_v25 = vmax.f32 %v32997_v51, %v6834_v12  ;;  %v33001_v3 = vmax.f32 %v32999_v41, %v33000_v8  ;;  %v33004_v0 = vld [vmem:[#allocation143_spill] sm:$0xff]  ;;  %v6890_v12 = vsel %vm6249_vm4, %v22468_v18, -inf  ;;  %v33009_v51 = vmax.f32 %v33007_v39, %v33008_v31  ;;  %v33012_v41 = vld [vmem:[#allocation145_spill] sm:$0xff]  ;;  %v22471_v31 = vpop.f32.mrb[144].mxu1 }
 0x1ff   :  { %32991 = vst [vmem:[#allocation99_spill] sm:$0xff] %v29130_v19  ;;  %v33003_v19 = vld [vmem:[#allocation36_spill] sm:$0xff]  ;;  %v33150_v33 = vld [vmem:[#allocation93_spill] sm:$0xff] }
 0x200   :  { %32998 = vst [vmem:[#allocation103_spill] sm:$0xff] %v29142_v25  ;;  %v29149_v43 = vmax.f32 %v33001_v3, %v6799_v22  ;;  %v33005_v1 = vmax.f32 %v33003_v19, %v33004_v0  ;;  %v29161_v25 = vmax.f32 %v33009_v51, %v6848_v63  ;;  %v33011_v22 = vld [vmem:[#allocation38_spill] sm:$0xff]  ;;  %v6883_v0 = vsel %vm6249_vm4, %v4750_v58, -inf  ;;  %v33015_v19 = vld [vmem:[#allocation41_spill] sm:$0xff]  ;;  %v22458_v63 = vpop.f32.mrb[144].mxu0  ;;  %v33024_v58 = vld [vmem:[#allocation148_spill] sm:$0xff] }
 0x201   :  { %v33013_v8 = vmax.f32 %v33011_v22, %v33012_v41  ;;  %v6862_v51 = vsel %vm6249_vm4, %v22458_v63, -inf  ;;  %v4635_v22 = vpop.f32.mrb[145].mxu0  ;;  %v33023_v41 = vld [vmem:[#allocation43_spill] sm:$0xff] }
 0x202   :  { %33002 = vst [vmem:[#allocation102_spill] sm:$0xff] %v29149_v43  ;;  %v29154_v48 = vmax.f32 %v33005_v1, %v6827_v26  ;;  %33010 = vst [vmem:[#allocation101_spill] sm:$0xff] %v29161_v25  ;;  %v6841_v1 = vsel %vm6249_vm4, %v4625_v23, -inf  ;;  %v33016_v26 = vld [vmem:[#allocation146_spill] sm:$0xff]  ;;  %v33020_v43 = vld [vmem:[#allocation147_spill] sm:$0xff]  ;;  %v4760_v23 = vpop.f32.mrb[145].mxu1 }
 0x203   :  { %v29166_v3 = vmax.f32 %v33013_v8, %v6890_v12  ;;  %v33017_v62 = vmax.f32 %v33015_v19, %v33016_v26  ;;  %v6904_v12 = vsel %vm6249_vm4, %v22471_v31, -inf  ;;  %v33025_v8 = vmax.f32 %v33023_v41, %v33024_v58  ;;  %v33028_v19 = vld [vmem:[#allocation149_spill] sm:$0xff]  ;;  %v22474_v58 = vpop.f32.mrb[146].mxu1 }
 0x204   :  { %33006 = vst [vmem:[#allocation104_spill] sm:$0xff] %v29154_v48  ;;  %v33019_v48 = vld [vmem:[#allocation40_spill] sm:$0xff] }
 0x205   :  { %33014 = vst [vmem:[#allocation105_spill] sm:$0xff] %v29166_v3  ;;  %v29173_v18 = vmax.f32 %v33017_v62, %v6841_v1  ;;  %v33021_v21 = vmax.f32 %v33019_v48, %v33020_v43  ;;  %v29185_v3 = vmax.f32 %v33025_v8, %v6862_v51  ;;  %v33027_v1 = vld [vmem:[#allocation42_spill] sm:$0xff]  ;;  %v6897_v43 = vsel %vm6249_vm4, %v4760_v23, -inf  ;;  %v33031_v48 = vld [vmem:[#allocation45_spill] sm:$0xff]  ;;  %v22461_v51 = vpop.f32.mrb[146].mxu0  ;;  %v33040_v23 = vld [vmem:[#allocation152_spill] sm:$0xff] }
 0x206   :  { %v33029_v26 = vmax.f32 %v33027_v1, %v33028_v19  ;;  %v6876_v8 = vsel %vm6249_vm4, %v22461_v51, -inf  ;;  %v4645_v1 = vpop.f32.mrb[147].mxu0  ;;  %v33039_v19 = vld [vmem:[#allocation47_spill] sm:$0xff] }
 0x207   :  { %33018 = vst [vmem:[#allocation107_spill] sm:$0xff] %v29173_v18  ;;  %v29178_v39 = vmax.f32 %v33021_v21, %v6883_v0  ;;  %33026 = vst [vmem:[#allocation106_spill] sm:$0xff] %v29185_v3  ;;  %v6855_v21 = vsel %vm6249_vm4, %v4635_v22, -inf  ;;  %v33032_v0 = vld [vmem:[#allocation150_spill] sm:$0xff]  ;;  %v33036_v18 = vld [vmem:[#allocation151_spill] sm:$0xff]  ;;  %v4770_v22 = vpop.f32.mrb[147].mxu1 }
 0x208   :  { %v29190_v62 = vmax.f32 %v33029_v26, %v6904_v12  ;;  %v33033_v63 = vmax.f32 %v33031_v48, %v33032_v0  ;;  %v6918_v12 = vsel %vm6249_vm4, %v22474_v58, -inf  ;;  %v33041_v26 = vmax.f32 %v33039_v19, %v33040_v23  ;;  %v33044_v48 = vld [vmem:[#allocation153_spill] sm:$0xff]  ;;  %v22487_v23 = vpop.f32.mrb[148].mxu0 }
 0x209   :  { %33022 = vst [vmem:[#allocation109_spill] sm:$0xff] %v29178_v39  ;;  %v33035_v39 = vld [vmem:[#allocation44_spill] sm:$0xff] }
 0x20a   :  { %33030 = vst [vmem:[#allocation110_spill] sm:$0xff] %v29190_v62  ;;  %v29197_v31 = vmax.f32 %v33033_v63, %v6855_v21  ;;  %v33037_v25 = vmax.f32 %v33035_v39, %v33036_v18  ;;  %v29209_v62 = vmax.f32 %v33041_v26, %v6876_v8  ;;  %v33043_v21 = vld [vmem:[#allocation46_spill] sm:$0xff]  ;;  %v6911_v18 = vsel %vm6249_vm4, %v4770_v22, -inf  ;;  %v33047_v39 = vld [vmem:[#allocation49_spill] sm:$0xff]  ;;  %v22477_v8 = vpop.f32.mrb[148].mxu1 }
 0x20b   :  { %v33045_v0 = vmax.f32 %v33043_v21, %v33044_v48  ;;  %v6932_v26 = vsel %vm6249_vm4, %v22477_v8, -inf  ;;  %v4780_v22 = vpop.f32.mrb[149].mxu1  ;;  %v4895_v21 = vpop.f32.mrb[149].mxu0  ;;  %v33055_v48 = vld [vmem:[#allocation50_spill] sm:$0xff] }
 0x20c   :  { %33034 = vst [vmem:[#allocation5_spill] sm:$0xff] %v29197_v31  ;;  %v29202_v41 = vmax.f32 %v33037_v25, %v6897_v43  ;;  %33042 = vst [vmem:[#allocation108_spill] sm:$0xff] %v29209_v62  ;;  %v6869_v25 = vsel %vm6249_vm4, %v4645_v1, -inf  ;;  %v33048_v43 = vld [vmem:[#allocation154_spill] sm:$0xff]  ;;  %v33052_v31 = vld [vmem:[#allocation155_spill] sm:$0xff] }
 0x20d   :  { %v29214_v63 = vmax.f32 %v33045_v0, %v6918_v12  ;;  %v33049_v51 = vmax.f32 %v33047_v39, %v33048_v43  ;;  %v6262_v12 = vsel %vm6249_vm4, %v22487_v23, -inf  ;;  %v29233_v1 = vld [vmem:[%s32148_s2] ss:$0 sm:$0xff]  ;;  %v33056_v0 = vld [vmem:[#allocation157_spill] sm:$0xff] }
 0x20e   :  { %33038 = vst [vmem:[#allocation111_spill] sm:$0xff] %v29202_v41  ;;  %v33051_v41 = vld [vmem:[#allocation48_spill] sm:$0xff] }
 0x20f   :  { %33046 = vst [vmem:[#allocation112_spill] sm:$0xff] %v29214_v63  ;;  %v29221_v58 = vmax.f32 %v33049_v51, %v6869_v25  ;;  %v33053_v3 = vmax.f32 %v33051_v41, %v33052_v31  ;;  %v33057_v25 = vmax.f32 %v33055_v48, %v33056_v0  ;;  %v6925_v41 = vsel %vm6249_vm4, %v4780_v22, -inf  ;;  %v33060_v43 = vld [vmem:[#allocation156_spill] sm:$0xff]  ;;  %v22490_v48 = vpop.f32.mrb[150].mxu0 }
 0x210   :  { %v33061_v51 = vld [vmem:[#allocation52_spill] sm:$0xff]  ;;  %v6276_v22 = vsel %vm6249_vm4, %v22490_v48, -inf }
 0x211   :  { %33050 = vst [vmem:[#allocation7_spill] sm:$0xff] %v29221_v58  ;;  %v29226_v19 = vmax.f32 %v33053_v3, %v6911_v18  ;;  %v29238_v39 = vmax.f32 %v33057_v25, %v6932_v26  ;;  %v33059_v3 = vld [vmem:[#allocation51_spill] sm:$0xff]  ;;  %v29243_v18 = vsel %vm6249_vm4, %v4895_v21, -inf  ;;  %v33062_v8 = vmax.f32 %v33060_v43, %v33061_v51  ;;  %v22480_v26 = vpop.f32.mrb[150].mxu1  ;;  %v4905_v21 = vpop.f32.mrb[151].mxu0  ;;  %v33072_v62 = vld [vmem:[#allocation56_spill] sm:$0xff] }
 0x212   :  { %v6263_v31 = vmax.f32 %v33059_v3, %v6262_v12  ;;  %v6946_v12 = vsel %vm6249_vm4, %v22480_v26, -inf  ;;  %v4790_v0 = vpop.f32.mrb[151].mxu1  ;;  %v33065_v3 = vld [vmem:[#allocation57_spill] sm:$0xff]  ;;  %v6277_v51 = vmax.f32 %v28663_v24, %v6276_v22  ;;  %v33069_v58 = vld [vmem:[#allocation55_spill] sm:$0xff]  ;;  %v6269_v26 = vsel %vm6249_vm4, %v4905_v21, -inf  ;;  %v22493_v7 = vpop.f32.mrb[152].mxu0 }
 0x213   :  { %33054 = vst [vmem:[#allocation113_spill] sm:$0xff] %v29226_v19  ;;  %33058 = vst [vmem:[#allocation6_spill] sm:$0xff] %v29238_v39  ;;  %v29248_v23 = vmax.f32 %v33062_v8, %v6925_v41  ;;  %v33064_v19 = vld [vmem:[#allocation53_spill] sm:$0xff]  ;;  %v33066_v41 = vmax.f32 %v28648_v28, %v33065_v3  ;;  %v33068_v8 = vld [vmem:[#allocation54_spill] sm:$0xff]  ;;  %v6270_v25 = vmax.f32 %v33072_v62, %v6269_v26  ;;  %v22506_v53 = vpop.f32.mrb[152].mxu1  ;;  %v6290_v24 = vsel %vm6249_vm4, %v22493_v7, -inf }
 0x214   :  { %v29253_v63 = vadd.f32 %v29233_v1, %v6263_v31  ;;  %v6939_v31 = vsel %vm6249_vm4, %v4790_v0, -inf  ;;  %v6960_v48 = vadd.f32 %v29233_v1, %v6277_v51  ;;  %v4915_v22 = vpop.f32.mrb[153].mxu0  ;;  %v6291_v0 = vmax.f32 %v28681_v2, %v6290_v24 }
 0x215   :  { %33063 = vst [vmem:[#allocation114_spill] sm:$0xff] %v29248_v23  ;;  %v29261_v43 = vmax.f32 %v33066_v41, %v6946_v12  ;;  %v33070_v23 = vmax.f32 %v33068_v8, %v33069_v58  ;;  %v6332_v12 = vsel %vm6249_vm4, %v22506_v53, -inf  ;;  %v5040_v58 = vpop.f32.mrb[153].mxu1  ;;  %v6283_v62 = vsel %vm6249_vm4, %v4915_v22, -inf }
 0x216   :  { %v33073_v28 = vmax.f32 %v29253_v63, 0.0  ;;  %v6333_v21 = vmax.f32 %v28686_v60, %v6332_v12  ;;  %v29283_v3 = vsel %vm6249_vm4, %v5040_v58, -inf  ;;  %v29285_v41 = vmax.f32 %v6960_v48, 0.0  ;;  %v22509_v8 = vpop.f32.mrb[154].mxu1 }
 0x217   :  { %33067 = vst [vmem:[#allocation9_spill] sm:$0xff] %v29261_v43  ;;  %v29268_v39 = vmax.f32 %v33070_v23, %v6939_v31  ;;  %v6959_v23 = vadd.f32 %v29233_v1, %v6270_v25  ;;  %v6284_v53 = vmax.f32 %v28693_v5, %v6283_v62  ;;  %v22496_v31 = vpop.f32.mrb[154].mxu0  ;;  %v6962_v25 = vadd.f32 %v29233_v1, %v6291_v0  ;;  %v5050_v48 = vpop.f32.mrb[155].mxu1  ;;  %v33074_v0 = vld [vmem:[#allocation138_spill] sm:$0xff] }
 0x218   :  { %22675 = vmatprep.mubr.msk.f32.mxu0 %vm6249_vm4, %v33073_v28  ;;  %v6968_v7 = vadd.f32 %v29233_v1, %v6333_v21  ;;  %v6304_v2 = vsel %vm6249_vm4, %v22496_v31, -inf  ;;  %v6346_v26 = vsel %vm6249_vm4, %v22509_v8, -inf  ;;  %v4925_v28 = vpop.f32.mrb[155].mxu0  ;;  %v22512_v31 = vpop.f32.mrb[156].mxu1 }
 0x219   :  { %33071 = vst [vmem:[#allocation115_spill] sm:$0xff] %v29268_v39  ;;  %v29287_v51 = vmax.f32 %v6959_v23, 0.0  ;;  %v6961_v12 = vadd.f32 %v29233_v1, %v6284_v53  ;;  %v6305_v22 = vmax.f32 %v28705_v35, %v6304_v2  ;;  %v6347_v5 = vmax.f32 %v28710_v32, %v6346_v26  ;;  %v22499_v32 = vpop.f32.mrb[156].mxu0 }
 0x21a   :  { %v29296_v24 = vmax.f32 %v6968_v7, 0.0  ;;  %v6297_v58 = vsel %vm6249_vm4, %v4925_v28, -inf  ;;  %v6339_v23 = vsel %vm6249_vm4, %v5050_v48, -inf  ;;  %v29320_v8 = vmax.f32 %v6962_v25, 0.0  ;;  %v4935_v28 = vpop.f32.mrb[157].mxu0 }
 0x21b   :  { %22676 = vmatmul.mubr.msk.f32.vlgmr.msra.gmra.mrb[198].mxu0 %vm6249_vm4, %v29287_v51  ;;  %v29310_v62 = vmax.f32 %v6961_v12, 0.0  ;;  %v6964_v35 = vadd.f32 %v29233_v1, %v6305_v22  ;;  %v6298_v7 = vmax.f32 %v28717_v56, %v6297_v58  ;;  %v6340_v53 = vmax.f32 %v28722_v46, %v6339_v23  ;;  %v5060_v46 = vpop.f32.mrb[157].mxu1 }
 0x21c   :  { %22678 = vmatprep.mubr.msk.f32.mxu0 %vm6249_vm4, %v29285_v41  ;;  %24403 = vmatpush3.bf16.msk.msra.mxu0 %vm28386_vm6, %v33074_v0  ;;  %v6970_v2 = vadd.f32 %v29233_v1, %v6347_v5  ;;  %v29324_v26 = vsel %vm6249_vm4, %v22499_v32, -inf  ;;  %v6360_v56 = vsel %vm6249_vm4, %v22512_v31, -inf  ;;  %v6311_v58 = vsel %vm6249_vm4, %v4935_v28, -inf  ;;  %v22515_v22 = vpop.f32.mrb[158].mxu1 }
 0x21d   :  { %22691 = vmatprep.mubr.msk.f32.mxu1 %vm6249_vm4, %v29296_v24  ;;  %24412 = vmatprep.subr.msk.bf16.mxu0 %vm28386_vm6, %v33074_v0  ;;  %33076 = vst [vmem:[#allocation8_spill] sm:$0xff] %v29324_v26  ;;  %v6963_v48 = vadd.f32 %v29233_v1, %v6298_v7  ;;  %v6969_v12 = vadd.f32 %v29233_v1, %v6340_v53  ;;  %v29333_v25 = vmax.f32 %v6964_v35, 0.0  ;;  %v6353_v23 = vsel %vm6249_vm4, %v5060_v46, -inf  ;;  %v22525_v35 = vpop.f32.mrb[158].mxu0  ;;  %v5070_v46 = vpop.f32.mrb[159].mxu1 }
 0x21e   :  { %v6361_v5 = vmax.f32 %v28734_v29, %v6360_v56  ;;  %v29340_v7 = vmax.f32 %v6970_v2, 0.0  ;;  %v6312_v31 = vmax.f32 %v28741_v47, %v6311_v58  ;;  %v6354_v29 = vmax.f32 %v28746_v42, %v6353_v23  ;;  %v5185_v26 = vpop.f32.mrb[159].mxu0  ;;  %v22518_v23 = vpop.f32.mrb[160].mxu1 }
 0x21f   :  { %22679 = vmatmul.mubr.msk.f32.gmra.mrb[200].mxu0 %vm6249_vm4, %v29310_v62  ;;  %v29342_v53 = vmax.f32 %v6963_v48, 0.0  ;;  %v29344_v32 = vmax.f32 %v6969_v12, 0.0  ;;  %v6374_v56 = vsel %vm6249_vm4, %v22515_v22, -inf  ;;  %v6402_v28 = vsel %vm6249_vm4, %v22525_v35, -inf }
 0x220   :  { %22681 = vmatprep.mubr.msk.f32.mxu0 %vm6249_vm4, %v29320_v8  ;;  %v6972_v60 = vadd.f32 %v29233_v1, %v6361_v5  ;;  %v29352_v2 = vadd.f32 %v29233_v1, %v6312_v31  ;;  %v6375_v48 = vmax.f32 %v28753_v57, %v6374_v56  ;;  %v6403_v12 = vmax.f32 %v28758_v49, %v6402_v28  ;;  %v22528_v31 = vpop.f32.mrb[160].mxu0  ;;  %v5080_v56 = vpop.f32.mrb[161].mxu1 }
 0x221   :  { %22692 = vmatmul.mubr.msk.f32.vlgmr.msra.gmra.mrb[202].mxu1 %vm6249_vm4, %v29344_v32  ;;  %v6971_v47 = vadd.f32 %v29233_v1, %v6354_v29  ;;  %v6367_v42 = vsel %vm6249_vm4, %v5070_v46, -inf  ;;  %v29363_v22 = vsel %vm6249_vm4, %v5185_v26, -inf  ;;  %v6416_v29 = vsel %vm6249_vm4, %v22528_v31, -inf  ;;  %v5195_v28 = vpop.f32.mrb[161].mxu0 }
 0x222   :  { %33077 = vst [vmem:[#allocation116_spill] sm:$0xff] %v29352_v2  ;;  %22694 = vmatprep.mubr.msk.f32.mxu1 %vm6249_vm4, %v29340_v7  ;;  %v29369_v57 = vmax.f32 %v6972_v60, 0.0  ;;  %v32342_v49 = vmax.f32 %v29352_v2, 0.0  ;;  %v6978_v5 = vadd.f32 %v29233_v1, %v6403_v12  ;;  %v6368_v58 = vmax.f32 %v28765_v52, %v6367_v42  ;;  %24409 = vmatpush3.bf16.msk.msra.mxu1 %vm28386_vm6, %v33074_v0  ;;  %v33091_v2 = vld [vmem:[#allocation65_spill] sm:$0xff] }
 0x223   :  { %22682 = vmatmul.mubr.msk.f32.gmra.mrb[202].mxu0 %vm6249_vm4, %v29342_v53  ;;  %v29377_v26 = vmax.f32 %v6971_v47, 0.0  ;;  %v29382_v60 = vsel %vm6249_vm4, %v22518_v23, -inf  ;;  %24418 = vmatprep.subr.msk.bf16.mxu1 %vm28386_vm6, %v33074_v0  ;;  %v6974_v52 = vadd.f32 %v29233_v1, %v6375_v48  ;;  %v6417_v42 = vmax.f32 %v28782_v15, %v6416_v29  ;;  %v22531_v47 = vpop.f32.mrb[162].mxu0 }
 0x224   :  { %22684 = vmatprep.mubr.msk.f32.mxu0 %vm6249_vm4, %v29333_v25  ;;  %33078 = vst [vmem:[#allocation10_spill] sm:$0xff] %v29382_v60  ;;  %v29389_v46 = vmax.f32 %v6978_v5, 0.0  ;;  %v6973_v12 = vadd.f32 %v29233_v1, %v6368_v58  ;;  %v6381_v23 = vsel %vm6249_vm4, %v5080_v56, -inf  ;;  %v6409_v31 = vsel %vm6249_vm4, %v5195_v28, -inf  ;;  %v5205_v28 = vpop.f32.mrb[163].mxu0 }
 0x225   :  { %22695 = vmatmul.mubr.msk.f32.gmra.mrb[204].mxu1 %vm6249_vm4, %v29377_v26  ;;  %v6382_v5 = vmax.f32 %v28789_v36, %v6381_v23  ;;  %v6410_v58 = vmax.f32 %v28794_v45, %v6409_v31  ;;  %v6980_v15 = vadd.f32 %v29233_v1, %v6417_v42  ;;  %v6430_v29 = vsel %vm6249_vm4, %v22531_v47, -inf }
 0x226   :  { %v29402_v48 = vmax.f32 %v6973_v12, 0.0  ;;  %22697 = vmatprep.mubr.msk.f32.mxu1 %vm6249_vm4, %v29369_v57  ;;  %v29413_v35 = vmax.f32 %v6974_v52, 0.0  ;;  %v6431_v23 = vmax.f32 %v28801_v44, %v6430_v29  ;;  %v6423_v42 = vsel %vm6249_vm4, %v5205_v28, -inf }
 0x227   :  { %22685 = vmatmul.mubr.msk.f32.gmra.mrb[204].mxu0 %vm6249_vm4, %v32342_v49  ;;  %v22544_v49 = vpop.f32.mrb[162].mxu1  ;;  %v6975_v36 = vadd.f32 %v29233_v1, %v6382_v5  ;;  %v6979_v45 = vadd.f32 %v29233_v1, %v6410_v58  ;;  %v29418_v31 = vmax.f32 %v6980_v15, 0.0  ;;  %v6424_v44 = vmax.f32 %v28813_v11, %v6423_v42 }
 0x228   :  { %22707 = vmatprep.mubr.msk.f32.mxu0 %vm6249_vm4, %v29389_v46  ;;  %v6472_v56 = vsel %vm6249_vm4, %v22544_v49, -inf  ;;  %v5330_v12 = vpop.f32.mrb[163].mxu1  ;;  %v6982_v5 = vadd.f32 %v29233_v1, %v6431_v23 }
 0x229   :  { %v6473_v60 = vmax.f32 %v28806_v34, %v6472_v56  ;;  %v29423_v47 = vsel %vm6249_vm4, %v5330_v12, -inf  ;;  %22698 = vmatmul.mubr.msk.f32.gmra.mrb[206].mxu1 %vm6249_vm4, %v29402_v48  ;;  %v29427_v49 = vmax.f32 %v6975_v36, 0.0  ;;  %v29429_v52 = vmax.f32 %v6979_v45, 0.0  ;;  %v22534_v34 = vpop.f32.mrb[164].mxu0  ;;  %v22547_v58 = vpop.f32.mrb[164].mxu1 }
 0x22a   :  { %22700 = vmatprep.mubr.msk.f32.mxu1 %vm6249_vm4, %v29413_v35  ;;  %v6444_v56 = vsel %vm6249_vm4, %v22534_v34, -inf  ;;  %v6486_v28 = vsel %vm6249_vm4, %v22547_v58, -inf  ;;  %v5215_v12 = vpop.f32.mrb[165].mxu0  ;;  %v5340_v36 = vpop.f32.mrb[165].mxu1  ;;  %v6981_v45 = vadd.f32 %v29233_v1, %v6424_v44 }
 0x22b   :  { %33079 = vst [vmem:[#allocation117_spill] sm:$0xff] %v29427_v49  ;;  %v6988_v15 = vadd.f32 %v29233_v1, %v6473_v60  ;;  %v6445_v11 = vmax.f32 %v28825_v54, %v6444_v56  ;;  %v6487_v23 = vmax.f32 %v28830_v61, %v6486_v28  ;;  %22708 = vmatmul.mubr.msk.f32.vlgmr.msra.gmra.mrb[206].mxu0 %vm6249_vm4, %v29429_v52  ;;  %v6437_v60 = vsel %vm6249_vm4, %v5215_v12, -inf  ;;  %v22537_v34 = vpop.f32.mrb[166].mxu0  ;;  %v22550_v58 = vpop.f32.mrb[166].mxu1 }
 0x22c   :  { %v6479_v29 = vsel %vm6249_vm4, %v5340_v36, -inf  ;;  %22710 = vmatprep.mubr.msk.f32.mxu0 %vm6249_vm4, %v29418_v31  ;;  %v29453_v44 = vmax.f32 %v6981_v45, 0.0  ;;  %v6438_v61 = vmax.f32 %v28837_v55, %v6437_v60  ;;  %24415 = vmatpush3.bf16.msk.msra.mxu0 %vm28386_vm6, %v33074_v0  ;;  %v29464_v28 = vsel %vm6249_vm4, %v22537_v34, -inf  ;;  %v5225_v36 = vpop.f32.mrb[167].mxu0  ;;  %v5350_v55 = vpop.f32.mrb[167].mxu1 }
 0x22d   :  { %v29445_v42 = vmax.f32 %v6988_v15, 0.0  ;;  %22701 = vmatmul.mubr.msk.f32.gmra.mrb[208].mxu1 %vm6249_vm4, %v29427_v49  ;;  %v6984_v54 = vadd.f32 %v29233_v1, %v6445_v11  ;;  %v29460_v15 = vmax.f32 %v6982_v5, 0.0  ;;  %v6480_v56 = vmax.f32 %v28842_v40, %v6479_v29  ;;  %33081 = vst [vmem:[#allocation118_spill] sm:$0xff] %v29464_v28  ;;  %24424 = vmatprep.subr.msk.bf16.mxu0 %vm28386_vm6, %v33074_v0  ;;  %v22553_v28 = vpop.f32.mrb[168].mxu1  ;;  %v22563_v38 = vpop.f32.mrb[168].mxu0 }
 0x22e   :  { %v6500_v12 = vsel %vm6249_vm4, %v22550_v58, -inf  ;;  %v6990_v45 = vadd.f32 %v29233_v1, %v6487_v23  ;;  %v6983_v5 = vadd.f32 %v29233_v1, %v6438_v61  ;;  %v6451_v60 = vsel %vm6249_vm4, %v5225_v36, -inf  ;;  %v5475_v49 = vpop.f32.mrb[169].mxu0 }
 0x22f   :  { %33080 = vst [vmem:[#allocation11_spill] sm:$0xff] %v29445_v42  ;;  %22723 = vmatprep.mubr.msk.f32.mxu1 %vm6249_vm4, %v29445_v42  ;;  %22711 = vmatmul.mubr.msk.f32.gmra.mrb[208].mxu0 %vm6249_vm4, %v29453_v44  ;;  %v6989_v29 = vadd.f32 %v29233_v1, %v6480_v56  ;;  %v6501_v11 = vmax.f32 %v28854_v4, %v6500_v12  ;;  %v6493_v34 = vsel %vm6249_vm4, %v5350_v55, -inf  ;;  %v29484_v23 = vmax.f32 %v6984_v54, 0.0  ;;  %v5360_v55 = vpop.f32.mrb[169].mxu1 }
 0x230   :  { %22713 = vmatprep.mubr.msk.f32.mxu0 %vm6249_vm4, %v29460_v15  ;;  %v29486_v61 = vmax.f32 %v6983_v5, 0.0  ;;  %v6452_v58 = vmax.f32 %v28861_v16, %v6451_v60  ;;  %v6494_v40 = vmax.f32 %v28866_v59, %v6493_v34  ;;  %v6514_v12 = vsel %vm6249_vm4, %v22553_v28, -inf }
 0x231   :  { %v29490_v56 = vmax.f32 %v6989_v29, 0.0  ;;  %v6992_v4 = vadd.f32 %v29233_v1, %v6501_v11  ;;  %v6542_v36 = vsel %vm6249_vm4, %v22563_v38, -inf  ;;  %v29495_v54 = vmax.f32 %v6990_v45, 0.0 }
 0x232   :  { %v6985_v5 = vadd.f32 %v29233_v1, %v6452_v58  ;;  %v6991_v16 = vadd.f32 %v29233_v1, %v6494_v40  ;;  %v6515_v59 = vmax.f32 %v28873_v6, %v6514_v12  ;;  %v6543_v29 = vmax.f32 %v28878_v13, %v6542_v36  ;;  %v22556_v13 = vpop.f32.mrb[170].mxu1 }
 0x233   :  { %22714 = vmatmul.mubr.msk.f32.gmra.mrb[210].mxu0 %vm6249_vm4, %v29486_v61  ;;  %v6507_v11 = vsel %vm6249_vm4, %v5360_v55, -inf  ;;  %v29505_v28 = vsel %vm6249_vm4, %v5475_v49, -inf  ;;  %22724 = vmatmul.mubr.msk.f32.vlgmr.msra.gmra.mrb[210].mxu1 %vm6249_vm4, %v29490_v56  ;;  %v29511_v38 = vmax.f32 %v6992_v4, 0.0  ;;  %v22566_v49 = vpop.f32.mrb[170].mxu0  ;;  %v29527_v58 = vsel %vm6249_vm4, %v22556_v13, -inf }
 0x234   :  { %22716 = vmatprep.mubr.msk.f32.mxu0 %vm6249_vm4, %v29484_v23  ;;  %v29513_v45 = vmax.f32 %v6985_v5, 0.0  ;;  %v29515_v6 = vmax.f32 %v6991_v16, 0.0  ;;  %v6508_v40 = vmax.f32 %v28885_v30, %v6507_v11  ;;  %22726 = vmatprep.mubr.msk.f32.mxu1 %vm6249_vm4, %v29495_v54  ;;  %v6998_v60 = vadd.f32 %v29233_v1, %v6543_v29  ;;  %33085 = vst [vmem:[#allocation120_spill] sm:$0xff] %v29527_v58  ;;  %v5370_v30 = vpop.f32.mrb[171].mxu1  ;;  %v5485_v12 = vpop.f32.mrb[171].mxu0  ;;  %v7157_v29 = vld [vmem:[%s32149_s3] sm:$0xff] }
 0x235   :  { %33082 = vst [vmem:[#allocation12_spill] sm:$0xff] %v29511_v38  ;;  %24421 = vmatpush3.bf16.msk.msra.mxu1 %vm28386_vm6, %v33074_v0  ;;  %v6556_v4 = vsel %vm6249_vm4, %v22566_v49, -inf  ;;  %v6994_v36 = vadd.f32 %v29233_v1, %v6515_v59  ;;  %v7158_v11 = vld [vmem:[%s32149_s3 + $0x8] sm:$0x3]  ;;  %v6521_v59 = vsel %vm6249_vm4, %v5370_v30, -inf  ;;  %v33088_v49 = vld [vmem:[#allocation60_spill] sm:$0xff] }
 0x236   :  { %33083 = vst [vmem:[#allocation119_spill] sm:$0xff] %v29513_v45  ;;  %33084 = vst [vmem:[#allocation13_spill] sm:$0xff] %v29515_v6  ;;  %24430 = vmatprep.subr.msk.bf16.mxu1 %vm28386_vm6, %v33074_v0  ;;  %v6993_v55 = vadd.f32 %v29233_v1, %v6508_v40  ;;  %v6557_v16 = vmax.f32 %v28902_v27, %v6556_v4  ;;  %v29546_v13 = vmax.f32 %v6998_v60, 0.0  ;;  %v6549_v40 = vsel %vm6249_vm4, %v5485_v12, -inf  ;;  %v22569_v5 = vpop.f32.mrb[172].mxu0  ;;  %v22582_v34 = vpop.f32.mrb[172].mxu1 }
 0x237   :  { %22717 = vmatmul.mubr.msk.f32.gmra.mrb[212].mxu0 %vm6249_vm4, %v29513_v45  ;;  %22727 = vmatmul.mubr.msk.f32.gmra.mrb[212].mxu1 %vm6249_vm4, %v29515_v6  ;;  %v6522_v4 = vmax.f32 %v33088_v49, %v6521_v59  ;;  %v33089_v58 = vld [vmem:[#allocation63_spill] sm:$0xff]  ;;  %v6570_v60 = vsel %vm6249_vm4, %v22569_v5, -inf  ;;  %v6612_v30 = vsel %vm6249_vm4, %v22582_v34, -inf  ;;  %v5495_v12 = vpop.f32.mrb[173].mxu0  ;;  %v5620_v45 = vpop.f32.mrb[173].mxu1  ;;  %v29564_v17 = vmax.f32 %v6994_v36, 0.0 }
 0x238   :  { %33086 = vst [vmem:[#allocation14_spill] sm:$0xff] %v29546_v13  ;;  %v29552_v27 = vmax.f32 %v6993_v55, 0.0  ;;  %22729 = vmatprep.mubr.msk.f32.mxu1 %vm6249_vm4, %v29511_v38  ;;  %v6550_v14 = vmax.f32 %v33089_v58, %v6549_v40  ;;  %22739 = vmatprep.mubr.msk.f32.mxu0 %vm6249_vm4, %v29546_v13  ;;  %v29562_v55 = vpack.c.bf16 %v7158_v11, %v7157_v29  ;;  %v33092_v5 = vld [vmem:[#allocation66_spill] sm:$0xff]  ;;  %v6563_v34 = vsel %vm6249_vm4, %v5495_v12, -inf  ;;  %v33095_v29 = vld [vmem:[#allocation64_spill] sm:$0xff] }
 0x239   :  { %33090 = vst [vmem:[#allocation15_spill] sm:$0xff] %v29564_v17  ;;  %v7000_v59 = vadd.f32 %v29233_v1, %v6557_v16  ;;  %v6995_v49 = vadd.f32 %v29233_v1, %v6522_v4  ;;  %v6571_v20 = vmax.f32 %v33091_v2, %v6570_v60  ;;  %v6613_v40 = vmax.f32 %v33092_v5, %v6612_v30  ;;  %v22585_v60 = vpop.f32.mrb[174].mxu1 }
 0x23a   :  { %33087 = vst [vmem:[#allocation121_spill] sm:$0xff] %v29552_v27  ;;  %v6999_v58 = vadd.f32 %v29233_v1, %v6550_v14  ;;  %v29573_v13 = vsel %vm6249_vm4, %v5620_v45, -inf  ;;  %v6564_v11 = vmax.f32 %v33095_v29, %v6563_v34  ;;  %v22572_v14 = vpop.f32.mrb[174].mxu0  ;;  %v33099_v29 = vld [vmem:[#allocation68_spill] sm:$0xff] }
 0x23b   :  { %33093 = vst [vmem:[#allocation122_spill] sm:$0xff] %v29573_v13  ;;  %22730 = vmatmul.mubr.msk.f32.gmra.mrb[214].mxu1 %vm6249_vm4, %v29552_v27  ;;  %v29577_v36 = vmax.f32 %v6995_v49, 0.0  ;;  %v7002_v16 = vadd.f32 %v29233_v1, %v6571_v20  ;;  %v7008_v45 = vadd.f32 %v29233_v1, %v6613_v40  ;;  %v6584_v12 = vsel %vm6249_vm4, %v22572_v14, -inf  ;;  %v5505_v5 = vpop.f32.mrb[175].mxu0  ;;  %v5630_v20 = vpop.f32.mrb[175].mxu1  ;;  %v33103_v14 = vld [vmem:[#allocation69_spill] sm:$0xff] }
 0x23c   :  { %22732 = vmatprep.mubr.msk.f32.mxu1 %vm6249_vm4, %v29564_v17  ;;  %v29585_v30 = vmax.f32 %v6999_v58, 0.0  ;;  %v6626_v49 = vsel %vm6249_vm4, %v22585_v60, -inf  ;;  %v29590_v27 = vmax.f32 %v7000_v59, 0.0  ;;  %v7001_v34 = vadd.f32 %v29233_v1, %v6564_v11  ;;  %v33101_v17 = vld [vmem:[#allocation70_spill] sm:$0xff] }
 0x23d   :  { %33094 = vst [vmem:[#allocation16_spill] sm:$0xff] %v29577_v36  ;;  %v6585_v4 = vmax.f32 %v33099_v29, %v6584_v12  ;;  %v29594_v38 = vmax.f32 %v7008_v45, 0.0  ;;  %v6627_v13 = vmax.f32 %v33101_v17, %v6626_v49  ;;  %v6577_v58 = vsel %vm6249_vm4, %v5505_v5, -inf  ;;  %v22575_v17 = vpop.f32.mrb[176].mxu0  ;;  %v22588_v45 = vpop.f32.mrb[176].mxu1  ;;  %v33105_v49 = vld [vmem:[#allocation71_spill] sm:$0xff] }
 0x23e   :  { %33097 = vst [vmem:[#allocation123_spill] sm:$0xff] %v29585_v30  ;;  %33098 = vst [vmem:[#allocation17_spill] sm:$0xff] %v29590_v27  ;;  %v6619_v40 = vsel %vm6249_vm4, %v5630_v20, -inf  ;;  %22740 = vmatmul.mubr.msk.f32.vlgmr.msra.gmra.mrb[214].mxu0 %vm6249_vm4, %v29585_v30  ;;  %v29603_v59 = vmax.f32 %v7001_v34, 0.0  ;;  %v6578_v60 = vmax.f32 %v33103_v14, %v6577_v58  ;;  %v29612_v12 = vmax.f32 %v7002_v16, 0.0  ;;  %v5515_v34 = vpop.f32.mrb[177].mxu0 }
 0x23f   :  { %33100 = vst [vmem:[#allocation124_spill] sm:$0xff] %v29594_v38  ;;  %22733 = vmatmul.mubr.msk.f32.gmra.mrb[216].mxu1 %vm6249_vm4, %v29577_v36  ;;  %v7004_v11 = vadd.f32 %v29233_v1, %v6585_v4  ;;  %22742 = vmatprep.mubr.msk.f32.mxu0 %vm6249_vm4, %v29590_v27  ;;  %v6620_v5 = vmax.f32 %v33105_v49, %v6619_v40  ;;  %v29616_v20 = vsel %vm6249_vm4, %v22575_v17, -inf  ;;  %v6640_v4 = vsel %vm6249_vm4, %v22588_v45, -inf  ;;  %v5640_v29 = vpop.f32.mrb[177].mxu1  ;;  %v33108_v17 = vld [vmem:[#allocation74_spill] sm:$0xff] }
 0x240   :  { %33102 = vst [vmem:[#allocation19_spill] sm:$0xff] %v29603_v59  ;;  %24427 = vmatpush3.bf16.msk.msra.mxu0 %vm28386_vm6, %v33074_v0  ;;  %33104 = vst [vmem:[#allocation125_spill] sm:$0xff] %v29612_v12  ;;  %22755 = vmatprep.mubr.msk.f32.mxu1 %vm6249_vm4, %v29594_v38  ;;  %v7010_v58 = vadd.f32 %v29233_v1, %v6627_v13  ;;  %v7003_v16 = vadd.f32 %v29233_v1, %v6578_v60  ;;  %v6591_v36 = vsel %vm6249_vm4, %v5515_v34, -inf  ;;  %v33111_v13 = vld [vmem:[#allocation73_spill] sm:$0xff]  ;;  %v22591_v14 = vpop.f32.mrb[178].mxu1  ;;  %v33216_v43 = vld [vmem:[#allocation14_spill] sm:$0xff] }
 0x241   :  { %33106 = vst [vmem:[#allocation18_spill] sm:$0xff] %v29616_v20  ;;  %24436 = vmatprep.subr.msk.bf16.mxu0 %vm28386_vm6, %v29562_v55  ;;  %v6641_v49 = vmax.f32 %v33108_v17, %v6640_v4  ;;  %v7009_v45 = vadd.f32 %v29233_v1, %v6620_v5  ;;  %v6633_v38 = vsel %vm6249_vm4, %v5640_v29, -inf  ;;  %v29634_v27 = vmax.f32 %v7004_v11, 0.0  ;;  %v22601_v4 = vpop.f32.mrb[178].mxu0  ;;  %v33113_v5 = vld [vmem:[#allocation75_spill] sm:$0xff]  ;;  %v5650_v40 = vpop.f32.mrb[179].mxu1 }
 0x242   :  { %22743 = vmatmul.mubr.msk.f32.gmra.mrb[216].mxu0 %vm6249_vm4, %v29603_v59  ;;  %v29636_v30 = vmax.f32 %v7003_v16, 0.0  ;;  %v6592_v60 = vmax.f32 %v33111_v13, %v6591_v36  ;;  %v6634_v34 = vmax.f32 %v33113_v5, %v6633_v38  ;;  %v6654_v29 = vsel %vm6249_vm4, %v22591_v14, -inf  ;;  %v5765_v11 = vpop.f32.mrb[179].mxu0  ;;  %v33115_v13 = vld [vmem:[#allocation76_spill] sm:$0xff] }
 0x243   :  { %33109 = vst [vmem:[#allocation126_spill] sm:$0xff] %v29634_v27  ;;  %22745 = vmatprep.mubr.msk.f32.mxu0 %vm6249_vm4, %v29612_v12  ;;  %v29641_v17 = vmax.f32 %v7009_v45, 0.0  ;;  %v6682_v20 = vsel %vm6249_vm4, %v22601_v4, -inf  ;;  %v29646_v59 = vmax.f32 %v7010_v58, 0.0  ;;  %v7012_v16 = vadd.f32 %v29233_v1, %v6641_v49  ;;  %v33116_v45 = vld [vmem:[#allocation78_spill] sm:$0xff]  ;;  %v33119_v49 = vld [vmem:[#allocation77_spill] sm:$0xff] }
 0x244   :  { %33110 = vst [vmem:[#allocation21_spill] sm:$0xff] %v29636_v30  ;;  %v7005_v36 = vadd.f32 %v29233_v1, %v6592_v60  ;;  %v6655_v12 = vmax.f32 %v33115_v13, %v6654_v29  ;;  %v7011_v2 = vadd.f32 %v29233_v1, %v6634_v34  ;;  %v6683_v6 = vmax.f32 %v33116_v45, %v6682_v20  ;;  %v33120_v4 = vld [vmem:[#allocation79_spill] sm:$0xff]  ;;  %v22594_v20 = vpop.f32.mrb[180].mxu1 }
 0x245   :  { %33112 = vst [vmem:[#allocation127_spill] sm:$0xff] %v29641_v17  ;;  %33114 = vst [vmem:[#allocation20_spill] sm:$0xff] %v29646_v59  ;;  %v6647_v38 = vsel %vm6249_vm4, %v5650_v40, -inf  ;;  %v29655_v14 = vsel %vm6249_vm4, %v5765_v11, -inf  ;;  %22756 = vmatmul.mubr.msk.f32.vlgmr.msra.gmra.mrb[218].mxu1 %vm6249_vm4, %v29641_v17  ;;  %v22604_v40 = vpop.f32.mrb[180].mxu0  ;;  %v29674_v11 = vsel %vm6249_vm4, %v22594_v20, -inf }
 0x246   :  { %33117 = vst [vmem:[#allocation128_spill] sm:$0xff] %v29655_v14  ;;  %22746 = vmatmul.mubr.msk.f32.gmra.mrb[218].mxu0 %vm6249_vm4, %v29636_v30  ;;  %v29661_v58 = vmax.f32 %v7005_v36, 0.0  ;;  %v6648_v60 = vmax.f32 %v33119_v49, %v6647_v38  ;;  %22758 = vmatprep.mubr.msk.f32.mxu1 %vm6249_vm4, %v29646_v59  ;;  %v29670_v34 = vmax.f32 %v7011_v2, 0.0  ;;  %v7018_v29 = vadd.f32 %v29233_v1, %v6683_v6  ;;  %v5660_v13 = vpop.f32.mrb[181].mxu1  ;;  %v5775_v45 = vpop.f32.mrb[181].mxu0  ;;  %v33139_v30 = vld [vmem:[#allocation90_spill] sm:$0xff] }
 0x247   :  { %22748 = vmatprep.mubr.msk.f32.mxu0 %vm6249_vm4, %v29634_v27  ;;  %33122 = vst [vmem:[#allocation22_spill] sm:$0xff] %v29674_v11  ;;  %v6696_v36 = vsel %vm6249_vm4, %v22604_v40, -inf  ;;  %24433 = vmatpush3.bf16.msk.msra.mxu1 %vm28386_vm6, %v33074_v0  ;;  %v29680_v38 = vmax.f32 %v7012_v16, 0.0  ;;  %v7014_v49 = vadd.f32 %v29233_v1, %v6655_v12  ;;  %v33126_v40 = vld [vmem:[#allocation82_spill] sm:$0xff]  ;;  %v6661_v27 = vsel %vm6249_vm4, %v5660_v13, -inf  ;;  %v33128_v16 = vld [vmem:[#allocation80_spill] sm:$0xff] }
 0x248   :  { %33118 = vst [vmem:[#allocation23_spill] sm:$0xff] %v29661_v58  ;;  %33121 = vst [vmem:[#allocation129_spill] sm:$0xff] %v29670_v34  ;;  %v7013_v2 = vadd.f32 %v29233_v1, %v6648_v60  ;;  %24442 = vmatprep.subr.msk.bf16.mxu1 %vm28386_vm6, %v29562_v55  ;;  %v29689_v20 = vmax.f32 %v7018_v29, 0.0  ;;  %v6697_v59 = vmax.f32 %v33126_v40, %v6696_v36  ;;  %v6689_v0 = vsel %vm6249_vm4, %v5775_v45, -inf  ;;  %v22607_v29 = vpop.f32.mrb[182].mxu0  ;;  %v22620_v6 = vpop.f32.mrb[182].mxu1 }
 0x249   :  { %33123 = vst [vmem:[#allocation130_spill] sm:$0xff] %v29680_v38  ;;  %22759 = vmatmul.mubr.msk.f32.gmra.mrb[220].mxu1 %vm6249_vm4, %v29670_v34  ;;  %v6662_v60 = vmax.f32 %v33128_v16, %v6661_v27  ;;  %v33129_v13 = vld [vmem:[#allocation83_spill] sm:$0xff]  ;;  %v6710_v45 = vsel %vm6249_vm4, %v22607_v29, -inf  ;;  %v6752_v11 = vsel %vm6249_vm4, %v22620_v6, -inf  ;;  %v5910_v5 = vpop.f32.mrb[183].mxu1  ;;  %v33131_v16 = vld [vmem:[#allocation85_spill] sm:$0xff] }
 0x24a   :  { %33125 = vst [vmem:[#allocation25_spill] sm:$0xff] %v29689_v20  ;;  %22749 = vmatmul.mubr.msk.f32.gmra.mrb[220].mxu0 %vm6249_vm4, %v29661_v58  ;;  %v29698_v12 = vmax.f32 %v7013_v2, 0.0  ;;  %22761 = vmatprep.mubr.msk.f32.mxu1 %vm6249_vm4, %v29680_v38  ;;  %v7020_v36 = vadd.f32 %v29233_v1, %v6697_v59  ;;  %v6690_v40 = vmax.f32 %v33129_v13, %v6689_v0  ;;  %v5785_v2 = vpop.f32.mrb[183].mxu0  ;;  %v29709_v58 = vmax.f32 %v7014_v49, 0.0  ;;  %v33132_v34 = vld [vmem:[#allocation86_spill] sm:$0xff]  ;;  %v33135_v13 = vld [vmem:[#allocation84_spill] sm:$0xff] }
 0x24b   :  { %22771 = vmatprep.mubr.msk.f32.mxu0 %vm6249_vm4, %v29689_v20  ;;  %v7015_v27 = vadd.f32 %v29233_v1, %v6662_v60  ;;  %v6711_v38 = vmax.f32 %v33131_v16, %v6710_v45  ;;  %v6753_v17 = vmax.f32 %v33132_v34, %v6752_v11  ;;  %v6703_v0 = vsel %vm6249_vm4, %v5785_v2, -inf  ;;  %v22610_v34 = vpop.f32.mrb[184].mxu0  ;;  %v33218_v39 = vld [vmem:[#allocation123_spill] sm:$0xff] }
 0x24c   :  { %33127 = vst [vmem:[#allocation131_spill] sm:$0xff] %v29698_v12  ;;  %33130 = vst [vmem:[#allocation24_spill] sm:$0xff] %v29709_v58  ;;  %v7019_v59 = vadd.f32 %v29233_v1, %v6690_v40  ;;  %v29717_v29 = vsel %vm6249_vm4, %v5910_v5, -inf  ;;  %v29721_v6 = vmax.f32 %v7020_v36, 0.0  ;;  %v6704_v45 = vmax.f32 %v33135_v13, %v6703_v0  ;;  %v22623_v11 = vpop.f32.mrb[184].mxu1  ;;  %v33136_v5 = vld [vmem:[#allocation87_spill] sm:$0xff] }
 0x24d   :  { %22762 = vmatmul.mubr.msk.f32.gmra.mrb[222].mxu1 %vm6249_vm4, %v29698_v12  ;;  %v29723_v49 = vmax.f32 %v7015_v27, 0.0  ;;  %v7028_v60 = vadd.f32 %v29233_v1, %v6753_v17  ;;  %v6724_v16 = vsel %vm6249_vm4, %v22610_v34, -inf  ;;  %v6766_v36 = vsel %vm6249_vm4, %v22623_v11, -inf  ;;  %v5795_v27 = vpop.f32.mrb[185].mxu0  ;;  %v5920_v12 = vpop.f32.mrb[185].mxu1  ;;  %v33138_v13 = vld [vmem:[#allocation89_spill] sm:$0xff] }
 0x24e   :  { %33133 = vst [vmem:[#allocation132_spill] sm:$0xff] %v29721_v6  ;;  %22764 = vmatprep.mubr.msk.f32.mxu1 %vm6249_vm4, %v29709_v58  ;;  %v29729_v40 = vmax.f32 %v7019_v59, 0.0  ;;  %v7022_v17 = vadd.f32 %v29233_v1, %v6711_v38  ;;  %v7021_v0 = vadd.f32 %v29233_v1, %v6704_v45  ;;  %v6725_v58 = vmax.f32 %v33138_v13, %v6724_v16  ;;  %v33142_v11 = vld [vmem:[#allocation91_spill] sm:$0xff] }
 0x24f   :  { %33134 = vst [vmem:[#allocation27_spill] sm:$0xff] %v29723_v49  ;;  %v29736_v20 = vmax.f32 %v7028_v60, 0.0  ;;  %v6767_v59 = vmax.f32 %v33139_v30, %v6766_v36  ;;  %v6717_v14 = vsel %vm6249_vm4, %v5795_v27, -inf  ;;  %v6759_v2 = vsel %vm6249_vm4, %v5920_v12, -inf  ;;  %v33141_v60 = vld [vmem:[#allocation88_spill] sm:$0xff]  ;;  %v22613_v30 = vpop.f32.mrb[186].mxu0 }
 0x250   :  { %22772 = vmatmul.mubr.msk.f32.vlgmr.msra.gmra.mrb[222].mxu0 %vm6249_vm4, %v29729_v40  ;;  %v29747_v34 = vmax.f32 %v7021_v0, 0.0  ;;  %v7024_v38 = vadd.f32 %v29233_v1, %v6725_v58  ;;  %v6718_v45 = vmax.f32 %v33141_v60, %v6717_v14  ;;  %v6760_v16 = vmax.f32 %v33142_v11, %v6759_v2  ;;  %v22626_v36 = vpop.f32.mrb[186].mxu1  ;;  %v5805_v58 = vpop.f32.mrb[187].mxu0 }
 0x251   :  { %33137 = vst [vmem:[#allocation133_spill] sm:$0xff] %v29736_v20  ;;  %22765 = vmatmul.mubr.msk.f32.gmra.mrb[224].mxu1 %vm6249_vm4, %v29723_v49  ;;  %22774 = vmatprep.mubr.msk.f32.mxu0 %vm6249_vm4, %v29721_v6  ;;  %v7030_v12 = vadd.f32 %v29233_v1, %v6767_v59  ;;  %v29758_v27 = vsel %vm6249_vm4, %v22613_v30, -inf  ;;  %v6780_v0 = vsel %vm6249_vm4, %v22626_v36, -inf  ;;  %v5930_v13 = vpop.f32.mrb[187].mxu1  ;;  %v29764_v14 = vmax.f32 %v7022_v17, 0.0  ;;  %v33146_v36 = vld [vmem:[#allocation94_spill] sm:$0xff] }
 0x252   :  { %33140 = vst [vmem:[#allocation26_spill] sm:$0xff] %v29747_v34  ;;  %22787 = vmatprep.mubr.msk.f32.mxu1 %vm6249_vm4, %v29736_v20  ;;  %33143 = vst [vmem:[#allocation134_spill] sm:$0xff] %v29758_v27  ;;  %24439 = vmatpush3.bf16.msk.msra.mxu0 %vm28386_vm6, %v29562_v55  ;;  %v7023_v2 = vadd.f32 %v29233_v1, %v6718_v45  ;;  %v7029_v60 = vadd.f32 %v29233_v1, %v6760_v16  ;;  %v6731_v17 = vsel %vm6249_vm4, %v5805_v58, -inf  ;;  %v33152_v58 = vld [vmem:[#allocation95_spill] sm:$0xff] }
 0x253   :  { %33144 = vst [vmem:[#allocation29_spill] sm:$0xff] %v29764_v14  ;;  %24448 = vmatprep.subr.msk.bf16.mxu0 %vm28386_vm6, %v29562_v55  ;;  %v33145_v11 = vmax.f32 %v33064_v19, %v29243_v18  ;;  %v6781_v49 = vmax.f32 %v33146_v36, %v6780_v0  ;;  %v6773_v45 = vsel %vm6249_vm4, %v5930_v13, -inf  ;;  %v29782_v16 = vmax.f32 %v7024_v38, 0.0 }
 0x254   :  { %22775 = vmatmul.mubr.msk.f32.gmra.mrb[224].mxu0 %vm6249_vm4, %v29747_v34  ;;  %v29784_v59 = vmax.f32 %v7023_v2, 0.0  ;;  %v29786_v27 = vmax.f32 %v7029_v60, 0.0  ;;  %v6732_v20 = vmax.f32 %v33150_v33, %v6731_v17  ;;  %v22629_v19 = vpop.f32.mrb[188].mxu1  ;;  %v29791_v0 = vmax.f32 %v7030_v12, 0.0  ;;  %v33154_v17 = vld [vmem:[#allocation96_spill] sm:$0xff] }
 0x255   :  { %v6957_v30 = vadd.f32 %v29233_v1, %v33145_v11  ;;  %33147 = vst [vmem:[#allocation135_spill] sm:$0xff] %v29782_v16  ;;  %22777 = vmatprep.mubr.msk.f32.mxu0 %vm6249_vm4, %v29764_v14  ;;  %v22639_v18 = vpop.f32.mrb[188].mxu0  ;;  %v6774_v13 = vmax.f32 %v33152_v58, %v6773_v45  ;;  %v6794_v11 = vsel %vm6249_vm4, %v22629_v19, -inf  ;;  %v5940_v2 = vpop.f32.mrb[189].mxu1  ;;  %v7032_v60 = vadd.f32 %v29233_v1, %v6781_v49 }
 0x256   :  { %33148 = vst [vmem:[#allocation28_spill] sm:$0xff] %v29784_v59  ;;  %33149 = vst [vmem:[#allocation136_spill] sm:$0xff] %v29786_v27  ;;  %v29796_v38 = vsel %vm6249_vm4, %v22639_v18, -inf  ;;  %v6055_v36 = vpop.f32.mrb[189].mxu0  ;;  %v7025_v33 = vadd.f32 %v29233_v1, %v6732_v20  ;;  %v6795_v34 = vmax.f32 %v33154_v17, %v6794_v11  ;;  %22788 = vmatmul.mubr.msk.f32.vlgmr.msra.gmra.mrb[226].mxu1 %vm6249_vm4, %v29786_v27  ;;  %v6787_v45 = vsel %vm6249_vm4, %v5940_v2, -inf  ;;  %v33158_v18 = vld [vmem:[#allocation97_spill] sm:$0xff] }
 0x257   :  { %33151 = vst [vmem:[#allocation30_spill] sm:$0xff] %v29791_v0  ;;  %33153 = vst [vmem:[#allocation137_spill] sm:$0xff] %v29796_v38  ;;  %v7031_v12 = vadd.f32 %v29233_v1, %v6774_v13  ;;  %v29808_v19 = vsel %vm6249_vm4, %v6055_v36, -inf  ;;  %22790 = vmatprep.mubr.msk.f32.mxu1 %vm6249_vm4, %v29791_v0  ;;  %v7057_v20 = vmax.f32 %v6957_v30, 0.0  ;;  %v6788_v58 = vmax.f32 %v33158_v18, %v6787_v45 }
 0x258   :  { %33156 = vst [vmem:[#allocation32_spill] sm:$0xff] %v29808_v19  ;;  %22778 = vmatmul.mubr.msk.f32.gmra.mrb[226].mxu0 %vm6249_vm4, %v29784_v59  ;;  %v29814_v49 = vmax.f32 %v7025_v33, 0.0  ;;  %24445 = vmatpush3.bf16.msk.msra.mxu1 %vm28386_vm6, %v29562_v55  ;;  %v22632_v13 = vpop.f32.mrb[190].mxu1  ;;  %v29835_v6 = vmax.f32 %v7032_v60, 0.0  ;;  %v33168_v60 = vld [vmem:[#allocation102_spill] sm:$0xff] }
 0x259   :  { %22780 = vmatprep.mubr.msk.f32.mxu0 %vm6249_vm4, %v29782_v16  ;;  %v22642_v11 = vpop.f32.mrb[190].mxu0  ;;  %v29822_v2 = vmax.f32 %v7031_v12, 0.0  ;;  %v29827_v30 = vsel %vm6249_vm4, %v22632_v13, -inf  ;;  %v5950_v45 = vpop.f32.mrb[191].mxu1  ;;  %24454 = vmatprep.subr.msk.bf16.mxu1 %vm28386_vm6, %v29562_v55  ;;  %v7034_v12 = vadd.f32 %v29233_v1, %v6795_v34  ;;  %v7033_v38 = vadd.f32 %v29233_v1, %v6788_v58 }
 0x25a   :  { %33157 = vst [vmem:[#allocation139_spill] sm:$0xff] %v29814_v49  ;;  %33161 = vst [vmem:[#allocation140_spill] sm:$0xff] %v29827_v30  ;;  %v29830_v33 = vsel %vm6249_vm4, %v22642_v11, -inf  ;;  %v6065_v18 = vpop.f32.mrb[191].mxu0  ;;  %v6801_v11 = vsel %vm6249_vm4, %v5950_v45, -inf }
 0x25b   :  { %33159 = vst [vmem:[#allocation33_spill] sm:$0xff] %v29822_v2  ;;  %33162 = vst [vmem:[#allocation37_spill] sm:$0xff] %v29830_v33  ;;  %v29845_v36 = vsel %vm6249_vm4, %v6065_v18, -inf  ;;  %22791 = vmatmul.mubr.msk.f32.gmra.mrb[228].mxu1 %vm6249_vm4, %v29822_v2  ;;  %v29851_v34 = vmax.f32 %v7033_v38, 0.0  ;;  %v6802_v58 = vmax.f32 %v33168_v60, %v6801_v11  ;;  %v33172_v11 = vmax.f32 %v28698_v37, %v29283_v3  ;;  %v33236_v3 = vld [vmem:[#allocation131_spill] sm:$0xff] }
 0x25c   :  { %33163 = vst [vmem:[#allocation34_spill] sm:$0xff] %v29835_v6  ;;  %33166 = vst [vmem:[#allocation141_spill] sm:$0xff] %v29845_v36  ;;  %22781 = vmatmul.mubr.msk.f32.gmra.mrb[228].mxu0 %vm6249_vm4, %v29814_v49  ;;  %22793 = vmatprep.mubr.msk.f32.mxu1 %vm6249_vm4, %v29835_v6  ;;  %v29871_v30 = vmax.f32 %v7034_v12, 0.0  ;;  %v33178_v37 = vmax.f32 %v29253_v63, 0.0  ;;  %v29944_v12 = vld [vmem:[%s32148_s2] ss:$0 sm:$0xff] }
 0x25d   :  { %33167 = vst [vmem:[#allocation35_spill] sm:$0xff] %v29851_v34  ;;  %22803 = vmatprep.mubr.msk.f32.mxu0 %vm6249_vm4, %v7057_v20  ;;  %v22645_v45 = vpop.f32.mrb[192].mxu0  ;;  %v22658_v18 = vpop.f32.mrb[192].mxu1  ;;  %v29869_v60 = vadd.f32 %v29233_v1, %v33172_v11  ;;  %v7035_v20 = vadd.f32 %v29233_v1, %v6802_v58  ;;  %v33234_v36 = vld [vmem:[#allocation130_spill] sm:$0xff] }
 0x25e   :  { %v29860_v19 = vsel %vm6249_vm4, %v22645_v45, -inf  ;;  %v29863_v33 = vsel %vm6249_vm4, %v22658_v18, -inf  ;;  %v6075_v38 = vpop.f32.mrb[193].mxu0  ;;  %v6200_v13 = vpop.f32.mrb[193].mxu1  ;;  %33173 = vst [vmem:[#allocation143_spill] sm:$0xff] %v29871_v30  ;;  %v33226_v45 = vld [vmem:[#allocation124_spill] sm:$0xff] }
 0x25f   :  { %33170 = vst [vmem:[#allocation142_spill] sm:$0xff] %v29860_v19  ;;  %33171 = vst [vmem:[#allocation36_spill] sm:$0xff] %v29863_v33  ;;  %v29879_v18 = vsel %vm6249_vm4, %v6075_v38, -inf  ;;  %v29882_v49 = vsel %vm6249_vm4, %v6200_v13, -inf  ;;  %22794 = vmatmul.mubr.msk.f32.gmra.mrb[230].mxu1 %vm6249_vm4, %v29851_v34  ;;  %v29889_v1 = vmax.f32 %v7035_v20, 0.0  ;;  %v33189_v11 = vmax.f32 %v29869_v60, 0.0 }
 0x260   :  { %33176 = vst [vmem:[#allocation39_spill] sm:$0xff] %v29879_v18  ;;  %33177 = vst [vmem:[#allocation144_spill] sm:$0xff] %v29882_v49  ;;  %22804 = vmatmul.mubr.msk.f32.vlgmr.msra.gmra.mrb[198].mxu0 %vm6249_vm4, %v33178_v37  ;;  %22796 = vmatprep.mubr.msk.f32.mxu1 %vm6249_vm4, %v29871_v30  ;;  %v33235_v18 = vld [vmem:[#allocation25_spill] sm:$0xff] }
 0x261   :  { %33179 = vst [vmem:[#allocation38_spill] sm:$0xff] %v29889_v1  ;;  %22806 = vmatprep.mubr.msk.f32.mxu0 %vm6249_vm4, %v29287_v51  ;;  %24451 = vmatpush3.bf16.msk.msra.mxu0 %vm28386_vm6, %v29562_v55 }
 0x262   :  { %v22648_v13 = vpop.f32.mrb[194].mxu0  ;;  %v22661_v58 = vpop.f32.mrb[194].mxu1  ;;  %24460 = vmatprep.subr.msk.bf16.mxu0 %vm28386_vm6, %v29562_v55 }
 0x263   :  { %v29900_v63 = vsel %vm6249_vm4, %v22648_v13, -inf  ;;  %v29903_v20 = vsel %vm6249_vm4, %v22661_v58, -inf  ;;  %v6085_v37 = vpop.f32.mrb[195].mxu0  ;;  %v6210_v17 = vpop.f32.mrb[195].mxu1  ;;  %22797 = vmatmul.mubr.msk.f32.gmra.mrb[232].mxu1 %vm6249_vm4, %v29889_v1 }
 0x264   :  { %33182 = vst [vmem:[#allocation145_spill] sm:$0xff] %v29900_v63  ;;  %33183 = vst [vmem:[#allocation41_spill] sm:$0xff] %v29903_v20  ;;  %v29917_v13 = vsel %vm6249_vm4, %v6085_v37, -inf  ;;  %v29920_v58 = vsel %vm6249_vm4, %v6210_v17, -inf  ;;  %22807 = vmatmul.mubr.msk.f32.gmra.mrb[200].mxu0 %vm6249_vm4, %v29285_v41  ;;  %22819 = vmatprep.mubr.msk.f32.mxu1 %vm6249_vm4, %v33189_v11  ;;  %v33193_v11 = vmax.f32 %v28770_v50, %v29363_v22  ;;  %v33228_v50 = vld [vmem:[#allocation127_spill] sm:$0xff] }
 0x265   :  { %33186 = vst [vmem:[#allocation146_spill] sm:$0xff] %v29917_v13  ;;  %33187 = vst [vmem:[#allocation40_spill] sm:$0xff] %v29920_v58  ;;  %22809 = vmatprep.mubr.msk.f32.mxu0 %vm6249_vm4, %v29310_v62  ;;  %v33206_v22 = vmax.f32 %v28818_v10, %v29423_v47  ;;  %v33209_v47 = vmax.f32 %v28890_v9, %v29505_v28  ;;  %v19928_v9 = vld [vmem:[%s32149_s3 + $0x20] sm:$0xff]  ;;  %v19929_v28 = vld [vmem:[%s32149_s3 + $0x28] sm:$0x3] }
 0x266   :  { %v6977_v13 = vadd.f32 %v29944_v12, %v33193_v11 }
 0x267   :  { %22820 = vmatmul.mubr.msk.f32.vlgmr.msra.gmra.mrb[202].mxu1 %vm6249_vm4, %v29296_v24 }
 0x268   :  { %22810 = vmatmul.mubr.msk.f32.gmra.mrb[202].mxu0 %vm6249_vm4, %v29320_v8  ;;  %22822 = vmatprep.mubr.msk.f32.mxu1 %vm6249_vm4, %v29344_v32 }
 0x269   :  { %v22651_v37 = vpop.f32.mrb[196].mxu0  ;;  %v22664_v20 = vpop.f32.mrb[196].mxu1  ;;  %22812 = vmatprep.mubr.msk.f32.mxu0 %vm6249_vm4, %v29342_v53  ;;  %24457 = vmatpush3.bf16.msk.msra.mxu1 %vm28386_vm6, %v29562_v55 }
 0x26a   :  { %v29936_v49 = vsel %vm6249_vm4, %v22651_v37, -inf  ;;  %v29939_v38 = vsel %vm6249_vm4, %v22664_v20, -inf  ;;  %v6095_v63 = vpop.f32.mrb[197].mxu0  ;;  %v6220_v14 = vpop.f32.mrb[197].mxu1  ;;  %24466 = vmatprep.subr.msk.bf16.mxu1 %vm28386_vm6, %v29562_v55 }
 0x26b   :  { %33191 = vst [vmem:[#allocation147_spill] sm:$0xff] %v29936_v49  ;;  %33192 = vst [vmem:[#allocation43_spill] sm:$0xff] %v29939_v38  ;;  %v29955_v20 = vsel %vm6249_vm4, %v6095_v63, -inf  ;;  %v29958_v33 = vsel %vm6249_vm4, %v6220_v14, -inf  ;;  %v29978_v38 = vmax.f32 %v6977_v13, 0.0  ;;  %22823 = vmatmul.mubr.msk.f32.gmra.mrb[204].mxu1 %vm6249_vm4, %v29340_v7  ;;  %v33225_v49 = vld [vmem:[#allocation125_spill] sm:$0xff] }
 0x26c   :  { %33196 = vst [vmem:[#allocation148_spill] sm:$0xff] %v29955_v20  ;;  %33197 = vst [vmem:[#allocation42_spill] sm:$0xff] %v29958_v33  ;;  %22813 = vmatmul.mubr.msk.f32.gmra.mrb[204].mxu0 %vm6249_vm4, %v29333_v25  ;;  %22825 = vmatprep.mubr.msk.f32.mxu1 %vm6249_vm4, %v29377_v26  ;;  %v6987_v33 = vadd.f32 %v29944_v12, %v33206_v22  ;;  %v33211_v22 = vld [vmem:[#allocation13_spill] sm:$0xff] }
 0x26d   :  { %v22667_v14 = vpop.f32.mrb[198].mxu1  ;;  %33201 = vst [vmem:[#allocation45_spill] sm:$0xff] %v29978_v38  ;;  %22835 = vmatprep.mubr.msk.f32.mxu0 %vm6249_vm4, %v29978_v38  ;;  %v33227_v20 = vld [vmem:[#allocation21_spill] sm:$0xff] }
 0x26e   :  { %v29976_v63 = vsel %vm6249_vm4, %v22667_v14, -inf  ;;  %v6230_v17 = vpop.f32.mrb[199].mxu1  ;;  %v30023_v10 = vmax.f32 %v6987_v33, 0.0  ;;  %v6997_v33 = vadd.f32 %v29944_v12, %v33209_v47  ;;  %v33213_v47 = vld [vmem:[#allocation122_spill] sm:$0xff] }
 0x26f   :  { %33200 = vst [vmem:[#allocation149_spill] sm:$0xff] %v29976_v63  ;;  %v29986_v37 = vsel %vm6249_vm4, %v6230_v17, -inf  ;;  %22826 = vmatmul.mubr.msk.f32.gmra.mrb[206].mxu1 %vm6249_vm4, %v29369_v57 }
 0x270   :  { %33203 = vst [vmem:[#allocation150_spill] sm:$0xff] %v29986_v37  ;;  %22836 = vmatmul.mubr.msk.f32.vlgmr.msra.gmra.mrb[206].mxu0 %vm6249_vm4, %v29389_v46  ;;  %22828 = vmatprep.mubr.msk.f32.mxu1 %vm6249_vm4, %v29402_v48  ;;  %33208 = vst [vmem:[#allocation47_spill] sm:$0xff] %v30023_v10  ;;  %v30074_v37 = vpack.c.bf16 %v19929_v28, %v19928_v9  ;;  %v33220_v9 = vld [vmem:[#allocation15_spill] sm:$0xff]  ;;  %v33221_v28 = vld [vmem:[#allocation17_spill] sm:$0xff] }
 0x271   :  { %v22670_v58 = vpop.f32.mrb[200].mxu1  ;;  %22838 = vmatprep.mubr.msk.f32.mxu0 %vm6249_vm4, %v29429_v52  ;;  %24463 = vmatpush3.bf16.msk.msra.mxu0 %vm28386_vm6, %v29562_v55 }
 0x272   :  { %v29999_v63 = vsel %vm6249_vm4, %v22670_v58, -inf  ;;  %v6240_v17 = vpop.f32.mrb[201].mxu1  ;;  %24472 = vmatprep.subr.msk.bf16.mxu0 %vm28386_vm6, %v29562_v55  ;;  %v30051_v58 = vmax.f32 %v6997_v33, 0.0 }
 0x273   :  { %33205 = vst [vmem:[#allocation44_spill] sm:$0xff] %v29999_v63  ;;  %v30008_v13 = vsel %vm6249_vm4, %v6240_v17, -inf  ;;  %22829 = vmatmul.mubr.msk.f32.gmra.mrb[208].mxu1 %vm6249_vm4, %v29413_v35  ;;  %v33212_v17 = vld [vmem:[#allocation67_spill] sm:$0xff]  ;;  %v33215_v63 = vld [vmem:[#allocation12_spill] sm:$0xff] }
 0x274   :  { %33207 = vst [vmem:[#allocation151_spill] sm:$0xff] %v30008_v13  ;;  %22839 = vmatmul.mubr.msk.f32.gmra.mrb[208].mxu0 %vm6249_vm4, %v29418_v31  ;;  %22851 = vmatprep.mubr.msk.f32.mxu1 %vm6249_vm4, %v30023_v10  ;;  %33210 = vst [vmem:[#allocation152_spill] sm:$0xff] %v30051_v58  ;;  %v33214_v33 = vmax.f32 %v33212_v17, %v33213_v47  ;;  %v33217_v13 = vld [vmem:[#allocation121_spill] sm:$0xff]  ;;  %v33222_v47 = vld [vmem:[#allocation19_spill] sm:$0xff] }
 0x275   :  { %22841 = vmatprep.mubr.msk.f32.mxu0 %vm6249_vm4, %v29453_v44 }
 0x276   :  { %v7007_v11 = vadd.f32 %v29944_v12, %v33214_v33  ;;  %v33223_v33 = vld [vmem:[#allocation128_spill] sm:$0xff] }
 0x277   :  { %22852 = vmatmul.mubr.msk.f32.vlgmr.msra.gmra.mrb[210].mxu1 %vm6249_vm4, %v29445_v42 }
 0x278   :  { %22842 = vmatmul.mubr.msk.f32.gmra.mrb[210].mxu0 %vm6249_vm4, %v29460_v15  ;;  %22854 = vmatprep.mubr.msk.f32.mxu1 %vm6249_vm4, %v29490_v56  ;;  %v30087_v17 = vmax.f32 %v7007_v11, 0.0  ;;  %v33224_v11 = vmax.f32 %v33120_v4, %v33223_v33  ;;  %v33230_v4 = vld [vmem:[#allocation126_spill] sm:$0xff]  ;;  %v33231_v33 = vld [vmem:[#allocation20_spill] sm:$0xff] }
 0x279   :  { %22844 = vmatprep.mubr.msk.f32.mxu0 %vm6249_vm4, %v29486_v61  ;;  %24469 = vmatpush3.bf16.msk.msra.mxu1 %vm28386_vm6, %v29562_v55 }
 0x27a   :  { %24478 = vmatprep.subr.msk.bf16.mxu1 %vm28386_vm6, %v29562_v55  ;;  %33219 = vst [vmem:[#allocation46_spill] sm:$0xff] %v30087_v17  ;;  %v7017_v14 = vadd.f32 %v29944_v12, %v33224_v11  ;;  %v33232_v11 = vld [vmem:[#allocation129_spill] sm:$0xff] }
 0x27b   :  { %22855 = vmatmul.mubr.msk.f32.gmra.mrb[212].mxu1 %vm6249_vm4, %v29495_v54 }
 0x27c   :  { %22845 = vmatmul.mubr.msk.f32.gmra.mrb[212].mxu0 %vm6249_vm4, %v29484_v23  ;;  %22857 = vmatprep.mubr.msk.f32.mxu1 %vm6249_vm4, %v33211_v22  ;;  %v30115_v19 = vmax.f32 %v7017_v14, 0.0 }
 0x27d   :  { %22867 = vmatprep.mubr.msk.f32.mxu0 %vm6249_vm4, %v30051_v58 }
 0x27e   :  { %33229 = vst [vmem:[#allocation153_spill] sm:$0xff] %v30115_v19 }
 0x27f   :  { %22858 = vmatmul.mubr.msk.f32.gmra.mrb[214].mxu1 %vm6249_vm4, %v33215_v63 }
 0x280   :  { %22868 = vmatmul.mubr.msk.f32.vlgmr.msra.gmra.mrb[214].mxu0 %vm6249_vm4, %v33216_v43  ;;  %22860 = vmatprep.mubr.msk.f32.mxu1 %vm6249_vm4, %v33217_v13 }
 0x281   :  { %22870 = vmatprep.mubr.msk.f32.mxu0 %vm6249_vm4, %v33218_v39  ;;  %24475 = vmatpush3.bf16.msk.msra.mxu0 %vm28386_vm6, %v29562_v55 }
 0x282   :  { %24484 = vmatprep.subr.msk.bf16.mxu0 %vm28386_vm6, %v30074_v37 }
 0x283   :  { %22861 = vmatmul.mubr.msk.f32.gmra.mrb[216].mxu1 %vm6249_vm4, %v33220_v9 }
 0x284   :  { %22871 = vmatmul.mubr.msk.f32.gmra.mrb[216].mxu0 %vm6249_vm4, %v33221_v28  ;;  %22883 = vmatprep.mubr.msk.f32.mxu1 %vm6249_vm4, %v30087_v17 }
 0x285   :  { %22873 = vmatprep.mubr.msk.f32.mxu0 %vm6249_vm4, %v33222_v47 }
 0x287   :  { %22884 = vmatmul.mubr.msk.f32.vlgmr.msra.gmra.mrb[218].mxu1 %vm6249_vm4, %v33226_v45 }
 0x288   :  { %22874 = vmatmul.mubr.msk.f32.gmra.mrb[218].mxu0 %vm6249_vm4, %v33225_v49  ;;  %22886 = vmatprep.mubr.msk.f32.mxu1 %vm6249_vm4, %v33228_v50 }
 0x289   :  { %22876 = vmatprep.mubr.msk.f32.mxu0 %vm6249_vm4, %v33227_v20  ;;  %24481 = vmatpush3.bf16.msk.msra.mxu1 %vm28386_vm6, %v29562_v55  ;;  %v33233_v55 = vmax.f32 %v33136_v5, %v29717_v29  ;;  %v33238_v29 = vld [vmem:[#allocation24_spill] sm:$0xff] }
 0x28a   :  { %24490 = vmatprep.subr.msk.bf16.mxu1 %vm28386_vm6, %v30074_v37  ;;  %v33239_v5 = vld [vmem:[#allocation132_spill] sm:$0xff] }
 0x28b   :  { %22887 = vmatmul.mubr.msk.f32.gmra.mrb[220].mxu1 %vm6249_vm4, %v33231_v33  ;;  %v7027_v14 = vadd.f32 %v29944_v12, %v33233_v55  ;;  %v33240_v55 = vld [vmem:[#allocation26_spill] sm:$0xff] }
 0x28c   :  { %22877 = vmatmul.mubr.msk.f32.gmra.mrb[220].mxu0 %vm6249_vm4, %v33230_v4  ;;  %22889 = vmatprep.mubr.msk.f32.mxu1 %vm6249_vm4, %v33232_v11 }
 0x28d   :  { %22899 = vmatprep.mubr.msk.f32.mxu0 %vm6249_vm4, %v30115_v19  ;;  %v30143_v19 = vmax.f32 %v7027_v14, 0.0  ;;  %v33242_v14 = vld [vmem:[#allocation133_spill] sm:$0xff] }
 0x28f   :  { %22890 = vmatmul.mubr.msk.f32.gmra.mrb[222].mxu1 %vm6249_vm4, %v33234_v36  ;;  %33237 = vst [vmem:[#allocation49_spill] sm:$0xff] %v30143_v19 }
 0x290   :  { %22900 = vmatmul.mubr.msk.f32.vlgmr.msra.gmra.mrb[222].mxu0 %vm6249_vm4, %v33235_v18  ;;  %22892 = vmatprep.mubr.msk.f32.mxu1 %vm6249_vm4, %v33236_v3  ;;  %v33241_v18 = vld [vmem:[#allocation29_spill] sm:$0xff] }
 0x291   :  { %22902 = vmatprep.mubr.msk.f32.mxu0 %vm6249_vm4, %v29729_v40  ;;  %24487 = vmatpush3.bf16.msk.msra.mxu0 %vm28386_vm6, %v30074_v37 }
 0x292   :  { %24496 = vmatprep.subr.msk.bf16.mxu0 %vm28386_vm6, %v30074_v37 }
 0x293   :  { %22893 = vmatmul.mubr.msk.f32.gmra.mrb[224].mxu1 %vm6249_vm4, %v33238_v29 }
 0x294   :  { %22903 = vmatmul.mubr.msk.f32.gmra.mrb[224].mxu0 %vm6249_vm4, %v33239_v5  ;;  %22915 = vmatprep.mubr.msk.f32.mxu1 %vm6249_vm4, %v30143_v19  ;;  %v33246_v19 = vld [vmem:[#allocation116_spill] sm:$0xff] }
 0x295   :  { %22905 = vmatprep.mubr.msk.f32.mxu0 %vm6249_vm4, %v33240_v55  ;;  %v33247_v45 = vmax.f32 %v33246_v19, 0.0 }
 0x297   :  { %22916 = vmatmul.mubr.msk.f32.vlgmr.msra.gmra.mrb[226].mxu1 %vm6249_vm4, %v33242_v14 }
 0x298   :  { %22906 = vmatmul.mubr.msk.f32.gmra.mrb[226].mxu0 %vm6249_vm4, %v33241_v18  ;;  %22918 = vmatprep.mubr.msk.f32.mxu1 %vm6249_vm4, %v29786_v27 }
 0x299   :  { %22908 = vmatprep.mubr.msk.f32.mxu0 %vm6249_vm4, %v29784_v59  ;;  %24493 = vmatpush3.bf16.msk.msra.mxu1 %vm28386_vm6, %v30074_v37 }
 0x29a   :  { %24502 = vmatprep.subr.msk.bf16.mxu1 %vm28386_vm6, %v30074_v37 }
 0x29b   :  { %22919 = vmatmul.mubr.msk.f32.gmra.mrb[228].mxu1 %vm6249_vm4, %v29791_v0 }
 0x29c   :  { %22909 = vmatmul.mubr.msk.f32.gmra.mrb[228].mxu0 %vm6249_vm4, %v29782_v16  ;;  %22921 = vmatprep.mubr.msk.f32.mxu1 %vm6249_vm4, %v29822_v2 }
 0x29d   :  { %22931 = vmatprep.mubr.msk.f32.mxu0 %vm6249_vm4, %v29287_v51  ;;  %v33244_v51 = vld [vmem:[#allocation8_spill] sm:$0xff] }
 0x29f   :  { %22922 = vmatmul.mubr.msk.f32.gmra.mrb[230].mxu1 %vm6249_vm4, %v29835_v6 }
 0x2a0   :  { %22932 = vmatmul.mubr.msk.f32.vlgmr.msra.gmra.mrb[198].mxu0 %vm6249_vm4, %v29285_v41  ;;  %22924 = vmatprep.mubr.msk.f32.mxu1 %vm6249_vm4, %v29851_v34  ;;  %v33243_v41 = vld [vmem:[#allocation58_spill] sm:$0xff] }
 0x2a1   :  { %22934 = vmatprep.mubr.msk.f32.mxu0 %vm6249_vm4, %v29310_v62  ;;  %24499 = vmatpush3.bf16.msk.msra.mxu0 %vm28386_vm6, %v30074_v37  ;;  %v33245_v62 = vmax.f32 %v33243_v41, %v33244_v51  ;;  %v33253_v51 = vld [vmem:[#allocation61_spill] sm:$0xff] }
 0x2a2   :  { %24508 = vmatprep.subr.msk.bf16.mxu0 %vm28386_vm6, %v30074_v37 }
 0x2a3   :  { %22925 = vmatmul.mubr.msk.f32.gmra.mrb[232].mxu1 %vm6249_vm4, %v29871_v30  ;;  %v6966_v14 = vadd.f32 %v29944_v12, %v33245_v62  ;;  %v33254_v62 = vld [vmem:[#allocation118_spill] sm:$0xff] }
 0x2a4   :  { %22935 = vmatmul.mubr.msk.f32.gmra.mrb[200].mxu0 %vm6249_vm4, %v29320_v8  ;;  %22947 = vmatprep.mubr.msk.f32.mxu1 %vm6249_vm4, %v29344_v32 }
 0x2a5   :  { %22937 = vmatprep.mubr.msk.f32.mxu0 %vm6249_vm4, %v29342_v53  ;;  %v7066_v8 = vmax.f32 %v6966_v14, 0.0  ;;  %v33249_v53 = vld [vmem:[#allocation10_spill] sm:$0xff]  ;;  %v33252_v14 = vld [vmem:[#allocation117_spill] sm:$0xff] }
 0x2a7   :  { %22948 = vmatmul.mubr.msk.f32.vlgmr.msra.gmra.mrb[202].mxu1 %vm6249_vm4, %v29340_v7 }
 0x2a8   :  { %22938 = vmatmul.mubr.msk.f32.gmra.mrb[202].mxu0 %vm6249_vm4, %v29333_v25  ;;  %22950 = vmatprep.mubr.msk.f32.mxu1 %vm6249_vm4, %v29377_v26  ;;  %v33248_v25 = vld [vmem:[#allocation59_spill] sm:$0xff] }
 0x2a9   :  { %22940 = vmatprep.mubr.msk.f32.mxu0 %vm6249_vm4, %v33247_v45  ;;  %24505 = vmatpush3.bf16.msk.msra.mxu1 %vm28386_vm6, %v30074_v37  ;;  %v33250_v19 = vmax.f32 %v33248_v25, %v33249_v53  ;;  %v33256_v53 = vld [vmem:[#allocation119_spill] sm:$0xff] }
 0x2aa   :  { %24514 = vmatprep.subr.msk.bf16.mxu1 %vm28386_vm6, %v30074_v37 }
 0x2ab   :  { %22951 = vmatmul.mubr.msk.f32.gmra.mrb[204].mxu1 %vm6249_vm4, %v29369_v57  ;;  %v30230_v45 = vadd.f32 %v29944_v12, %v33250_v19 }
 0x2ac   :  { %22941 = vmatmul.mubr.msk.f32.gmra.mrb[204].mxu0 %vm6249_vm4, %v7066_v8  ;;  %22953 = vmatprep.mubr.msk.f32.mxu1 %vm6249_vm4, %v29402_v48  ;;  %v33255_v8 = vmax.f32 %v33253_v51, %v33254_v62  ;;  %v20002_v51 = vld [vmem:[%s32149_s3 + $0x30] sm:$0xff]  ;;  %v20003_v62 = vld [vmem:[%s32149_s3 + $0x38] sm:$0x3] }
 0x2ad   :  { %22963 = vmatprep.mubr.msk.f32.mxu0 %vm6249_vm4, %v29429_v52  ;;  %33251 = vst [vmem:[#allocation154_spill] sm:$0xff] %v30230_v45  ;;  %v32442_v41 = vmax.f32 %v30230_v45, 0.0  ;;  %v30294_v45 = vpack.c.bf16 %v20003_v62, %v20002_v51 }
 0x2ae   :  { %v6986_v25 = vadd.f32 %v29944_v12, %v33255_v8  ;;  %v33258_v8 = vld [vmem:[#allocation62_spill] sm:$0xff] }
 0x2af   :  { %22954 = vmatmul.mubr.msk.f32.gmra.mrb[206].mxu1 %vm6249_vm4, %v29413_v35 }
 0x2b0   :  { %22964 = vmatmul.mubr.msk.f32.vlgmr.msra.gmra.mrb[206].mxu0 %vm6249_vm4, %v29418_v31  ;;  %22956 = vmatprep.mubr.msk.f32.mxu1 %vm6249_vm4, %v33252_v14  ;;  %v30268_v19 = vmax.f32 %v6986_v25, 0.0  ;;  %v33259_v25 = vld [vmem:[#allocation120_spill] sm:$0xff] }
 0x2b1   :  { %22966 = vmatprep.mubr.msk.f32.mxu0 %vm6249_vm4, %v29453_v44  ;;  %24511 = vmatpush3.bf16.msk.msra.mxu0 %vm28386_vm6, %v30074_v37 }
 0x2b2   :  { %24520 = vmatprep.subr.msk.bf16.mxu0 %vm28386_vm6, %v30074_v37  ;;  %33257 = vst [vmem:[#allocation48_spill] sm:$0xff] %v30268_v19 }
 0x2b3   :  { %22957 = vmatmul.mubr.msk.f32.gmra.mrb[208].mxu1 %vm6249_vm4, %v32442_v41  ;;  %v33260_v41 = vmax.f32 %v33258_v8, %v33259_v25  ;;  %v33266_v8 = vld [vmem:[#allocation23_spill] sm:$0xff] }
 0x2b4   :  { %22967 = vmatmul.mubr.msk.f32.gmra.mrb[208].mxu0 %vm6249_vm4, %v29460_v15  ;;  %22979 = vmatprep.mubr.msk.f32.mxu1 %vm6249_vm4, %v29490_v56 }
 0x2b5   :  { %22969 = vmatprep.mubr.msk.f32.mxu0 %vm6249_vm4, %v29486_v61 }
 0x2b7   :  { %22980 = vmatmul.mubr.msk.f32.vlgmr.msra.gmra.mrb[210].mxu1 %vm6249_vm4, %v29495_v54 }
 0x2b8   :  { %22970 = vmatmul.mubr.msk.f32.gmra.mrb[210].mxu0 %vm6249_vm4, %v29484_v23  ;;  %22982 = vmatprep.mubr.msk.f32.mxu1 %vm6249_vm4, %v33211_v22 }
 0x2b9   :  { %22972 = vmatprep.mubr.msk.f32.mxu0 %vm6249_vm4, %v33256_v53  ;;  %24517 = vmatpush3.bf16.msk.msra.mxu1 %vm28386_vm6, %v30074_v37  ;;  %v33261_v53 = vld [vmem:[#allocation16_spill] sm:$0xff] }
 0x2ba   :  { %24526 = vmatprep.subr.msk.bf16.mxu1 %vm28386_vm6, %v30074_v37 }
 0x2bb   :  { %22983 = vmatmul.mubr.msk.f32.gmra.mrb[212].mxu1 %vm6249_vm4, %v33215_v63 }
 0x2bc   :  { %22973 = vmatmul.mubr.msk.f32.gmra.mrb[212].mxu0 %vm6249_vm4, %v30268_v19  ;;  %22985 = vmatprep.mubr.msk.f32.mxu1 %vm6249_vm4, %v33217_v13  ;;  %v6996_v19 = vadd.f32 %v29944_v12, %v33260_v41  ;;  %v33263_v41 = vld [vmem:[#allocation72_spill] sm:$0xff] }
 0x2bd   :  { %22995 = vmatprep.mubr.msk.f32.mxu0 %vm6249_vm4, %v33218_v39 }
 0x2be   :  { %v30304_v14 = vmax.f32 %v6996_v19, 0.0  ;;  %v33264_v19 = vld [vmem:[#allocation18_spill] sm:$0xff] }
 0x2bf   :  { %22986 = vmatmul.mubr.msk.f32.gmra.mrb[214].mxu1 %vm6249_vm4, %v33220_v9  ;;  %v33265_v51 = vmax.f32 %v33263_v41, %v33264_v19  ;;  %v33268_v41 = vld [vmem:[#allocation81_spill] sm:$0xff]  ;;  %v33269_v19 = vld [vmem:[#allocation22_spill] sm:$0xff] }
 0x2c0   :  { %22996 = vmatmul.mubr.msk.f32.vlgmr.msra.gmra.mrb[214].mxu0 %vm6249_vm4, %v33221_v28  ;;  %22988 = vmatprep.mubr.msk.f32.mxu1 %vm6249_vm4, %v33261_v53  ;;  %33262 = vst [vmem:[#allocation155_spill] sm:$0xff] %v30304_v14 }
 0x2c1   :  { %22998 = vmatprep.mubr.msk.f32.mxu0 %vm6249_vm4, %v33222_v47  ;;  %24523 = vmatpush3.bf16.msk.msra.mxu0 %vm28386_vm6, %v30074_v37  ;;  %v7006_v62 = vadd.f32 %v29944_v12, %v33265_v51  ;;  %v33270_v51 = vmax.f32 %v33268_v41, %v33269_v19  ;;  %v33273_v41 = vld [vmem:[#allocation92_spill] sm:$0xff]  ;;  %v33274_v19 = vld [vmem:[#allocation134_spill] sm:$0xff] }
 0x2c2   :  { %24532 = vmatprep.subr.msk.bf16.mxu0 %vm28386_vm6, %v30294_v45 }
 0x2c3   :  { %22989 = vmatmul.mubr.msk.f32.gmra.mrb[216].mxu1 %vm6249_vm4, %v30304_v14  ;;  %v30332_v25 = vmax.f32 %v7006_v62, 0.0  ;;  %v33271_v62 = vld [vmem:[#allocation27_spill] sm:$0xff] }
 0x2c4   :  { %22999 = vmatmul.mubr.msk.f32.gmra.mrb[216].mxu0 %vm6249_vm4, %v33225_v49  ;;  %23011 = vmatprep.mubr.msk.f32.mxu1 %vm6249_vm4, %v33228_v50 }
 0x2c5   :  { %23001 = vmatprep.mubr.msk.f32.mxu0 %vm6249_vm4, %v33227_v20  ;;  %33267 = vst [vmem:[#allocation50_spill] sm:$0xff] %v30332_v25 }
 0x2c7   :  { %23012 = vmatmul.mubr.msk.f32.vlgmr.msra.gmra.mrb[218].mxu1 %vm6249_vm4, %v33231_v33 }
 0x2c8   :  { %23002 = vmatmul.mubr.msk.f32.gmra.mrb[218].mxu0 %vm6249_vm4, %v33230_v4  ;;  %23014 = vmatprep.mubr.msk.f32.mxu1 %vm6249_vm4, %v33232_v11 }
 0x2c9   :  { %23004 = vmatprep.mubr.msk.f32.mxu0 %vm6249_vm4, %v33266_v8  ;;  %24529 = vmatpush3.bf16.msk.msra.mxu1 %vm28386_vm6, %v30074_v37  ;;  %v7016_v37 = vadd.f32 %v29944_v12, %v33270_v51  ;;  %v33275_v51 = vmax.f32 %v33273_v41, %v33274_v19  ;;  %v33278_v41 = vmax.f32 %v29869_v60, 0.0  ;;  %v33279_v19 = vld [vmem:[#allocation100_spill] sm:$0xff] }
 0x2ca   :  { %24538 = vmatprep.subr.msk.bf16.mxu1 %vm28386_vm6, %v30294_v45 }
 0x2cb   :  { %23015 = vmatmul.mubr.msk.f32.gmra.mrb[220].mxu1 %vm6249_vm4, %v33234_v36 }
 0x2cc   :  { %23005 = vmatmul.mubr.msk.f32.gmra.mrb[220].mxu0 %vm6249_vm4, %v30332_v25  ;;  %23017 = vmatprep.mubr.msk.f32.mxu1 %vm6249_vm4, %v33236_v3  ;;  %v30360_v25 = vmax.f32 %v7016_v37, 0.0  ;;  %v7026_v37 = vadd.f32 %v29944_v12, %v33275_v51  ;;  %v33280_v51 = vld [vmem:[#allocation140_spill] sm:$0xff] }
 0x2cd   :  { %23027 = vmatprep.mubr.msk.f32.mxu0 %vm6249_vm4, %v29729_v40 }
 0x2ce   :  { %33272 = vst [vmem:[#allocation157_spill] sm:$0xff] %v30360_v25  ;;  %v30388_v14 = vmax.f32 %v7026_v37, 0.0  ;;  %v33281_v37 = vmax.f32 %v33279_v19, %v33280_v51  ;;  %v33283_v51 = vld [vmem:[#allocation124_spill] sm:$0xff] }
 0x2cf   :  { %23018 = vmatmul.mubr.msk.f32.gmra.mrb[222].mxu1 %vm6249_vm4, %v33238_v29 }
 0x2d0   :  { %23028 = vmatmul.mubr.msk.f32.vlgmr.msra.gmra.mrb[222].mxu0 %vm6249_vm4, %v33239_v5  ;;  %23020 = vmatprep.mubr.msk.f32.mxu1 %vm6249_vm4, %v33271_v62  ;;  %33277 = vst [vmem:[#allocation51_spill] sm:$0xff] %v30388_v14 }
 0x2d1   :  { %23030 = vmatprep.mubr.msk.f32.mxu0 %vm6249_vm4, %v33240_v55  ;;  %24535 = vmatpush3.bf16.msk.msra.mxu0 %vm28386_vm6, %v30294_v45 }
 0x2d2   :  { %24544 = vmatprep.subr.msk.bf16.mxu0 %vm28386_vm6, %v30294_v45 }
 0x2d3   :  { %23021 = vmatmul.mubr.msk.f32.gmra.mrb[224].mxu1 %vm6249_vm4, %v30360_v25  ;;  %v33276_v25 = vld [vmem:[#allocation139_spill] sm:$0xff] }
 0x2d4   :  { %23031 = vmatmul.mubr.msk.f32.gmra.mrb[224].mxu0 %vm6249_vm4, %v33241_v18  ;;  %23043 = vmatprep.mubr.msk.f32.mxu1 %vm6249_vm4, %v29786_v27 }
 0x2d5   :  { %23033 = vmatprep.mubr.msk.f32.mxu0 %vm6249_vm4, %v29784_v59 }
 0x2d7   :  { %23044 = vmatmul.mubr.msk.f32.vlgmr.msra.gmra.mrb[226].mxu1 %vm6249_vm4, %v29791_v0 }
 0x2d8   :  { %23034 = vmatmul.mubr.msk.f32.gmra.mrb[226].mxu0 %vm6249_vm4, %v29782_v16  ;;  %23046 = vmatprep.mubr.msk.f32.mxu1 %vm6249_vm4, %v29822_v2 }
 0x2d9   :  { %23036 = vmatprep.mubr.msk.f32.mxu0 %vm6249_vm4, %v33276_v25  ;;  %24541 = vmatpush3.bf16.msk.msra.mxu1 %vm28386_vm6, %v30294_v45  ;;  %v7036_v25 = vadd.f32 %v29944_v12, %v33281_v37  ;;  %v33284_v37 = vld [vmem:[#allocation153_spill] sm:$0xff] }
 0x2da   :  { %24550 = vmatprep.subr.msk.bf16.mxu1 %vm28386_vm6, %v30294_v45 }
 0x2db   :  { %23047 = vmatmul.mubr.msk.f32.gmra.mrb[228].mxu1 %vm6249_vm4, %v29835_v6  ;;  %v30417_v60 = vmax.f32 %v7036_v25, 0.0  ;;  %v20076_v25 = vld [vmem:[%s32149_s3 + $0x40] sm:$0xff] }
 0x2dc   :  { %23037 = vmatmul.mubr.msk.f32.gmra.mrb[228].mxu0 %vm6249_vm4, %v30388_v14  ;;  %23049 = vmatprep.mubr.msk.f32.mxu1 %vm6249_vm4, %v29851_v34  ;;  %v33296_v14 = vld [vmem:[#allocation141_spill] sm:$0xff] }
 0x2dd   :  { %23059 = vmatprep.mubr.msk.f32.mxu0 %vm6249_vm4, %v33278_v41  ;;  %33282 = vst [vmem:[#allocation156_spill] sm:$0xff] %v30417_v60  ;;  %v20077_v41 = vld [vmem:[%s32149_s3 + $0x48] sm:$0x3] }
 0x2de   :  { %v30505_v19 = vpack.c.bf16 %v20077_v41, %v20076_v25  ;;  %v33285_v25 = vld [vmem:[#allocation25_spill] sm:$0xff] }
 0x2df   :  { %23050 = vmatmul.mubr.msk.f32.gmra.mrb[230].mxu1 %vm6249_vm4, %v29871_v30  ;;  %v33286_v41 = vld [vmem:[#allocation49_spill] sm:$0xff] }
 0x2e0   :  { %23060 = vmatmul.mubr.msk.f32.vlgmr.msra.gmra.mrb[198].mxu0 %vm6249_vm4, %v29296_v24  ;;  %23052 = vmatprep.mubr.msk.f32.mxu1 %vm6249_vm4, %v29889_v1 }
 0x2e1   :  { %23062 = vmatprep.mubr.msk.f32.mxu0 %vm6249_vm4, %v29344_v32  ;;  %24547 = vmatpush3.bf16.msk.msra.mxu0 %vm28386_vm6, %v30294_v45 }
 0x2e2   :  { %24556 = vmatprep.subr.msk.bf16.mxu0 %vm28386_vm6, %v30294_v45 }
 0x2e3   :  { %23053 = vmatmul.mubr.msk.f32.gmra.mrb[232].mxu1 %vm6249_vm4, %v30417_v60 }
 0x2e4   :  { %23063 = vmatmul.mubr.msk.f32.gmra.mrb[200].mxu0 %vm6249_vm4, %v29340_v7  ;;  %23075 = vmatprep.mubr.msk.f32.mxu1 %vm6249_vm4, %v29978_v38  ;;  %v33292_v38 = vld [vmem:[#allocation98_spill] sm:$0xff]  ;;  %v33397_v21 = vld [vmem:[#allocation156_spill] sm:$0xff] }
 0x2e5   :  { %23065 = vmatprep.mubr.msk.f32.mxu0 %vm6249_vm4, %v29377_v26 }
 0x2e7   :  { %23076 = vmatmul.mubr.msk.f32.vlgmr.msra.gmra.mrb[202].mxu1 %vm6249_vm4, %v29389_v46 }
 0x2e8   :  { %23066 = vmatmul.mubr.msk.f32.gmra.mrb[202].mxu0 %vm6249_vm4, %v29369_v57  ;;  %23078 = vmatprep.mubr.msk.f32.mxu1 %vm6249_vm4, %v29429_v52 }
 0x2e9   :  { %23068 = vmatprep.mubr.msk.f32.mxu0 %vm6249_vm4, %v29402_v48  ;;  %24553 = vmatpush3.bf16.msk.msra.mxu1 %vm28386_vm6, %v30294_v45 }
 0x2ea   :  { %24562 = vmatprep.subr.msk.bf16.mxu1 %vm28386_vm6, %v30294_v45 }
 0x2eb   :  { %23079 = vmatmul.mubr.msk.f32.gmra.mrb[204].mxu1 %vm6249_vm4, %v29418_v31 }
 0x2ec   :  { %23069 = vmatmul.mubr.msk.f32.gmra.mrb[204].mxu0 %vm6249_vm4, %v29413_v35  ;;  %23081 = vmatprep.mubr.msk.f32.mxu1 %vm6249_vm4, %v29453_v44 }
 0x2ed   :  { %23091 = vmatprep.mubr.msk.f32.mxu0 %vm6249_vm4, %v30023_v10  ;;  %v33291_v10 = vld [vmem:[#allocation133_spill] sm:$0xff] }
 0x2ef   :  { %23082 = vmatmul.mubr.msk.f32.gmra.mrb[206].mxu1 %vm6249_vm4, %v29460_v15 }
 0x2f0   :  { %23092 = vmatmul.mubr.msk.f32.vlgmr.msra.gmra.mrb[206].mxu0 %vm6249_vm4, %v29445_v42  ;;  %23084 = vmatprep.mubr.msk.f32.mxu1 %vm6249_vm4, %v29486_v61 }
 0x2f1   :  { %23094 = vmatprep.mubr.msk.f32.mxu0 %vm6249_vm4, %v29490_v56  ;;  %24559 = vmatpush3.bf16.msk.msra.mxu0 %vm28386_vm6, %v30294_v45 }
 0x2f2   :  { %24568 = vmatprep.subr.msk.bf16.mxu0 %vm28386_vm6, %v30294_v45 }
 0x2f3   :  { %23085 = vmatmul.mubr.msk.f32.gmra.mrb[208].mxu1 %vm6249_vm4, %v29484_v23 }
 0x2f4   :  { %23095 = vmatmul.mubr.msk.f32.gmra.mrb[208].mxu0 %vm6249_vm4, %v29495_v54  ;;  %23107 = vmatprep.mubr.msk.f32.mxu1 %vm6249_vm4, %v30051_v58 }
 0x2f5   :  { %23097 = vmatprep.mubr.msk.f32.mxu0 %vm6249_vm4, %v33211_v22 }
 0x2f7   :  { %23108 = vmatmul.mubr.msk.f32.vlgmr.msra.gmra.mrb[210].mxu1 %vm6249_vm4, %v33216_v43 }
 0x2f8   :  { %23098 = vmatmul.mubr.msk.f32.gmra.mrb[210].mxu0 %vm6249_vm4, %v33215_v63  ;;  %23110 = vmatprep.mubr.msk.f32.mxu1 %vm6249_vm4, %v33218_v39 }
 0x2f9   :  { %23100 = vmatprep.mubr.msk.f32.mxu0 %vm6249_vm4, %v33217_v13  ;;  %24565 = vmatpush3.bf16.msk.msra.mxu1 %vm28386_vm6, %v30294_v45 }
 0x2fa   :  { %24574 = vmatprep.subr.msk.bf16.mxu1 %vm28386_vm6, %v30294_v45 }
 0x2fb   :  { %23111 = vmatmul.mubr.msk.f32.gmra.mrb[212].mxu1 %vm6249_vm4, %v33221_v28 }
 0x2fc   :  { %23101 = vmatmul.mubr.msk.f32.gmra.mrb[212].mxu0 %vm6249_vm4, %v33220_v9  ;;  %23113 = vmatprep.mubr.msk.f32.mxu1 %vm6249_vm4, %v33222_v47 }
 0x2fd   :  { %23123 = vmatprep.mubr.msk.f32.mxu0 %vm6249_vm4, %v30087_v17  ;;  %v33288_v17 = vld [vmem:[#allocation32_spill] sm:$0xff] }
 0x2ff   :  { %23114 = vmatmul.mubr.msk.f32.gmra.mrb[214].mxu1 %vm6249_vm4, %v33225_v49 }
 0x300   :  { %23124 = vmatmul.mubr.msk.f32.vlgmr.msra.gmra.mrb[214].mxu0 %vm6249_vm4, %v33283_v51  ;;  %23116 = vmatprep.mubr.msk.f32.mxu1 %vm6249_vm4, %v33227_v20 }
 0x301   :  { %23126 = vmatprep.mubr.msk.f32.mxu0 %vm6249_vm4, %v33228_v50  ;;  %24571 = vmatpush3.bf16.msk.msra.mxu0 %vm28386_vm6, %v30294_v45 }
 0x302   :  { %24580 = vmatprep.subr.msk.bf16.mxu0 %vm28386_vm6, %v30505_v19 }
 0x303   :  { %23117 = vmatmul.mubr.msk.f32.gmra.mrb[216].mxu1 %vm6249_vm4, %v33230_v4 }
 0x304   :  { %23127 = vmatmul.mubr.msk.f32.gmra.mrb[216].mxu0 %vm6249_vm4, %v33231_v33  ;;  %23139 = vmatprep.mubr.msk.f32.mxu1 %vm6249_vm4, %v33284_v37  ;;  %v33287_v37 = vld [vmem:[#allocation99_spill] sm:$0xff] }
 0x305   :  { %23129 = vmatprep.mubr.msk.f32.mxu0 %vm6249_vm4, %v33232_v11  ;;  %v33289_v58 = vmax.f32 %v33287_v37, %v33288_v17  ;;  %v33295_v37 = vld [vmem:[#allocation104_spill] sm:$0xff] }
 0x306   :  { %v33297_v1 = vmax.f32 %v33295_v37, %v33296_v14  ;;  %v33300_v14 = vld [vmem:[#allocation37_spill] sm:$0xff] }
 0x307   :  { %23140 = vmatmul.mubr.msk.f32.vlgmr.msra.gmra.mrb[218].mxu1 %vm6249_vm4, %v33285_v25 }
 0x308   :  { %23130 = vmatmul.mubr.msk.f32.gmra.mrb[218].mxu0 %vm6249_vm4, %v33234_v36  ;;  %23142 = vmatprep.mubr.msk.f32.mxu1 %vm6249_vm4, %v29729_v40 }
 0x309   :  { %23132 = vmatprep.mubr.msk.f32.mxu0 %vm6249_vm4, %v33236_v3  ;;  %24577 = vmatpush3.bf16.msk.msra.mxu1 %vm28386_vm6, %v30294_v45  ;;  %v30555_v45 = vadd.f32 %v29944_v12, %v33289_v58 }
 0x30a   :  { %24586 = vmatprep.subr.msk.bf16.mxu1 %vm28386_vm6, %v30505_v19 }
 0x30b   :  { %23143 = vmatmul.mubr.msk.f32.gmra.mrb[220].mxu1 %vm6249_vm4, %v33239_v5  ;;  %33290 = vst [vmem:[#allocation52_spill] sm:$0xff] %v30555_v45  ;;  %v32470_v58 = vmax.f32 %v30555_v45, 0.0 }
 0x30c   :  { %23133 = vmatmul.mubr.msk.f32.gmra.mrb[220].mxu0 %vm6249_vm4, %v33238_v29  ;;  %23145 = vmatprep.mubr.msk.f32.mxu1 %vm6249_vm4, %v33240_v55 }
 0x30d   :  { %23155 = vmatprep.mubr.msk.f32.mxu0 %vm6249_vm4, %v33286_v41  ;;  %v33293_v41 = vld [vmem:[#allocation137_spill] sm:$0xff] }
 0x30e   :  { %v33294_v60 = vmax.f32 %v33292_v38, %v33293_v41 }
 0x30f   :  { %23146 = vmatmul.mubr.msk.f32.gmra.mrb[222].mxu1 %vm6249_vm4, %v33241_v18 }
 0x310   :  { %23156 = vmatmul.mubr.msk.f32.vlgmr.msra.gmra.mrb[222].mxu0 %vm6249_vm4, %v33291_v10  ;;  %23148 = vmatprep.mubr.msk.f32.mxu1 %vm6249_vm4, %v29784_v59  ;;  %v7038_v17 = vadd.f32 %v29944_v12, %v33294_v60  ;;  %v7039_v10 = vadd.f32 %v29944_v12, %v33297_v1  ;;  %v33299_v1 = vld [vmem:[#allocation103_spill] sm:$0xff] }
 0x311   :  { %23158 = vmatprep.mubr.msk.f32.mxu0 %vm6249_vm4, %v29786_v27  ;;  %24583 = vmatpush3.bf16.msk.msra.mxu0 %vm28386_vm6, %v30505_v19  ;;  %v33301_v60 = vmax.f32 %v33299_v1, %v33300_v14  ;;  %v33304_v27 = vld [vmem:[#allocation39_spill] sm:$0xff]  ;;  %v33307_v1 = vld [vmem:[#allocation142_spill] sm:$0xff] }
 0x312   :  { %24592 = vmatprep.subr.msk.bf16.mxu0 %vm28386_vm6, %v30505_v19  ;;  %v30589_v38 = vmax.f32 %v7038_v17, 0.0  ;;  %v30595_v37 = vmax.f32 %v7039_v10, 0.0  ;;  %v33306_v10 = vld [vmem:[#allocation101_spill] sm:$0xff] }
 0x313   :  { %23149 = vmatmul.mubr.msk.f32.gmra.mrb[224].mxu1 %vm6249_vm4, %v29782_v16  ;;  %v7040_v41 = vadd.f32 %v29944_v12, %v33301_v60  ;;  %v33303_v16 = vld [vmem:[#allocation107_spill] sm:$0xff]  ;;  %v33308_v14 = vmax.f32 %v33306_v10, %v33307_v1  ;;  %v33310_v60 = vld [vmem:[#allocation146_spill] sm:$0xff] }
 0x314   :  { %23159 = vmatmul.mubr.msk.f32.gmra.mrb[224].mxu0 %vm6249_vm4, %v29791_v0  ;;  %23171 = vmatprep.mubr.msk.f32.mxu1 %vm6249_vm4, %v32470_v58  ;;  %33298 = vst [vmem:[#allocation53_spill] sm:$0xff] %v30589_v38  ;;  %33302 = vst [vmem:[#allocation57_spill] sm:$0xff] %v30595_v37  ;;  %v33305_v59 = vmax.f32 %v33303_v16, %v33304_v27  ;;  %v33309_v16 = vld [vmem:[#allocation5_spill] sm:$0xff] }
 0x315   :  { %23161 = vmatprep.mubr.msk.f32.mxu0 %vm6249_vm4, %v29822_v2  ;;  %v30609_v17 = vmax.f32 %v7040_v41, 0.0  ;;  %v7042_v27 = vadd.f32 %v29944_v12, %v33308_v14  ;;  %v33311_v58 = vmax.f32 %v33309_v16, %v33310_v60  ;;  %v33312_v41 = vld [vmem:[#allocation106_spill] sm:$0xff]  ;;  %v20151_v60 = vld [vmem:[%s32149_s3 + $0x58] sm:$0x3] }
 0x316   :  { %v7041_v0 = vadd.f32 %v29944_v12, %v33305_v59  ;;  %v20150_v16 = vld [vmem:[%s32149_s3 + $0x50] sm:$0xff] }
 0x317   :  { %23172 = vmatmul.mubr.msk.f32.vlgmr.msra.gmra.mrb[226].mxu1 %vm6249_vm4, %v30589_v38  ;;  %v7043_v45 = vadd.f32 %v29944_v12, %v33311_v58  ;;  %v33313_v58 = vld [vmem:[#allocation145_spill] sm:$0xff] }
 0x318   :  { %23162 = vmatmul.mubr.msk.f32.gmra.mrb[226].mxu0 %vm6249_vm4, %v29835_v6  ;;  %23174 = vmatprep.mubr.msk.f32.mxu1 %vm6249_vm4, %v30595_v37  ;;  %v30618_v59 = vmax.f32 %v7041_v0, 0.0  ;;  %v30635_v0 = vmax.f32 %v7042_v27, 0.0  ;;  %v33314_v10 = vmax.f32 %v33312_v41, %v33313_v58  ;;  %v33317_v27 = vld [vmem:[#allocation119_spill] sm:$0xff]  ;;  %v30739_v41 = vpack.c.bf16 %v20151_v60, %v20150_v16  ;;  %v33318_v58 = vld [vmem:[#allocation133_spill] sm:$0xff]  ;;  %v33322_v16 = vld [vmem:[#allocation30_spill] sm:$0xff] }
 0x319   :  { %23164 = vmatprep.mubr.msk.f32.mxu0 %vm6249_vm4, %v29851_v34  ;;  %24589 = vmatpush3.bf16.msk.msra.mxu1 %vm28386_vm6, %v30505_v19  ;;  %v30641_v14 = vmax.f32 %v7043_v45, 0.0  ;;  %v33316_v45 = vld [vmem:[#allocation117_spill] sm:$0xff]  ;;  %v33323_v60 = vld [vmem:[#allocation139_spill] sm:$0xff] }
 0x31a   :  { %24598 = vmatprep.subr.msk.bf16.mxu1 %vm28386_vm6, %v30505_v19  ;;  %v7044_v1 = vadd.f32 %v29944_v12, %v33314_v10  ;;  %v33319_v10 = vld [vmem:[#allocation28_spill] sm:$0xff] }
 0x31b   :  { %23175 = vmatmul.mubr.msk.f32.gmra.mrb[228].mxu1 %vm6249_vm4, %v30609_v17  ;;  %33315 = vst [vmem:[#allocation54_spill] sm:$0xff] %v30641_v14 }
 0x31c   :  { %23165 = vmatmul.mubr.msk.f32.gmra.mrb[228].mxu0 %vm6249_vm4, %v29871_v30  ;;  %23177 = vmatprep.mubr.msk.f32.mxu1 %vm6249_vm4, %v30618_v59 }
 0x31d   :  { %23187 = vmatprep.mubr.msk.f32.mxu0 %vm6249_vm4, %v29296_v24  ;;  %v30651_v24 = vmax.f32 %v7044_v1, 0.0  ;;  %v33321_v1 = vld [vmem:[#allocation135_spill] sm:$0xff] }
 0x31f   :  { %23178 = vmatmul.mubr.msk.f32.gmra.mrb[230].mxu1 %vm6249_vm4, %v30635_v0 }
 0x320   :  { %23188 = vmatmul.mubr.msk.f32.vlgmr.msra.gmra.mrb[198].mxu0 %vm6249_vm4, %v29344_v32  ;;  %23180 = vmatprep.mubr.msk.f32.mxu1 %vm6249_vm4, %v30641_v14 }
 0x321   :  { %23190 = vmatprep.mubr.msk.f32.mxu0 %vm6249_vm4, %v29340_v7  ;;  %24595 = vmatpush3.bf16.msk.msra.mxu0 %vm28386_vm6, %v30505_v19 }
 0x322   :  { %24604 = vmatprep.subr.msk.bf16.mxu0 %vm28386_vm6, %v30505_v19 }
 0x323   :  { %23181 = vmatmul.mubr.msk.f32.gmra.mrb[232].mxu1 %vm6249_vm4, %v30651_v24 }
 0x324   :  { %23191 = vmatmul.mubr.msk.f32.gmra.mrb[200].mxu0 %vm6249_vm4, %v29377_v26  ;;  %23203 = vmatprep.mubr.msk.f32.mxu1 %vm6249_vm4, %v29389_v46 }
 0x325   :  { %23193 = vmatprep.mubr.msk.f32.mxu0 %vm6249_vm4, %v29369_v57 }
 0x327   :  { %23204 = vmatmul.mubr.msk.f32.vlgmr.msra.gmra.mrb[202].mxu1 %vm6249_vm4, %v29429_v52 }
 0x328   :  { %23194 = vmatmul.mubr.msk.f32.gmra.mrb[202].mxu0 %vm6249_vm4, %v29402_v48  ;;  %23206 = vmatprep.mubr.msk.f32.mxu1 %vm6249_vm4, %v29418_v31 }
 0x329   :  { %23196 = vmatprep.mubr.msk.f32.mxu0 %vm6249_vm4, %v29413_v35  ;;  %24601 = vmatpush3.bf16.msk.msra.mxu1 %vm28386_vm6, %v30505_v19 }
 0x32a   :  { %24610 = vmatprep.subr.msk.bf16.mxu1 %vm28386_vm6, %v30505_v19 }
 0x32b   :  { %23207 = vmatmul.mubr.msk.f32.gmra.mrb[204].mxu1 %vm6249_vm4, %v29453_v44 }
 0x32c   :  { %23197 = vmatmul.mubr.msk.f32.gmra.mrb[204].mxu0 %vm6249_vm4, %v33316_v45  ;;  %23209 = vmatprep.mubr.msk.f32.mxu1 %vm6249_vm4, %v29460_v15 }
 0x32d   :  { %23219 = vmatprep.mubr.msk.f32.mxu0 %vm6249_vm4, %v29445_v42 }
 0x32f   :  { %23210 = vmatmul.mubr.msk.f32.gmra.mrb[206].mxu1 %vm6249_vm4, %v29486_v61 }
 0x330   :  { %23220 = vmatmul.mubr.msk.f32.vlgmr.msra.gmra.mrb[206].mxu0 %vm6249_vm4, %v29490_v56  ;;  %23212 = vmatprep.mubr.msk.f32.mxu1 %vm6249_vm4, %v29484_v23 }
 0x331   :  { %23222 = vmatprep.mubr.msk.f32.mxu0 %vm6249_vm4, %v29495_v54  ;;  %24607 = vmatpush3.bf16.msk.msra.mxu0 %vm28386_vm6, %v30505_v19 }
 0x332   :  { %24616 = vmatprep.subr.msk.bf16.mxu0 %vm28386_vm6, %v30505_v19 }
 0x333   :  { %23213 = vmatmul.mubr.msk.f32.gmra.mrb[208].mxu1 %vm6249_vm4, %v33317_v27 }
 0x334   :  { %23223 = vmatmul.mubr.msk.f32.gmra.mrb[208].mxu0 %vm6249_vm4, %v33211_v22  ;;  %23235 = vmatprep.mubr.msk.f32.mxu1 %vm6249_vm4, %v33216_v43 }
 0x335   :  { %23225 = vmatprep.mubr.msk.f32.mxu0 %vm6249_vm4, %v33215_v63 }
 0x337   :  { %23236 = vmatmul.mubr.msk.f32.vlgmr.msra.gmra.mrb[210].mxu1 %vm6249_vm4, %v33218_v39 }
 0x338   :  { %23226 = vmatmul.mubr.msk.f32.gmra.mrb[210].mxu0 %vm6249_vm4, %v33217_v13  ;;  %23238 = vmatprep.mubr.msk.f32.mxu1 %vm6249_vm4, %v33221_v28 }
 0x339   :  { %23228 = vmatprep.mubr.msk.f32.mxu0 %vm6249_vm4, %v33220_v9  ;;  %24613 = vmatpush3.bf16.msk.msra.mxu1 %vm28386_vm6, %v30505_v19 }
 0x33a   :  { %24622 = vmatprep.subr.msk.bf16.mxu1 %vm28386_vm6, %v30505_v19 }
 0x33b   :  { %23239 = vmatmul.mubr.msk.f32.gmra.mrb[212].mxu1 %vm6249_vm4, %v33222_v47 }
 0x33c   :  { %23229 = vmatmul.mubr.msk.f32.gmra.mrb[212].mxu0 %vm6249_vm4, %v33261_v53  ;;  %23241 = vmatprep.mubr.msk.f32.mxu1 %vm6249_vm4, %v33225_v49 }
 0x33d   :  { %23251 = vmatprep.mubr.msk.f32.mxu0 %vm6249_vm4, %v33283_v51 }
 0x33f   :  { %23242 = vmatmul.mubr.msk.f32.gmra.mrb[214].mxu1 %vm6249_vm4, %v33227_v20 }
 0x340   :  { %23252 = vmatmul.mubr.msk.f32.vlgmr.msra.gmra.mrb[214].mxu0 %vm6249_vm4, %v33228_v50  ;;  %23244 = vmatprep.mubr.msk.f32.mxu1 %vm6249_vm4, %v33230_v4 }
 0x341   :  { %23254 = vmatprep.mubr.msk.f32.mxu0 %vm6249_vm4, %v33231_v33  ;;  %24619 = vmatpush3.bf16.msk.msra.mxu0 %vm28386_vm6, %v30505_v19 }
 0x342   :  { %24628 = vmatprep.subr.msk.bf16.mxu0 %vm28386_vm6, %v30739_v41 }
 0x343   :  { %23245 = vmatmul.mubr.msk.f32.gmra.mrb[216].mxu1 %vm6249_vm4, %v33266_v8 }
 0x344   :  { %23255 = vmatmul.mubr.msk.f32.gmra.mrb[216].mxu0 %vm6249_vm4, %v33232_v11  ;;  %23267 = vmatprep.mubr.msk.f32.mxu1 %vm6249_vm4, %v33285_v25  ;;  %v33326_v25 = vld [vmem:[#allocation148_spill] sm:$0xff] }
 0x345   :  { %23257 = vmatprep.mubr.msk.f32.mxu0 %vm6249_vm4, %v33234_v36 }
 0x347   :  { %23268 = vmatmul.mubr.msk.f32.vlgmr.msra.gmra.mrb[218].mxu1 %vm6249_vm4, %v29729_v40 }
 0x348   :  { %23258 = vmatmul.mubr.msk.f32.gmra.mrb[218].mxu0 %vm6249_vm4, %v33236_v3  ;;  %23270 = vmatprep.mubr.msk.f32.mxu1 %vm6249_vm4, %v33239_v5 }
 0x349   :  { %23260 = vmatprep.mubr.msk.f32.mxu0 %vm6249_vm4, %v33238_v29  ;;  %24625 = vmatpush3.bf16.msk.msra.mxu1 %vm28386_vm6, %v30505_v19  ;;  %v33320_v19 = vld [vmem:[#allocation136_spill] sm:$0xff] }
 0x34a   :  { %24634 = vmatprep.subr.msk.bf16.mxu1 %vm28386_vm6, %v30739_v41 }
 0x34b   :  { %23271 = vmatmul.mubr.msk.f32.gmra.mrb[220].mxu1 %vm6249_vm4, %v33240_v55 }
 0x34c   :  { %23261 = vmatmul.mubr.msk.f32.gmra.mrb[220].mxu0 %vm6249_vm4, %v33271_v62  ;;  %23273 = vmatprep.mubr.msk.f32.mxu1 %vm6249_vm4, %v33241_v18 }
 0x34d   :  { %23283 = vmatprep.mubr.msk.f32.mxu0 %vm6249_vm4, %v33318_v58  ;;  %v33325_v58 = vld [vmem:[#allocation7_spill] sm:$0xff] }
 0x34e   :  { %v33327_v51 = vmax.f32 %v33325_v58, %v33326_v25  ;;  %v33334_v25 = vld [vmem:[#allocation157_spill] sm:$0xff] }
 0x34f   :  { %23274 = vmatmul.mubr.msk.f32.gmra.mrb[222].mxu1 %vm6249_vm4, %v33319_v10  ;;  %v33337_v58 = vld [vmem:[#allocation45_spill] sm:$0xff] }
 0x350   :  { %23284 = vmatmul.mubr.msk.f32.vlgmr.msra.gmra.mrb[222].mxu0 %vm6249_vm4, %v33320_v19  ;;  %23276 = vmatprep.mubr.msk.f32.mxu1 %vm6249_vm4, %v33321_v1  ;;  %v7045_v43 = vadd.f32 %v29944_v12, %v33327_v51  ;;  %v33333_v51 = vld [vmem:[#allocation50_spill] sm:$0xff] }
 0x351   :  { %23286 = vmatprep.mubr.msk.f32.mxu0 %vm6249_vm4, %v33322_v16  ;;  %24631 = vmatpush3.bf16.msk.msra.mxu0 %vm28386_vm6, %v30739_v41 }
 0x352   :  { %24640 = vmatprep.subr.msk.bf16.mxu0 %vm28386_vm6, %v30739_v41  ;;  %v30841_v42 = vmax.f32 %v7045_v43, 0.0  ;;  %v33329_v43 = vld [vmem:[#allocation154_spill] sm:$0xff] }
 0x353   :  { %23277 = vmatmul.mubr.msk.f32.gmra.mrb[224].mxu1 %vm6249_vm4, %v33323_v60 }
 0x354   :  { %23287 = vmatmul.mubr.msk.f32.gmra.mrb[224].mxu0 %vm6249_vm4, %v29822_v2  ;;  %23299 = vmatprep.mubr.msk.f32.mxu1 %vm6249_vm4, %v30589_v38  ;;  %v33324_v38 = vld [vmem:[#allocation38_spill] sm:$0xff]  ;;  %33328 = vst [vmem:[#allocation55_spill] sm:$0xff] %v30841_v42 }
 0x355   :  { %23289 = vmatprep.mubr.msk.f32.mxu0 %vm6249_vm4, %v29835_v6 }
 0x357   :  { %23300 = vmatmul.mubr.msk.f32.vlgmr.msra.gmra.mrb[226].mxu1 %vm6249_vm4, %v30595_v37 }
 0x358   :  { %23290 = vmatmul.mubr.msk.f32.gmra.mrb[226].mxu0 %vm6249_vm4, %v29851_v34  ;;  %23302 = vmatprep.mubr.msk.f32.mxu1 %vm6249_vm4, %v30609_v17 }
 0x359   :  { %23292 = vmatprep.mubr.msk.f32.mxu0 %vm6249_vm4, %v29871_v30  ;;  %24637 = vmatpush3.bf16.msk.msra.mxu1 %vm28386_vm6, %v30739_v41 }
 0x35a   :  { %24646 = vmatprep.subr.msk.bf16.mxu1 %vm28386_vm6, %v30739_v41 }
 0x35b   :  { %23303 = vmatmul.mubr.msk.f32.gmra.mrb[228].mxu1 %vm6249_vm4, %v30618_v59 }
 0x35c   :  { %23293 = vmatmul.mubr.msk.f32.gmra.mrb[228].mxu0 %vm6249_vm4, %v33324_v38  ;;  %23305 = vmatprep.mubr.msk.f32.mxu1 %vm6249_vm4, %v30635_v0 }
 0x35d   :  { %23315 = vmatprep.mubr.msk.f32.mxu0 %vm6249_vm4, %v29344_v32  ;;  %v33331_v32 = vld [vmem:[#allocation48_spill] sm:$0xff] }
 0x35f   :  { %23306 = vmatmul.mubr.msk.f32.gmra.mrb[230].mxu1 %vm6249_vm4, %v30641_v14 }
 0x360   :  { %23316 = vmatmul.mubr.msk.f32.vlgmr.msra.gmra.mrb[198].mxu0 %vm6249_vm4, %v29340_v7  ;;  %23308 = vmatprep.mubr.msk.f32.mxu1 %vm6249_vm4, %v30651_v24  ;;  %v33330_v7 = vmax.f32 %v33329_v43, 0.0  ;;  %v33338_v43 = vld [vmem:[#allocation108_spill] sm:$0xff] }
 0x361   :  { %23318 = vmatprep.mubr.msk.f32.mxu0 %vm6249_vm4, %v29377_v26  ;;  %24643 = vmatpush3.bf16.msk.msra.mxu0 %vm28386_vm6, %v30739_v41  ;;  %v20224_v26 = vld [vmem:[%s32149_s3 + $0x60] sm:$0xff] }
 0x362   :  { %24652 = vmatprep.subr.msk.bf16.mxu0 %vm28386_vm6, %v30739_v41 }
 0x363   :  { %23309 = vmatmul.mubr.msk.f32.gmra.mrb[232].mxu1 %vm6249_vm4, %v30841_v42 }
 0x364   :  { %23319 = vmatmul.mubr.msk.f32.gmra.mrb[200].mxu0 %vm6249_vm4, %v29369_v57  ;;  %23331 = vmatprep.mubr.msk.f32.mxu1 %vm6249_vm4, %v29429_v52  ;;  %v33332_v57 = vld [vmem:[#allocation155_spill] sm:$0xff] }
 0x365   :  { %23321 = vmatprep.mubr.msk.f32.mxu0 %vm6249_vm4, %v29402_v48 }
 0x367   :  { %23332 = vmatmul.mubr.msk.f32.vlgmr.msra.gmra.mrb[202].mxu1 %vm6249_vm4, %v29418_v31 }
 0x368   :  { %23322 = vmatmul.mubr.msk.f32.gmra.mrb[202].mxu0 %vm6249_vm4, %v29413_v35  ;;  %23334 = vmatprep.mubr.msk.f32.mxu1 %vm6249_vm4, %v29453_v44  ;;  %v20225_v35 = vld [vmem:[%s32149_s3 + $0x68] sm:$0x3] }
 0x369   :  { %23324 = vmatprep.mubr.msk.f32.mxu0 %vm6249_vm4, %v33316_v45  ;;  %24649 = vmatpush3.bf16.msk.msra.mxu1 %vm28386_vm6, %v30739_v41  ;;  %v30930_v48 = vpack.c.bf16 %v20225_v35, %v20224_v26  ;;  %v33335_v45 = vld [vmem:[#allocation51_spill] sm:$0xff] }
 0x36a   :  { %24658 = vmatprep.subr.msk.bf16.mxu1 %vm28386_vm6, %v30739_v41 }
 0x36b   :  { %23335 = vmatmul.mubr.msk.f32.gmra.mrb[204].mxu1 %vm6249_vm4, %v29460_v15 }
 0x36c   :  { %23325 = vmatmul.mubr.msk.f32.gmra.mrb[204].mxu0 %vm6249_vm4, %v33330_v7  ;;  %23337 = vmatprep.mubr.msk.f32.mxu1 %vm6249_vm4, %v29486_v61  ;;  %v33339_v7 = vld [vmem:[#allocation147_spill] sm:$0xff] }
 0x36d   :  { %23347 = vmatprep.mubr.msk.f32.mxu0 %vm6249_vm4, %v29490_v56  ;;  %v33340_v26 = vmax.f32 %v33338_v43, %v33339_v7  ;;  %v33343_v43 = vld [vmem:[#allocation11_spill] sm:$0xff]  ;;  %v33344_v7 = vld [vmem:[#allocation152_spill] sm:$0xff] }
 0x36f   :  { %23338 = vmatmul.mubr.msk.f32.gmra.mrb[206].mxu1 %vm6249_vm4, %v29484_v23  ;;  %v31024_v35 = vadd.f32 %v29944_v12, %v33340_v26  ;;  %v33342_v12 = vld [vmem:[#allocation47_spill] sm:$0xff]  ;;  %v33345_v26 = vld [vmem:[#allocation14_spill] sm:$0xff] }
 0x370   :  { %23348 = vmatmul.mubr.msk.f32.vlgmr.msra.gmra.mrb[206].mxu0 %vm6249_vm4, %v29495_v54  ;;  %23340 = vmatprep.mubr.msk.f32.mxu1 %vm6249_vm4, %v33317_v27 }
 0x371   :  { %23350 = vmatprep.mubr.msk.f32.mxu0 %vm6249_vm4, %v33211_v22  ;;  %24655 = vmatpush3.bf16.msk.msra.mxu0 %vm28386_vm6, %v30739_v41  ;;  %33341 = vst [vmem:[#allocation56_spill] sm:$0xff] %v31024_v35 }
 0x372   :  { %24664 = vmatprep.subr.msk.bf16.mxu0 %vm28386_vm6, %v30739_v41 }
 0x373   :  { %23341 = vmatmul.mubr.msk.f32.gmra.mrb[208].mxu1 %vm6249_vm4, %v33331_v32 }
 0x374   :  { %23351 = vmatmul.mubr.msk.f32.gmra.mrb[208].mxu0 %vm6249_vm4, %v33215_v63  ;;  %23363 = vmatprep.mubr.msk.f32.mxu1 %vm6249_vm4, %v33218_v39 }
 0x375   :  { %23353 = vmatprep.mubr.msk.f32.mxu0 %vm6249_vm4, %v33217_v13 }
 0x377   :  { %23364 = vmatmul.mubr.msk.f32.vlgmr.msra.gmra.mrb[210].mxu1 %vm6249_vm4, %v33221_v28 }
 0x378   :  { %23354 = vmatmul.mubr.msk.f32.gmra.mrb[210].mxu0 %vm6249_vm4, %v33220_v9  ;;  %23366 = vmatprep.mubr.msk.f32.mxu1 %vm6249_vm4, %v33222_v47 }
 0x379   :  { %23356 = vmatprep.mubr.msk.f32.mxu0 %vm6249_vm4, %v33261_v53  ;;  %24661 = vmatpush3.bf16.msk.msra.mxu1 %vm28386_vm6, %v30739_v41 }
 0x37a   :  { %24670 = vmatprep.subr.msk.bf16.mxu1 %vm28386_vm6, %v30739_v41 }
 0x37b   :  { %23367 = vmatmul.mubr.msk.f32.gmra.mrb[212].mxu1 %vm6249_vm4, %v33225_v49 }
 0x37c   :  { %23357 = vmatmul.mubr.msk.f32.gmra.mrb[212].mxu0 %vm6249_vm4, %v33332_v57  ;;  %23369 = vmatprep.mubr.msk.f32.mxu1 %vm6249_vm4, %v33227_v20 }
 0x37d   :  { %23379 = vmatprep.mubr.msk.f32.mxu0 %vm6249_vm4, %v33228_v50 }
 0x37f   :  { %23370 = vmatmul.mubr.msk.f32.gmra.mrb[214].mxu1 %vm6249_vm4, %v33230_v4 }
 0x380   :  { %23380 = vmatmul.mubr.msk.f32.vlgmr.msra.gmra.mrb[214].mxu0 %vm6249_vm4, %v33231_v33  ;;  %23372 = vmatprep.mubr.msk.f32.mxu1 %vm6249_vm4, %v33266_v8 }
 0x381   :  { %23382 = vmatprep.mubr.msk.f32.mxu0 %vm6249_vm4, %v33232_v11  ;;  %24667 = vmatpush3.bf16.msk.msra.mxu0 %vm28386_vm6, %v30739_v41 }
 0x382   :  { %24676 = vmatprep.subr.msk.bf16.mxu0 %vm28386_vm6, %v30930_v48 }
 0x383   :  { %23373 = vmatmul.mubr.msk.f32.gmra.mrb[216].mxu1 %vm6249_vm4, %v33333_v51  ;;  %v33355_v51 = vld [vmem:[#allocation144_spill] sm:$0xff] }
 0x384   :  { %23383 = vmatmul.mubr.msk.f32.gmra.mrb[216].mxu0 %vm6249_vm4, %v33234_v36  ;;  %23395 = vmatprep.mubr.msk.f32.mxu1 %vm6249_vm4, %v29729_v40 }
 0x385   :  { %23385 = vmatprep.mubr.msk.f32.mxu0 %vm6249_vm4, %v33236_v3 }
 0x387   :  { %23396 = vmatmul.mubr.msk.f32.vlgmr.msra.gmra.mrb[218].mxu1 %vm6249_vm4, %v33239_v5 }
 0x388   :  { %23386 = vmatmul.mubr.msk.f32.gmra.mrb[218].mxu0 %vm6249_vm4, %v33238_v29  ;;  %23398 = vmatprep.mubr.msk.f32.mxu1 %vm6249_vm4, %v33240_v55 }
 0x389   :  { %23388 = vmatprep.mubr.msk.f32.mxu0 %vm6249_vm4, %v33271_v62  ;;  %24673 = vmatpush3.bf16.msk.msra.mxu1 %vm28386_vm6, %v30739_v41  ;;  %v33336_v41 = vld [vmem:[#allocation156_spill] sm:$0xff] }
 0x38a   :  { %24682 = vmatprep.subr.msk.bf16.mxu1 %vm28386_vm6, %v30930_v48 }
 0x38b   :  { %23399 = vmatmul.mubr.msk.f32.gmra.mrb[220].mxu1 %vm6249_vm4, %v33241_v18 }
 0x38c   :  { %23389 = vmatmul.mubr.msk.f32.gmra.mrb[220].mxu0 %vm6249_vm4, %v33334_v25  ;;  %23401 = vmatprep.mubr.msk.f32.mxu1 %vm6249_vm4, %v33319_v10  ;;  %v33354_v25 = vld [vmem:[#allocation109_spill] sm:$0xff] }
 0x38d   :  { %23411 = vmatprep.mubr.msk.f32.mxu0 %vm6249_vm4, %v33320_v19  ;;  %v33356_v57 = vmax.f32 %v33354_v25, %v33355_v51  ;;  %v33361_v51 = vld [vmem:[#allocation111_spill] sm:$0xff]  ;;  %v33362_v25 = vld [vmem:[#allocation40_spill] sm:$0xff] }
 0x38f   :  { %23402 = vmatmul.mubr.msk.f32.gmra.mrb[222].mxu1 %vm6249_vm4, %v33321_v1 }
 0x390   :  { %23412 = vmatmul.mubr.msk.f32.vlgmr.msra.gmra.mrb[222].mxu0 %vm6249_vm4, %v33322_v16  ;;  %23404 = vmatprep.mubr.msk.f32.mxu1 %vm6249_vm4, %v33323_v60 }
 0x391   :  { %23414 = vmatprep.mubr.msk.f32.mxu0 %vm6249_vm4, %v29822_v2  ;;  %24679 = vmatpush3.bf16.msk.msra.mxu0 %vm28386_vm6, %v30930_v48 }
 0x392   :  { %24688 = vmatprep.subr.msk.bf16.mxu0 %vm28386_vm6, %v30930_v48 }
 0x393   :  { %23405 = vmatmul.mubr.msk.f32.gmra.mrb[224].mxu1 %vm6249_vm4, %v33335_v45  ;;  %v33349_v45 = vld [vmem:[#allocation25_spill] sm:$0xff] }
 0x394   :  { %23415 = vmatmul.mubr.msk.f32.gmra.mrb[224].mxu0 %vm6249_vm4, %v29835_v6  ;;  %23427 = vmatprep.mubr.msk.f32.mxu1 %vm6249_vm4, %v30595_v37 }
 0x395   :  { %23417 = vmatprep.mubr.msk.f32.mxu0 %vm6249_vm4, %v29851_v34 }
 0x397   :  { %23428 = vmatmul.mubr.msk.f32.vlgmr.msra.gmra.mrb[226].mxu1 %vm6249_vm4, %v30609_v17 }
 0x398   :  { %23418 = vmatmul.mubr.msk.f32.gmra.mrb[226].mxu0 %vm6249_vm4, %v29871_v30  ;;  %23430 = vmatprep.mubr.msk.f32.mxu1 %vm6249_vm4, %v30618_v59 }
 0x399   :  { %23420 = vmatprep.mubr.msk.f32.mxu0 %vm6249_vm4, %v33324_v38  ;;  %24685 = vmatpush3.bf16.msk.msra.mxu1 %vm28386_vm6, %v30930_v48 }
 0x39a   :  { %24694 = vmatprep.subr.msk.bf16.mxu1 %vm28386_vm6, %v30930_v48 }
 0x39b   :  { %23431 = vmatmul.mubr.msk.f32.gmra.mrb[228].mxu1 %vm6249_vm4, %v30635_v0 }
 0x39c   :  { %23421 = vmatmul.mubr.msk.f32.gmra.mrb[228].mxu0 %vm6249_vm4, %v33336_v41  ;;  %23433 = vmatprep.mubr.msk.f32.mxu1 %vm6249_vm4, %v30641_v14 }
 0x39d   :  { %23443 = vmatprep.mubr.msk.f32.mxu0 %vm6249_vm4, %v33337_v58  ;;  %v32479_v58 = vmax.f32 %v31024_v35, 0.0  ;;  %v33348_v35 = vld [vmem:[#allocation153_spill] sm:$0xff] }
 0x39f   :  { %23434 = vmatmul.mubr.msk.f32.gmra.mrb[230].mxu1 %vm6249_vm4, %v30651_v24 }
 0x3a0   :  { %23444 = vmatmul.mubr.msk.f32.vlgmr.msra.gmra.mrb[198].mxu0 %vm6249_vm4, %v29389_v46  ;;  %23436 = vmatprep.mubr.msk.f32.mxu1 %vm6249_vm4, %v30841_v42  ;;  %v33357_v42 = vld [vmem:[#allocation53_spill] sm:$0xff] }
 0x3a1   :  { %23446 = vmatprep.mubr.msk.f32.mxu0 %vm6249_vm4, %v29429_v52  ;;  %24691 = vmatpush3.bf16.msk.msra.mxu0 %vm28386_vm6, %v30930_v48 }
 0x3a2   :  { %24700 = vmatprep.subr.msk.bf16.mxu0 %vm28386_vm6, %v30930_v48 }
 0x3a3   :  { %23437 = vmatmul.mubr.msk.f32.gmra.mrb[232].mxu1 %vm6249_vm4, %v32479_v58  ;;  %v20299_v58 = vld [vmem:[%s32149_s3 + $0x78] sm:$0x3] }
 0x3a4   :  { %23447 = vmatmul.mubr.msk.f32.gmra.mrb[200].mxu0 %vm6249_vm4, %v29418_v31  ;;  %23459 = vmatprep.mubr.msk.f32.mxu1 %vm6249_vm4, %v33342_v12  ;;  %v33346_v12 = vld [vmem:[#allocation46_spill] sm:$0xff] }
 0x3a5   :  { %23449 = vmatprep.mubr.msk.f32.mxu0 %vm6249_vm4, %v29453_v44 }
 0x3a7   :  { %23460 = vmatmul.mubr.msk.f32.vlgmr.msra.gmra.mrb[202].mxu1 %vm6249_vm4, %v33343_v43 }
 0x3a8   :  { %23450 = vmatmul.mubr.msk.f32.gmra.mrb[202].mxu0 %vm6249_vm4, %v29460_v15  ;;  %23462 = vmatprep.mubr.msk.f32.mxu1 %vm6249_vm4, %v29490_v56 }
 0x3a9   :  { %23452 = vmatprep.mubr.msk.f32.mxu0 %vm6249_vm4, %v29486_v61  ;;  %24697 = vmatpush3.bf16.msk.msra.mxu1 %vm28386_vm6, %v30930_v48 }
 0x3aa   :  { %24706 = vmatprep.subr.msk.bf16.mxu1 %vm28386_vm6, %v30930_v48 }
 0x3ab   :  { %23463 = vmatmul.mubr.msk.f32.gmra.mrb[204].mxu1 %vm6249_vm4, %v29495_v54 }
 0x3ac   :  { %23453 = vmatmul.mubr.msk.f32.gmra.mrb[204].mxu0 %vm6249_vm4, %v29484_v23  ;;  %23465 = vmatprep.mubr.msk.f32.mxu1 %vm6249_vm4, %v33211_v22 }
 0x3ad   :  { %23475 = vmatprep.mubr.msk.f32.mxu0 %vm6249_vm4, %v33344_v7  ;;  %v33347_v7 = vld [vmem:[#allocation124_spill] sm:$0xff] }
 0x3af   :  { %23466 = vmatmul.mubr.msk.f32.gmra.mrb[206].mxu1 %vm6249_vm4, %v33215_v63 }
 0x3b0   :  { %23476 = vmatmul.mubr.msk.f32.vlgmr.msra.gmra.mrb[206].mxu0 %vm6249_vm4, %v33345_v26  ;;  %23468 = vmatprep.mubr.msk.f32.mxu1 %vm6249_vm4, %v33217_v13 }
 0x3b1   :  { %23478 = vmatprep.mubr.msk.f32.mxu0 %vm6249_vm4, %v33218_v39  ;;  %24703 = vmatpush3.bf16.msk.msra.mxu0 %vm28386_vm6, %v30930_v48 }
 0x3b2   :  { %24712 = vmatprep.subr.msk.bf16.mxu0 %vm28386_vm6, %v30930_v48 }
 0x3b3   :  { %23469 = vmatmul.mubr.msk.f32.gmra.mrb[208].mxu1 %vm6249_vm4, %v33220_v9 }
 0x3b4   :  { %23479 = vmatmul.mubr.msk.f32.gmra.mrb[208].mxu0 %vm6249_vm4, %v33221_v28  ;;  %23491 = vmatprep.mubr.msk.f32.mxu1 %vm6249_vm4, %v33346_v12  ;;  %v20298_v12 = vld [vmem:[%s32149_s3 + $0x70] sm:$0xff] }
 0x3b5   :  { %23481 = vmatprep.mubr.msk.f32.mxu0 %vm6249_vm4, %v33222_v47  ;;  %v31122_v41 = vpack.c.bf16 %v20299_v58, %v20298_v12  ;;  %v33351_v58 = vld [vmem:[#allocation133_spill] sm:$0xff]  ;;  %v33352_v12 = vld [vmem:[#allocation52_spill] sm:$0xff] }
 0x3b7   :  { %23492 = vmatmul.mubr.msk.f32.vlgmr.msra.gmra.mrb[210].mxu1 %vm6249_vm4, %v33347_v7 }
 0x3b8   :  { %23482 = vmatmul.mubr.msk.f32.gmra.mrb[210].mxu0 %vm6249_vm4, %v33225_v49  ;;  %23494 = vmatprep.mubr.msk.f32.mxu1 %vm6249_vm4, %v33228_v50 }
 0x3b9   :  { %23484 = vmatprep.mubr.msk.f32.mxu0 %vm6249_vm4, %v33227_v20  ;;  %24709 = vmatpush3.bf16.msk.msra.mxu1 %vm28386_vm6, %v30930_v48 }
 0x3ba   :  { %24718 = vmatprep.subr.msk.bf16.mxu1 %vm28386_vm6, %v30930_v48 }
 0x3bb   :  { %23495 = vmatmul.mubr.msk.f32.gmra.mrb[212].mxu1 %vm6249_vm4, %v33231_v33 }
 0x3bc   :  { %23485 = vmatmul.mubr.msk.f32.gmra.mrb[212].mxu0 %vm6249_vm4, %v33230_v4  ;;  %23497 = vmatprep.mubr.msk.f32.mxu1 %vm6249_vm4, %v33232_v11 }
 0x3bd   :  { %23507 = vmatprep.mubr.msk.f32.mxu0 %vm6249_vm4, %v33348_v35  ;;  %v33350_v35 = vld [vmem:[#allocation49_spill] sm:$0xff] }
 0x3bf   :  { %23498 = vmatmul.mubr.msk.f32.gmra.mrb[214].mxu1 %vm6249_vm4, %v33234_v36 }
 0x3c0   :  { %23508 = vmatmul.mubr.msk.f32.vlgmr.msra.gmra.mrb[214].mxu0 %vm6249_vm4, %v33349_v45  ;;  %23500 = vmatprep.mubr.msk.f32.mxu1 %vm6249_vm4, %v33236_v3 }
 0x3c1   :  { %23510 = vmatprep.mubr.msk.f32.mxu0 %vm6249_vm4, %v29729_v40  ;;  %24715 = vmatpush3.bf16.msk.msra.mxu0 %vm28386_vm6, %v30930_v48 }
 0x3c2   :  { %24724 = vmatprep.subr.msk.bf16.mxu0 %vm28386_vm6, %v31122_v41 }
 0x3c3   :  { %23501 = vmatmul.mubr.msk.f32.gmra.mrb[216].mxu1 %vm6249_vm4, %v33238_v29 }
 0x3c4   :  { %23511 = vmatmul.mubr.msk.f32.gmra.mrb[216].mxu0 %vm6249_vm4, %v33239_v5  ;;  %23523 = vmatprep.mubr.msk.f32.mxu1 %vm6249_vm4, %v33350_v35  ;;  %v33353_v35 = vmax.f32 %v33352_v12, 0.0  ;;  %v33358_v12 = vld [vmem:[#allocation105_spill] sm:$0xff] }
 0x3c5   :  { %23513 = vmatprep.mubr.msk.f32.mxu0 %vm6249_vm4, %v33240_v55 }
 0x3c7   :  { %23524 = vmatmul.mubr.msk.f32.vlgmr.msra.gmra.mrb[218].mxu1 %vm6249_vm4, %v33351_v58 }
 0x3c8   :  { %23514 = vmatmul.mubr.msk.f32.gmra.mrb[218].mxu0 %vm6249_vm4, %v33241_v18  ;;  %23526 = vmatprep.mubr.msk.f32.mxu1 %vm6249_vm4, %v33320_v19 }
 0x3c9   :  { %23516 = vmatprep.mubr.msk.f32.mxu0 %vm6249_vm4, %v33319_v10  ;;  %24721 = vmatpush3.bf16.msk.msra.mxu1 %vm28386_vm6, %v30930_v48  ;;  %v31172_v48 = vld [vmem:[%s32148_s2] ss:$0 sm:$0xff] }
 0x3ca   :  { %24730 = vmatprep.subr.msk.bf16.mxu1 %vm28386_vm6, %v31122_v41  ;;  %v7047_v32 = vadd.f32 %v31172_v48, %v33356_v57 }
 0x3cb   :  { %23527 = vmatmul.mubr.msk.f32.gmra.mrb[220].mxu1 %vm6249_vm4, %v33322_v16 }
 0x3cc   :  { %23517 = vmatmul.mubr.msk.f32.gmra.mrb[220].mxu0 %vm6249_vm4, %v33321_v1  ;;  %23529 = vmatprep.mubr.msk.f32.mxu1 %vm6249_vm4, %v29822_v2  ;;  %v7147_v57 = vmax.f32 %v7047_v32, 0.0  ;;  %v33364_v32 = vld [vmem:[#allocation110_spill] sm:$0xff] }
 0x3cd   :  { %23539 = vmatprep.mubr.msk.f32.mxu0 %vm6249_vm4, %v33353_v35  ;;  %v33359_v35 = vld [vmem:[#allocation36_spill] sm:$0xff] }
 0x3ce   :  { %v33360_v38 = vmax.f32 %v33358_v12, %v33359_v35  ;;  %v33365_v12 = vld [vmem:[#allocation41_spill] sm:$0xff] }
 0x3cf   :  { %23530 = vmatmul.mubr.msk.f32.gmra.mrb[222].mxu1 %vm6249_vm4, %v29835_v6 }
 0x3d0   :  { %23540 = vmatmul.mubr.msk.f32.vlgmr.msra.gmra.mrb[222].mxu0 %vm6249_vm4, %v33357_v42  ;;  %23532 = vmatprep.mubr.msk.f32.mxu1 %vm6249_vm4, %v29851_v34  ;;  %v31190_v2 = vadd.f32 %v31172_v48, %v33360_v38  ;;  %v33363_v42 = vmax.f32 %v33361_v51, %v33362_v25  ;;  %v33367_v25 = vld [vmem:[#allocation113_spill] sm:$0xff] }
 0x3d1   :  { %23542 = vmatprep.mubr.msk.f32.mxu0 %vm6249_vm4, %v30595_v37  ;;  %24727 = vmatpush3.bf16.msk.msra.mxu0 %vm28386_vm6, %v31122_v41  ;;  %v33368_v37 = vld [vmem:[#allocation42_spill] sm:$0xff] }
 0x3d2   :  { %v7049_v6 = vadd.f32 %v31172_v48, %v33363_v42  ;;  %24736 = vmatprep.subr.msk.bf16.mxu0 %vm28386_vm6, %v31122_v41  ;;  %v32494_v38 = vmax.f32 %v31190_v2, 0.0  ;;  %v33366_v42 = vmax.f32 %v33364_v32, %v33365_v12  ;;  %v33371_v32 = vld [vmem:[#allocation43_spill] sm:$0xff] }
 0x3d3   :  { %23533 = vmatmul.mubr.msk.f32.gmra.mrb[224].mxu1 %vm6249_vm4, %v29871_v30  ;;  %v33369_v30 = vmax.f32 %v33367_v25, %v33368_v37  ;;  %v33374_v25 = vld [vmem:[#allocation150_spill] sm:$0xff] }
 0x3d4   :  { %23543 = vmatmul.mubr.msk.f32.gmra.mrb[224].mxu0 %vm6249_vm4, %v30609_v17  ;;  %23555 = vmatprep.mubr.msk.f32.mxu1 %vm6249_vm4, %v7147_v57  ;;  %v7050_v35 = vadd.f32 %v31172_v48, %v33366_v42  ;;  %v31214_v51 = vmax.f32 %v7049_v6, 0.0  ;;  %v33370_v57 = vld [vmem:[#allocation112_spill] sm:$0xff]  ;;  %v33373_v42 = vld [vmem:[#allocation114_spill] sm:$0xff] }
 0x3d5   :  { %23545 = vmatprep.mubr.msk.f32.mxu0 %vm6249_vm4, %v30618_v59  ;;  %v7051_v34 = vadd.f32 %v31172_v48, %v33369_v30  ;;  %v33372_v37 = vmax.f32 %v33370_v57, %v33371_v32 }
 0x3d6   :  { %v31229_v6 = vmax.f32 %v7050_v35, 0.0  ;;  %v33376_v35 = vld [vmem:[#allocation6_spill] sm:$0xff] }
 0x3d7   :  { %23556 = vmatmul.mubr.msk.f32.vlgmr.msra.gmra.mrb[226].mxu1 %vm6249_vm4, %v32494_v38  ;;  %v7052_v30 = vadd.f32 %v31172_v48, %v33372_v37  ;;  %v31238_v12 = vmax.f32 %v7051_v34, 0.0  ;;  %v33375_v38 = vmax.f32 %v33373_v42, %v33374_v25  ;;  %v33384_v42 = vld [vmem:[#allocation143_spill] sm:$0xff]  ;;  %v33385_v25 = vld [vmem:[#allocation38_spill] sm:$0xff] }
 0x3d8   :  { %23546 = vmatmul.mubr.msk.f32.gmra.mrb[226].mxu0 %vm6249_vm4, %v30635_v0  ;;  %23558 = vmatprep.mubr.msk.f32.mxu1 %vm6249_vm4, %v31214_v51 }
 0x3d9   :  { %23548 = vmatprep.mubr.msk.f32.mxu0 %vm6249_vm4, %v30641_v14  ;;  %24733 = vmatpush3.bf16.msk.msra.mxu1 %vm28386_vm6, %v31122_v41  ;;  %v7053_v14 = vadd.f32 %v31172_v48, %v33375_v38  ;;  %v31255_v34 = vmax.f32 %v7052_v30, 0.0  ;;  %v33377_v38 = vld [vmem:[#allocation149_spill] sm:$0xff]  ;;  %v33382_v30 = vld [vmem:[#allocation35_spill] sm:$0xff] }
 0x3da   :  { %24742 = vmatprep.subr.msk.bf16.mxu1 %vm28386_vm6, %v31122_v41  ;;  %v33378_v57 = vmax.f32 %v33376_v35, %v33377_v38  ;;  %v33386_v35 = vmax.f32 %v31190_v2, 0.0  ;;  %v33387_v38 = vld [vmem:[#allocation54_spill] sm:$0xff]  ;;  %v33388_v2 = vld [vmem:[#allocation55_spill] sm:$0xff] }
 0x3db   :  { %23559 = vmatmul.mubr.msk.f32.gmra.mrb[228].mxu1 %vm6249_vm4, %v31229_v6  ;;  %v31261_v37 = vmax.f32 %v7053_v14, 0.0  ;;  %v20372_v14 = vld [vmem:[%s32149_s3 + $0x80] sm:$0xff] }
 0x3dc   :  { %23549 = vmatmul.mubr.msk.f32.gmra.mrb[228].mxu0 %vm6249_vm4, %v30651_v24  ;;  %23561 = vmatprep.mubr.msk.f32.mxu1 %vm6249_vm4, %v31238_v12  ;;  %v7054_v32 = vadd.f32 %v31172_v48, %v33378_v57  ;;  %v33389_v57 = vld [vmem:[#allocation115_spill] sm:$0xff] }
 0x3dd   :  { %23571 = vmatprep.mubr.msk.f32.mxu0 %vm6249_vm4, %v29389_v46 }
 0x3de   :  { %v31271_v46 = vmax.f32 %v7054_v32, 0.0  ;;  %v33390_v32 = vld [vmem:[#allocation151_spill] sm:$0xff] }
 0x3df   :  { %23562 = vmatmul.mubr.msk.f32.gmra.mrb[230].mxu1 %vm6249_vm4, %v31255_v34 }
 0x3e0   :  { %23572 = vmatmul.mubr.msk.f32.vlgmr.msra.gmra.mrb[198].mxu0 %vm6249_vm4, %v29429_v52  ;;  %23564 = vmatprep.mubr.msk.f32.mxu1 %vm6249_vm4, %v31261_v37 }
 0x3e1   :  { %23574 = vmatprep.mubr.msk.f32.mxu0 %vm6249_vm4, %v29418_v31  ;;  %24739 = vmatpush3.bf16.msk.msra.mxu0 %vm28386_vm6, %v31122_v41 }
 0x3e2   :  { %24748 = vmatprep.subr.msk.bf16.mxu0 %vm28386_vm6, %v31122_v41 }
 0x3e3   :  { %23565 = vmatmul.mubr.msk.f32.gmra.mrb[232].mxu1 %vm6249_vm4, %v31271_v46 }
 0x3e4   :  { %23575 = vmatmul.mubr.msk.f32.gmra.mrb[200].mxu0 %vm6249_vm4, %v29453_v44  ;;  %23587 = vmatprep.mubr.msk.f32.mxu1 %vm6249_vm4, %v33343_v43  ;;  %v20373_v43 = vld [vmem:[%s32149_s3 + $0x88] sm:$0x3] }
 0x3e5   :  { %23577 = vmatprep.mubr.msk.f32.mxu0 %vm6249_vm4, %v29460_v15 }
 0x3e7   :  { %23588 = vmatmul.mubr.msk.f32.vlgmr.msra.gmra.mrb[202].mxu1 %vm6249_vm4, %v29490_v56 }
 0x3e8   :  { %23578 = vmatmul.mubr.msk.f32.gmra.mrb[202].mxu0 %vm6249_vm4, %v29486_v61  ;;  %23590 = vmatprep.mubr.msk.f32.mxu1 %vm6249_vm4, %v29495_v54 }
 0x3e9   :  { %23580 = vmatprep.mubr.msk.f32.mxu0 %vm6249_vm4, %v29484_v23  ;;  %24745 = vmatpush3.bf16.msk.msra.mxu1 %vm28386_vm6, %v31122_v41 }
 0x3ea   :  { %24754 = vmatprep.subr.msk.bf16.mxu1 %vm28386_vm6, %v31122_v41 }
 0x3eb   :  { %23591 = vmatmul.mubr.msk.f32.gmra.mrb[204].mxu1 %vm6249_vm4, %v33211_v22 }
 0x3ec   :  { %23581 = vmatmul.mubr.msk.f32.gmra.mrb[204].mxu0 %vm6249_vm4, %v33317_v27  ;;  %23593 = vmatprep.mubr.msk.f32.mxu1 %vm6249_vm4, %v33215_v63 }
 0x3ed   :  { %23603 = vmatprep.mubr.msk.f32.mxu0 %vm6249_vm4, %v33345_v26  ;;  %v31359_v26 = vpack.c.bf16 %v20373_v43, %v20372_v14  ;;  %v33391_v14 = vmax.f32 %v33389_v57, %v33390_v32 }
 0x3ef   :  { %23594 = vmatmul.mubr.msk.f32.gmra.mrb[206].mxu1 %vm6249_vm4, %v33217_v13  ;;  %v31454_v43 = vadd.f32 %v31172_v48, %v33391_v14 }
 0x3f0   :  { %23604 = vmatmul.mubr.msk.f32.vlgmr.msra.gmra.mrb[206].mxu0 %vm6249_vm4, %v33218_v39  ;;  %23596 = vmatprep.mubr.msk.f32.mxu1 %vm6249_vm4, %v33220_v9 }
 0x3f1   :  { %23606 = vmatprep.mubr.msk.f32.mxu0 %vm6249_vm4, %v33221_v28  ;;  %24751 = vmatpush3.bf16.msk.msra.mxu0 %vm28386_vm6, %v31122_v41 }
 0x3f2   :  { %24760 = vmatprep.subr.msk.bf16.mxu0 %vm28386_vm6, %v31122_v41 }
 0x3f3   :  { %23597 = vmatmul.mubr.msk.f32.gmra.mrb[208].mxu1 %vm6249_vm4, %v33261_v53 }
 0x3f4   :  { %23607 = vmatmul.mubr.msk.f32.gmra.mrb[208].mxu0 %vm6249_vm4, %v33222_v47  ;;  %23619 = vmatprep.mubr.msk.f32.mxu1 %vm6249_vm4, %v33347_v7  ;;  %v33380_v7 = vld [vmem:[#allocation34_spill] sm:$0xff] }
 0x3f5   :  { %23609 = vmatprep.mubr.msk.f32.mxu0 %vm6249_vm4, %v33225_v49 }
 0x3f7   :  { %23620 = vmatmul.mubr.msk.f32.vlgmr.msra.gmra.mrb[210].mxu1 %vm6249_vm4, %v33228_v50 }
 0x3f8   :  { %23610 = vmatmul.mubr.msk.f32.gmra.mrb[210].mxu0 %vm6249_vm4, %v33227_v20  ;;  %23622 = vmatprep.mubr.msk.f32.mxu1 %vm6249_vm4, %v33231_v33 }
 0x3f9   :  { %23612 = vmatprep.mubr.msk.f32.mxu0 %vm6249_vm4, %v33230_v4  ;;  %24757 = vmatpush3.bf16.msk.msra.mxu1 %vm28386_vm6, %v31122_v41 }
 0x3fa   :  { %24766 = vmatprep.subr.msk.bf16.mxu1 %vm28386_vm6, %v31122_v41 }
 0x3fb   :  { %23623 = vmatmul.mubr.msk.f32.gmra.mrb[212].mxu1 %vm6249_vm4, %v33232_v11 }
 0x3fc   :  { %23613 = vmatmul.mubr.msk.f32.gmra.mrb[212].mxu0 %vm6249_vm4, %v33266_v8  ;;  %23625 = vmatprep.mubr.msk.f32.mxu1 %vm6249_vm4, %v33234_v36 }
 0x3fd   :  { %23635 = vmatprep.mubr.msk.f32.mxu0 %vm6249_vm4, %v33349_v45  ;;  %v33379_v45 = vld [vmem:[#allocation33_spill] sm:$0xff] }
 0x3ff   :  { %23626 = vmatmul.mubr.msk.f32.gmra.mrb[214].mxu1 %vm6249_vm4, %v33236_v3 }
 0x400   :  { %23636 = vmatmul.mubr.msk.f32.vlgmr.msra.gmra.mrb[214].mxu0 %vm6249_vm4, %v29729_v40  ;;  %23628 = vmatprep.mubr.msk.f32.mxu1 %vm6249_vm4, %v33238_v29 }
 0x401   :  { %23638 = vmatprep.mubr.msk.f32.mxu0 %vm6249_vm4, %v33239_v5  ;;  %24763 = vmatpush3.bf16.msk.msra.mxu0 %vm28386_vm6, %v31122_v41 }
 0x402   :  { %24772 = vmatprep.subr.msk.bf16.mxu0 %vm28386_vm6, %v31359_v26 }
 0x403   :  { %23629 = vmatmul.mubr.msk.f32.gmra.mrb[216].mxu1 %vm6249_vm4, %v33271_v62 }
 0x404   :  { %23639 = vmatmul.mubr.msk.f32.gmra.mrb[216].mxu0 %vm6249_vm4, %v33240_v55  ;;  %23651 = vmatprep.mubr.msk.f32.mxu1 %vm6249_vm4, %v33351_v58  ;;  %v33381_v58 = vld [vmem:[#allocation53_spill] sm:$0xff] }
 0x405   :  { %23641 = vmatprep.mubr.msk.f32.mxu0 %vm6249_vm4, %v33241_v18 }
 0x407   :  { %23652 = vmatmul.mubr.msk.f32.vlgmr.msra.gmra.mrb[218].mxu1 %vm6249_vm4, %v33320_v19 }
 0x408   :  { %23642 = vmatmul.mubr.msk.f32.gmra.mrb[218].mxu0 %vm6249_vm4, %v33319_v10  ;;  %23654 = vmatprep.mubr.msk.f32.mxu1 %vm6249_vm4, %v33322_v16 }
 0x409   :  { %23644 = vmatprep.mubr.msk.f32.mxu0 %vm6249_vm4, %v33321_v1  ;;  %24769 = vmatpush3.bf16.msk.msra.mxu1 %vm28386_vm6, %v31122_v41  ;;  %v33383_v41 = vld [vmem:[#allocation57_spill] sm:$0xff] }
 0x40a   :  { %24778 = vmatprep.subr.msk.bf16.mxu1 %vm28386_vm6, %v31359_v26 }
 0x40b   :  { %23655 = vmatmul.mubr.msk.f32.gmra.mrb[220].mxu1 %vm6249_vm4, %v33379_v45 }
 0x40c   :  { %23645 = vmatmul.mubr.msk.f32.gmra.mrb[220].mxu0 %vm6249_vm4, %v33323_v60  ;;  %23657 = vmatprep.mubr.msk.f32.mxu1 %vm6249_vm4, %v33380_v7 }
 0x40d   :  { %23667 = vmatprep.mubr.msk.f32.mxu0 %vm6249_vm4, %v33381_v58 }
 0x40f   :  { %23658 = vmatmul.mubr.msk.f32.gmra.mrb[222].mxu1 %vm6249_vm4, %v33382_v30 }
 0x410   :  { %23668 = vmatmul.mubr.msk.f32.vlgmr.msra.gmra.mrb[222].mxu0 %vm6249_vm4, %v33383_v41  ;;  %23660 = vmatprep.mubr.msk.f32.mxu1 %vm6249_vm4, %v33384_v42 }
 0x411   :  { %23670 = vmatprep.mubr.msk.f32.mxu0 %vm6249_vm4, %v30609_v17  ;;  %24775 = vmatpush3.bf16.msk.msra.mxu0 %vm28386_vm6, %v31359_v26 }
 0x412   :  { %24784 = vmatprep.subr.msk.bf16.mxu0 %vm28386_vm6, %v31359_v26 }
 0x413   :  { %23661 = vmatmul.mubr.msk.f32.gmra.mrb[224].mxu1 %vm6249_vm4, %v33385_v25 }
 0x414   :  { %23671 = vmatmul.mubr.msk.f32.gmra.mrb[224].mxu0 %vm6249_vm4, %v30618_v59  ;;  %23683 = vmatprep.mubr.msk.f32.mxu1 %vm6249_vm4, %v33386_v35 }
 0x415   :  { %23673 = vmatprep.mubr.msk.f32.mxu0 %vm6249_vm4, %v30635_v0 }
 0x417   :  { %23684 = vmatmul.mubr.msk.f32.vlgmr.msra.gmra.mrb[226].mxu1 %vm6249_vm4, %v31214_v51 }
 0x418   :  { %23674 = vmatmul.mubr.msk.f32.gmra.mrb[226].mxu0 %vm6249_vm4, %v33387_v38  ;;  %23686 = vmatprep.mubr.msk.f32.mxu1 %vm6249_vm4, %v31229_v6 }
 0x419   :  { %23676 = vmatprep.mubr.msk.f32.mxu0 %vm6249_vm4, %v30651_v24  ;;  %24781 = vmatpush3.bf16.msk.msra.mxu1 %vm28386_vm6, %v31359_v26 }
 0x41a   :  { %24790 = vmatprep.subr.msk.bf16.mxu1 %vm28386_vm6, %v31359_v26 }
 0x41b   :  { %23687 = vmatmul.mubr.msk.f32.gmra.mrb[228].mxu1 %vm6249_vm4, %v31238_v12 }
 0x41c   :  { %23677 = vmatmul.mubr.msk.f32.gmra.mrb[228].mxu0 %vm6249_vm4, %v33388_v2  ;;  %23689 = vmatprep.mubr.msk.f32.mxu1 %vm6249_vm4, %v31255_v34 }
 0x41d   :  { %23699 = vmatprep.mubr.msk.f32.mxu0 %vm6249_vm4, %v29429_v52  ;;  %v7155_v52 = vmax.f32 %v31454_v43, 0.0 }
 0x41f   :  { %23690 = vmatmul.mubr.msk.f32.gmra.mrb[230].mxu1 %vm6249_vm4, %v31261_v37 }
 0x420   :  { %23700 = vmatmul.mubr.msk.f32.vlgmr.msra.gmra.mrb[198].mxu0 %vm6249_vm4, %v29418_v31  ;;  %23692 = vmatprep.mubr.msk.f32.mxu1 %vm6249_vm4, %v31271_v46  ;;  %v33392_v31 = vld [vmem:[#allocation48_spill] sm:$0xff] }
 0x421   :  { %23702 = vmatprep.mubr.msk.f32.mxu0 %vm6249_vm4, %v29453_v44  ;;  %24787 = vmatpush3.bf16.msk.msra.mxu0 %vm28386_vm6, %v31359_v26  ;;  %v33394_v44 = vld [vmem:[#allocation50_spill] sm:$0xff] }
 0x422   :  { %24796 = vmatprep.subr.msk.bf16.mxu0 %vm28386_vm6, %v31359_v26 }
 0x423   :  { %23693 = vmatmul.mubr.msk.f32.gmra.mrb[232].mxu1 %vm6249_vm4, %v7155_v52 }
 0x424   :  { %23703 = vmatmul.mubr.msk.f32.gmra.mrb[200].mxu0 %vm6249_vm4, %v29460_v15  ;;  %23715 = vmatprep.mubr.msk.f32.mxu1 %vm6249_vm4, %v29490_v56  ;;  %v33395_v15 = vld [vmem:[#allocation157_spill] sm:$0xff] }
 0x425   :  { %23705 = vmatprep.mubr.msk.f32.mxu0 %vm6249_vm4, %v29486_v61  ;;  %v33398_v61 = vld [vmem:[#allocation56_spill] sm:$0xff] }
 0x426   :  { %v33399_v56 = vmax.f32 %v33398_v61, 0.0 }
 0x427   :  { %23716 = vmatmul.mubr.msk.f32.vlgmr.msra.gmra.mrb[202].mxu1 %vm6249_vm4, %v29495_v54  ;;  %v33400_v54 = vld [vmem:[#allocation9_spill] sm:$0xff] }
 0x428   :  { %23706 = vmatmul.mubr.msk.f32.gmra.mrb[202].mxu0 %vm6249_vm4, %v29484_v23  ;;  %23718 = vmatprep.mubr.msk.f32.mxu1 %vm6249_vm4, %v33211_v22  ;;  %v33396_v23 = vld [vmem:[#allocation51_spill] sm:$0xff]  ;;  %v25593_v22 = vmov 0.0  }
 0x429   :  { %23708 = vmatprep.mubr.msk.f32.mxu0 %vm6249_vm4, %v33317_v27  ;;  %24793 = vmatpush3.bf16.msk.msra.mxu1 %vm28386_vm6, %v31359_v26 }
 0x42a   :  { %24802 = vmatprep.subr.msk.bf16.mxu1 %vm28386_vm6, %v31359_v26 }
 0x42b   :  { %23719 = vmatmul.mubr.msk.f32.gmra.mrb[204].mxu1 %vm6249_vm4, %v33215_v63  ;;  %v25591_v63 = vmov 0.0|0.0  }
 0x42c   :  { %23709 = vmatmul.mubr.msk.f32.gmra.mrb[204].mxu0 %vm6249_vm4, %v33392_v31  ;;  %23721 = vmatprep.mubr.msk.f32.mxu1 %vm6249_vm4, %v33217_v13  ;;  %v18274_v13 = vld [vmem:[%s32153_s7] sm:$0x7f] }
 0x42d   :  { %23731 = vmatprep.mubr.msk.f32.mxu0 %vm6249_vm4, %v33218_v39  ;;  %v33393_v39 = vld [vmem:[#allocation155_spill] sm:$0xff] }
 0x42f   :  { %23722 = vmatmul.mubr.msk.f32.gmra.mrb[206].mxu1 %vm6249_vm4, %v33220_v9 }
 0x430   :  { %23732 = vmatmul.mubr.msk.f32.vlgmr.msra.gmra.mrb[206].mxu0 %vm6249_vm4, %v33221_v28  ;;  %23724 = vmatprep.mubr.msk.f32.mxu1 %vm6249_vm4, %v33261_v53 }
 0x431   :  { %23734 = vmatprep.mubr.msk.f32.mxu0 %vm6249_vm4, %v33222_v47  ;;  %24799 = vmatpush3.bf16.msk.msra.mxu0 %vm28386_vm6, %v31359_v26 }
 0x432   :  { %24808 = vmatprep.subr.msk.bf16.mxu0 %vm28386_vm6, %v31359_v26 }
 0x433   :  { %23725 = vmatmul.mubr.msk.f32.gmra.mrb[208].mxu1 %vm6249_vm4, %v33393_v39 }
 0x434   :  { %23735 = vmatmul.mubr.msk.f32.gmra.mrb[208].mxu0 %vm6249_vm4, %v33225_v49  ;;  %23747 = vmatprep.mubr.msk.f32.mxu1 %vm6249_vm4, %v33228_v50 }
 0x435   :  { %23737 = vmatprep.mubr.msk.f32.mxu0 %vm6249_vm4, %v33227_v20  ;;  %v20448_v20 = vld [vmem:[%s32151_s5 + $0x18] sm:$0x7f] }
 0x437   :  { %23748 = vmatmul.mubr.msk.f32.vlgmr.msra.gmra.mrb[210].mxu1 %vm6249_vm4, %v33231_v33 }
 0x438   :  { %23738 = vmatmul.mubr.msk.f32.gmra.mrb[210].mxu0 %vm6249_vm4, %v33230_v4  ;;  %23750 = vmatprep.mubr.msk.f32.mxu1 %vm6249_vm4, %v33232_v11 }
 0x439   :  { %23740 = vmatprep.mubr.msk.f32.mxu0 %vm6249_vm4, %v33266_v8  ;;  %24805 = vmatpush3.bf16.msk.msra.mxu1 %vm28386_vm6, %v31359_v26 }
 0x43a   :  { %24814 = vmatprep.subr.msk.bf16.mxu1 %vm28386_vm6, %v31359_v26 }
 0x43b   :  { %23751 = vmatmul.mubr.msk.f32.gmra.mrb[212].mxu1 %vm6249_vm4, %v33234_v36 }
 0x43c   :  { %23741 = vmatmul.mubr.msk.f32.gmra.mrb[212].mxu0 %vm6249_vm4, %v33394_v44  ;;  %23753 = vmatprep.mubr.msk.f32.mxu1 %vm6249_vm4, %v33236_v3  ;;  %v20447_v3 = vld [vmem:[%s32151_s5 + $0x10] sm:$0xff] }
 0x43d   :  { %23763 = vmatprep.mubr.msk.f32.mxu0 %vm6249_vm4, %v29729_v40  ;;  %v33401_v40 = vld [vmem:[#allocation44_spill] sm:$0xff]  ;;  %v24819_v50 = vpack.c.bf16 %v20448_v20, %v20447_v3 }
 0x43e   :  { %v33402_v49 = vmax.f32 %v33400_v54, %v33401_v40  ;;  %v15606_v54 = vld [vmem:[%s32151_s5] sm:$0xff]  ;;  %v15607_v40 = vld [vmem:[%s32151_s5 + $0x8] sm:$0x7f] }
 0x43f   :  { %23754 = vmatmul.mubr.msk.f32.gmra.mrb[214].mxu1 %vm6249_vm4, %v33238_v29 }
 0x440   :  { %23764 = vmatmul.mubr.msk.f32.vlgmr.msra.gmra.mrb[214].mxu0 %vm6249_vm4, %v33239_v5  ;;  %23756 = vmatprep.mubr.msk.f32.mxu1 %vm6249_vm4, %v33271_v62  ;;  %v7056_v36 = vadd.f32 %v31172_v48, %v33402_v49 }
 0x441   :  { %23766 = vmatprep.mubr.msk.f32.mxu0 %vm6249_vm4, %v33240_v55  ;;  %24811 = vmatpush3.bf16.msk.msra.mxu0 %vm28386_vm6, %v31359_v26 }
 0x442   :  { %24818 = vmatprep.subr.bf16.mxu0 %v25591_v63 }
 0x443   :  { %23757 = vmatmul.mubr.msk.f32.gmra.mrb[216].mxu1 %vm6249_vm4, %v33395_v15 }
 0x444   :  { %23767 = vmatmul.mubr.msk.f32.gmra.mrb[216].mxu0 %vm6249_vm4, %v33241_v18  ;;  %23779 = vmatprep.mubr.msk.f32.mxu1 %vm6249_vm4, %v33320_v19  ;;  %v7156_v18 = vmax.f32 %v7056_v36, 0.0 }
 0x445   :  { %23769 = vmatprep.mubr.msk.f32.mxu0 %vm6249_vm4, %v33319_v10 }
 0x447   :  { %23780 = vmatmul.mubr.msk.f32.vlgmr.msra.gmra.mrb[218].mxu1 %vm6249_vm4, %v33322_v16  ;;  %v31652_v16 = vld [vmem:[%s32150_s4] ss:$0 sm:$0xff] }
 0x448   :  { %23770 = vmatmul.mubr.msk.f32.gmra.mrb[218].mxu0 %vm6249_vm4, %v33321_v1  ;;  %23782 = vmatprep.mubr.msk.f32.mxu1 %vm6249_vm4, %v33379_v45 }
 0x449   :  { %23772 = vmatprep.mubr.msk.f32.mxu0 %vm6249_vm4, %v33323_v60  ;;  %24817 = vmatpush3.bf16.msk.msra.mxu1 %vm28386_vm6, %v31359_v26 }
 0x44a   :  { %24822 = vmatprep.subr.bf16.mxu1 %v25591_v63 }
 0x44b   :  { %23783 = vmatmul.mubr.msk.f32.gmra.mrb[220].mxu1 %vm6249_vm4, %v33380_v7 }
 0x44c   :  { %23773 = vmatmul.mubr.msk.f32.gmra.mrb[220].mxu0 %vm6249_vm4, %v33396_v23  ;;  %23785 = vmatprep.mubr.msk.f32.mxu1 %vm6249_vm4, %v33382_v30 }
 0x44d   :  { %23795 = vmatprep.mubr.msk.f32.mxu0 %vm6249_vm4, %v33383_v41 }
 0x44f   :  { %23786 = vmatmul.mubr.msk.f32.gmra.mrb[222].mxu1 %vm6249_vm4, %v33384_v42 }
 0x450   :  { %23796 = vmatmul.mubr.msk.f32.vlgmr.msra.gmra.mrb[222].mxu0 %vm6249_vm4, %v30609_v17  ;;  %23788 = vmatprep.mubr.msk.f32.mxu1 %vm6249_vm4, %v33385_v25 }
 0x451   :  { %23798 = vmatprep.mubr.msk.f32.mxu0 %vm6249_vm4, %v30618_v59  ;;  %24821 = vmatpush3.bf16.msk.msra.mxu0 %vm31634_vm8, %v24819_v50 }
 0x452   :  { %24826 = vmatprep.subr.bf16.mxu0 %v25591_v63 }
 0x453   :  { %23789 = vmatmul.mubr.msk.f32.gmra.mrb[224].mxu1 %vm6249_vm4, %v33397_v21 }
 0x454   :  { %23799 = vmatmul.mubr.msk.f32.gmra.mrb[224].mxu0 %vm6249_vm4, %v30635_v0  ;;  %23811 = vmatprep.mubr.msk.f32.mxu1 %vm6249_vm4, %v31214_v51 }
 0x455   :  { %23801 = vmatprep.mubr.msk.f32.mxu0 %vm6249_vm4, %v33387_v38 }
 0x457   :  { %23812 = vmatmul.mubr.msk.f32.vlgmr.msra.gmra.mrb[226].mxu1 %vm6249_vm4, %v31229_v6 }
 0x458   :  { %23802 = vmatmul.mubr.msk.f32.gmra.mrb[226].mxu0 %vm6249_vm4, %v30651_v24  ;;  %23814 = vmatprep.mubr.msk.f32.mxu1 %vm6249_vm4, %v31238_v12 }
 0x459   :  { %23804 = vmatprep.mubr.msk.f32.mxu0 %vm6249_vm4, %v33388_v2  ;;  %24825 = vmatpush3.bf16.msk.msra.mxu1 %vm31634_vm8, %v24819_v50 }
 0x45a   :  { %24830 = vmatprep.subr.bf16.mxu1 %v25591_v63 }
 0x45b   :  { %23815 = vmatmul.mubr.msk.f32.gmra.mrb[228].mxu1 %vm6249_vm4, %v31255_v34 }
 0x45c   :  { %23805 = vmatmul.mubr.msk.f32.gmra.mrb[228].mxu0 %vm6249_vm4, %v33399_v56  ;;  %23817 = vmatprep.mubr.msk.f32.mxu1 %vm6249_vm4, %v31261_v37 }
 0x45d   :  { %23827 = vmatprep.mubr.msk.f32.mxu0 %vm25592_vm9, %v25593_v22 }
 0x45f   :  { %23818 = vmatmul.mubr.msk.f32.gmra.mrb[230].mxu1 %vm6249_vm4, %v31271_v46 }
 0x460   :  { %23820 = vmatprep.mubr.msk.f32.mxu1 %vm6249_vm4, %v7155_v52 }
 0x463   :  { %23821 = vmatmul.mubr.msk.f32.gmra.mrb[232].mxu1 %vm6249_vm4, %v7156_v18 }
 0x464   :  { %23834 = vmatprep.mubr.msk.f32.mxu1 %vm25592_vm9, %v25593_v22 }
 0x4f3   :  { %v23701_v9 = vpop.f32.mrb[198].mxu0 }
 0x4f4   :  { %v14678_v28 = vpop.f32.mrb[199].mxu0 }
 0x4f7   :  { %v23704_v47 = vpop.f32.mrb[200].mxu0 }
 0x4f8   :  { %v14688_v4 = vpop.f32.mrb[201].mxu0 }
 0x4fa   :  { %v23717_v11 = vpop.f32.mrb[202].mxu1 }
 0x4fb   :  { %v23707_v33 = vpop.f32.mrb[202].mxu0  ;;  %v15520_v29 = vmax.f32 %v23701_v9, %v23717_v11  ;;  %v14783_v55 = vpop.f32.mrb[203].mxu1 }
 0x4fc   :  { %v14698_v5 = vpop.f32.mrb[203].mxu0  ;;  %v15519_v53 = vmax.f32 %v14678_v28, %v14783_v55 }
 0x4fe   :  { %v15551_v8 = vmax.f32 %v15519_v53, %v15520_v29  ;;  %v23720_v17 = vpop.f32.mrb[204].mxu1 }
 0x4ff   :  { %v23710_v62 = vpop.f32.mrb[204].mxu0  ;;  %v15522_v59 = vmax.f32 %v23704_v47, %v23720_v17  ;;  %v14793_v24 = vpop.f32.mrb[205].mxu1 }
 0x500   :  { %v14708_v0 = vpop.f32.mrb[205].mxu0  ;;  %v15521_v27 = vmax.f32 %v14688_v4, %v14793_v24  ;;  %v15562_v9 = vadd.f32 %v31652_v16, %v15551_v8  ;;  %v20465_v8 = vld [vmem:[%s32151_s5 + $0x20] sm:$0xff] }
 0x502   :  { %v15570_v10 = vmax.f32 %v15521_v27, %v15522_v59  ;;  %v23723_v19 = vpop.f32.mrb[206].mxu1 }
 0x503   :  { %v23733_v1 = vpop.f32.mrb[206].mxu0  ;;  %v15524_v60 = vmax.f32 %v23707_v33, %v23723_v19  ;;  %v14803_v48 = vpop.f32.mrb[207].mxu1 }
 0x504   :  { %v14888_v51 = vpop.f32.mrb[207].mxu0  ;;  %v31655_v6 = vadd.f32 %v31652_v16, %v15570_v10  ;;  %v15523_v12 = vmax.f32 %v14698_v5, %v14803_v48  ;;  %v20466_v10 = vld [vmem:[%s32151_s5 + $0x28] sm:$0x7f] }
 0x506   :  { %v15578_v34 = vmax.f32 %v31655_v6, 0.0  ;;  %v15582_v37 = vmax.f32 %v15523_v12, %v15524_v60  ;;  %v23726_v46 = vpop.f32.mrb[208].mxu1  ;;  %v20475_v6 = vld [vmem:[%s32151_s5 + $0x30] sm:$0xff] }
 0x507   :  { %v23736_v26 = vpop.f32.mrb[208].mxu0  ;;  %v15526_v45 = vmax.f32 %v23710_v62, %v23726_v46  ;;  %v14813_v7 = vpop.f32.mrb[209].mxu1  ;;  %v15566_v62 = vmax.f32 %v15562_v9, 0.0 }
 0x508   :  { %v14898_v58 = vpop.f32.mrb[209].mxu0  ;;  %v31659_v30 = vadd.f32 %v31652_v16, %v15582_v37  ;;  %v15525_v41 = vmax.f32 %v14708_v0, %v14813_v7  ;;  %23828 = vmatmul.mubr.msk.f32.vlgmr.msra.gmra.mrb[230].mxu0 %vm15611_vm10, %v15578_v34 }
 0x509   :  { %24829 = vmatpush3.bf16.msk.msra.mxu0 %vm31634_vm8, %v24819_v50  ;;  %23841 = vmatprep.mubr.msk.f32.mxu0 %vm25592_vm9, %v25593_v22 }
 0x50a   :  { %v15590_v42 = vmax.f32 %v31659_v30, 0.0  ;;  %v31669_v25 = vmax.f32 %v15525_v41, %v15526_v45  ;;  %v23749_v38 = vpop.f32.mrb[210].mxu1  ;;  %24834 = vmatprep.subr.bf16.mxu0 %v25591_v63 }
 0x50b   :  { %v23739_v35 = vpop.f32.mrb[210].mxu0  ;;  %v15528_v2 = vmax.f32 %v23733_v1, %v23749_v38  ;;  %v14993_v32 = vpop.f32.mrb[211].mxu1 }
 0x50c   :  { %v14908_v57 = vpop.f32.mrb[211].mxu0  ;;  %v15527_v14 = vmax.f32 %v14888_v51, %v14993_v32  ;;  %23835 = vmatmul.mubr.msk.f32.vlgmr.msra.gmra.mrb[234].mxu1 %vm15611_vm10, %v15590_v42  ;;  %v24851_v51 = vpack.c.bf16 %v20466_v10, %v20465_v8 }
 0x50d   :  { %24833 = vmatpush3.bf16.msk.msra.mxu1 %vm31634_vm8, %v24819_v50  ;;  %23848 = vmatprep.mubr.msk.f32.mxu1 %vm25592_vm9, %v25593_v22  ;;  %v24835_v50 = vpack.c.bf16 %v15607_v40, %v15606_v54 }
 0x50e   :  { %v15552_v43 = vmax.f32 %v15527_v14, %v15528_v2  ;;  %v23752_v31 = vpop.f32.mrb[212].mxu1  ;;  %24838 = vmatprep.subr.bf16.mxu1 %v25591_v63 }
 0x50f   :  { %v23742_v52 = vpop.f32.mrb[212].mxu0  ;;  %v15530_v39 = vmax.f32 %v23736_v26, %v23752_v31  ;;  %v15003_v15 = vpop.f32.mrb[213].mxu1 }
 0x510   :  { %v14918_v44 = vpop.f32.mrb[213].mxu0  ;;  %v15529_v23 = vmax.f32 %v14898_v58, %v15003_v15  ;;  %v31701_v17 = vadd.f32 %v31652_v16, %v15552_v43 }
 0x512   :  { %v15571_v21 = vmax.f32 %v15529_v23, %v15530_v39  ;;  %v23755_v61 = vpop.f32.mrb[214].mxu1  ;;  %v15567_v12 = vmax.f32 %v31701_v17, 0.0 }
 0x513   :  { %v23765_v56 = vpop.f32.mrb[214].mxu0  ;;  %v15532_v49 = vmax.f32 %v23739_v35, %v23755_v61  ;;  %v15013_v36 = vpop.f32.mrb[215].mxu1  ;;  %v15598_v35 = vadd.f32 %v31652_v16, %v31669_v25 }
 0x514   :  { %v15098_v18 = vpop.f32.mrb[215].mxu0  ;;  %v15575_v3 = vadd.f32 %v31652_v16, %v15571_v21  ;;  %v15531_v20 = vmax.f32 %v14908_v57, %v15013_v36 }
 0x515   :  { %v15602_v31 = vmax.f32 %v15598_v35, 0.0 }
 0x516   :  { %v31688_v28 = vmax.f32 %v15575_v3, 0.0  ;;  %v15583_v47 = vmax.f32 %v15531_v20, %v15532_v49  ;;  %v23758_v4 = vpop.f32.mrb[216].mxu1  ;;  %v20486_v3 = vld [vmem:[%s32151_s5 + $0x48] sm:$0x7f] }
 0x517   :  { %v23768_v33 = vpop.f32.mrb[216].mxu0  ;;  %v15534_v11 = vmax.f32 %v23742_v52, %v23758_v4  ;;  %v15023_v29 = vpop.f32.mrb[217].mxu1 }
 0x518   :  { %v15108_v5 = vpop.f32.mrb[217].mxu0  ;;  %v15587_v55 = vadd.f32 %v31652_v16, %v15583_v47  ;;  %v15533_v53 = vmax.f32 %v14918_v44, %v15023_v29  ;;  %23842 = vmatmul.mubr.msk.f32.vlgmr.msra.gmra.mrb[232].mxu0 %vm15611_vm10, %v31688_v28 }
 0x519   :  { %24837 = vmatpush3.bf16.msk.msra.mxu0 %vm31634_vm8, %v24835_v50  ;;  %23855 = vmatprep.mubr.msk.f32.mxu0 %vm25592_vm9, %v25593_v22 }
 0x51a   :  { %v31703_v59 = vmax.f32 %v15587_v55, 0.0  ;;  %v15595_v0 = vmax.f32 %v15533_v53, %v15534_v11  ;;  %v23781_v27 = vpop.f32.mrb[218].mxu1  ;;  %24842 = vmatprep.subr.bf16.mxu0 %v25591_v63 }
 0x51b   :  { %v23771_v24 = vpop.f32.mrb[218].mxu0  ;;  %v15536_v19 = vmax.f32 %v23765_v56, %v23781_v27  ;;  %v15203_v60 = vpop.f32.mrb[219].mxu1 }
 0x51c   :  { %v15118_v1 = vpop.f32.mrb[219].mxu0  ;;  %v15535_v48 = vmax.f32 %v15098_v18, %v15203_v60  ;;  %23849 = vmatmul.mubr.msk.f32.vlgmr.msra.gmra.mrb[236].mxu1 %vm15611_vm10, %v31703_v59  ;;  %23856 = vmatmul.mubr.msk.f32.vlgmr.msra.gmra.mrb[230].mxu0 %vm15611_vm10, %v15566_v62  ;;  %v31757_v39 = vadd.f32 %v31652_v16, %v15595_v0  ;;  %v20485_v18 = vld [vmem:[%s32151_s5 + $0x40] sm:$0xff] }
 0x51d   :  { %24841 = vmatpush3.bf16.msk.msra.mxu1 %vm31634_vm8, %v24835_v50  ;;  %24845 = vmatpush3.bf16.msk.msra.mxu0 %vm31634_vm8, %v24835_v50  ;;  %v24883_v4 = vpack.c.bf16 %v20486_v3, %v20485_v18 }
 0x51e   :  { %v15553_v37 = vmax.f32 %v15535_v48, %v15536_v19  ;;  %v23784_v26 = vpop.f32.mrb[220].mxu1  ;;  %23862 = vmatprep.mubr.msk.f32.mxu1 %vm25592_vm9, %v25593_v22  ;;  %23869 = vmatprep.mubr.msk.f32.mxu0 %vm25592_vm9, %v25593_v22  ;;  %v15603_v56 = vmax.f32 %v31757_v39, 0.0  ;;  %v20495_v19 = vld [vmem:[%s32151_s5 + $0x50] sm:$0xff]  ;;  %v20526_v39 = vld [vmem:[%s32151_s5 + $0x88] sm:$0x7f] }
 0x51f   :  { %v23774_v46 = vpop.f32.mrb[220].mxu0  ;;  %v15538_v45 = vmax.f32 %v23768_v33, %v23784_v26  ;;  %v15213_v58 = vpop.f32.mrb[221].mxu1  ;;  %24846 = vmatprep.subr.bf16.mxu1 %v25591_v63  ;;  %24850 = vmatprep.subr.bf16.mxu0 %v25591_v63 }
 0x520   :  { %v15128_v7 = vpop.f32.mrb[221].mxu0  ;;  %v15537_v41 = vmax.f32 %v15108_v5, %v15213_v58  ;;  %23863 = vmatmul.mubr.msk.f32.vlgmr.msra.gmra.mrb[234].mxu1 %vm15611_vm10, %v15578_v34  ;;  %23870 = vmatmul.mubr.msk.f32.vlgmr.msra.gmra.mrb[232].mxu0 %vm15611_vm10, %v15567_v12  ;;  %v20476_v34 = vld [vmem:[%s32151_s5 + $0x38] sm:$0x7f]  ;;  %v31776_v54 = vadd.f32 %v31652_v16, %v15553_v37 }
 0x521   :  { %24849 = vmatpush3.bf16.msk.msra.mxu1 %vm31634_vm8, %v24835_v50  ;;  %24853 = vmatpush3.bf16.msk.msra.mxu0 %vm31634_vm8, %v24851_v51  ;;  %v24867_v52 = vpack.c.bf16 %v20476_v34, %v20475_v6 }
 0x522   :  { %v15572_v38 = vmax.f32 %v15537_v41, %v15538_v45  ;;  %v23787_v2 = vpop.f32.mrb[222].mxu1  ;;  %23876 = vmatprep.mubr.msk.f32.mxu1 %vm25592_vm9, %v25593_v22  ;;  %23883 = vmatprep.mubr.msk.f32.mxu0 %vm25592_vm9, %v25593_v22  ;;  %v15568_v33 = vmax.f32 %v31776_v54, 0.0 }
 0x523   :  { %v23797_v57 = vpop.f32.mrb[222].mxu0  ;;  %v15540_v32 = vmax.f32 %v23771_v24, %v23787_v2  ;;  %v15223_v14 = vpop.f32.mrb[223].mxu1  ;;  %24854 = vmatprep.subr.bf16.mxu1 %v25591_v63  ;;  %24858 = vmatprep.subr.bf16.mxu0 %v25591_v63  ;;  %v20505_v2 = vld [vmem:[%s32151_s5 + $0x60] sm:$0xff] }
 0x524   :  { %v15308_v25 = vpop.f32.mrb[223].mxu0  ;;  %v15539_v43 = vmax.f32 %v15118_v1, %v15223_v14  ;;  %23877 = vmatmul.mubr.msk.f32.vlgmr.msra.gmra.mrb[236].mxu1 %vm15611_vm10, %v31688_v28  ;;  %23884 = vmatmul.mubr.msk.f32.vlgmr.msra.gmra.mrb[230].mxu0 %vm15611_vm10, %v15590_v42  ;;  %v15576_v11 = vadd.f32 %v31652_v16, %v15572_v38  ;;  %v20496_v1 = vld [vmem:[%s32151_s5 + $0x58] sm:$0x7f] }
 0x525   :  { %24857 = vmatpush3.bf16.msk.msra.mxu1 %vm31634_vm8, %v24851_v51  ;;  %24861 = vmatpush3.bf16.msk.msra.mxu0 %vm31634_vm8, %v24851_v51  ;;  %v24899_v37 = vpack.c.bf16 %v20496_v1, %v20495_v19  ;;  %v20516_v14 = vld [vmem:[%s32151_s5 + $0x78] sm:$0x7f]  ;;  %v20559_v1 = vld [vmem:[%s32153_s7 + $0x40] sm:$0x7f] }
 0x526   :  { %v31759_v44 = vmax.f32 %v15539_v43, %v15540_v32  ;;  %v23790_v15 = vpop.f32.mrb[224].mxu1  ;;  %23890 = vmatprep.mubr.msk.f32.mxu1 %vm25592_vm9, %v25593_v22  ;;  %23897 = vmatprep.mubr.msk.f32.mxu0 %vm25592_vm9, %v25593_v22  ;;  %v31822_v24 = vmax.f32 %v15576_v11, 0.0 }
 0x527   :  { %v23800_v23 = vpop.f32.mrb[224].mxu0  ;;  %v15542_v30 = vmax.f32 %v23774_v46, %v23790_v15  ;;  %v15233_v42 = vpop.f32.mrb[225].mxu1  ;;  %24862 = vmatprep.subr.bf16.mxu1 %v25591_v63  ;;  %24866 = vmatprep.subr.bf16.mxu0 %v25591_v63 }
 0x528   :  { %v15318_v21 = vpop.f32.mrb[225].mxu0  ;;  %v15541_v61 = vmax.f32 %v15128_v7, %v15233_v42  ;;  %23891 = vmatmul.mubr.msk.f32.vlgmr.msra.gmra.mrb[234].mxu1 %vm15611_vm10, %v15602_v31  ;;  %23898 = vmatmul.mubr.msk.f32.vlgmr.msra.gmra.mrb[232].mxu0 %vm15611_vm10, %v31703_v59  ;;  %v15588_v46 = vadd.f32 %v31652_v16, %v31759_v44  ;;  %v20525_v31 = vld [vmem:[%s32151_s5 + $0x80] sm:$0xff] }
 0x529   :  { %24865 = vmatpush3.bf16.msk.msra.mxu1 %vm31634_vm8, %v24851_v51  ;;  %24869 = vmatpush3.bf16.msk.msra.mxu0 %vm31634_vm8, %v24867_v52  ;;  %v24947_v44 = vpack.c.bf16 %v20526_v39, %v20525_v31 }
 0x52a   :  { %v31778_v40 = vmax.f32 %v15541_v61, %v15542_v30  ;;  %v23813_v36 = vpop.f32.mrb[226].mxu1  ;;  %23904 = vmatprep.mubr.msk.f32.mxu1 %vm25592_vm9, %v25593_v22  ;;  %23911 = vmatprep.mubr.msk.f32.mxu0 %vm25592_vm9, %v25593_v22  ;;  %v31866_v35 = vmax.f32 %v15588_v46, 0.0  ;;  %v20539_v30 = vld [vmem:[%s32153_s7 + $0x10] sm:$0x7f] }
 0x52b   :  { %v23803_v49 = vpop.f32.mrb[226].mxu0  ;;  %v15544_v20 = vmax.f32 %v23797_v57, %v23813_v36  ;;  %v15416_v9 = vpop.f32.mrb[227].mxu1  ;;  %24870 = vmatprep.subr.bf16.mxu1 %v25591_v63  ;;  %24874 = vmatprep.subr.bf16.mxu0 %v25591_v63  ;;  %v20506_v57 = vld [vmem:[%s32151_s5 + $0x68] sm:$0x7f] }
 0x52c   :  { %v15328_v50 = vpop.f32.mrb[227].mxu0  ;;  %v15543_v47 = vmax.f32 %v15308_v25, %v15416_v9  ;;  %23905 = vmatmul.mubr.msk.f32.vlgmr.msra.gmra.mrb[236].mxu1 %vm15611_vm10, %v15603_v56  ;;  %23912 = vmatmul.mubr.msk.f32.vlgmr.msra.gmra.mrb[230].mxu0 %vm15611_vm10, %v15567_v12  ;;  %v24915_v34 = vpack.c.bf16 %v20506_v57, %v20505_v2  ;;  %v31893_v32 = vadd.f32 %v31652_v16, %v31778_v40 }
 0x52d   :  { %24873 = vmatpush3.bf16.msk.msra.mxu1 %vm31634_vm8, %v24867_v52  ;;  %24877 = vmatpush3.bf16.msk.msra.mxu0 %vm31634_vm8, %v24867_v52 }
 0x52e   :  { %v15554_v29 = vmax.f32 %v15543_v47, %v15544_v20  ;;  %v23816_v55 = vpop.f32.mrb[228].mxu1  ;;  %23918 = vmatprep.mubr.msk.f32.mxu1 %vm25592_vm9, %v25593_v22  ;;  %23925 = vmatprep.mubr.msk.f32.mxu0 %vm25592_vm9, %v25593_v22 }
 0x52f   :  { %v23806_v5 = vpop.f32.mrb[228].mxu0  ;;  %v15546_v53 = vmax.f32 %v23800_v23, %v23816_v55  ;;  %v15426_v62 = vpop.f32.mrb[229].mxu1  ;;  %24878 = vmatprep.subr.bf16.mxu1 %v25591_v63  ;;  %24882 = vmatprep.subr.bf16.mxu0 %v25591_v63 }
 0x530   :  { %v15338_v8 = vpop.f32.mrb[229].mxu0  ;;  %v31811_v17 = vadd.f32 %v31652_v16, %v15554_v29  ;;  %v15545_v0 = vmax.f32 %v15318_v21, %v15426_v62  ;;  %23919 = vmatmul.mubr.msk.f32.vlgmr.msra.gmra.mrb[234].mxu1 %vm15611_vm10, %v31688_v28  ;;  %23926 = vmatmul.mubr.msk.f32.vlgmr.msra.gmra.mrb[232].mxu0 %vm15611_vm10, %v15568_v33  ;;  %v20544_v62 = vld [vmem:[%s32153_s7 + $0x18] sm:$0x7f] }
 0x531   :  { %24881 = vmatpush3.bf16.msk.msra.mxu1 %vm31634_vm8, %v24867_v52  ;;  %24885 = vmatpush3.bf16.msk.msra.mxu0 %vm31634_vm8, %v24883_v4 }
 0x532   :  { %v15573_v27 = vmax.f32 %v15545_v0, %v15546_v53  ;;  %v23819_v10 = vpop.f32.mrb[230].mxu1  ;;  %23932 = vmatprep.mubr.msk.f32.mxu1 %vm25592_vm9, %v25593_v22  ;;  %23939 = vmatprep.mubr.msk.f32.mxu0 %vm25592_vm9, %v25593_v22  ;;  %v15569_v43 = vmax.f32 %v31811_v17, 0.0  ;;  %v20538_v53 = vld [vmem:[%s32153_s7 + $0x8] sm:$0x7f]  ;;  %v20554_v0 = vld [vmem:[%s32153_s7 + $0x38] sm:$0x7f] }
 0x533   :  { %v15548_v60 = vmax.f32 %v23803_v49, %v23819_v10  ;;  %v15436_v48 = vpop.f32.mrb[231].mxu1  ;;  %24886 = vmatprep.subr.bf16.mxu1 %v25591_v63  ;;  %24890 = vmatprep.subr.bf16.mxu0 %v25591_v63  ;;  %v20550_v17 = vld [vmem:[%s32153_s7 + $0x28] sm:$0x7f]  ;;  %v20553_v10 = vld [vmem:[%s32153_s7 + $0x30] sm:$0x7f] }
 0x534   :  { %v31837_v51 = vadd.f32 %v31652_v16, %v15573_v27  ;;  %v15547_v12 = vmax.f32 %v15328_v50, %v15436_v48  ;;  %23933 = vmatmul.mubr.msk.f32.vlgmr.msra.gmra.mrb[236].mxu1 %vm15611_vm10, %v31822_v24  ;;  %23940 = vmatmul.mubr.msk.f32.vlgmr.msra.gmra.mrb[230].mxu0 %vm15611_vm10, %v31688_v28  ;;  %v19142_v48 = vld [vmem:[%s32154_s8] sm:$0x1f] }
 0x535   :  { %24889 = vmatpush3.bf16.msk.msra.mxu1 %vm31634_vm8, %v24883_v4  ;;  %24893 = vmatpush3.bf16.msk.msra.mxu0 %vm31634_vm8, %v24883_v4 }
 0x536   :  { %v15585_v26 = vmax.f32 %v15547_v12, %v15548_v60  ;;  %v23822_v45 = vpop.f32.mrb[232].mxu1  ;;  %23946 = vmatprep.mubr.msk.f32.mxu1 %vm25592_vm9, %v25593_v22  ;;  %23953 = vmatprep.mubr.msk.f32.mxu0 %vm25592_vm9, %v25593_v22  ;;  %v15581_v52 = vmax.f32 %v31837_v51, 0.0  ;;  %v20565_v60 = vld [vmem:[%s32153_s7 + $0x50] sm:$0x7f]  ;;  %v19228_v51 = vld [vmem:[%s32156_s10] sm:$0xff]  ;;  %v19229_v12 = vld [vmem:[%s32156_s10 + $0x8] sm:$0xff] }
 0x537   :  { %v15550_v7 = vmax.f32 %v23806_v5, %v23822_v45  ;;  %v15446_v28 = vpop.f32.mrb[233].mxu1  ;;  %24894 = vmatprep.subr.bf16.mxu1 %v25591_v63  ;;  %24898 = vmatprep.subr.bf16.mxu0 %v25591_v63  ;;  %v20545_v5 = vld [vmem:[%s32153_s7 + $0x20] sm:$0x7f] }
 0x538   :  { %v31856_v58 = vadd.f32 %v31652_v16, %v15585_v26  ;;  %v15549_v41 = vmax.f32 %v15338_v8, %v15446_v28  ;;  %23947 = vmatmul.mubr.msk.f32.vlgmr.msra.gmra.mrb[234].mxu1 %vm15611_vm10, %v31703_v59  ;;  %23954 = vmatmul.mubr.msk.f32.vlgmr.msra.gmra.mrb[232].mxu0 %vm15611_vm10, %v31822_v24 }
 0x539   :  { %24897 = vmatpush3.bf16.msk.msra.mxu1 %vm31634_vm8, %v24883_v4  ;;  %24901 = vmatpush3.bf16.msk.msra.mxu0 %vm31634_vm8, %v24899_v37  ;;  %v20535_v4 = vld [vmem:[%s32152_s6] ss:$0 sm:$0xff] }
 0x53a   :  { %v15597_v38 = vmax.f32 %v15549_v41, %v15550_v7  ;;  %23960 = vmatprep.mubr.msk.f32.mxu1 %vm25592_vm9, %v25593_v22  ;;  %23967 = vmatprep.mubr.msk.f32.mxu0 %vm25592_vm9, %v25593_v22  ;;  %v15593_v15 = vmax.f32 %v31856_v58, 0.0 }
 0x53b   :  { %24902 = vmatprep.subr.bf16.mxu1 %v25591_v63  ;;  %24906 = vmatprep.subr.bf16.mxu0 %v25591_v63 }
 0x53c   :  { %v31881_v6 = vadd.f32 %v31652_v16, %v15597_v38  ;;  %23961 = vmatmul.mubr.msk.f32.vlgmr.msra.gmra.mrb[236].mxu1 %vm15611_vm10, %v31866_v35  ;;  %23968 = vmatmul.mubr.msk.f32.vlgmr.msra.gmra.mrb[230].mxu0 %vm15611_vm10, %v31703_v59  ;;  %v15604_v16 = vmax.f32 %v31893_v32, 0.0  ;;  %v20515_v59 = vld [vmem:[%s32151_s5 + $0x70] sm:$0xff] }
 0x53d   :  { %24905 = vmatpush3.bf16.msk.msra.mxu1 %vm31634_vm8, %v24899_v37  ;;  %24909 = vmatpush3.bf16.msk.msra.mxu0 %vm31634_vm8, %v24899_v37  ;;  %v24931_v25 = vpack.c.bf16 %v20516_v14, %v20515_v59 }
 0x53e   :  { %23974 = vmatprep.mubr.msk.f32.mxu1 %vm25592_vm9, %v25593_v22  ;;  %23981 = vmatprep.mubr.msk.f32.mxu0 %vm25592_vm9, %v25593_v22  ;;  %v15605_v23 = vmax.f32 %v31881_v6, 0.0 }
 0x53f   :  { %24910 = vmatprep.subr.bf16.mxu1 %v25591_v63  ;;  %24914 = vmatprep.subr.bf16.mxu0 %v25591_v63 }
 0x540   :  { %23975 = vmatmul.mubr.msk.f32.vlgmr.msra.gmra.mrb[234].mxu1 %vm15611_vm10, %v15603_v56  ;;  %23982 = vmatmul.mubr.msk.f32.vlgmr.msra.gmra.mrb[232].mxu0 %vm15611_vm10, %v31866_v35 }
 0x541   :  { %24913 = vmatpush3.bf16.msk.msra.mxu1 %vm31634_vm8, %v24899_v37  ;;  %24917 = vmatpush3.bf16.msk.msra.mxu0 %vm31634_vm8, %v24915_v34  ;;  %v24963_v37 = vpack.c.bf16 %v19229_v12, %v19228_v51 }
 0x542   :  { %23988 = vmatprep.mubr.msk.f32.mxu1 %vm25592_vm9, %v25593_v22  ;;  %23995 = vmatprep.mubr.msk.f32.mxu0 %vm25592_vm9, %v25593_v22 }
 0x543   :  { %24918 = vmatprep.subr.bf16.mxu1 %v25591_v63  ;;  %24922 = vmatprep.subr.bf16.mxu0 %v25591_v63 }
 0x544   :  { %23989 = vmatmul.mubr.msk.f32.vlgmr.msra.gmra.mrb[236].mxu1 %vm15611_vm10, %v15604_v16  ;;  %23996 = vmatmul.mubr.msk.f32.vlgmr.msra.gmra.mrb[230].mxu0 %vm15611_vm10, %v15568_v33 }
 0x545   :  { %24921 = vmatpush3.bf16.msk.msra.mxu1 %vm31634_vm8, %v24915_v34  ;;  %24925 = vmatpush3.bf16.msk.msra.mxu0 %vm31634_vm8, %v24915_v34 }
 0x546   :  { %24002 = vmatprep.mubr.msk.f32.mxu1 %vm25592_vm9, %v25593_v22  ;;  %24009 = vmatprep.mubr.msk.f32.mxu0 %vm25592_vm9, %v25593_v22 }
 0x547   :  { %24926 = vmatprep.subr.bf16.mxu1 %v25591_v63  ;;  %24930 = vmatprep.subr.bf16.mxu0 %v25591_v63 }
 0x548   :  { %24003 = vmatmul.mubr.msk.f32.vlgmr.msra.gmra.mrb[234].mxu1 %vm15611_vm10, %v31822_v24  ;;  %24010 = vmatmul.mubr.msk.f32.vlgmr.msra.gmra.mrb[232].mxu0 %vm15611_vm10, %v15569_v43 }
 0x549   :  { %24929 = vmatpush3.bf16.msk.msra.mxu1 %vm31634_vm8, %v24915_v34  ;;  %24933 = vmatpush3.bf16.msk.msra.mxu0 %vm31634_vm8, %v24931_v25 }
 0x54a   :  { %24016 = vmatprep.mubr.msk.f32.mxu1 %vm25592_vm9, %v25593_v22  ;;  %24023 = vmatprep.mubr.msk.f32.mxu0 %vm25592_vm9, %v25593_v22 }
 0x54b   :  { %24934 = vmatprep.subr.bf16.mxu1 %v25591_v63  ;;  %24938 = vmatprep.subr.bf16.mxu0 %v25591_v63 }
 0x54c   :  { %24017 = vmatmul.mubr.msk.f32.vlgmr.msra.gmra.mrb[236].mxu1 %vm15611_vm10, %v15581_v52  ;;  %24024 = vmatmul.mubr.msk.f32.vlgmr.msra.gmra.mrb[230].mxu0 %vm15611_vm10, %v31822_v24  ;;  %v20560_v24 = vld [vmem:[%s32153_s7 + $0x48] sm:$0x7f] }
 0x54d   :  { %24937 = vmatpush3.bf16.msk.msra.mxu1 %vm31634_vm8, %v24931_v25  ;;  %24941 = vmatpush3.bf16.msk.msra.mxu0 %vm31634_vm8, %v24931_v25 }
 0x54e   :  { %24030 = vmatprep.mubr.msk.f32.mxu1 %vm25592_vm9, %v25593_v22  ;;  %24037 = vmatprep.mubr.msk.f32.mxu0 %vm25592_vm9, %v25593_v22 }
 0x54f   :  { %24942 = vmatprep.subr.bf16.mxu1 %v25591_v63  ;;  %24946 = vmatprep.subr.bf16.mxu0 %v25591_v63 }
 0x550   :  { %24031 = vmatmul.mubr.msk.f32.vlgmr.msra.gmra.mrb[234].mxu1 %vm15611_vm10, %v31866_v35  ;;  %24038 = vmatmul.mubr.msk.f32.vlgmr.msra.gmra.mrb[232].mxu0 %vm15611_vm10, %v15581_v52 }
 0x551   :  { %24945 = vmatpush3.bf16.msk.msra.mxu1 %vm31634_vm8, %v24931_v25  ;;  %24949 = vmatpush3.bf16.msk.msra.mxu0 %vm31634_vm8, %v24947_v44 }
 0x552   :  { %24044 = vmatprep.mubr.msk.f32.mxu1 %vm25592_vm9, %v25593_v22  ;;  %24051 = vmatprep.mubr.msk.f32.mxu0 %vm25592_vm9, %v25593_v22 }
 0x553   :  { %24950 = vmatprep.subr.bf16.mxu1 %v25591_v63  ;;  %24954 = vmatprep.subr.bf16.mxu0 %v25591_v63 }
 0x554   :  { %24045 = vmatmul.mubr.msk.f32.vlgmr.msra.gmra.mrb[236].mxu1 %vm15611_vm10, %v15593_v15  ;;  %24052 = vmatmul.mubr.msk.f32.vlgmr.msra.gmra.mrb[230].mxu0 %vm15611_vm10, %v31866_v35 }
 0x555   :  { %24953 = vmatpush3.bf16.msk.msra.mxu1 %vm31634_vm8, %v24947_v44  ;;  %24957 = vmatpush3.bf16.msk.msra.mxu0 %vm31634_vm8, %v24947_v44 }
 0x556   :  { %24058 = vmatprep.mubr.msk.f32.mxu1 %vm25592_vm9, %v25593_v22  ;;  %24065 = vmatprep.mubr.msk.f32.mxu0 %vm25592_vm9, %v25593_v22 }
 0x557   :  { %24958 = vmatprep.subr.bf16.mxu1 %v25591_v63  ;;  %24075 = vmatprep.subr.mxu0 %v25593_v22 }
 0x558   :  { %24059 = vmatmul.mubr.msk.f32.vlgmr.msra.gmra.mrb[234].mxu1 %vm15611_vm10, %v15604_v16  ;;  %24066 = vmatmul.mubr.msk.f32.vlgmr.msra.gmra.mrb[232].mxu0 %vm15611_vm10, %v15593_v15 }
 0x559   :  { %24961 = vmatpush3.bf16.msk.msra.mxu1 %vm31634_vm8, %v24947_v44  ;;  %24072 = vmatprep.mubr.msk.f32.mxu1 %vm25592_vm9, %v25593_v22 }
 0x55a   :  { %24077 = vmatprep.mubr.msk.f32.mxu0 %vm25592_vm9, %v25593_v22  ;;  %24080 = vmatprep.subr.mxu1 %v25593_v22 }
 0x55b   :  { %24076 = vmatpush3.msk.msra.mxu0 %vm15615_vm7, %v18274_v13  ;;  %v19230_v13 = vld [vmem:[%s32156_s10 + $0x10] sm:$0xff] }
 0x55c   :  { %24073 = vmatmul.mubr.msk.f32.vlgmr.msra.gmra.mrb[236].mxu1 %vm15611_vm10, %v15605_v23  ;;  %24090 = vmatprep.subr.mxu0 %v25593_v22 }
 0x55d   :  { %24082 = vmatprep.mubr.msk.f32.mxu1 %vm25592_vm9, %v25593_v22  ;;  %24081 = vmatpush3.msk.msra.mxu1 %vm15615_vm7, %v20539_v30  ;;  %v19231_v30 = vld [vmem:[%s32156_s10 + $0x18] sm:$0x3f] }
 0x55e   :  { %24085 = vmatprep.subr.mxu1 %v25593_v22 }
 0x627   :  { %v18036_v42 = vpop.f32.mrb[230].mxu0 }
 0x628   :  { %v24053_v21 = vpop.f32.mrb[231].mxu0  ;;  %v18258_v54 = vsel %vm18257_vm11, %v18036_v42, -inf  ;;  %v24966_v42 = vpack.c.bf16 %v19231_v30, %v19230_v13 }
 0x629   :  { %v20568_v21 = vld [vmem:[%s32155_s9] ss:$0 sm:$0xff]  ;;  %s25594_s9 = smov [#allocation2]  }
 0x62a   :  { %s19333_s10 = sshll.u32 %s25594_s9, 4  ;;  %s19334_s10 = int_to_ptr.vmem [resolvable:$true] %s19333_s10 }
 0x62b   :  { %v18106_v61 = vpop.f32.mrb[234].mxu1  ;;  %v18176_v56 = vpop.f32.mrb[232].mxu0  ;;  %p25571_p1 = scmp.lt.s32.totalorder %s19334_s10, %s19334_s10 }
 0x62c   :  { %v18259_v40 = vsel %vm18257_vm11, %v18106_v61, -inf  ;;  %v24060_v49 = vpop.f32.mrb[235].mxu1  ;;  %v24067_v36 = vpop.f32.mrb[233].mxu0  ;;  %v18260_v20 = vsel %vm18257_vm11, %v18176_v56, -inf }
 0x62d   :  { %v18262_v18 = vmax.f32 %v18258_v54, %v18259_v40  ;;  %v20571_v49 = vld [vmem:[%s32157_s11] ss:$0 sm:$0xff]  ;;  %s25566_s11 = scalar_lea.vmem %s19334_s10, 128 }
 0x62e   :  { %p25567_p0 = scmp.ne.s32.totalorder %s19334_s10, %s25566_s11  ;;  %p25572_p2 = scmp.lt.s32.totalorder %s25566_s11, %s25566_s11 }
 0x62f   :  { %v18249_v3 = vpop.f32.mrb[236].mxu1 }
 0x630   :  { %v18261_v50 = vsel %vm18257_vm11, %v18249_v3, -inf  ;;  %v24074_v9 = vpop.f32.mrb[237].mxu1  ;;  %p25573_p3 = por %p25572_p2, %p25571_p1 }
 0x631   :  { %v18263_v47 = vmax.f32 %v18260_v20, %v18261_v50 }
 0x632   :  { %p25574_p4 = pnand %p25573_p3, %p25567_p0 }
 0x633   :  { %v18264_v33 = vmax.f32 %v18262_v18, %v18263_v47 }
 0x635   :  { %v18272_v11 = vadd.f32 %v20535_v4, %v18264_v33 }
 0x637   :  { %v18273_v29 = vmax.f32 %v18272_v11, 0.0 }
 0x639   :  { %24078 = vmatmul.mubr.msk.f32.vlgmr.msra.gmra.mrb[234].mxu0 %vm18257_vm11, %v18273_v29  ;;  %v18355_v55 = vrot.slane %v18273_v29, 1  ;;  %v18508_v8 = vrot.slane %v18273_v29, 2  ;;  %v18736_v27 = vrot.slane %v18273_v29, 3  ;;  %v18889_v19 = vrot.slane %v18273_v29, 4 }
 0x63a   :  { %24091 = vmatpush3.msk.msra.mxu0 %vm15615_vm7, %v20545_v5  ;;  %24092 = vmatprep.mubr.msk.f32.mxu0 %vm25592_vm9, %v25593_v22 }
 0x63b   :  { %24083 = vmatmul.mubr.msk.f32.vlgmr.msra.gmra.mrb[238].mxu1 %vm18257_vm11, %v18355_v55  ;;  %24095 = vmatprep.subr.mxu0 %v25593_v22 }
 0x63c   :  { %24086 = vmatpush3.msk.msra.mxu1 %vm15615_vm7, %v20538_v53  ;;  %24087 = vmatprep.mubr.msk.f32.mxu1 %vm25592_vm9, %v25593_v22 }
 0x63d   :  { %24093 = vmatmul.mubr.msk.f32.vlgmr.msra.gmra.mrb[236].mxu0 %vm18257_vm11, %v18508_v8  ;;  %24100 = vmatprep.subr.mxu1 %v25593_v22 }
 0x63e   :  { %24096 = vmatpush3.msk.msra.mxu0 %vm15615_vm7, %v20544_v62  ;;  %24097 = vmatprep.mubr.msk.f32.mxu0 %vm25592_vm9, %v25593_v22 }
 0x63f   :  { %24105 = vmatprep.subr.mxu0 %v25593_v22 }
 0x643   :  { %24088 = vmatmul.mubr.msk.f32.vlgmr.msra.gmra.mrb[238].mxu1 %vm18257_vm11, %v18273_v29 }
 0x644   :  { %24101 = vmatpush3.msk.msra.mxu1 %vm15615_vm7, %v20550_v17  ;;  %24102 = vmatprep.mubr.msk.f32.mxu1 %vm25592_vm9, %v25593_v22 }
 0x645   :  { %24098 = vmatmul.mubr.msk.f32.vlgmr.msra.gmra.mrb[236].mxu0 %vm18257_vm11, %v18355_v55  ;;  %24115 = vmatprep.subr.mxu1 %v25593_v22 }
 0x646   :  { %24106 = vmatpush3.msk.msra.mxu0 %vm15615_vm7, %v20554_v0  ;;  %24107 = vmatprep.mubr.msk.f32.mxu0 %vm25592_vm9, %v25593_v22 }
 0x647   :  { %24103 = vmatmul.mubr.msk.f32.vlgmr.msra.gmra.mrb[240].mxu1 %vm18257_vm11, %v18508_v8  ;;  %24110 = vmatprep.subr.mxu0 %v25593_v22 }
 0x648   :  { %24116 = vmatpush3.msk.msra.mxu1 %vm15615_vm7, %v20560_v24  ;;  %24117 = vmatprep.mubr.msk.f32.mxu1 %vm25592_vm9, %v25593_v22 }
 0x649   :  { %24108 = vmatmul.mubr.msk.f32.vlgmr.msra.gmra.mrb[238].mxu0 %vm18257_vm11, %v18736_v27  ;;  %24120 = vmatprep.subr.mxu1 %v25593_v22 }
 0x64a   :  { %24111 = vmatpush3.msk.msra.mxu0 %vm15615_vm7, %v20553_v10  ;;  %24112 = vmatprep.mubr.msk.f32.mxu0 %vm25592_vm9, %v25593_v22 }
 0x64b   :  { %24118 = vmatmul.mubr.msk.f32.vlgmr.msra.gmra.mrb[242].mxu1 %vm18257_vm11, %v18889_v19  ;;  %24125 = vmatprep.subr.mxu0 %v25593_v22 }
 0x64c   :  { %24121 = vmatpush3.msk.msra.mxu1 %vm15615_vm7, %v20559_v1  ;;  %24122 = vmatprep.mubr.msk.f32.mxu1 %vm25592_vm9, %v25593_v22 }
 0x64d   :  { %24130 = vmatprep.subr.mxu1 %v25593_v22 }
 0x651   :  { %24113 = vmatmul.mubr.msk.f32.vlgmr.msra.gmra.mrb[238].mxu0 %vm18257_vm11, %v18508_v8 }
 0x652   :  { %24126 = vmatpush3.msk.msra.mxu0 %vm15615_vm7, %v20565_v60  ;;  %24127 = vmatprep.mubr.msk.f32.mxu0 %vm25592_vm9, %v25593_v22 }
 0x653   :  { %24123 = vmatmul.mubr.msk.f32.vlgmr.msra.gmra.mrb[242].mxu1 %vm18257_vm11, %v18736_v27  ;;  %24962 = vmatprep.subr.bf16.mxu0 %v25591_v63 }
 0x654   :  { %24132 = vmatprep.mubr.msk.f32.mxu1 %vm25592_vm9, %v25593_v22  ;;  %24131 = vmatpush3.msk.msra.mxu1 %vm19137_vm12, %v19142_v48 }
 0x655   :  { %24128 = vmatmul.mubr.msk.f32.vlgmr.msra.gmra.mrb[240].mxu0 %vm18257_vm11, %v18889_v19 }
 0x656   :  { %24143 = vmatprep.mubr.msk.f32.mxu0 %vm25592_vm9, %v25593_v22  ;;  %24964 = vmatpush3.bf16.msra.mxu0 %v24963_v37 }
 0x657   :  { %24965 = vmatprep.subr.bf16.mxu0 %v25591_v63 }
 0x65a   :  { %24968 = vmatpush3.bf16.msk.msra.mxu0 %vm24967_vm2, %v24966_v42 }
 0x70c   :  { %v18347_v22 = vpop.f32.mrb[234].mxu0 }
 0x70d   :  { %v24079_v46 = vpop.f32.mrb[235].mxu0 }
 0x716   :  { %v18500_v26 = vpop.f32.mrb[238].mxu1 }
 0x717   :  { %v19114_v45 = vrot.slane %v18500_v26, 7  ;;  %v24089_v7 = vpop.f32.mrb[239].mxu1 }
 0x718   :  { %v18653_v28 = vpop.f32.mrb[236].mxu0 }
 0x719   :  { %v19131_v58 = vsel %vm475_vm0, %v18347_v22, %v19114_v45  ;;  %v19117_v41 = vrot.slane %v18653_v28, 6  ;;  %v24099_v35 = vpop.f32.mrb[237].mxu0  ;;  %vm19150_vm0 = vcmask 39936  }
 0x71a   :  { %v18728_v38 = vpop.f32.mrb[240].mxu1 }
 0x71b   :  { %v19132_v2 = vsel %vm7186_vm5, %v19131_v58, %v19117_v41  ;;  %v19120_v57 = vrot.slane %v18728_v38, 5  ;;  %v24104_v6 = vpop.f32.mrb[241].mxu1 }
 0x71d   :  { %v19134_v34 = vsel %vm19133_vm13, %v19132_v2, %v19120_v57 }
 0x724   :  { %v18881_v32 = vpop.f32.mrb[238].mxu0 }
 0x725   :  { %v19123_v63 = vrot.slane %v18881_v32, 4  ;;  %v24114_v16 = vpop.f32.mrb[239].mxu0 }
 0x726   :  { %v19034_v59 = vpop.f32.mrb[242].mxu1 }
 0x727   :  { %v19136_v14 = vsel %vm19135_vm14, %v19134_v34, %v19123_v63  ;;  %v19126_v25 = vrot.slane %v19034_v59, 3  ;;  %v24124_v43 = vpop.f32.mrb[243].mxu1 }
 0x728   :  { %v19109_v52 = vpop.f32.mrb[240].mxu0 }
 0x729   :  { %v19138_v31 = vsel %vm19137_vm12, %v19136_v14, %v19126_v25  ;;  %v19129_v39 = vrot.slane %v19109_v52, 2  ;;  %v24129_v44 = vpop.f32.mrb[241].mxu0 }
 0x72b   :  { %v19140_v15 = vsel %vm19139_vm15, %v19138_v31, %v19129_v39 }
 0x72c   :  { %v19141_v23 = vsel %vm15615_vm7, %v19140_v15, 0.0 }
 0x72d   :  { %24133 = vmatmul.mubr.msk.f32.vlgmr.msra.gmra.mrb[244].mxu1 %vm19150_vm0, %v19141_v23 }
 0x800   :  { %v19223_v61 = vpop.f32.mrb[244].mxu1 }
 0x801   :  { %v19224_v56 = vadd.f32 %v20568_v21, %v19223_v61  ;;  %v24134_v54 = vpop.f32.mrb[245].mxu1 }
 0x803   :  { %v19227_v40 = vmax.f32 %v19224_v56, 0.0 }
 0x805   :  { %24144 = vmatmul.mubr.msk.f32.vlgmr.msra.gmra.mrb[242].mxu0 %vm19239_vm3, %v19227_v40 }
 0x8d8   :  { %v19312_v36 = vpop.f32.mrb[242].mxu0 }
 0x8d9   :  { %v19313_v18 = vadd.f32 %v20571_v49, %v19312_v36  ;;  %v24145_v3 = vpop.f32.mrb[243].mxu0 }
 0x8db   :  { %19316 = vmax.xlane.f32.xlu0 %v19313_v18 }
 0x968   :  { %v19317_v20 = vpop.xlane.xlu0 %19316 }
 0x969   :  { %v19318_v50 = vsub.f32 %v19313_v18, %v19317_v20 }
 0x96b   :  { %v19319_v9 = vmul.f32 1.442695, %v19318_v50 }
 0x96d   :  { %25560 = vpow2.f32 %v19319_v9 }
 0x977   :  { %v25561_v47 = vpop.eup %25560 }
 0x978   :  { %19321 = vadd.xlane.f32.xlu0 %v25561_v47 }
 0xa05   :  { %v19322_v4 = vpop.xlane.xlu0 %19321 }
 0xa06   :  { %25562 = vlog2.f32 %v19322_v4 }
 0xa10   :  { %v25563_v33 = vpop.eup %25562 }
 0xa11   :  { %v19324_v11 = vmul.f32 0.6931472, %v25563_v33 }
 0xa13   :  { %v19325_v29 = vsub.f32 %v19318_v50, %v19324_v11 }
 0xa15   :  { %19326 = vst [vmem:[#allocation2] sm:$0xff] %v19325_v29 }
 0xa16   :  { %25577 = shalt.err (!%p25574_p4)
}
 0xa17   :  { %s25578_s29 = scalar_lea.hbm %s32158_s12, 128 }
 0xa18   :  { %p25579_p5 = scmp.ne.s32.totalorder %s32158_s12, %s25578_s29  ;;  %p25582_p6 = scmp.lt.u32.totalorder %s25578_s29, %s32158_s12 }
 0xa1a   :  { %p25584_p7 = pnand %p25582_p6, %p25579_p5 }
 0xa1c   :  { %25587 = shalt.err (!%p25584_p7)
}
 0xa1d   :  { %19336 = dma.vmem_to_hbm [thread:$0]  %s19334_s10, 128, %s32158_s12, [#allocation3]  }
 0xa1e   :  { %25588 = dma.done.wait [#allocation3], 128  }
 0xa1f   :  { %25589 = vsyncadd [#allocation3], 4294967168 }
 0xa20   :  { %19340 = vsyncpa [#allocation3], 1 }

</bundles_post_ra>
